<compile_context>
chip_gen: v5e
topology: v5e:2x2
jax: 0.10.0
libtpu: 0.0.40
codegen_flags: <defaults>
</compile_context>

<pallas_src>
import functools

import jax
import jax.numpy as jnp
from jax.experimental import pallas as pl
from jax.experimental.pallas import tpu as pltpu

LEAKY_SLOPE = 0.01   # nn.LeakyReLU default negative_slope
BN_EPS = 1e-5        # nn.BatchNorm2d default eps


def _round_up(x, m):
    return (x + m - 1) // m * m


def _flat_geom(H, W):
    """Geometry of the padded / flattened per-image layout."""
    Wp = W + 2
    F = (-Wp) % 8
    if F == 0:
        F = 8                       # need F >= 1 for the kh=0,kw=0 tap at F-1
    B = 8                           # back pad (>= 1 needed for the last tap row)
    Lx = F + (H + 2) * Wp + B       # flat rows per image
    M = H * Wp                      # interior (output) rows
    head = F + Wp                   # flat row of padded pixel (1, 0); 8-aligned
    return Wp, F, B, Lx, M, head


# ---------------------------------------------------------------------------
# Fused Pallas kernel: conv1 + BN1 + LReLU -> conv2 + residual + BN2 + LReLU
# ---------------------------------------------------------------------------
def _fused_residual_block_kernel(xf_ref, mask_ref, w1_ref, w2_ref,
                                 sh1_ref, sc2_ref, sh2_ref,
                                 o_ref, h1_ref, *, H, W, F):
    # Flat layout (per image): padded pixel (prow, pcol) lives at flat row
    # F + prow*Wp + pcol, prow in [0, H+2), pcol in [0, Wp), Wp = W + 2.
    # The interior rows are q = head + j, j in [0, H*Wp): pixel rows 1..H over
    # ALL Wp columns; columns 0 and Wp-1 are the spatial zero padding ("junk"
    # columns) and are forced to zero so the output layout stays chainable.
    Wp = W + 2
    M = H * Wp
    Cp = o_ref.shape[-1]            # channels, padded to a multiple of 128
    L = o_ref.shape[0]
    head = F + Wp
    halo = Wp + 1                   # h1 halo rows conv2 actually reads per side

    # conv2 reads h1 rows [F-1, head) and [head+M, head+M+halo): zero them.
    # Unconditional on purpose (see header note about megacore-sharded grids).
    h1_ref[pl.ds(F - 1, halo), :] = jnp.zeros((halo, Cp), h1_ref.dtype)
    h1_ref[pl.ds(head + M, halo), :] = jnp.zeros((halo, Cp), h1_ref.dtype)

    # ---- conv1 (BN1 scale folded into w1), accumulator seeded with BN1 shift ----
    acc1 = jnp.broadcast_to(sh1_ref[...], (M, Cp))
    for kh in range(3):
        for kw in range(3):
            s = F + kh * Wp + kw - 1                      # static flat offset
            acc1 = acc1 + jnp.dot(xf_ref[pl.ds(s, M), :], w1_ref[kh * 3 + kw],
                                  preferred_element_type=jnp.float32)
    y1 = jnp.maximum(acc1, LEAKY_SLOPE * acc1)            # LeakyReLU
    # Junk columns -> 0 so they act as conv2's zero padding.
    h1_ref[pl.ds(head, M), :] = (y1 * mask_ref[...]).astype(h1_ref.dtype)

    # ---- conv2, accumulator seeded with the residual, + BN2 + LeakyReLU ----
    # TODO(synk): the residual is the bf16 copy of x (PyTorch adds f32 x); pass
    # an f32 residual view if tighter than bf16 skip-connection fidelity is needed.
    acc2 = xf_ref[pl.ds(head, M), :].astype(jnp.float32)
    for kh in range(3):
        for kw in range(3):
            s = F + kh * Wp + kw - 1
            acc2 = acc2 + jnp.dot(h1_ref[pl.ds(s, M), :], w2_ref[kh * 3 + kw],
                                  preferred_element_type=jnp.float32)
    y2 = acc2 * sc2_ref[...] + sh2_ref[...]
    y2 = jnp.maximum(y2, LEAKY_SLOPE * y2)

    # Output written in the SAME padded flat layout as the input (zero halos,
    # zero junk columns) so the next layer consumes it directly.
    o_ref[pl.ds(0, head), :] = jnp.zeros((head, Cp), o_ref.dtype)
    o_ref[pl.ds(head + M, L - head - M), :] = jnp.zeros((L - head - M, Cp), o_ref.dtype)
    o_ref[pl.ds(head, M), :] = (y2 * mask_ref[...]).astype(o_ref.dtype)
    # Dropout2d(p=0.1) is identity in eval mode.


# ---------------------------------------------------------------------------
# Parameter / activation packing (plain JAX; done once per layer or per edge)
# ---------------------------------------------------------------------------
def _fold_bn(gamma, beta, mean, var):
    scale = gamma / jnp.sqrt(var + BN_EPS)
    return scale, beta - mean * scale


def pack_params(w1, w2, bn1, bn2):
    """Fold BN stats, pad channels to a multiple of 128, lay out 9 conv taps."""
    Co, C = int(w1.shape[0]), int(w1.shape[1])
    assert Co == C, "downsample=None requires in_channels == out_channels"
    Cp = _round_up(C, 128)
    s1, b1 = _fold_bn(*bn1)
    s2, b2 = _fold_bn(*bn2)

    def taps(w_oihw, col_scale):
        wt = jnp.transpose(w_oihw.astype(jnp.float32), (2, 3, 1, 0))  # (3,3,Ci,Co)
        if col_scale is not None:
            wt = wt * col_scale[None, None, None, :]
        wt = jnp.pad(wt, ((0, 0), (0, 0), (0, Cp - C), (0, Cp - Co)))
        return wt.reshape(9, Cp, Cp).astype(jnp.bfloat16)

    def vec(v):
        return jnp.pad(v, (0, Cp - Co)).reshape(1, Cp).astype(jnp.float32)

    return dict(w1=taps(w1, s1),        # BN1 scale folded into conv1 weights
                w2=taps(w2, None),      # BN2 scale applied after the residual
                shift1=vec(b1), scale2=vec(s2), shift2=vec(b2))


def pack_input(x_nchw):
    """NCHW f32 -> padded, spatially flattened NHWC bf16 of shape (N, Lx, Cp)."""
    N, C, H, W = x_nchw.shape
    Cp = _round_up(C, 128)
    Wp, F, B, Lx, M, head = _flat_geom(H, W)
    x_nhwc = jnp.transpose(x_nchw, (0, 2, 3, 1)).astype(jnp.float32)
    xpad = jnp.pad(x_nhwc, ((0, 0), (1, 1), (1, 1), (0, Cp - C)))
    xf = jnp.pad(xpad.reshape(N, (H + 2) * Wp, Cp), ((0, 0), (F, B), (0, 0)))
    return xf.astype(jnp.bfloat16)


def unpack_output(out_flat, C, H, W):
    """Padded flat bf16 (N, Lx, Cp) -> NCHW f32 (N, C, H, W)."""
    N, Lx, Cp = out_flat.shape
    Wp, F, B, Lx_chk, M, head = _flat_geom(H, W)
    out = out_flat[:, head:head + M, :].reshape(N, H, Wp, Cp)[:, :, 1:W + 1, :C]
    return jnp.transpose(out, (0, 3, 1, 2)).astype(jnp.float32)


def _vmem_limit_bytes():
    # ~75% of physical VMEM (128 MiB on v5e/v6e, 64 MiB on v7x); conservative
    # fallback if the query is unavailable.
    try:
        cap = int(pltpu.get_tpu_info().vmem_capacity_bytes)
        return max(32 << 20, min(cap * 3 // 4, 100 << 20))
    except Exception:
        return 48 << 20


# ---------------------------------------------------------------------------
# Fused residual block on the flat layout (flat in -> flat out, chainable)
# ---------------------------------------------------------------------------
def residual_block_flat(xf, params, *, H, W):
    N, Lx, Cp = xf.shape
    Wp, F, B, Lx_chk, M, head = _flat_geom(H, W)
    assert Lx == Lx_chk and Cp % 128 == 0

    # Mask of real (non-junk) columns within the flattened interior rows.
    col = jnp.arange(M, dtype=jnp.int32) % Wp
    mask = ((col >= 1) & (col <= W)).astype(jnp.float32).reshape(M, 1)

    kernel = functools.partial(_fused_residual_block_kernel, H=H, W=W, F=F)

    def resident(shape):
        # Constant index_map -> block stays resident in VMEM (DMA'd only once).
        return pl.BlockSpec(shape, lambda b: (0,) * len(shape))

    return pl.pallas_call(
        kernel,
        out_shape=jax.ShapeDtypeStruct((N, Lx, Cp), jnp.bfloat16),
        grid=(N,),
        in_specs=[
            pl.BlockSpec((None, Lx, Cp), lambda b: (b, 0, 0)),  # per-image acts
            resident((M, 1)),            # column mask
            resident((9, Cp, Cp)),       # conv1 taps (BN1 scale folded)
            resident((9, Cp, Cp)),       # conv2 taps
            resident((1, Cp)),           # BN1 shift
            resident((1, Cp)),           # BN2 scale
            resident((1, Cp)),           # BN2 shift
        ],
        out_specs=pl.BlockSpec((None, Lx, Cp), lambda b: (b, 0, 0)),
        scratch_shapes=[pltpu.VMEM((Lx, Cp), jnp.bfloat16)],    # h1, on-chip only
        compiler_params=pltpu.CompilerParams(
            dimension_semantics=("parallel",),
            vmem_limit_bytes=_vmem_limit_bytes()),
    )(xf, mask, params["w1"], params["w2"],
      params["shift1"], params["scale2"], params["shift2"])


@jax.jit
def residual_block_forward(x_nchw, w1, w2, bn1, bn2):
    """NCHW convenience wrapper: pack -> fused kernel -> unpack."""
    _, C, H, W = x_nchw.shape
    params = pack_params(w1, w2, bn1, bn2)
    xf = pack_input(x_nchw)
    out_flat = residual_block_flat(xf, params, H=H, W=W)
    return unpack_output(out_flat, C, H, W)


# ---------------------------------------------------------------------------
# Pure-JAX reference (NCHW, mirrors the PyTorch forward in eval mode)
# ---------------------------------------------------------------------------
def _ref_forward(x, w1, w2, bn1, bn2):
    def conv(a, w):
        return jax.lax.conv_general_dilated(
            a, w, (1, 1), ((1, 1), (1, 1)),
            dimension_numbers=("NCHW", "OIHW", "NCHW"))

    def bn(a, p):
        g, b, m, v = (t[None, :, None, None] for t in p)
        return (a - m) / jnp.sqrt(v + BN_EPS) * g + b

    def lrelu(a):
        return jnp.where(a > 0, a, LEAKY_SLOPE * a)

    out = lrelu(bn(conv(x, w1), bn1))   # conv1 block
    out = conv(out, w2)                 # conv2
    out = out + x                       # residual (downsample=None)
    out = lrelu(bn(out, bn2))           # batchNorm2d + LeakyReLU
    return out                          # dropout: identity (eval)


if __name__ == "__main__":
    N, C, H, W = 2, 4, 16, 16           # in_channels == out_channels, stride=1
    key = jax.random.PRNGKey(0)
    (kx, kw1, kw2, kg1, kb1, km1, kv1, kg2, kb2, km2, kv2) = jax.random.split(key, 11)

    x = jax.random.normal(kx, (N, C, H, W), jnp.float32)
    w1 = 0.2 * jax.random.normal(kw1, (C, C, 3, 3), jnp.float32)
    w2 = 0.2 * jax.random.normal(kw2, (C, C, 3, 3), jnp.float32)

    bn1 = (1.0 + 0.1 * jax.random.normal(kg1, (C,), jnp.float32),     # gamma
           0.1 * jax.random.normal(kb1, (C,), jnp.float32),           # beta
           0.1 * jax.random.normal(km1, (C,), jnp.float32),           # running_mean
           jnp.abs(jax.random.normal(kv1, (C,), jnp.float32)) + 0.5)  # running_var
    bn2 = (1.0 + 0.1 * jax.random.normal(kg2, (C,), jnp.float32),
           0.1 * jax.random.normal(kb2, (C,), jnp.float32),
           0.1 * jax.random.normal(km2, (C,), jnp.float32),
           jnp.abs(jax.random.normal(kv2, (C,), jnp.float32)) + 0.5)

    out = jax.block_until_ready(residual_block_forward(x, w1, w2, bn1, bn2))

    ref = _ref_forward(x, w1, w2, bn1, bn2)
    assert out.shape == (N, C, H, W)
    # bf16 matmul operands / bf16 output / bf16 residual with f32 accumulation
    # -> relaxed tolerance vs the f32 reference.
    err = float(jnp.max(jnp.abs(out - ref)))
    assert jnp.allclose(out, ref, atol=1e-1, rtol=1e-1), err

    print("KERNEL_OK")
</pallas_src>

<mosaic_0001>
module attributes {stable_mosaic.version = 11 : i64} {
  func.func @_fused_residual_block_kernel(%arg0: i32, %arg1: memref<1x338x128xbf16, #tpu.memory_space<vmem>>, %arg2: memref<288x1xf32, #tpu.memory_space<vmem>>, %arg3: memref<9x128x128xbf16, #tpu.memory_space<vmem>>, %arg4: memref<9x128x128xbf16, #tpu.memory_space<vmem>>, %arg5: memref<1x128xf32, #tpu.memory_space<vmem>>, %arg6: memref<1x128xf32, #tpu.memory_space<vmem>>, %arg7: memref<1x128xf32, #tpu.memory_space<vmem>>, %arg8: memref<1x338x128xbf16, #tpu.memory_space<vmem>>, %arg9: memref<338x128xbf16, #tpu.memory_space<vmem>>) attributes {dimension_semantics = [#tpu.dimension_semantics<parallel>], iteration_bounds = array<i64: 2>, scalar_prefetch = 0 : i64, scratch_operands = 1 : i64, tpu.core_type = #tpu.core_type<tc>, window_params = [{transform_indices = @transform_0, window_bounds = array<i64: 1, 338, 128>}, {pipeline_mode = #tpu.pipeline_mode<synchronous>, transform_indices = @transform_1, window_bounds = array<i64: 288, 1>}, {pipeline_mode = #tpu.pipeline_mode<synchronous>, transform_indices = @transform_2, window_bounds = array<i64: 9, 128, 128>}, {pipeline_mode = #tpu.pipeline_mode<synchronous>, transform_indices = @transform_3, window_bounds = array<i64: 9, 128, 128>}, {pipeline_mode = #tpu.pipeline_mode<synchronous>, transform_indices = @transform_4, window_bounds = array<i64: 1, 128>}, {pipeline_mode = #tpu.pipeline_mode<synchronous>, transform_indices = @transform_5, window_bounds = array<i64: 1, 128>}, {pipeline_mode = #tpu.pipeline_mode<synchronous>, transform_indices = @transform_6, window_bounds = array<i64: 1, 128>}, {transform_indices = @transform_7, window_bounds = array<i64: 1, 338, 128>}]} {
    %cst = arith.constant 0.000000e+00 : bf16
    %0 = vector.broadcast %cst : bf16 to vector<19x128xbf16>
    %c5 = arith.constant 5 : index
    %c0 = arith.constant 0 : index
    %1 = vector.load %arg9[%c5, %c0] : memref<338x128xbf16, #tpu.memory_space<vmem>>, vector<19x128xbf16>
    tpu.vector_store %arg9[%c5, %c0], %0 {strides = array<i32>} : memref<338x128xbf16, #tpu.memory_space<vmem>>, vector<19x128xbf16>,
    %cst_0 = arith.constant 0.000000e+00 : bf16
    %2 = vector.broadcast %cst_0 : bf16 to vector<19x128xbf16>
    %c312 = arith.constant 312 : index
    %c0_1 = arith.constant 0 : index
    %3 = vector.load %arg9[%c312, %c0_1] : memref<338x128xbf16, #tpu.memory_space<vmem>>, vector<19x128xbf16>
    tpu.vector_store %arg9[%c312, %c0_1], %2 {strides = array<i32>} : memref<338x128xbf16, #tpu.memory_space<vmem>>, vector<19x128xbf16>,
    %c0_2 = arith.constant 0 : index
    %c0_3 = arith.constant 0 : index
    %4 = vector.load %arg5[%c0_2, %c0_3] : memref<1x128xf32, #tpu.memory_space<vmem>>, vector<1x128xf32>
    %5 = vector.shape_cast %4 : vector<1x128xf32> to vector<1x128xf32>
    %6 = vector.broadcast %5 : vector<1x128xf32> to vector<288x128xf32>
    %c0_4 = arith.constant 0 : index
    %c5_5 = arith.constant 5 : index
    %c0_6 = arith.constant 0 : index
    %7 = vector.load %arg1[%c0_4, %c5_5, %c0_6] : memref<1x338x128xbf16, #tpu.memory_space<vmem>>, vector<1x288x128xbf16>
    %8 = vector.shape_cast %7 : vector<1x288x128xbf16> to vector<288x128xbf16>
    %c0_7 = arith.constant 0 : index
    %c0_8 = arith.constant 0 : index
    %c0_9 = arith.constant 0 : index
    %9 = vector.load %arg3[%c0_7, %c0_8, %c0_9] : memref<9x128x128xbf16, #tpu.memory_space<vmem>>, vector<1x128x128xbf16>
    %10 = vector.shape_cast %9 : vector<1x128x128xbf16> to vector<128x128xbf16>
    %cst_10 = arith.constant dense<0.000000e+00> : vector<288x128xf32>
    %11 = tpu.matmul %8, %10, %cst_10 {dimension_numbers = #tpu.dot_dimension_numbers<[1], [0], [0], [1], [0, 0, 1, 1], [], []>} : vector<288x128xbf16>, vector<128x128xbf16>, vector<288x128xf32> -> vector<288x128xf32>
    %12 = arith.addf %6, %11 : vector<288x128xf32>
    %c0_11 = arith.constant 0 : index
    %c6 = arith.constant 6 : index
    %c0_12 = arith.constant 0 : index
    %13 = vector.load %arg1[%c0_11, %c6, %c0_12] : memref<1x338x128xbf16, #tpu.memory_space<vmem>>, vector<1x288x128xbf16>
    %14 = vector.shape_cast %13 : vector<1x288x128xbf16> to vector<288x128xbf16>
    %c1 = arith.constant 1 : index
    %c0_13 = arith.constant 0 : index
    %c0_14 = arith.constant 0 : index
    %15 = vector.load %arg3[%c1, %c0_13, %c0_14] : memref<9x128x128xbf16, #tpu.memory_space<vmem>>, vector<1x128x128xbf16>
    %16 = vector.shape_cast %15 : vector<1x128x128xbf16> to vector<128x128xbf16>
    %cst_15 = arith.constant dense<0.000000e+00> : vector<288x128xf32>
    %17 = tpu.matmul %14, %16, %cst_15 {dimension_numbers = #tpu.dot_dimension_numbers<[1], [0], [0], [1], [0, 0, 1, 1], [], []>} : vector<288x128xbf16>, vector<128x128xbf16>, vector<288x128xf32> -> vector<288x128xf32>
    %18 = arith.addf %12, %17 : vector<288x128xf32>
    %c0_16 = arith.constant 0 : index
    %c7 = arith.constant 7 : index
    %c0_17 = arith.constant 0 : index
    %19 = vector.load %arg1[%c0_16, %c7, %c0_17] : memref<1x338x128xbf16, #tpu.memory_space<vmem>>, vector<1x288x128xbf16>
    %20 = vector.shape_cast %19 : vector<1x288x128xbf16> to vector<288x128xbf16>
    %c2 = arith.constant 2 : index
    %c0_18 = arith.constant 0 : index
    %c0_19 = arith.constant 0 : index
    %21 = vector.load %arg3[%c2, %c0_18, %c0_19] : memref<9x128x128xbf16, #tpu.memory_space<vmem>>, vector<1x128x128xbf16>
    %22 = vector.shape_cast %21 : vector<1x128x128xbf16> to vector<128x128xbf16>
    %cst_20 = arith.constant dense<0.000000e+00> : vector<288x128xf32>
    %23 = tpu.matmul %20, %22, %cst_20 {dimension_numbers = #tpu.dot_dimension_numbers<[1], [0], [0], [1], [0, 0, 1, 1], [], []>} : vector<288x128xbf16>, vector<128x128xbf16>, vector<288x128xf32> -> vector<288x128xf32>
    %24 = arith.addf %18, %23 : vector<288x128xf32>
    %c0_21 = arith.constant 0 : index
    %c23 = arith.constant 23 : index
    %c0_22 = arith.constant 0 : index
    %25 = vector.load %arg1[%c0_21, %c23, %c0_22] : memref<1x338x128xbf16, #tpu.memory_space<vmem>>, vector<1x288x128xbf16>
    %26 = vector.shape_cast %25 : vector<1x288x128xbf16> to vector<288x128xbf16>
    %c3 = arith.constant 3 : index
    %c0_23 = arith.constant 0 : index
    %c0_24 = arith.constant 0 : index
    %27 = vector.load %arg3[%c3, %c0_23, %c0_24] : memref<9x128x128xbf16, #tpu.memory_space<vmem>>, vector<1x128x128xbf16>
    %28 = vector.shape_cast %27 : vector<1x128x128xbf16> to vector<128x128xbf16>
    %cst_25 = arith.constant dense<0.000000e+00> : vector<288x128xf32>
    %29 = tpu.matmul %26, %28, %cst_25 {dimension_numbers = #tpu.dot_dimension_numbers<[1], [0], [0], [1], [0, 0, 1, 1], [], []>} : vector<288x128xbf16>, vector<128x128xbf16>, vector<288x128xf32> -> vector<288x128xf32>
    %30 = arith.addf %24, %29 : vector<288x128xf32>
    %c0_26 = arith.constant 0 : index
    %c24 = arith.constant 24 : index
    %c0_27 = arith.constant 0 : index
    %31 = vector.load %arg1[%c0_26, %c24, %c0_27] : memref<1x338x128xbf16, #tpu.memory_space<vmem>>, vector<1x288x128xbf16>
    %32 = vector.shape_cast %31 : vector<1x288x128xbf16> to vector<288x128xbf16>
    %c4 = arith.constant 4 : index
    %c0_28 = arith.constant 0 : index
    %c0_29 = arith.constant 0 : index
    %33 = vector.load %arg3[%c4, %c0_28, %c0_29] : memref<9x128x128xbf16, #tpu.memory_space<vmem>>, vector<1x128x128xbf16>
    %34 = vector.shape_cast %33 : vector<1x128x128xbf16> to vector<128x128xbf16>
    %cst_30 = arith.constant dense<0.000000e+00> : vector<288x128xf32>
    %35 = tpu.matmul %32, %34, %cst_30 {dimension_numbers = #tpu.dot_dimension_numbers<[1], [0], [0], [1], [0, 0, 1, 1], [], []>} : vector<288x128xbf16>, vector<128x128xbf16>, vector<288x128xf32> -> vector<288x128xf32>
    %36 = arith.addf %30, %35 : vector<288x128xf32>
    %c0_31 = arith.constant 0 : index
    %c25 = arith.constant 25 : index
    %c0_32 = arith.constant 0 : index
    %37 = vector.load %arg1[%c0_31, %c25, %c0_32] : memref<1x338x128xbf16, #tpu.memory_space<vmem>>, vector<1x288x128xbf16>
    %38 = vector.shape_cast %37 : vector<1x288x128xbf16> to vector<288x128xbf16>
    %c5_33 = arith.constant 5 : index
    %c0_34 = arith.constant 0 : index
    %c0_35 = arith.constant 0 : index
    %39 = vector.load %arg3[%c5_33, %c0_34, %c0_35] : memref<9x128x128xbf16, #tpu.memory_space<vmem>>, vector<1x128x128xbf16>
    %40 = vector.shape_cast %39 : vector<1x128x128xbf16> to vector<128x128xbf16>
    %cst_36 = arith.constant dense<0.000000e+00> : vector<288x128xf32>
    %41 = tpu.matmul %38, %40, %cst_36 {dimension_numbers = #tpu.dot_dimension_numbers<[1], [0], [0], [1], [0, 0, 1, 1], [], []>} : vector<288x128xbf16>, vector<128x128xbf16>, vector<288x128xf32> -> vector<288x128xf32>
    %42 = arith.addf %36, %41 : vector<288x128xf32>
    %c0_37 = arith.constant 0 : index
    %c41 = arith.constant 41 : index
    %c0_38 = arith.constant 0 : index
    %43 = vector.load %arg1[%c0_37, %c41, %c0_38] : memref<1x338x128xbf16, #tpu.memory_space<vmem>>, vector<1x288x128xbf16>
    %44 = vector.shape_cast %43 : vector<1x288x128xbf16> to vector<288x128xbf16>
    %c6_39 = arith.constant 6 : index
    %c0_40 = arith.constant 0 : index
    %c0_41 = arith.constant 0 : index
    %45 = vector.load %arg3[%c6_39, %c0_40, %c0_41] : memref<9x128x128xbf16, #tpu.memory_space<vmem>>, vector<1x128x128xbf16>
    %46 = vector.shape_cast %45 : vector<1x128x128xbf16> to vector<128x128xbf16>
    %cst_42 = arith.constant dense<0.000000e+00> : vector<288x128xf32>
    %47 = tpu.matmul %44, %46, %cst_42 {dimension_numbers = #tpu.dot_dimension_numbers<[1], [0], [0], [1], [0, 0, 1, 1], [], []>} : vector<288x128xbf16>, vector<128x128xbf16>, vector<288x128xf32> -> vector<288x128xf32>
    %48 = arith.addf %42, %47 : vector<288x128xf32>
    %c0_43 = arith.constant 0 : index
    %c42 = arith.constant 42 : index
    %c0_44 = arith.constant 0 : index
    %49 = vector.load %arg1[%c0_43, %c42, %c0_44] : memref<1x338x128xbf16, #tpu.memory_space<vmem>>, vector<1x288x128xbf16>
    %50 = vector.shape_cast %49 : vector<1x288x128xbf16> to vector<288x128xbf16>
    %c7_45 = arith.constant 7 : index
    %c0_46 = arith.constant 0 : index
    %c0_47 = arith.constant 0 : index
    %51 = vector.load %arg3[%c7_45, %c0_46, %c0_47] : memref<9x128x128xbf16, #tpu.memory_space<vmem>>, vector<1x128x128xbf16>
    %52 = vector.shape_cast %51 : vector<1x128x128xbf16> to vector<128x128xbf16>
    %cst_48 = arith.constant dense<0.000000e+00> : vector<288x128xf32>
    %53 = tpu.matmul %50, %52, %cst_48 {dimension_numbers = #tpu.dot_dimension_numbers<[1], [0], [0], [1], [0, 0, 1, 1], [], []>} : vector<288x128xbf16>, vector<128x128xbf16>, vector<288x128xf32> -> vector<288x128xf32>
    %54 = arith.addf %48, %53 : vector<288x128xf32>
    %c0_49 = arith.constant 0 : index
    %c43 = arith.constant 43 : index
    %c0_50 = arith.constant 0 : index
    %55 = vector.load %arg1[%c0_49, %c43, %c0_50] : memref<1x338x128xbf16, #tpu.memory_space<vmem>>, vector<1x288x128xbf16>
    %56 = vector.shape_cast %55 : vector<1x288x128xbf16> to vector<288x128xbf16>
    %c8 = arith.constant 8 : index
    %c0_51 = arith.constant 0 : index
    %c0_52 = arith.constant 0 : index
    %57 = vector.load %arg3[%c8, %c0_51, %c0_52] : memref<9x128x128xbf16, #tpu.memory_space<vmem>>, vector<1x128x128xbf16>
    %58 = vector.shape_cast %57 : vector<1x128x128xbf16> to vector<128x128xbf16>
    %cst_53 = arith.constant dense<0.000000e+00> : vector<288x128xf32>
    %59 = tpu.matmul %56, %58, %cst_53 {dimension_numbers = #tpu.dot_dimension_numbers<[1], [0], [0], [1], [0, 0, 1, 1], [], []>} : vector<288x128xbf16>, vector<128x128xbf16>, vector<288x128xf32> -> vector<288x128xf32>
    %60 = arith.addf %54, %59 : vector<288x128xf32>
    %cst_54 = arith.constant 0.00999999977 : f32
    %61 = vector.broadcast %cst_54 : f32 to vector<288x128xf32>
    %62 = arith.mulf %61, %60 : vector<288x128xf32>
    %63 = arith.maximumf %60, %62 : vector<288x128xf32>
    %c0_55 = arith.constant 0 : index
    %c0_56 = arith.constant 0 : index
    %64 = vector.load %arg2[%c0_55, %c0_56] : memref<288x1xf32, #tpu.memory_space<vmem>>, vector<288x1xf32>
    %65 = vector.broadcast %64 : vector<288x1xf32> to vector<288x128xf32>
    %66 = arith.mulf %63, %65 : vector<288x128xf32>
    %67 = arith.truncf %66 : vector<288x128xf32> to vector<288x128xbf16>
    %c24_57 = arith.constant 24 : index
    %c0_58 = arith.constant 0 : index
    %68 = vector.load %arg9[%c24_57, %c0_58] : memref<338x128xbf16, #tpu.memory_space<vmem>>, vector<288x128xbf16>
    tpu.vector_store %arg9[%c24_57, %c0_58], %67 {strides = array<i32>} : memref<338x128xbf16, #tpu.memory_space<vmem>>, vector<288x128xbf16>,
    %c0_59 = arith.constant 0 : index
    %c24_60 = arith.constant 24 : index
    %c0_61 = arith.constant 0 : index
    %69 = vector.load %arg1[%c0_59, %c24_60, %c0_61] : memref<1x338x128xbf16, #tpu.memory_space<vmem>>, vector<1x288x128xbf16>
    %70 = vector.shape_cast %69 : vector<1x288x128xbf16> to vector<288x128xbf16>
    %71 = arith.extf %70 : vector<288x128xbf16> to vector<288x128xf32>
    %c5_62 = arith.constant 5 : index
    %c0_63 = arith.constant 0 : index
    %72 = vector.load %arg9[%c5_62, %c0_63] : memref<338x128xbf16, #tpu.memory_space<vmem>>, vector<288x128xbf16>
    %c0_64 = arith.constant 0 : index
    %c0_65 = arith.constant 0 : index
    %c0_66 = arith.constant 0 : index
    %73 = vector.load %arg4[%c0_64, %c0_65, %c0_66] : memref<9x128x128xbf16, #tpu.memory_space<vmem>>, vector<1x128x128xbf16>
    %74 = vector.shape_cast %73 : vector<1x128x128xbf16> to vector<128x128xbf16>
    %cst_67 = arith.constant dense<0.000000e+00> : vector<288x128xf32>
    %75 = tpu.matmul %72, %74, %cst_67 {dimension_numbers = #tpu.dot_dimension_numbers<[1], [0], [0], [1], [0, 0, 1, 1], [], []>} : vector<288x128xbf16>, vector<128x128xbf16>, vector<288x128xf32> -> vector<288x128xf32>
    %76 = arith.addf %71, %75 : vector<288x128xf32>
    %c6_68 = arith.constant 6 : index
    %c0_69 = arith.constant 0 : index
    %77 = vector.load %arg9[%c6_68, %c0_69] : memref<338x128xbf16, #tpu.memory_space<vmem>>, vector<288x128xbf16>
    %c1_70 = arith.constant 1 : index
    %c0_71 = arith.constant 0 : index
    %c0_72 = arith.constant 0 : index
    %78 = vector.load %arg4[%c1_70, %c0_71, %c0_72] : memref<9x128x128xbf16, #tpu.memory_space<vmem>>, vector<1x128x128xbf16>
    %79 = vector.shape_cast %78 : vector<1x128x128xbf16> to vector<128x128xbf16>
    %cst_73 = arith.constant dense<0.000000e+00> : vector<288x128xf32>
    %80 = tpu.matmul %77, %79, %cst_73 {dimension_numbers = #tpu.dot_dimension_numbers<[1], [0], [0], [1], [0, 0, 1, 1], [], []>} : vector<288x128xbf16>, vector<128x128xbf16>, vector<288x128xf32> -> vector<288x128xf32>
    %81 = arith.addf %76, %80 : vector<288x128xf32>
    %c7_74 = arith.constant 7 : index
    %c0_75 = arith.constant 0 : index
    %82 = vector.load %arg9[%c7_74, %c0_75] : memref<338x128xbf16, #tpu.memory_space<vmem>>, vector<288x128xbf16>
    %c2_76 = arith.constant 2 : index
    %c0_77 = arith.constant 0 : index
    %c0_78 = arith.constant 0 : index
    %83 = vector.load %arg4[%c2_76, %c0_77, %c0_78] : memref<9x128x128xbf16, #tpu.memory_space<vmem>>, vector<1x128x128xbf16>
    %84 = vector.shape_cast %83 : vector<1x128x128xbf16> to vector<128x128xbf16>
    %cst_79 = arith.constant dense<0.000000e+00> : vector<288x128xf32>
    %85 = tpu.matmul %82, %84, %cst_79 {dimension_numbers = #tpu.dot_dimension_numbers<[1], [0], [0], [1], [0, 0, 1, 1], [], []>} : vector<288x128xbf16>, vector<128x128xbf16>, vector<288x128xf32> -> vector<288x128xf32>
    %86 = arith.addf %81, %85 : vector<288x128xf32>
    %c23_80 = arith.constant 23 : index
    %c0_81 = arith.constant 0 : index
    %87 = vector.load %arg9[%c23_80, %c0_81] : memref<338x128xbf16, #tpu.memory_space<vmem>>, vector<288x128xbf16>
    %c3_82 = arith.constant 3 : index
    %c0_83 = arith.constant 0 : index
    %c0_84 = arith.constant 0 : index
    %88 = vector.load %arg4[%c3_82, %c0_83, %c0_84] : memref<9x128x128xbf16, #tpu.memory_space<vmem>>, vector<1x128x128xbf16>
    %89 = vector.shape_cast %88 : vector<1x128x128xbf16> to vector<128x128xbf16>
    %cst_85 = arith.constant dense<0.000000e+00> : vector<288x128xf32>
    %90 = tpu.matmul %87, %89, %cst_85 {dimension_numbers = #tpu.dot_dimension_numbers<[1], [0], [0], [1], [0, 0, 1, 1], [], []>} : vector<288x128xbf16>, vector<128x128xbf16>, vector<288x128xf32> -> vector<288x128xf32>
    %91 = arith.addf %86, %90 : vector<288x128xf32>
    %c24_86 = arith.constant 24 : index
    %c0_87 = arith.constant 0 : index
    %92 = vector.load %arg9[%c24_86, %c0_87] : memref<338x128xbf16, #tpu.memory_space<vmem>>, vector<288x128xbf16>
    %c4_88 = arith.constant 4 : index
    %c0_89 = arith.constant 0 : index
    %c0_90 = arith.constant 0 : index
    %93 = vector.load %arg4[%c4_88, %c0_89, %c0_90] : memref<9x128x128xbf16, #tpu.memory_space<vmem>>, vector<1x128x128xbf16>
    %94 = vector.shape_cast %93 : vector<1x128x128xbf16> to vector<128x128xbf16>
    %cst_91 = arith.constant dense<0.000000e+00> : vector<288x128xf32>
    %95 = tpu.matmul %92, %94, %cst_91 {dimension_numbers = #tpu.dot_dimension_numbers<[1], [0], [0], [1], [0, 0, 1, 1], [], []>} : vector<288x128xbf16>, vector<128x128xbf16>, vector<288x128xf32> -> vector<288x128xf32>
    %96 = arith.addf %91, %95 : vector<288x128xf32>
    %c25_92 = arith.constant 25 : index
    %c0_93 = arith.constant 0 : index
    %97 = vector.load %arg9[%c25_92, %c0_93] : memref<338x128xbf16, #tpu.memory_space<vmem>>, vector<288x128xbf16>
    %c5_94 = arith.constant 5 : index
    %c0_95 = arith.constant 0 : index
    %c0_96 = arith.constant 0 : index
    %98 = vector.load %arg4[%c5_94, %c0_95, %c0_96] : memref<9x128x128xbf16, #tpu.memory_space<vmem>>, vector<1x128x128xbf16>
    %99 = vector.shape_cast %98 : vector<1x128x128xbf16> to vector<128x128xbf16>
    %cst_97 = arith.constant dense<0.000000e+00> : vector<288x128xf32>
    %100 = tpu.matmul %97, %99, %cst_97 {dimension_numbers = #tpu.dot_dimension_numbers<[1], [0], [0], [1], [0, 0, 1, 1], [], []>} : vector<288x128xbf16>, vector<128x128xbf16>, vector<288x128xf32> -> vector<288x128xf32>
    %101 = arith.addf %96, %100 : vector<288x128xf32>
    %c41_98 = arith.constant 41 : index
    %c0_99 = arith.constant 0 : index
    %102 = vector.load %arg9[%c41_98, %c0_99] : memref<338x128xbf16, #tpu.memory_space<vmem>>, vector<288x128xbf16>
    %c6_100 = arith.constant 6 : index
    %c0_101 = arith.constant 0 : index
    %c0_102 = arith.constant 0 : index
    %103 = vector.load %arg4[%c6_100, %c0_101, %c0_102] : memref<9x128x128xbf16, #tpu.memory_space<vmem>>, vector<1x128x128xbf16>
    %104 = vector.shape_cast %103 : vector<1x128x128xbf16> to vector<128x128xbf16>
    %cst_103 = arith.constant dense<0.000000e+00> : vector<288x128xf32>
    %105 = tpu.matmul %102, %104, %cst_103 {dimension_numbers = #tpu.dot_dimension_numbers<[1], [0], [0], [1], [0, 0, 1, 1], [], []>} : vector<288x128xbf16>, vector<128x128xbf16>, vector<288x128xf32> -> vector<288x128xf32>
    %106 = arith.addf %101, %105 : vector<288x128xf32>
    %c42_104 = arith.constant 42 : index
    %c0_105 = arith.constant 0 : index
    %107 = vector.load %arg9[%c42_104, %c0_105] : memref<338x128xbf16, #tpu.memory_space<vmem>>, vector<288x128xbf16>
    %c7_106 = arith.constant 7 : index
    %c0_107 = arith.constant 0 : index
    %c0_108 = arith.constant 0 : index
    %108 = vector.load %arg4[%c7_106, %c0_107, %c0_108] : memref<9x128x128xbf16, #tpu.memory_space<vmem>>, vector<1x128x128xbf16>
    %109 = vector.shape_cast %108 : vector<1x128x128xbf16> to vector<128x128xbf16>
    %cst_109 = arith.constant dense<0.000000e+00> : vector<288x128xf32>
    %110 = tpu.matmul %107, %109, %cst_109 {dimension_numbers = #tpu.dot_dimension_numbers<[1], [0], [0], [1], [0, 0, 1, 1], [], []>} : vector<288x128xbf16>, vector<128x128xbf16>, vector<288x128xf32> -> vector<288x128xf32>
    %111 = arith.addf %106, %110 : vector<288x128xf32>
    %c43_110 = arith.constant 43 : index
    %c0_111 = arith.constant 0 : index
    %112 = vector.load %arg9[%c43_110, %c0_111] : memref<338x128xbf16, #tpu.memory_space<vmem>>, vector<288x128xbf16>
    %c8_112 = arith.constant 8 : index
    %c0_113 = arith.constant 0 : index
    %c0_114 = arith.constant 0 : index
    %113 = vector.load %arg4[%c8_112, %c0_113, %c0_114] : memref<9x128x128xbf16, #tpu.memory_space<vmem>>, vector<1x128x128xbf16>
    %114 = vector.shape_cast %113 : vector<1x128x128xbf16> to vector<128x128xbf16>
    %cst_115 = arith.constant dense<0.000000e+00> : vector<288x128xf32>
    %115 = tpu.matmul %112, %114, %cst_115 {dimension_numbers = #tpu.dot_dimension_numbers<[1], [0], [0], [1], [0, 0, 1, 1], [], []>} : vector<288x128xbf16>, vector<128x128xbf16>, vector<288x128xf32> -> vector<288x128xf32>
    %116 = arith.addf %111, %115 : vector<288x128xf32>
    %c0_116 = arith.constant 0 : index
    %c0_117 = arith.constant 0 : index
    %117 = vector.load %arg6[%c0_116, %c0_117] : memref<1x128xf32, #tpu.memory_space<vmem>>, vector<1x128xf32>
    %118 = vector.broadcast %117 : vector<1x128xf32> to vector<288x128xf32>
    %119 = arith.mulf %116, %118 : vector<288x128xf32>
    %c0_118 = arith.constant 0 : index
    %c0_119 = arith.constant 0 : index
    %120 = vector.load %arg7[%c0_118, %c0_119] : memref<1x128xf32, #tpu.memory_space<vmem>>, vector<1x128xf32>
    %121 = vector.broadcast %120 : vector<1x128xf32> to vector<288x128xf32>
    %122 = arith.addf %119, %121 : vector<288x128xf32>
    %cst_120 = arith.constant 0.00999999977 : f32
    %123 = vector.broadcast %cst_120 : f32 to vector<288x128xf32>
    %124 = arith.mulf %123, %122 : vector<288x128xf32>
    %125 = arith.maximumf %122, %124 : vector<288x128xf32>
    %cst_121 = arith.constant 0.000000e+00 : bf16
    %126 = vector.broadcast %cst_121 : bf16 to vector<24x128xbf16>
    %c0_122 = arith.constant 0 : index
    %c0_123 = arith.constant 0 : index
    %c0_124 = arith.constant 0 : index
    %127 = vector.load %arg8[%c0_122, %c0_123, %c0_124] : memref<1x338x128xbf16, #tpu.memory_space<vmem>>, vector<1x24x128xbf16>
    %128 = vector.shape_cast %127 : vector<1x24x128xbf16> to vector<24x128xbf16>
    %129 = vector.shape_cast %126 : vector<24x128xbf16> to vector<1x24x128xbf16>
    tpu.vector_store %arg8[%c0_122, %c0_123, %c0_124], %129 {strides = array<i32>} : memref<1x338x128xbf16, #tpu.memory_space<vmem>>, vector<1x24x128xbf16>,
    %cst_125 = arith.constant 0.000000e+00 : bf16
    %130 = vector.broadcast %cst_125 : bf16 to vector<26x128xbf16>
    %c0_126 = arith.constant 0 : index
    %c312_127 = arith.constant 312 : index
    %c0_128 = arith.constant 0 : index
    %131 = vector.load %arg8[%c0_126, %c312_127, %c0_128] : memref<1x338x128xbf16, #tpu.memory_space<vmem>>, vector<1x26x128xbf16>
    %132 = vector.shape_cast %131 : vector<1x26x128xbf16> to vector<26x128xbf16>
    %133 = vector.shape_cast %130 : vector<26x128xbf16> to vector<1x26x128xbf16>
    tpu.vector_store %arg8[%c0_126, %c312_127, %c0_128], %133 {strides = array<i32>} : memref<1x338x128xbf16, #tpu.memory_space<vmem>>, vector<1x26x128xbf16>,
    %c0_129 = arith.constant 0 : index
    %c0_130 = arith.constant 0 : index
    %134 = vector.load %arg2[%c0_129, %c0_130] : memref<288x1xf32, #tpu.memory_space<vmem>>, vector<288x1xf32>
    %135 = vector.broadcast %134 : vector<288x1xf32> to vector<288x128xf32>
    %136 = arith.mulf %125, %135 : vector<288x128xf32>
    %137 = arith.truncf %136 : vector<288x128xf32> to vector<288x128xbf16>
    %c0_131 = arith.constant 0 : index
    %c24_132 = arith.constant 24 : index
    %c0_133 = arith.constant 0 : index
    %138 = vector.load %arg8[%c0_131, %c24_132, %c0_133] : memref<1x338x128xbf16, #tpu.memory_space<vmem>>, vector<1x288x128xbf16>
    %139 = vector.shape_cast %138 : vector<1x288x128xbf16> to vector<288x128xbf16>
    %140 = vector.shape_cast %137 : vector<288x128xbf16> to vector<1x288x128xbf16>
    tpu.vector_store %arg8[%c0_131, %c24_132, %c0_133], %140 {strides = array<i32>} : memref<1x338x128xbf16, #tpu.memory_space<vmem>>, vector<1x288x128xbf16>,
    return
  }
  func.func @transform_0(%arg0: i32) -> (i32, i32, i32) {
    %c0_i32 = arith.constant 0 : i32
    %c0_i32_0 = arith.constant 0 : i32
    %c0_i32_1 = arith.constant 0 : i32
    return %arg0, %c0_i32, %c0_i32_0 : i32, i32, i32
  }
  func.func @transform_1(%arg0: i32) -> (i32, i32) {
    %c0_i32 = arith.constant 0 : i32
    %c0_i32_0 = arith.constant 0 : i32
    %c0_i32_1 = arith.constant 0 : i32
    return %c0_i32, %c0_i32_0 : i32, i32
  }
  func.func @transform_2(%arg0: i32) -> (i32, i32, i32) {
    %c0_i32 = arith.constant 0 : i32
    %c0_i32_0 = arith.constant 0 : i32
    %c0_i32_1 = arith.constant 0 : i32
    %c0_i32_2 = arith.constant 0 : i32
    return %c0_i32, %c0_i32_0, %c0_i32_1 : i32, i32, i32
  }
  func.func @transform_3(%arg0: i32) -> (i32, i32, i32) {
    %c0_i32 = arith.constant 0 : i32
    %c0_i32_0 = arith.constant 0 : i32
    %c0_i32_1 = arith.constant 0 : i32
    %c0_i32_2 = arith.constant 0 : i32
    return %c0_i32, %c0_i32_0, %c0_i32_1 : i32, i32, i32
  }
  func.func @transform_4(%arg0: i32) -> (i32, i32) {
    %c0_i32 = arith.constant 0 : i32
    %c0_i32_0 = arith.constant 0 : i32
    %c0_i32_1 = arith.constant 0 : i32
    return %c0_i32, %c0_i32_0 : i32, i32
  }
  func.func @transform_5(%arg0: i32) -> (i32, i32) {
    %c0_i32 = arith.constant 0 : i32
    %c0_i32_0 = arith.constant 0 : i32
    %c0_i32_1 = arith.constant 0 : i32
    return %c0_i32, %c0_i32_0 : i32, i32
  }
  func.func @transform_6(%arg0: i32) -> (i32, i32) {
    %c0_i32 = arith.constant 0 : i32
    %c0_i32_0 = arith.constant 0 : i32
    %c0_i32_1 = arith.constant 0 : i32
    return %c0_i32, %c0_i32_0 : i32, i32
  }
  func.func @transform_7(%arg0: i32) -> (i32, i32, i32) {
    %c0_i32 = arith.constant 0 : i32
    %c0_i32_0 = arith.constant 0 : i32
    %c0_i32_1 = arith.constant 0 : i32
    return %arg0, %c0_i32, %c0_i32_0 : i32, i32, i32
  }
}

</mosaic_0001>

<bundles_post_ra>
// kernel: residual_block_forward.1
= control target key start
LH: loop header
LB: loop body
LE: loop exit
PB: predicated region body
PF: predicated region fallthrough
CT: control target
= control target key end

     0   :  { %s10392_s24 = smov 0   ;;  %s13752_s0 = inlined_call_operand.vmem [shape: bf16[2,338,128], index: 0, kind: input, shape index: {}]   ;;  %s13753_s1 = inlined_call_operand.vmem [shape: f32[288,1], index: 1, kind: input, shape index: {}]   ;;  %s13754_s2 = inlined_call_operand.vmem [shape: bf16[9,128,128], index: 2, kind: input, shape index: {}]   ;;  %s13755_s3 = inlined_call_operand.vmem [shape: bf16[9,128,128], index: 3, kind: input, shape index: {}]   ;;  %s13756_s4 = inlined_call_operand.vmem [shape: f32[1,128], index: 4, kind: input, shape index: {}]   ;;  %s13757_s5 = inlined_call_operand.vmem [shape: f32[1,128], index: 5, kind: input, shape index: {}]   ;;  %s13758_s6 = inlined_call_operand.vmem [shape: f32[1,128], index: 6, kind: input, shape index: {}]   ;;  %s13759_s7 = inlined_call_operand.vmem [shape: bf16[2,338,128], index: 7, kind: output, shape index: {}]  }
   0x1 LB: > { %s8102_s25 = sadd.s32 4294967295, %s10349_s24   ;;  %p8106_p0 = scmp.ge.s32.totalorder %s10349_s24, 1  ;;  %s10349_s24 = sphi %s10392_s24, %s17_s24  }
   0x2   : > { %p237_p1 = scmp.lt.s32.totalorder %s10349_s24, 3 }
   0x4   : > { %p238_p2 = pnand %p8106_p0, %p237_p1 }
   0x6   : > { %241 = sbr.rel (%p238_p2) target bundleno = 1637 (0x665), region = 48 }
   0xb   : > { %v9383_v0 = vld [vmem:[%s13754_s2 + $0x38] sm:$0xff]  ;;  %p269_p3 = scmp.lt.s32.totalorder %s8102_s25, 1  ;;  %v9382_v2 = vld [vmem:[%s13754_s2 + $0x30] sm:$0xff]  ;;  %v9381_v4 = vld [vmem:[%s13754_s2 + $0x28] sm:$0xff]  ;;  %vm446_vm0 = vsmask.f32 5376 }
   0xc   : > { %v9391_v1 = vld [vmem:[%s13754_s2 + $0x78] sm:$0xff]  ;;  %683 = vmatpush.bf16.msra.mxu0 %v9383_v0  ;;  %10290 = vmatpush.bf16.msra.mxu2 %v9383_v0  ;;  %v9390_v3 = vld [vmem:[%s13754_s2 + $0x70] sm:$0xff]  ;;  %v9389_v5 = vld [vmem:[%s13754_s2 + $0x68] sm:$0xff]  ;;  %vm839_vm1 = vcmask 1044480   ;;  %vm1099_vm2 = vsmask.f32 4352 }
   0xd   : > { %s14155_s25 = smov (!%p269_p3, %s8102_s25), 1  ;;  %10298 = vmatpush.bf16.msra.mxu3 %v9391_v1  ;;  %943 = vmatpush.bf16.msra.mxu1 %v9391_v1  ;;  %v9380_v8 = vld [vmem:[%s13754_s2 + $0x20] sm:$0xff]  ;;  %v9379_v14 = vld [vmem:[%s13754_s2 + $0x18] sm:$0xff]  ;;  %v9378_v23 = vld [vmem:[%s13754_s2 + $0x10] sm:$0xff]  ;;  %vm2287_vm3 = vsmask.f32 7424 }
   0xe   : > { %s10306_s11 = smul.u32 172, %s14155_s25  ;;  %v9388_v11 = vld [vmem:[%s13754_s2 + $0x60] sm:$0xff]  ;;  %v9387_v17 = vld [vmem:[%s13754_s2 + $0x58] sm:$0xff]  ;;  %v9386_v28 = vld [vmem:[%s13754_s2 + $0x50] sm:$0xff]  ;;  %vm3414_vm4 = vsmask.f32 6400 }
   0xf   : > { %v9377_v34 = vld [vmem:[%s13754_s2 + $0x8] sm:$0xff]  ;;  %v9376_v42 = vld [vmem:[%s13754_s2] sm:$0xff]  ;;  %v9399_v49 = vld [vmem:[%s13754_s2 + $0xb8] sm:$0xff]  ;;  %vm3154_vm5 = vcmask 1046528   ;;  %vm280_vm6 = vcmask 1043458   ;;  %vm290_vm9 = vcmask 1041408  }
  0x10   : > { %684 = vmatpush.bf16.msra.mxu0 %v9382_v2  ;;  %10291 = vmatpush.bf16.msra.mxu2 %v9382_v2  ;;  %s10423_s16 = scalar_lea.vmem %s13752_s0, %s10306_s11  ;;  %v9385_v39 = vld [vmem:[%s13754_s2 + $0x48] sm:$0xff]  ;;  %v9384_v46 = vld [vmem:[%s13754_s2 + $0x40] sm:$0xff]  ;;  %v9407_v50 = vld [vmem:[%s13754_s2 + $0xf8] sm:$0xff]  ;;  %s11004_s17 = scalar_lea.vmem %s13759_s7, %s10306_s11  ;;  %vm281_vm7 = vsmask.f32 7946 }
  0x11   : > { %10299 = vmatpush.bf16.msra.mxu3 %v9390_v3  ;;  %944 = vmatpush.bf16.msra.mxu1 %v9390_v3  ;;  %v300_v6 = vld [vmem:[%s10423_s16] sm:$0xc]  ;;  %v301_v7 = vld [vmem:[%s10423_s16 + $0x4] sm:$0xf]  ;;  %v10437_v12 = vld [vmem:[%s10423_s16 + $0x8] sm:$0xff] }
  0x12   : > { %v390_v9 = vunpack.c.l.b16 %v300_v6  ;;  %v391_v10 = vunpack.c.l.b16 %v301_v7  ;;  %v10440_v13 = vld [vmem:[%s10423_s16 + $0x48] sm:$0xff]  ;;  %v10446_v16 = vld [vmem:[%s10423_s16 + $0x50] sm:$0xff]  ;;  %v456_v18 = vshrl.u32 %v10437_v12, 16  ;;  %v459_v19 = vshll.u32 %v10437_v12, 16  ;;  %v818_v22 = vld [vmem:[%s10423_s16] sm:$0x8] }
  0x13   : > { %v13777_v20 = vshrl.u32 %v10440_v13, 16  ;;  %v13776_v21 = vshll.u32 %v10440_v13, 16  ;;  %v13775_v26 = vshrl.u32 %v10446_v16, 16  ;;  %v13774_v27 = vshll.u32 %v10446_v16, 16  ;;  %v9415_v55 = vld [vmem:[%s13754_s2 + $0x138] sm:$0xff]  ;;  %v10509_v56 = vld [vmem:[%s10423_s16 + $0x10] sm:$0xff]  ;;  %vm282_vm8 = vmand %vm280_vm6, %vm281_vm7 }
  0x14   : > { %685 = vmatpush.bf16.msra.mxu0 %v9381_v4  ;;  %10292 = vmatpush.bf16.msra.mxu2 %v9381_v4  ;;  %v427_v15 = vpack.c.b16 %v391_v10, %v390_v9  ;;  %v837_v29 = vunpack.c.l.b16 %v818_v22  ;;  %v458_v30 = vrot.slane %v456_v18, 2  ;;  %v461_v31 = vrot.slane %v459_v19, 3  ;;  %v10512_v57 = vld [vmem:[%s10423_s16 + $0x58] sm:$0xff]  ;;  %v9398_v59 = vld [vmem:[%s13754_s2 + $0xb0] sm:$0xff]  ;;  %v9397_v3 = vld [vmem:[%s13754_s2 + $0xa8] sm:$0xff] }
  0x15   : > { %10300 = vmatpush.bf16.msra.mxu3 %v9389_v5  ;;  %945 = vmatpush.bf16.msra.mxu1 %v9389_v5  ;;  %v530_v32 = vrot.slane %v13777_v20, 2  ;;  %v533_v33 = vrot.slane %v13776_v21, 3  ;;  %v539_v37 = vrot.slane %v13775_v26, 2  ;;  %v542_v38 = vrot.slane %v13774_v27, 3  ;;  %v9406_v61 = vld [vmem:[%s13754_s2 + $0xf0] sm:$0xff]  ;;  %v9405_v4 = vld [vmem:[%s13754_s2 + $0xe8] sm:$0xff] }
  0x16   : > { %v448_v24 = vshrl.u32 %v427_v15, 16  ;;  %v451_v25 = vshll.u32 %v427_v15, 16  ;;  %v10482_v40 = vpack.c.b16 %v391_v10, %v837_v29  ;;  %v462_v41 = vor.u32 %v461_v31, %v458_v30  ;;  %v9414_v2 = vld [vmem:[%s13754_s2 + $0x130] sm:$0xff]  ;;  %v9413_v9 = vld [vmem:[%s13754_s2 + $0x128] sm:$0xff] }
  0x17   : > { %v10487_v44 = vor.u32 %v533_v33, %v530_v32  ;;  %v543_v45 = vor.u32 %v542_v38, %v539_v37  ;;  %v857_v47 = vrot.slane %v10440_v13, 3  ;;  %v859_v48 = vrot.slane %v10446_v16, 3  ;;  %v9396_v33 = vld [vmem:[%s13754_s2 + $0xa0] sm:$0xff] }
  0x18   : > { %686 = vmatpush.bf16.msra.mxu0 %v9380_v8  ;;  %10293 = vmatpush.bf16.msra.mxu2 %v9380_v8  ;;  %v450_v35 = vrot.slane %v448_v24, 2  ;;  %v453_v36 = vrot.slane %v451_v25, 3  ;;  %v840_v51 = vrot.slane %v10482_v40, 3  ;;  %v841_v52 = vrot.slane %v10437_v12, 3  ;;  %v10556_v24 = vld [vmem:[%s10423_s16 + $0x60] sm:$0xff] }
  0x19   : > { %10301 = vmatpush.bf16.msra.mxu3 %v9388_v11  ;;  %946 = vmatpush.bf16.msra.mxu1 %v9388_v11  ;;  %v544_v54 = vsel %vm446_vm0, %v10487_v44, %v543_v45  ;;  %v860_v58 = vsel %vm839_vm1, %v857_v47, %v859_v48  ;;  %v465_v62 = vshrl.u32 %v10509_v56, 16  ;;  %v468_v63 = vshll.u32 %v10509_v56, 16 }
  0x1a   : > { %v454_v43 = vor.u32 %v453_v36, %v450_v35  ;;  %v842_v60 = vsel %vm839_vm1, %v840_v51, %v841_v52  ;;  %v13773_v0 = vshrl.u32 %v10512_v57, 16  ;;  %v13772_v1 = vshll.u32 %v10512_v57, 16 }
  0x1b   : > { %v467_v5 = vrot.slane %v465_v62, 2  ;;  %v470_v6 = vrot.slane %v468_v63, 3  ;;  %v843_v15 = vrot.slane %v10509_v56, 3  ;;  %v13771_v31 = vshrl.u32 %v10556_v24, 16 }
  0x1c   : > { %687 = vmatpush.bf16.msra.mxu0 %v9379_v14  ;;  %10294 = vmatpush.bf16.msra.mxu2 %v9379_v14  ;;  %v463_v53 = vsel %vm446_vm0, %v454_v43, %v462_v41  ;;  %v548_v7 = vrot.slane %v13773_v0, 2  ;;  %v551_v8 = vrot.slane %v13772_v1, 3  ;;  %v861_v14 = vrot.slane %v10512_v57, 3 }
  0x1d   : > { %10302 = vmatpush.bf16.msra.mxu3 %v9387_v17  ;;  %947 = vmatpush.bf16.msra.mxu1 %v9387_v17  ;;  %v471_v10 = vor.u32 %v470_v6, %v467_v5  ;;  %v13770_v32 = vshll.u32 %v10556_v24, 16  ;;  %v557_v37 = vrot.slane %v13771_v31, 2  ;;  %vm291_vm10 = vsmask.f32 1280 }
  0x1e   : > { %v552_v11 = vor.u32 %v551_v8, %v548_v7  ;;  %v862_v25 = vsel %vm839_vm1, %v859_v48, %v861_v14  ;;  %v10583_v48 = vld [vmem:[%s10423_s16 + $0x20] sm:$0xff]  ;;  %vm292_vm11 = vmand %vm290_vm9, %vm291_vm10 }
  0x1f   : > { %v472_v17 = vsel %vm446_vm0, %v462_v41, %v471_v10  ;;  %v560_v38 = vrot.slane %v13770_v32, 3  ;;  %v847_v8 = vrot.slane %v10583_v48, 3  ;;  %v1108_v32 = vrot.slane %v456_v18, 3 }
  0x20   : > { %688 = vmatpush.bf16.msra.mxu0 %v9378_v23  ;;  %10295 = vmatpush.bf16.msra.mxu2 %v9378_v23  ;;  %v553_v22 = vsel %vm446_vm0, %v543_v45, %v552_v11  ;;  %v10553_v23 = vld [vmem:[%s10423_s16 + $0x18] sm:$0xff] }
  0x21   : > { %10303 = vmatpush.bf16.msra.mxu3 %v9386_v28  ;;  %948 = vmatpush.bf16.msra.mxu1 %v9386_v28  ;;  %v844_v28 = vsel %vm839_vm1, %v841_v52, %v843_v15  ;;  %v474_v29 = vshrl.u32 %v10553_v23, 16  ;;  %v477_v30 = vshll.u32 %v10553_v23, 16  ;;  %v561_v41 = vor.u32 %v560_v38, %v557_v37 }
  0x22   : > { %v845_v43 = vrot.slane %v10553_v23, 3  ;;  %v483_v52 = vshrl.u32 %v10583_v48, 16 }
  0x23   : > { %v476_v35 = vrot.slane %v474_v29, 2  ;;  %v479_v36 = vrot.slane %v477_v30, 3 }
  0x24   : > { %689 = vmatpush.bf16.msra.mxu0 %v9377_v34  ;;  %10296 = vmatpush.bf16.msra.mxu2 %v9377_v34  ;;  %v9404_v34 = vld [vmem:[%s13754_s2 + $0xe0] sm:$0xff]  ;;  %v846_v51 = vsel %vm839_vm1, %v843_v15, %v845_v43 }
  0x25   : > { %10304 = vmatpush.bf16.msra.mxu3 %v9385_v39  ;;  %949 = vmatpush.bf16.msra.mxu1 %v9385_v39  ;;  %v480_v39 = vor.u32 %v479_v36, %v476_v35  ;;  %v9394_v35 = vld [vmem:[%s13754_s2 + $0x90] sm:$0xff] }
  0x26   : > { %v9402_v36 = vld [vmem:[%s13754_s2 + $0xd0] sm:$0xff] }
  0x27   : > { %v481_v45 = vsel %vm446_vm0, %v471_v10, %v480_v39 }
  0x28   : > { %690 = vmatpush.bf16.msra.mxu0 %v9376_v42  ;;  %10297 = vmatpush.bf16.msra.mxu2 %v9376_v42  ;;  %v863_v42 = vrot.slane %v10556_v24, 3 }
  0x29   : > { %10305 = vmatpush.bf16.msra.mxu3 %v9384_v46  ;;  %950 = vmatpush.bf16.msra.mxu1 %v9384_v46  ;;  %v562_v46 = vsel %vm446_vm0, %v552_v11, %v561_v41  ;;  %v10616_v11 = vld [vmem:[%s10423_s16 + $0x28] sm:$0xff] }
  0x2b   : > { %691 = vmatmul.bf16.vlgmr.msra.gmra.mxu0 %v463_v53  ;;  %736 = vmatmul.bf16.vlgmr.msra.gmra.mxu2 %v544_v54  ;;  %v486_v53 = vshll.u32 %v10583_v48, 16  ;;  %v9472_v48 = vld [vmem:[%s13754_s2 + $0x1e8] sm:$0xff] }
  0x2c   : > { %1251 = vmatpush.bf16.msrb.mxu2 %v9399_v49  ;;  %996 = vmatmul.bf16.vlgmr.msra.gmra.mxu3 %v860_v58  ;;  %v10586_v49 = vld [vmem:[%s10423_s16 + $0x68] sm:$0xff]  ;;  %v9412_v58 = vld [vmem:[%s13754_s2 + $0x120] sm:$0xff] }
  0x2d   : > { %1769 = vmatpush.bf16.msrb.mxu3 %v9407_v50  ;;  %2005 = vmatpush.bf16.msrb.mxu0 %v9415_v55  ;;  %v864_v50 = vsel %vm839_vm1, %v861_v14, %v863_v42  ;;  %v13769_v54 = vshrl.u32 %v10586_v49, 16  ;;  %v13768_v55 = vshll.u32 %v10586_v49, 16  ;;  %v865_v7 = vrot.slane %v10586_v49, 3  ;;  %v10619_v14 = vld [vmem:[%s10423_s16 + $0x70] sm:$0xff] }
  0x2e   : > { %951 = vmatmul.bf16.vlgmr.msra.gmra.mxu1 %v842_v60  ;;  %v9403_v60 = vld [vmem:[%s13754_s2 + $0xd8] sm:$0xff] }
  0x2f   : > { %v866_v15 = vsel %vm839_vm1, %v863_v42, %v865_v7 }
  0x30   : > { %1252 = vmatpush.bf16.msrb.mxu2 %v9398_v59  ;;  %v9395_v59 = vld [vmem:[%s13754_s2 + $0x98] sm:$0xff] }
  0x31   : > { %1770 = vmatpush.bf16.msrb.mxu3 %v9406_v61  ;;  %2006 = vmatpush.bf16.msrb.mxu0 %v9414_v2  ;;  %v485_v61 = vrot.slane %v483_v52, 2  ;;  %v488_v2 = vrot.slane %v486_v53, 3 }
  0x33   : > { %v489_v5 = vor.u32 %v488_v2, %v485_v61 }
  0x34   : > { %1253 = vmatpush.bf16.msrb.mxu2 %v9397_v3  ;;  %v566_v3 = vrot.slane %v13769_v54, 2 }
  0x35   : > { %1771 = vmatpush.bf16.msrb.mxu3 %v9405_v4  ;;  %2007 = vmatpush.bf16.msrb.mxu0 %v9413_v9  ;;  %v569_v4 = vrot.slane %v13768_v55, 3  ;;  %v490_v9 = vsel %vm446_vm0, %v480_v39, %v489_v5 }
  0x37   : > { %v570_v6 = vor.u32 %v569_v4, %v566_v3 }
  0x38   : > { %1254 = vmatpush.bf16.msrb.mxu2 %v9396_v33  ;;  %v13764_v33 = vshll.u32 %v10619_v14, 16 }
  0x39   : > { %1772 = vmatpush.bf16.msrb.mxu3 %v9404_v34  ;;  %2008 = vmatpush.bf16.msrb.mxu0 %v9412_v58  ;;  %v571_v10 = vsel %vm446_vm0, %v561_v41, %v570_v6  ;;  %v9411_v34 = vld [vmem:[%s13754_s2 + $0x118] sm:$0xff]  ;;  %v10649_v58 = vld [vmem:[%s10423_s16 + $0x30] sm:$0xff] }
  0x3a   : > { %v578_v41 = vrot.slane %v13764_v33, 3  ;;  %v501_v2 = vshrl.u32 %v10649_v58, 16  ;;  %v504_v3 = vshll.u32 %v10649_v58, 16 }
  0x3b   : > { %696 = vmatmul.bf16.gmra.mxu0 %v472_v17  ;;  %741 = vmatmul.bf16.gmra.mxu2 %v553_v22  ;;  %v848_v17 = vsel %vm839_vm1, %v845_v43, %v847_v8  ;;  %v492_v22 = vshrl.u32 %v10616_v11, 16 }
  0x3c   : > { %1001 = vmatmul.bf16.gmra.mxu3 %v862_v25  ;;  %1255 = vmatpush.bf16.msrb.mxu2 %v9395_v59  ;;  %v495_v25 = vshll.u32 %v10616_v11, 16  ;;  %v10652_v59 = vld [vmem:[%s10423_s16 + $0x78] sm:$0xff] }
  0x3d   : > { %1773 = vmatpush.bf16.msrb.mxu3 %v9403_v60  ;;  %2009 = vmatpush.bf16.msrb.mxu0 %v9411_v34  ;;  %v494_v37 = vrot.slane %v492_v22, 2  ;;  %v13763_v4 = vshrl.u32 %v10652_v59, 16 }
  0x3e   : > { %956 = vmatmul.bf16.gmra.mxu1 %v844_v28  ;;  %v13765_v28 = vshrl.u32 %v10619_v14, 16  ;;  %v497_v38 = vrot.slane %v495_v25, 3 }
  0x40   : > { %1256 = vmatpush.bf16.msrb.mxu2 %v9394_v35  ;;  %v575_v39 = vrot.slane %v13765_v28, 2  ;;  %v498_v42 = vor.u32 %v497_v38, %v494_v37  ;;  %v851_v37 = vrot.slane %v10649_v58, 3 }
  0x41   : > { %1774 = vmatpush.bf16.msrb.mxu3 %v9402_v36  ;;  %v869_v36 = vrot.slane %v10652_v59, 3 }
  0x42   : > { %v579_v43 = vor.u32 %v578_v41, %v575_v39  ;;  %v10682_v41 = vld [vmem:[%s10423_s16 + $0x38] sm:$0xff] }
  0x4b   : > { %701 = vmatmul.bf16.gmra.mxu0 %v481_v45  ;;  %746 = vmatmul.bf16.gmra.mxu2 %v562_v46  ;;  %v867_v45 = vrot.slane %v10619_v14, 3  ;;  %v849_v46 = vrot.slane %v10616_v11, 3 }
  0x4c   : > { %1006 = vmatmul.bf16.gmra.mxu3 %v864_v50  ;;  %v499_v50 = vsel %vm446_vm0, %v489_v5, %v498_v42  ;;  %v13762_v5 = vshll.u32 %v10652_v59, 16 }
  0x4d   : > { %v868_v60 = vsel %vm839_vm1, %v865_v7, %v867_v45  ;;  %v850_v61 = vsel %vm839_vm1, %v847_v8, %v849_v46  ;;  %v9393_v7 = vld [vmem:[%s13754_s2 + $0x88] sm:$0xff] }
  0x4e   : > { %961 = vmatmul.bf16.gmra.mxu1 %v846_v51  ;;  %v580_v51 = vsel %vm446_vm0, %v570_v6, %v579_v43  ;;  %v9410_v6 = vld [vmem:[%s13754_s2 + $0x110] sm:$0xff]  ;;  %v9401_v8 = vld [vmem:[%s13754_s2 + $0xc8] sm:$0xff]  ;;  %1257 = vmatpush.bf16.msrb.mxu2 %v9393_v7 }
  0x4f   : > { %2010 = vmatpush.bf16.msrb.mxu0 %v9410_v6  ;;  %1775 = vmatpush.bf16.msrb.mxu3 %v9401_v8  ;;  %v513_v6 = vshll.u32 %v10682_v41, 16 }
  0x5b   : > { %706 = vmatmul.bf16.gmra.mxu0 %v490_v9  ;;  %751 = vmatmul.bf16.gmra.mxu2 %v571_v10  ;;  %v503_v9 = vrot.slane %v501_v2, 2  ;;  %v506_v10 = vrot.slane %v504_v3, 3 }
  0x5c   : > { %1011 = vmatmul.bf16.gmra.mxu3 %v866_v15  ;;  %v584_v15 = vrot.slane %v13763_v4, 2 }
  0x5d   : > { %v507_v34 = vor.u32 %v506_v10, %v503_v9 }
  0x5e   : > { %966 = vmatmul.bf16.gmra.mxu1 %v848_v17  ;;  %v587_v17 = vrot.slane %v13762_v5, 3  ;;  %v336_v5 = vld [vmem:[%s10423_s16 + $0x90] sm:$0x7] }
  0x5f   : > { %v508_v38 = vsel %vm446_vm0, %v498_v42, %v507_v34  ;;  %v426_v33 = vunpack.c.l.b16 %v336_v5  ;;  %v9436_v5 = vld [vmem:[%s13754_s2 + $0x150] sm:$0xff] }
  0x60   : > { %v588_v35 = vor.u32 %v587_v17, %v584_v15 }
  0x62   : > { %v589_v39 = vsel %vm446_vm0, %v579_v43, %v588_v35  ;;  %v9409_v43 = vld [vmem:[%s13754_s2 + $0x108] sm:$0xff] }
  0x63   : > { %2011 = vmatpush.bf16.msrb.mxu0 %v9409_v43  ;;  %v10712_v43 = vld [vmem:[%s10423_s16 + $0x40] sm:$0xff] }
  0x6b   : > { %711 = vmatmul.bf16.gmra.mxu0 %v499_v50  ;;  %756 = vmatmul.bf16.gmra.mxu2 %v580_v51  ;;  %v10685_v50 = vld [vmem:[%s10423_s16 + $0x80] sm:$0xff]  ;;  %v870_v51 = vsel %vm839_vm1, %v867_v45, %v869_v36 }
  0x6c   : > { %1016 = vmatmul.bf16.gmra.mxu3 %v868_v60  ;;  %v852_v60 = vsel %vm839_vm1, %v849_v46, %v851_v37  ;;  %v13760_v7 = vshrl.u32 %v10685_v50, 16  ;;  %v13761_v42 = vshll.u32 %v10685_v50, 16  ;;  %v515_v46 = vrot.slane %v513_v6, 3 }
  0x6d   : > { %v871_v17 = vrot.slane %v10685_v50, 3 }
  0x6e   : > { %971 = vmatmul.bf16.gmra.mxu1 %v850_v61  ;;  %v510_v61 = vshrl.u32 %v10682_v41, 16  ;;  %v593_v8 = vrot.slane %v13760_v7, 2  ;;  %v596_v9 = vrot.slane %v13761_v42, 3  ;;  %v10715_v7 = vld [vmem:[%s10423_s16 + $0x88] sm:$0xff] }
  0x6f   : > { %v872_v42 = vsel %vm839_vm1, %v869_v36, %v871_v17  ;;  %v13766_v36 = vshrl.u32 %v10715_v7, 16  ;;  %v873_v28 = vrot.slane %v10715_v7, 3 }
  0x70   : > { %v512_v45 = vrot.slane %v510_v61, 2  ;;  %v597_v15 = vor.u32 %v596_v9, %v593_v8  ;;  %v522_v8 = vshll.u32 %v10712_v43, 16  ;;  %v13767_v9 = vshll.u32 %v10715_v7, 16 }
  0x71   : > { %v874_v54 = vsel %vm839_vm1, %v871_v17, %v873_v28  ;;  %v1386_v17 = vld [vmem:[%s10423_s16 + $0x8] sm:$0x8] }
  0x72   : > { %v516_v10 = vor.u32 %v515_v46, %v512_v45  ;;  %v9392_v45 = vld [vmem:[%s13754_s2 + $0x80] sm:$0xff] }
  0x73   : > { %1258 = vmatpush.bf16.msrb.mxu2 %v9392_v45  ;;  %v605_v45 = vrot.slane %v13767_v9, 3  ;;  %v9437_v9 = vld [vmem:[%s13754_s2 + $0x158] sm:$0xff] }
  0x7b   : > { %716 = vmatmul.bf16.gmra.mxu0 %v508_v38  ;;  %761 = vmatmul.bf16.gmra.mxu2 %v589_v39  ;;  %v853_v38 = vrot.slane %v10682_v41, 3  ;;  %v9441_v39 = vld [vmem:[%s13754_s2 + $0x178] sm:$0xff] }
  0x7c   : > { %1021 = vmatmul.bf16.gmra.mxu3 %v870_v51  ;;  %v517_v51 = vsel %vm446_vm0, %v507_v34, %v516_v10  ;;  %2502 = vmatpush.bf16.msrb.mxu1 %v9441_v39  ;;  %v9440_v34 = vld [vmem:[%s13754_s2 + $0x170] sm:$0xff] }
  0x7d   : > { %v854_v46 = vsel %vm839_vm1, %v851_v37, %v853_v38  ;;  %v9400_v37 = vld [vmem:[%s13754_s2 + $0xc0] sm:$0xff] }
  0x7e   : > { %976 = vmatmul.bf16.gmra.mxu1 %v852_v60  ;;  %v598_v60 = vsel %vm446_vm0, %v588_v35, %v597_v15  ;;  %v519_v35 = vshrl.u32 %v10712_v43, 16  ;;  %1776 = vmatpush.bf16.msrb.mxu3 %v9400_v37 }
  0x80   : > { %2503 = vmatpush.bf16.msrb.mxu1 %v9440_v34  ;;  %v521_v39 = vrot.slane %v519_v35, 2  ;;  %v9438_v34 = vld [vmem:[%s13754_s2 + $0x160] sm:$0xff] }
  0x8b   : > { %721 = vmatmul.bf16.gmra.mxu0 %v517_v51  ;;  %766 = vmatmul.bf16.gmra.mxu2 %v598_v60  ;;  %v524_v51 = vrot.slane %v522_v8, 3  ;;  %v602_v60 = vrot.slane %v13766_v36, 2  ;;  %v855_v36 = vrot.slane %v10712_v43, 3  ;;  %v11013_v43 = vld [vmem:[%s13753_s1] sm:$0xff] }
  0x8c   : > { %1026 = vmatmul.bf16.gmra.mxu3 %v872_v42  ;;  %v9439_v42 = vld [vmem:[%s13754_s2 + $0x168] sm:$0xff] }
  0x8d   : > { %2504 = vmatpush.bf16.msrb.mxu1 %v9439_v42  ;;  %v525_v37 = vor.u32 %v524_v51, %v521_v39  ;;  %v606_v4 = vor.u32 %v605_v45, %v602_v60  ;;  %v856_v39 = vsel %vm839_vm1, %v853_v38, %v855_v36  ;;  %v10773_v38 = vld [vmem:[%s10423_s16 + $0xc] sm:$0xf]  ;;  %v9482_v45 = vld [vmem:[%s13754_s2 + $0x238] sm:$0xff] }
  0x8e   : > { %981 = vmatmul.bf16.gmra.mxu1 %v854_v46  ;;  %v9408_v46 = vld [vmem:[%s13754_s2 + $0x100] sm:$0xff] }
  0x8f   : > { %2012 = vmatpush.bf16.msrb.mxu0 %v9408_v46  ;;  %v526_v55 = vsel %vm446_vm0, %v516_v10, %v525_v37  ;;  %v607_v42 = vsel %vm446_vm0, %v597_v15, %v606_v4  ;;  %v445_v46 = vpack.c.b16 %v426_v33, %v426_v33  ;;  %v9466_v33 = vld [vmem:[%s13754_s2 + $0x1b8] sm:$0xff] }
  0x90   : > { %v9474_v10 = vld [vmem:[%s13754_s2 + $0x1f8] sm:$0xff]  ;;  %2998 = vmatpush.bf16.msra.mxu2 %v9466_v33  ;;  %v535_v33 = vsel %vm446_vm0, %v525_v37, %v10487_v44  ;;  %v1101_v44 = vshrl.u32 %v10482_v40, 16 }
  0x91   : > { %2505 = vmatpush.bf16.msrb.mxu1 %v9438_v34  ;;  %v609_v51 = vshrl.u32 %v445_v46, 16  ;;  %v612_v60 = vshll.u32 %v445_v46, 16  ;;  %3258 = vmatpush.bf16.msra.mxu3 %v9474_v10 }
  0x93   : > { %v611_v15 = vrot.slane %v609_v51, 2  ;;  %3566 = vmatpush.bf16.msra.mxu0 %v9482_v45  ;;  %v10785_v51 = vld [vmem:[%s13756_s4] ss:$0 sm:$0xff] }
  0x95   : > { %2506 = vmatpush.bf16.msrb.mxu1 %v9437_v9  ;;  %v9434_v9 = vld [vmem:[%s13754_s2 + $0x140] sm:$0xff] }
  0x99   : > { %2507 = vmatpush.bf16.msrb.mxu1 %v9436_v5  ;;  %v875_v5 = vrot.slane %v445_v46, 3  ;;  %v858_v46 = vsel %vm839_vm1, %v855_v36, %v857_v47 }
  0x9b   : > { %726 = vmatmul.bf16.gmra.mxu0 %v526_v55  ;;  %771 = vmatmul.bf16.gmra.mxu2 %v607_v42  ;;  %v9435_v55 = vld [vmem:[%s13754_s2 + $0x148] sm:$0xff]  ;;  %v1477_v42 = vunpack.c.l.b16 %v1386_v17 }
  0x9c   : > { %1031 = vmatmul.bf16.gmra.mxu3 %v874_v54  ;;  %v614_v54 = vrot.slane %v612_v60, 3 }
  0x9d   : > { %2508 = vmatpush.bf16.msrb.mxu1 %v9435_v55 }
  0x9e   : > { %986 = vmatmul.bf16.gmra.mxu1 %v856_v39  ;;  %v615_v34 = vor.u32 %v614_v54, %v611_v15  ;;  %v1478_v39 = vunpack.c.l.b16 %v10773_v38  ;;  %v876_v54 = vsel %vm839_vm1, %v873_v28, %v875_v5  ;;  %v9981_v38 = vld [vmem:[%s10423_s16 + $0x10] sm:$0xff]  }
  0x9f   : > { %v1542_v28 = vshrl.u32 %v9981_v38, 16  ;;  %v9609_v21 = vunpack.c.l.b16 %v9981_v38 }
  0xa0   : > { %v616_v10 = vsel %vm446_vm0, %v606_v4, %v615_v34  ;;  %v1514_v55 = vpack.c.b16 %v1478_v39, %v1477_v42  ;;  %v1104_v4 = vshll.u32 %v10482_v40, 16  ;;  %v1545_v42 = vshll.u32 %v9981_v38, 16 }
  0xa1   : > { %2509 = vmatpush.bf16.msrb.mxu1 %v9434_v9  ;;  %v9416_v9 = vld [vmem:[%s10423_s16 + $0xc] sm:$0xff]  ;;  %v1109_v40 = vrot.slane %v459_v19, 4  ;;  %v1544_v1 = vrot.slane %v1542_v28, 3 }
  0xa2   : > { %v1534_v37 = vshrl.u32 %v1514_v55, 16  ;;  %v1537_v34 = vshll.u32 %v1514_v55, 16  ;;  %v2291_v47 = vshll.u32 %v9416_v9, 16  ;;  %v1547_v0 = vrot.slane %v1545_v42, 4 }
  0xa3   : > { %v1110_v20 = vor.u32 %v1109_v40, %v1108_v32 }
  0xa4   : > { %v1536_v55 = vrot.slane %v1534_v37, 3  ;;  %v2293_v26 = vrot.slane %v2291_v47, 1  ;;  %v1548_v19 = vor.u32 %v1547_v0, %v1544_v1 }
  0xa8   : > { %v692_v60 = vpop.f32.mrf.mxu0 }
  0xa9   : > { %v782_v15 = vadd.f32 %v10785_v51, %v692_v60  ;;  %v10802_v60 = vld [vmem:[%s10423_s16 + $0x14] sm:$0xff] }
  0xab   : > { %v952_v17 = vpop.f32.mrf.mxu1  ;;  %731 = vmatmul.bf16.gmra.mxu0 %v535_v33  ;;  %776 = vmatmul.bf16.gmra.mxu2 %v616_v10  ;;  %v1103_v10 = vrot.slane %v1101_v44, 3  ;;  %v2296_v44 = vshll.u32 %v10802_v60, 16 }
  0xac   : > { %v10797_v45 = vadd.f32 %v952_v17, %v782_v15  ;;  %1036 = vmatmul.bf16.gmra.mxu3 %v876_v54  ;;  %v1106_v15 = vrot.slane %v1104_v4, 4  ;;  %v1539_v54 = vrot.slane %v1537_v34, 4 }
  0xae   : > { %991 = vmatmul.bf16.gmra.mxu1 %v858_v46  ;;  %v737_v5 = vpop.f32.mrf.mxu2  ;;  %v1107_v18 = vor.u32 %v1106_v15, %v1103_v10  ;;  %v1540_v12 = vor.u32 %v1539_v54, %v1536_v55  ;;  %v9418_v15 = vld [vmem:[%s10423_s16 + $0x1c] sm:$0xff]  ;;  %v1112_v54 = vrot.slane %v465_v62, 3  ;;  %v2300_v62 = vshrl.u32 %v10802_v60, 16 }
  0xaf   : > { %v800_v36 = vadd.f32 %v10785_v51, %v737_v5  ;;  %v997_v33 = vpop.f32.mrf.mxu3  ;;  %v2289_v5 = vshrl.u32 %v9416_v9, 16  ;;  %v2304_v56 = vshll.u32 %v9418_v15, 16 }
  0xb0   : > { %v694_v17 = vpop.f32.mrf.mxu0  ;;  %v1549_v38 = vsel %vm1099_vm2, %v1540_v12, %v1548_v19 }
  0xb1   : > { %v10809_v46 = vadd.f32 %v997_v33, %v800_v36  ;;  %v783_v31 = vadd.f32 %v10785_v51, %v694_v17  ;;  %v2294_v34 = vor.u32 %v2293_v26, %v2289_v5  ;;  %v2298_v36 = vrot.slane %v2296_v44, 1  ;;  %v9982_v26 = vld [vmem:[%s10423_s16 + $0x18] sm:$0xff]  }
  0xb2   : > { %v1921_v33 = vpack.c.b16 %v9609_v21, %v1478_v39  ;;  %v1551_v21 = vshrl.u32 %v9982_v26, 16  ;;  %v1554_v39 = vshll.u32 %v9982_v26, 16  ;;  %v1113_v5 = vrot.slane %v468_v63, 4  ;;  %v10228_v26 = vld [vmem:[%s10423_s16 + $0x14] sm:$0xff]  }
  0xb3   : > { %v954_v27 = vpop.f32.mrf.mxu1  ;;  %v2299_v0 = vsel %vm2287_vm3, %v2294_v34, %v2298_v36  ;;  %v9465_v34 = vld [vmem:[%s13754_s2 + $0x1b0] sm:$0xff] }
  0xb4   : > { %v10813_v4 = vadd.f32 %v954_v27, %v783_v31  ;;  %v1111_v27 = vsel %vm1099_vm2, %v1107_v18, %v1110_v20  ;;  %v1553_v12 = vrot.slane %v1551_v21, 3  ;;  %2999 = vmatpush.bf16.msra.mxu2 %v9465_v34 }
  0xb6   : > { %v739_v37 = vpop.f32.mrf.mxu2 }
  0xb7   : > { %v801_v28 = vadd.f32 %v10785_v51, %v739_v37  ;;  %v999_v42 = vpop.f32.mrf.mxu3  ;;  %v1556_v37 = vrot.slane %v1554_v39, 4 }
  0xb8   : > { %v697_v9 = vpop.f32.mrf.mxu0 }
  0xb9   : > { %v10817_v31 = vadd.f32 %v999_v42, %v801_v28  ;;  %v784_v32 = vadd.f32 %v10785_v51, %v697_v9  ;;  %v9473_v28 = vld [vmem:[%s13754_s2 + $0x1f0] sm:$0xff]  ;;  %v1557_v9 = vor.u32 %v1556_v37, %v1553_v12  ;;  %v9419_v37 = vld [vmem:[%s10423_s16 + $0x24] sm:$0xff] }
  0xba   : > { %3259 = vmatpush.bf16.msra.mxu3 %v9473_v28 }
  0xbb   : > { %13878 = vst [vmem:[#allocation3_spill] sm:$0xff] %v10817_v31  ;;  %v957_v47 = vpop.f32.mrf.mxu1  ;;  %1259 = vmatmul.bf16.vlgmr.msrb.gmra.mxu2 %v1111_v27  ;;  %2013 = vmatmul.bf16.vlgmr.msrb.gmra.mxu0 %v1921_v33  ;;  %v1114_v33 = vor.u32 %v1113_v5, %v1112_v54  ;;  %v9983_v54 = vld [vmem:[%s10423_s16 + $0x20] sm:$0xff]  }
  0xbc   : > { %v10823_v1 = vadd.f32 %v957_v47, %v784_v32  ;;  %1777 = vmatmul.bf16.vlgmr.msrb.gmra.mxu3 %v1549_v38  ;;  %v2302_v32 = vor.u32 %v2300_v62, %v2298_v36  ;;  %v2306_v38 = vrot.slane %v2304_v56, 1  ;;  %v1117_v62 = vrot.slane %v477_v30, 4 }
  0xbd   : > { %v1115_v39 = vsel %vm1099_vm2, %v1110_v20, %v1114_v33  ;;  %v1560_v20 = vshrl.u32 %v9983_v54, 16 }
  0xbe   : > { %2510 = vmatmul.bf16.vlgmr.msrb.gmra.mxu1 %v2299_v0  ;;  %v742_v10 = vpop.f32.mrf.mxu2  ;;  %3260 = vmatpush.bf16.msra.mxu3 %v9472_v48  ;;  %v1124_v48 = vrot.slane %v492_v22, 3 }
  0xbf   : > { %v802_v17 = vadd.f32 %v10785_v51, %v742_v10  ;;  %v1002_v40 = vpop.f32.mrf.mxu3 }
  0xc0   : > { %v699_v55 = vpop.f32.mrf.mxu0 }
  0xc1   : > { %v10831_v44 = vadd.f32 %v1002_v40, %v802_v17  ;;  %v785_v18 = vadd.f32 %v10785_v51, %v699_v55  ;;  %v1558_v17 = vsel %vm1099_vm2, %v1548_v19, %v1557_v9  ;;  %v9481_v40 = vld [vmem:[%s13754_s2 + $0x230] sm:$0xff]  ;;  %v2307_v55 = vsel %vm2287_vm3, %v2302_v32, %v2306_v38 }
  0xc2   : > { %3567 = vmatpush.bf16.msra.mxu0 %v9481_v40  ;;  %v1562_v32 = vrot.slane %v1560_v20, 3 }
  0xc3   : > { %13879 = vst [vmem:[#allocation4_spill] sm:$0xff] %v10831_v44  ;;  %v959_v42 = vpop.f32.mrf.mxu1 }
  0xc4   : > { %v10841_v63 = vadd.f32 %v959_v42, %v785_v18  ;;  %v1563_v18 = vshll.u32 %v9983_v54, 16  ;;  %v1116_v42 = vrot.slane %v474_v29, 3 }
  0xc6   : > { %v744_v27 = vpop.f32.mrf.mxu2 }
  0xc7   : > { %v803_v47 = vadd.f32 %v10785_v51, %v744_v27  ;;  %v1004_v0 = vpop.f32.mrf.mxu3 }
  0xc8   : > { %v702_v21 = vpop.f32.mrf.mxu0 }
  0xc9   : > { %v10846_v10 = vadd.f32 %v1004_v0, %v803_v47  ;;  %v786_v60 = vadd.f32 %v10785_v51, %v702_v21  ;;  %v1565_v47 = vrot.slane %v1563_v18, 4  ;;  %v2312_v21 = vshll.u32 %v9419_v37, 16 }
  0xcb   : > { %13880 = vst [vmem:[#allocation5_spill] sm:$0xff] %v10846_v10  ;;  %v962_v36 = vpop.f32.mrf.mxu1  ;;  %1264 = vmatmul.bf16.gmra.mxu2 %v1115_v39  ;;  %2018 = vmatmul.bf16.gmra.mxu0 %v10228_v26  ;;  %v2308_v26 = vshrl.u32 %v9418_v15, 16 }
  0xcc   : > { %v10855_v5 = vadd.f32 %v962_v36, %v786_v60  ;;  %1782 = vmatmul.bf16.gmra.mxu3 %v1558_v17  ;;  %v1118_v60 = vor.u32 %v1117_v62, %v1116_v42  ;;  %v1566_v17 = vor.u32 %v1565_v47, %v1562_v32  ;;  %v2314_v36 = vrot.slane %v2312_v21, 1 }
  0xcd   : > { %v2310_v29 = vor.u32 %v2308_v26, %v2306_v38  ;;  %v1121_v26 = vrot.slane %v486_v53, 4 }
  0xce   : > { %2515 = vmatmul.bf16.gmra.mxu1 %v2307_v55  ;;  %v747_v12 = vpop.f32.mrf.mxu2  ;;  %v10230_v55 = vld [vmem:[%s10423_s16 + $0x1c] sm:$0xff]   ;;  %v1119_v20 = vsel %vm1099_vm2, %v1114_v33, %v1118_v60  ;;  %v9420_v33 = vld [vmem:[%s10423_s16 + $0x2c] sm:$0xff] }
  0xcf   : > { %v804_v19 = vadd.f32 %v10785_v51, %v747_v12  ;;  %v1007_v34 = vpop.f32.mrf.mxu3  ;;  %v1567_v12 = vsel %vm1099_vm2, %v1557_v9, %v1566_v17  ;;  %v1120_v9 = vrot.slane %v483_v52, 3 }
  0xd0   : > { %v704_v28 = vpop.f32.mrf.mxu0 }
  0xd1   : > { %v10863_v56 = vadd.f32 %v1007_v34, %v804_v19  ;;  %v787_v27 = vadd.f32 %v10785_v51, %v704_v28  ;;  %v2315_v34 = vsel %vm2287_vm3, %v2310_v29, %v2314_v36  ;;  %v9984_v28 = vld [vmem:[%s10423_s16 + $0x28] sm:$0xff]   ;;  %v1122_v52 = vor.u32 %v1121_v26, %v1120_v9 }
  0xd2   : > { %v1569_v42 = vshrl.u32 %v9984_v28, 16  ;;  %v1572_v62 = vshll.u32 %v9984_v28, 16 }
  0xd3   : > { %13881 = vst [vmem:[#allocation6_spill] sm:$0xff] %v10863_v56  ;;  %v964_v0 = vpop.f32.mrf.mxu1 }
  0xd4   : > { %v10866_v39 = vadd.f32 %v964_v0, %v787_v27  ;;  %v1571_v29 = vrot.slane %v1569_v42, 3 }
  0xd6   : > { %v749_v40 = vpop.f32.mrf.mxu2 }
  0xd7   : > { %v805_v23 = vadd.f32 %v10785_v51, %v749_v40  ;;  %v1009_v30 = vpop.f32.mrf.mxu3 }
  0xd8   : > { %v707_v54 = vpop.f32.mrf.mxu0 }
  0xd9   : > { %v10871_v18 = vadd.f32 %v1009_v30, %v805_v23  ;;  %v788_v15 = vadd.f32 %v10785_v51, %v707_v54  ;;  %v1574_v23 = vrot.slane %v1572_v62, 4  ;;  %v9464_v30 = vld [vmem:[%s13754_s2 + $0x1a8] sm:$0xff]  ;;  %v2316_v54 = vshrl.u32 %v9419_v37, 16 }
  0xda   : > { %3000 = vmatpush.bf16.msra.mxu2 %v9464_v30  ;;  %v10232_v62 = vld [vmem:[%s10423_s16 + $0x24] sm:$0xff]  }
  0xdb   : > { %13882 = vst [vmem:[#allocation7_spill] sm:$0xff] %v10871_v18  ;;  %v967_v19 = vpop.f32.mrf.mxu1  ;;  %1269 = vmatmul.bf16.gmra.mxu2 %v1119_v20  ;;  %2023 = vmatmul.bf16.gmra.mxu0 %v10230_v55  ;;  %v2320_v20 = vshll.u32 %v9420_v33, 16  ;;  %v1575_v53 = vor.u32 %v1574_v23, %v1571_v29 }
  0xdc   : > { %v10877_v38 = vadd.f32 %v967_v19, %v788_v15  ;;  %1787 = vmatmul.bf16.gmra.mxu3 %v1567_v12  ;;  %v2318_v19 = vor.u32 %v2316_v54, %v2314_v36 }
  0xde   : > { %2520 = vmatmul.bf16.gmra.mxu1 %v2315_v34  ;;  %v752_v27 = vpop.f32.mrf.mxu2  ;;  %v2322_v34 = vrot.slane %v2320_v20, 1 }
  0xdf   : > { %v806_v32 = vadd.f32 %v10785_v51, %v752_v27  ;;  %v1012_v47 = vpop.f32.mrf.mxu3  ;;  %v1123_v27 = vsel %vm1099_vm2, %v1118_v60, %v1122_v52  ;;  %v9480_v60 = vld [vmem:[%s13754_s2 + $0x228] sm:$0xff] }
  0xe0   : > { %v709_v0 = vpop.f32.mrf.mxu0  ;;  %v2323_v26 = vsel %vm2287_vm3, %v2318_v19, %v2322_v34  ;;  %3568 = vmatpush.bf16.msra.mxu0 %v9480_v60 }
  0xe1   : > { %v10885_v21 = vadd.f32 %v1012_v47, %v806_v32  ;;  %v789_v40 = vadd.f32 %v10785_v51, %v709_v0  ;;  %v1576_v0 = vsel %vm1099_vm2, %v1566_v17, %v1575_v53 }
  0xe3   : > { %13883 = vst [vmem:[#allocation8_spill] sm:$0xff] %v10885_v21  ;;  %v969_v55 = vpop.f32.mrf.mxu1 }
  0xe4   : > { %v10891_v15 = vadd.f32 %v969_v55, %v789_v40  ;;  %v9985_v40 = vld [vmem:[%s10423_s16 + $0x30] sm:$0xff]  }
  0xe5   : > { %v1578_v29 = vshrl.u32 %v9985_v40, 16  ;;  %v1581_v23 = vshll.u32 %v9985_v40, 16  ;;  %v9421_v55 = vld [vmem:[%s10423_s16 + $0x34] sm:$0xff] }
  0xe6   : > { %v754_v12 = vpop.f32.mrf.mxu2 }
  0xe7   : > { %v807_v28 = vadd.f32 %v10785_v51, %v754_v12  ;;  %v1014_v42 = vpop.f32.mrf.mxu3  ;;  %v1125_v12 = vrot.slane %v495_v25, 4 }
  0xe8   : > { %v712_v37 = vpop.f32.mrf.mxu0 }
  0xe9   : > { %v10899_v32 = vadd.f32 %v1014_v42, %v807_v28  ;;  %v790_v47 = vadd.f32 %v10785_v51, %v712_v37  ;;  %v1580_v42 = vrot.slane %v1578_v29, 3 }
  0xeb   : > { %13884 = vst [vmem:[#allocation9_spill] sm:$0xff] %v10899_v32  ;;  %v972_v9 = vpop.f32.mrf.mxu1  ;;  %1274 = vmatmul.bf16.gmra.mxu2 %v1123_v27  ;;  %2028 = vmatmul.bf16.gmra.mxu0 %v10232_v62  ;;  %v1583_v62 = vrot.slane %v1581_v23, 4  ;;  %v2324_v27 = vshrl.u32 %v9420_v33, 16 }
  0xec   : > { %v10905_v36 = vadd.f32 %v972_v9, %v790_v47  ;;  %1792 = vmatmul.bf16.gmra.mxu3 %v1576_v0  ;;  %v2328_v47 = vshll.u32 %v9421_v55, 16  ;;  %v1126_v9 = vor.u32 %v1125_v12, %v1124_v48  ;;  %v9986_v12 = vld [vmem:[%s10423_s16 + $0x38] sm:$0xff]  }
  0xed   : > { %v2326_v22 = vor.u32 %v2324_v27, %v2322_v34 }
  0xee   : > { %2525 = vmatmul.bf16.gmra.mxu1 %v2323_v26  ;;  %v757_v30 = vpop.f32.mrf.mxu2  ;;  %v1584_v26 = vor.u32 %v1583_v62, %v1580_v42  ;;  %v2330_v60 = vrot.slane %v2328_v47, 1  ;;  %v1127_v29 = vsel %vm1099_vm2, %v1122_v52, %v1126_v9  ;;  %v1590_v42 = vshll.u32 %v9986_v12, 16  ;;  %v9422_v52 = vld [vmem:[%s10423_s16 + $0x3c] sm:$0xff] }
  0xef   : > { %v808_v17 = vadd.f32 %v10785_v51, %v757_v30  ;;  %v1017_v54 = vpop.f32.mrf.mxu3  ;;  %v10234_v30 = vld [vmem:[%s10423_s16 + $0x2c] sm:$0xff]  }
  0xf0   : > { %v714_v20 = vpop.f32.mrf.mxu0  ;;  %v2331_v48 = vsel %vm2287_vm3, %v2326_v22, %v2330_v60 }
  0xf1   : > { %v10916_v19 = vadd.f32 %v1017_v54, %v808_v17  ;;  %v791_v28 = vadd.f32 %v10785_v51, %v714_v20  ;;  %v1585_v54 = vsel %vm1099_vm2, %v1575_v53, %v1584_v26  ;;  %v1128_v53 = vrot.slane %v501_v2, 3 }
  0xf3   : > { %13885 = vst [vmem:[#allocation10_spill] sm:$0xff] %v10916_v19  ;;  %v974_v37 = vpop.f32.mrf.mxu1 }
  0xf4   : > { %v10919_v0 = vadd.f32 %v974_v37, %v791_v28  ;;  %v1587_v28 = vshrl.u32 %v9986_v12, 16 }
  0xf6   : > { %v759_v40 = vpop.f32.mrf.mxu2 }
  0xf7   : > { %v809_v11 = vadd.f32 %v10785_v51, %v759_v40  ;;  %v1019_v25 = vpop.f32.mrf.mxu3  ;;  %v1129_v40 = vrot.slane %v504_v3, 4 }
  0xf8   : > { %v717_v17 = vpop.f32.mrf.mxu0 }
  0xf9   : > { %v10924_v23 = vadd.f32 %v1019_v25, %v809_v11  ;;  %v792_v33 = vadd.f32 %v10785_v51, %v717_v17  ;;  %v1589_v25 = vrot.slane %v1587_v28, 3 }
  0xfb   : > { %13886 = vst [vmem:[#allocation11_spill] sm:$0xff] %v10924_v23  ;;  %v977_v20 = vpop.f32.mrf.mxu1  ;;  %1279 = vmatmul.bf16.gmra.mxu2 %v1127_v29  ;;  %2033 = vmatmul.bf16.gmra.mxu0 %v10234_v30  ;;  %v1592_v30 = vrot.slane %v1590_v42, 4  ;;  %v2332_v29 = vshrl.u32 %v9421_v55, 16 }
  0xfc   : > { %v10930_v34 = vadd.f32 %v977_v20, %v792_v33  ;;  %1797 = vmatmul.bf16.gmra.mxu3 %v1585_v54  ;;  %v2336_v33 = vshll.u32 %v9422_v52, 16  ;;  %v1130_v20 = vor.u32 %v1129_v40, %v1128_v53  ;;  %v9463_v53 = vld [vmem:[%s13754_s2 + $0x1a0] sm:$0xff] }
  0xfd   : > { %v2334_v2 = vor.u32 %v2332_v29, %v2330_v60  ;;  %v9471_v60 = vld [vmem:[%s13754_s2 + $0x1e0] sm:$0xff]  ;;  %3001 = vmatpush.bf16.msra.mxu2 %v9463_v53 }
  0xfe   : > { %2530 = vmatmul.bf16.gmra.mxu1 %v2331_v48  ;;  %v762_v62 = vpop.f32.mrf.mxu2  ;;  %v1593_v48 = vor.u32 %v1592_v30, %v1589_v25  ;;  %v9987_v25 = vld [vmem:[%s10423_s16 + $0x40] sm:$0xff]   ;;  %3261 = vmatpush.bf16.msra.mxu3 %v9471_v60  ;;  %v2340_v60 = vshrl.u32 %v9422_v52, 16 }
  0xff   : > { %v810_v37 = vadd.f32 %v10785_v51, %v762_v62  ;;  %v1022_v27 = vpop.f32.mrf.mxu3  ;;  %v2338_v62 = vrot.slane %v2336_v33, 1  ;;  %v1599_v30 = vshll.u32 %v9987_v25, 16  ;;  %v10961_v29 = vld [vmem:[%s10423_s16 + $0x44] sm:$0xff] }
 0x100   : > { %v719_v47 = vpop.f32.mrf.mxu0  ;;  %v1594_v42 = vsel %vm1099_vm2, %v1584_v26, %v1593_v48  ;;  %v1596_v26 = vshrl.u32 %v9987_v25, 16 }
 0x101   : > { %v10938_v22 = vadd.f32 %v1022_v27, %v810_v37  ;;  %v793_v11 = vadd.f32 %v10785_v51, %v719_v47  ;;  %v10236_v37 = vld [vmem:[%s10423_s16 + $0x34] sm:$0xff]   ;;  %v1131_v47 = vsel %vm1099_vm2, %v1126_v9, %v1130_v20  ;;  %v2342_v25 = vor.u32 %v2340_v60, %v2338_v62  ;;  %v10992_v60 = vld [vmem:[%s10423_s16 + $0x4c] sm:$0xff] }
 0x103   : > { %13887 = vst [vmem:[#allocation12_spill] sm:$0xff] %v10938_v22  ;;  %v979_v17 = vpop.f32.mrf.mxu1 }
 0x104   : > { %v10941_v54 = vadd.f32 %v979_v17, %v793_v11  ;;  %v2339_v11 = vsel %vm2287_vm3, %v2334_v2, %v2338_v62  ;;  %v1132_v2 = vrot.slane %v510_v61, 3  ;;  %v9988_v62 = vld [vmem:[%s10423_s16 + $0x48] sm:$0xff]  }
 0x106   : > { %v764_v12 = vpop.f32.mrf.mxu2 }
 0x107   : > { %v811_v58 = vadd.f32 %v10785_v51, %v764_v12  ;;  %v1024_v3 = vpop.f32.mrf.mxu3 }
 0x108   : > { %v722_v27 = vpop.f32.mrf.mxu0 }
 0x109   : > { %v10946_v28 = vadd.f32 %v1024_v3, %v811_v58  ;;  %v794_v55 = vadd.f32 %v10785_v51, %v722_v27  ;;  %v1133_v3 = vrot.slane %v513_v6, 4 }
 0x10b   : > { %13888 = vst [vmem:[#allocation13_spill] sm:$0xff] %v10946_v28  ;;  %v982_v40 = vpop.f32.mrf.mxu1  ;;  %1284 = vmatmul.bf16.gmra.mxu2 %v1131_v47  ;;  %2038 = vmatmul.bf16.gmra.mxu0 %v10236_v37  ;;  %v1598_v47 = vrot.slane %v1596_v26, 3  ;;  %v1134_v41 = vor.u32 %v1133_v3, %v1132_v2 }
 0x10c   : > { %v10958_v9 = vadd.f32 %v982_v40, %v794_v55  ;;  %1802 = vmatmul.bf16.gmra.mxu3 %v1594_v42  ;;  %v1601_v55 = vrot.slane %v1599_v30, 4  ;;  %v9479_v42 = vld [vmem:[%s13754_s2 + $0x220] sm:$0xff]  ;;  %v2344_v40 = vshll.u32 %v10961_v29, 16 }
 0x10d   : > { %3569 = vmatpush.bf16.msra.mxu0 %v9479_v42  ;;  %v1135_v52 = vsel %vm1099_vm2, %v1130_v20, %v1134_v41  ;;  %v1605_v42 = vshrl.u32 %v9988_v62, 16  ;;  %v1608_v20 = vshll.u32 %v9988_v62, 16 }
 0x10e   : > { %2535 = vmatmul.bf16.gmra.mxu1 %v2339_v11  ;;  %v767_v17 = vpop.f32.mrf.mxu2  ;;  %v10977_v61 = vor.u32 %v1601_v55, %v1598_v47 }
 0x10f   : > { %v812_v33 = vadd.f32 %v10785_v51, %v767_v17  ;;  %v1027_v12 = vpop.f32.mrf.mxu3  ;;  %v2346_v17 = vrot.slane %v2344_v40, 1 }
 0x110   : > { %v724_v58 = vpop.f32.mrf.mxu0  ;;  %v1603_v2 = vsel %vm1099_vm2, %v1593_v48, %v10977_v61 }
 0x111   : > { %v10968_v37 = vadd.f32 %v1027_v12, %v812_v33  ;;  %v795_v27 = vadd.f32 %v10785_v51, %v724_v58  ;;  %v10238_v33 = vld [vmem:[%s10423_s16 + $0x3c] sm:$0xff]   ;;  %v2347_v47 = vsel %vm2287_vm3, %v2342_v25, %v2346_v17  ;;  %v1136_v25 = vrot.slane %v519_v35, 3 }
 0x112   : > { %v10351_v35 = vmov 0  }
 0x113   : > { %13889 = vst [vmem:[#allocation14_spill] sm:$0xff] %v10968_v37  ;;  %v984_v53 = vpop.f32.mrf.mxu1  ;;  %10316 = vset.pattern.permute.xlu0 %v10351_v35  ;;  %10317 = vset.pattern.permute.xlu1 %v10351_v35  ;;  %v10242_v37 = vld [vmem:[%s10423_s16 + $0x4c] sm:$0xff]  }
 0x114   : > { %v10975_v11 = vadd.f32 %v984_v53, %v795_v27  ;;  %7716 = vst [vmem:[%s11004_s17] sm:$0xf] %v10351_v35  ;;  %3811 = vperm.xlu0 %10316, %v11013_v43   ;;  %10318 = vset.pattern.permute.xlu2 %v10351_v35 }
 0x115   : > { %7717 = vst [vmem:[%s11004_s17 + $0x4] sm:$0xf] %v10351_v35 }
 0x116   : > { %v769_v6 = vpop.f32.mrf.mxu2  ;;  %7718 = vst [vmem:[%s11004_s17 + $0x8] sm:$0xf] %v10351_v35 }
 0x117   : > { %v813_v26 = vadd.f32 %v10785_v51, %v769_v6  ;;  %v1029_v30 = vpop.f32.mrf.mxu3  ;;  %7719 = vst [vmem:[%s11004_s17 + $0x9c] sm:$0xf] %v10351_v35 }
 0x118   : > { %v727_v12 = vpop.f32.mrf.mxu0  ;;  %7720 = vst [vmem:[%s11004_s17 + $0xa0] sm:$0xf] %v10351_v35 }
 0x119   : > { %v10982_v58 = vadd.f32 %v1029_v30, %v813_v26  ;;  %v796_v27 = vadd.f32 %v10785_v51, %v727_v12  ;;  %v1137_v26 = vrot.slane %v522_v8, 4  ;;  %v1607_v12 = vrot.slane %v1605_v42, 3  ;;  %7721 = vst [vmem:[%s11004_s17 + $0xa4] sm:$0xf] %v10351_v35 }
 0x11a   : > { %7722 = vst [vmem:[%s11004_s17 + $0xa8] sm:$0x1] %v10351_v35 }
 0x11b   : > { %13890 = vst [vmem:[#allocation15_spill] sm:$0xff] %v10982_v58  ;;  %v987_v3 = vpop.f32.mrf.mxu1  ;;  %1289 = vmatmul.bf16.gmra.mxu2 %v1135_v52  ;;  %2043 = vmatmul.bf16.gmra.mxu0 %v10238_v33  ;;  %v1610_v52 = vrot.slane %v1608_v20, 4 }
 0x11c   : > { %v10989_v55 = vadd.f32 %v987_v3, %v796_v27  ;;  %1807 = vmatmul.bf16.gmra.mxu3 %v1603_v2  ;;  %v2348_v27 = vshrl.u32 %v10961_v29, 16  ;;  %v2352_v2 = vshll.u32 %v10992_v60, 16  ;;  %286 = vst [vmem:[#allocation2 + $0x4] sm:$0xf] %v10351_v35 }
 0x11d   : > { %v11025_v62 = vor.u32 %v1610_v52, %v1607_v12  ;;  %287 = vst [vmem:[#allocation2 + $0x8] sm:$0xf] %v10351_v35  ;;  %v11043_v12 = vld [vmem:[%s13753_s1 + $0x8] sm:$0xff] }
 0x11e   : > { %2540 = vmatmul.bf16.gmra.mxu1 %v2347_v47  ;;  %v772_v53 = vpop.f32.mrf.mxu2  ;;  %v11022_v47 = vor.u32 %v1137_v26, %v1136_v25  ;;  %v2350_v20 = vor.u32 %v2348_v27, %v2346_v17  ;;  %v2354_v29 = vrot.slane %v2352_v2, 1  ;;  %288 = vst [vmem:[#allocation2 + $0x9c] sm:$0xf] %v10351_v35  ;;  %3816 = vperm.xlu0 %10316, %v11043_v12  }
 0x11f   : > { %v814_v40 = vadd.f32 %v10785_v51, %v772_v53  ;;  %v1032_v6 = vpop.f32.mrf.mxu3  ;;  %v1612_v17 = vsel %vm1099_vm2, %v10977_v61, %v11025_v62  ;;  %289 = vst [vmem:[#allocation2 + $0xa0] sm:$0xf] %v10351_v35  ;;  %v9462_v61 = vld [vmem:[%s13754_s2 + $0x198] sm:$0xff] }
 0x120   : > { %v729_v48 = vpop.f32.mrf.mxu0  ;;  %3002 = vmatpush.bf16.msra.mxu2 %v9462_v61  ;;  %v3775_v61 = vld [vmem:[%s13753_s1 + $0x10] sm:$0xff] }
 0x121   : > { %v11006_v30 = vadd.f32 %v1032_v6, %v814_v40  ;;  %v797_v33 = vadd.f32 %v10785_v51, %v729_v48  ;;  %v10240_v6 = vld [vmem:[%s10423_s16 + $0x44] sm:$0xff]   ;;  %3821 = vperm.xlu1 %10317, %v3775_v61  }
 0x123   : > { %13891 = vst [vmem:[#allocation16_spill] sm:$0xff] %v11006_v30  ;;  %v989_v8 = vpop.f32.mrf.mxu1 }
 0x124   : > { %v11019_v3 = vadd.f32 %v989_v8, %v797_v33  ;;  %v1139_v33 = vsel %vm1099_vm2, %v1134_v41, %v11022_v47  ;;  %v2355_v8 = vsel %vm2287_vm3, %v2350_v20, %v2354_v29  ;;  %v9989_v41 = vld [vmem:[%s10423_s16 + $0x50] sm:$0xff]   ;;  %v9470_v20 = vld [vmem:[%s13754_s2 + $0x1d8] sm:$0xff] }
 0x125   : > { %v1614_v2 = vshrl.u32 %v9989_v41, 16  ;;  %3262 = vmatpush.bf16.msra.mxu3 %v9470_v20  ;;  %v11073_v20 = vld [vmem:[%s13753_s1 + $0x30] sm:$0xff] }
 0x126   : > { %v774_v42 = vpop.f32.mrf.mxu2  ;;  %3841 = vperm.xlu0 %10316, %v11073_v20  }
 0x127   : > { %v815_v53 = vadd.f32 %v10785_v51, %v774_v42  ;;  %v1034_v40 = vpop.f32.mrf.mxu3  ;;  %v1617_v42 = vshll.u32 %v9989_v41, 16 }
 0x128   : > { %v732_v48 = vpop.f32.mrf.mxu0 }
 0x129   : > { %v11034_v25 = vadd.f32 %v1034_v40, %v815_v53  ;;  %v798_v26 = vadd.f32 %v10785_v51, %v732_v48  ;;  %v11057_v40 = vld [vmem:[%s10423_s16 + $0x54] sm:$0xff]  ;;  %v1619_v30 = vrot.slane %v1617_v42, 4 }
 0x12b   : > { %13892 = vst [vmem:[#allocation17_spill] sm:$0xff] %v11034_v25  ;;  %v992_v52 = vpop.f32.mrf.mxu1  ;;  %1294 = vmatmul.bf16.gmra.mxu2 %v1139_v33  ;;  %2048 = vmatmul.bf16.gmra.mxu0 %v10240_v6  ;;  %v13893_v33 = vshrl.u32 %v10440_v13, 16  ;;  %v1616_v25 = vrot.slane %v1614_v2, 3 }
 0x12c   : > { %v11048_v27 = vadd.f32 %v992_v52, %v798_v26  ;;  %1812 = vmatmul.bf16.gmra.mxu3 %v1612_v17  ;;  %v13894_v17 = vshll.u32 %v10440_v13, 16  ;;  %v2356_v13 = vshrl.u32 %v10992_v60, 16 }
 0x12d   : > { %v1140_v26 = vrot.slane %v13893_v33, 3 }
 0x12e   : > { %2545 = vmatmul.bf16.gmra.mxu1 %v2355_v8  ;;  %v777_v53 = vpop.f32.mrf.mxu2  ;;  %v1141_v52 = vrot.slane %v13894_v17, 4  ;;  %v2358_v17 = vor.u32 %v2356_v13, %v2354_v29  ;;  %v11094_v29 = vld [vmem:[%s13753_s1 + $0x18] sm:$0xff] }
 0x12f   : > { %v816_v6 = vadd.f32 %v10785_v51, %v777_v53  ;;  %v1037_v48 = vpop.f32.mrf.mxu3  ;;  %3826 = vperm.xlu1 %10317, %v11094_v29   ;;  %v11106_v13 = vld [vmem:[%s10423_s16 + $0x5c] sm:$0xff] }
 0x130   : > { %v734_v35 = vpop.f32.mrf.mxu0  ;;  %v1142_v42 = vor.u32 %v1141_v52, %v1140_v26 }
 0x131   : > { %v11064_v8 = vadd.f32 %v1037_v48, %v816_v6  ;;  %v799_v41 = vadd.f32 %v10785_v51, %v734_v35  ;;  %v2360_v6 = vshll.u32 %v11057_v40, 16  ;;  %v1620_v48 = vor.u32 %v1619_v30, %v1616_v25  ;;  %v9478_v35 = vld [vmem:[%s13754_s2 + $0x218] sm:$0xff] }
 0x132   : > { %3570 = vmatpush.bf16.msra.mxu0 %v9478_v35 }
 0x133   : > { %13895 = vst [vmem:[#allocation18_spill] sm:$0xff] %v11064_v8  ;;  %v994_v53 = vpop.f32.mrf.mxu1  ;;  %v2362_v8 = vrot.slane %v2360_v6, 1  ;;  %v1621_v30 = vsel %vm1099_vm2, %v11025_v62, %v1620_v48 }
 0x134   : > { %v11078_v2 = vadd.f32 %v994_v53, %v799_v41  ;;  %v1143_v41 = vsel %vm1099_vm2, %v11022_v47, %v1142_v42  ;;  %v9990_v47 = vld [vmem:[%s10423_s16 + $0x58] sm:$0xff]  }
 0x135   : > { %v2363_v26 = vsel %vm2287_vm3, %v2358_v17, %v2362_v8  ;;  %v1626_v62 = vshll.u32 %v9990_v47, 16  ;;  %v13897_v17 = vshrl.u32 %v10446_v16, 16 }
 0x136   : > { %v779_v33 = vpop.f32.mrf.mxu2 }
 0x137   : > { %v817_v58 = vadd.f32 %v10785_v51, %v779_v33  ;;  %v1039_v60 = vpop.f32.mrf.mxu3  ;;  %v11099_v51 = vld [vmem:[%s13753_s1 + $0x48] sm:$0xff] }
 0x138   : > { %v2014_v61 = vpop.f32.mrf.mxu0  ;;  %3856 = vperm.xlu0 %10316, %v11099_v51  }
 0x139   : > { %v11087_v53 = vadd.f32 %v1039_v60, %v817_v58  ;;  %v1623_v58 = vshrl.u32 %v9990_v47, 16  ;;  %v1144_v60 = vrot.slane %v13897_v17, 3  ;;  %v2368_v47 = vshll.u32 %v11106_v13, 16 }
 0x13b   : > { %13896 = vst [vmem:[#allocation19_spill] sm:$0xff] %v11087_v53  ;;  %v2511_v25 = vpop.f32.mrf.mxu1  ;;  %1299 = vmatmul.bf16.gmra.mxu2 %v1143_v41  ;;  %2053 = vmatmul.bf16.gmra.mxu0 %v10242_v37  ;;  %v13898_v53 = vshll.u32 %v10446_v16, 16  ;;  %v1625_v41 = vrot.slane %v1623_v58, 3  ;;  %v1628_v37 = vrot.slane %v1626_v62, 4  ;;  %v2370_v23 = vrot.slane %v2368_v47, 1 }
 0x13c   : > { %1817 = vmatmul.bf16.gmra.mxu3 %v1621_v30  ;;  %v11116_v30 = vld [vmem:[%s13753_s1 + $0x38] sm:$0xff] }
 0x13d   : > { %v1145_v28 = vrot.slane %v13898_v53, 4  ;;  %v2364_v53 = vshrl.u32 %v11057_v40, 16  ;;  %3846 = vperm.xlu1 %10317, %v11116_v30   ;;  %v10244_v40 = vld [vmem:[%s10423_s16 + $0x54] sm:$0xff]  }
 0x13e   : > { %2550 = vmatmul.bf16.gmra.mxu1 %v2363_v26  ;;  %v1260_v52 = vpop.f32.mrf.mxu2  ;;  %v9507_v26 = vld [vmem:[%s13755_s3 + $0x38] sm:$0xff] }
 0x13f   : > { %v1350_v6 = vadd.f32 %v1260_v52, %v10797_v45  ;;  %v1778_v35 = vpop.f32.mrf.mxu3  ;;  %v11121_v45 = vld [vmem:[%s13753_s1 + $0x60] sm:$0xff]  ;;  %4551 = vmatpush.bf16.msra.mxu1 %v9507_v26  ;;  %v1146_v62 = vor.u32 %v1145_v28, %v1144_v60  ;;  %v2366_v17 = vor.u32 %v2364_v53, %v2362_v8  ;;  %v11144_v28 = vld [vmem:[%s13753_s1 + $0x78] sm:$0xff]  ;;  %v13901_v53 = vshrl.u32 %v10512_v57, 16 }
 0x140   : > { %v2016_v33 = vpop.f32.mrf.mxu0  ;;  %3871 = vperm.xlu0 %10316, %v11121_v45   ;;  %v11153_v60 = vld [vmem:[%s10423_s16 + $0x64] sm:$0xff] }
 0x141   : > { %v1868_v22 = vadd.f32 %v1778_v35, %v1350_v6  ;;  %v1629_v6 = vor.u32 %v1628_v37, %v1625_v41  ;;  %v1147_v18 = vsel %vm1099_vm2, %v1142_v42, %v1146_v62  ;;  %v2371_v8 = vsel %vm2287_vm3, %v2366_v17, %v2370_v23 }
 0x142   : > { %v1148_v47 = vrot.slane %v13901_v53, 3 }
 0x143   : > { %v2513_v16 = vpop.f32.mrf.mxu1  ;;  %v2104_v58 = vadd.f32 %v2014_v61, %v1868_v22  ;;  %v1630_v10 = vsel %vm1099_vm2, %v1620_v48, %v1629_v6  ;;  %v11139_v22 = vld [vmem:[%s13753_s1 + $0x50] sm:$0xff]  ;;  %v9991_v61 = vld [vmem:[%s10423_s16 + $0x60] sm:$0xff]  }
 0x144   : > { %v1632_v42 = vshrl.u32 %v9991_v61, 16  ;;  %v1635_v48 = vshll.u32 %v9991_v61, 16 }
 0x145   : > { %v11130_v52 = vadd.f32 %v2511_v25, %v2104_v58  ;;  %3861 = vperm.xlu1 %10317, %v11139_v22  }
 0x146   : > { %v1262_v35 = vpop.f32.mrf.mxu2 }
 0x147   : > { %13899 = vst [vmem:[#allocation20_spill] sm:$0xff] %v11130_v52  ;;  %v1351_v19 = vadd.f32 %v1262_v35, %v10813_v4  ;;  %v1780_v32 = vpop.f32.mrf.mxu3  ;;  %v11166_v35 = vld [vmem:[%s13753_s1 + $0x68] sm:$0xff]  ;;  %v13909_v52 = vshrl.u32 %v10586_v49, 16 }
 0x148   : > { %v2019_v21 = vpop.f32.mrf.mxu0  ;;  %3886 = vperm.xlu0 %10316, %v11144_v28  }
 0x149   : > { %v1869_v56 = vadd.f32 %v1780_v32, %v1351_v19 }
 0x14b   : > { %v2516_v4 = vpop.f32.mrf.mxu1  ;;  %1304 = vmatmul.bf16.gmra.mxu2 %v1147_v18  ;;  %2058 = vmatmul.bf16.gmra.mxu0 %v10244_v40  ;;  %v2105_v32 = vadd.f32 %v2016_v33, %v1869_v56  ;;  %v13902_v18 = vshll.u32 %v10512_v57, 16  ;;  %v1637_v33 = vrot.slane %v1635_v48, 4  ;;  %v2372_v57 = vshrl.u32 %v11106_v13, 16 }
 0x14c   : > { %1822 = vmatmul.bf16.gmra.mxu3 %v1630_v10  ;;  %v1634_v10 = vrot.slane %v1632_v42, 3  ;;  %v2376_v40 = vshll.u32 %v11153_v60, 16 }
 0x14d   : > { %v11150_v19 = vadd.f32 %v2513_v16, %v2105_v32  ;;  %v1149_v58 = vrot.slane %v13902_v18, 4  ;;  %v9461_v16 = vld [vmem:[%s13754_s2 + $0x190] sm:$0xff]  ;;  %3876 = vperm.xlu1 %10317, %v11166_v35   ;;  %v10246_v18 = vld [vmem:[%s10423_s16 + $0x5c] sm:$0xff]  }
 0x14e   : > { %2555 = vmatmul.bf16.gmra.mxu1 %v2371_v8  ;;  %v1265_v25 = vpop.f32.mrf.mxu2  ;;  %v9469_v8 = vld [vmem:[%s13754_s2 + $0x1d0] sm:$0xff]  ;;  %3003 = vmatpush.bf16.msra.mxu2 %v9461_v16  ;;  %v11184_v48 = vor.u32 %v1637_v33, %v1634_v10 }
 0x14f   : > { %13900 = vst [vmem:[#allocation21_spill] sm:$0xff] %v11150_v19  ;;  %v1352_v41 = vadd.f32 %v1265_v25, %v10823_v1  ;;  %v1783_v37 = vpop.f32.mrf.mxu3  ;;  %v11171_v1 = vld [vmem:[%s13753_s1 + $0x90] sm:$0xff]  ;;  %v11180_v32 = vor.u32 %v1149_v58, %v1148_v47  ;;  %3263 = vmatpush.bf16.msra.mxu3 %v9469_v8  ;;  %v2374_v25 = vor.u32 %v2372_v57, %v2370_v23  ;;  %v11200_v23 = vld [vmem:[%s13753_s1 + $0x80] sm:$0xff] }
 0x150   : > { %v2021_v26 = vpop.f32.mrf.mxu0  ;;  %3901 = vperm.xlu0 %10316, %v11171_v1   ;;  %v1639_v47 = vsel %vm1099_vm2, %v1629_v6, %v11184_v48  ;;  %v9992_v6 = vld [vmem:[%s10423_s16 + $0x68] sm:$0xff]   ;;  %v9477_v10 = vld [vmem:[%s13754_s2 + $0x210] sm:$0xff] }
 0x151   : > { %v1870_v56 = vadd.f32 %v1783_v37, %v1352_v41  ;;  %v2378_v41 = vrot.slane %v2376_v40, 1  ;;  %v1641_v57 = vshrl.u32 %v9992_v6, 16  ;;  %v1644_v40 = vshll.u32 %v9992_v6, 16  ;;  %3571 = vmatpush.bf16.msra.mxu0 %v9477_v10  ;;  %v11238_v6 = vld [vmem:[%s13753_s1 + $0xc0] sm:$0xff] }
 0x152   : > { %v2380_v10 = vshrl.u32 %v11153_v60, 16 }
 0x153   : > { %v2518_v17 = vpop.f32.mrf.mxu1  ;;  %v2106_v61 = vadd.f32 %v2019_v21, %v1870_v56  ;;  %v1151_v21 = vsel %vm1099_vm2, %v1146_v62, %v11180_v32  ;;  %v2379_v58 = vsel %vm2287_vm3, %v2374_v25, %v2378_v41 }
 0x155   : > { %v11182_v42 = vadd.f32 %v2516_v4, %v2106_v61  ;;  %v11195_v4 = vld [vmem:[%s13753_s1 + $0x20] sm:$0xff]  ;;  %3891 = vperm.xlu1 %10317, %v11200_v23   ;;  %v11218_v61 = vld [vmem:[%s10423_s16 + $0x6c] sm:$0xff] }
 0x156   : > { %v1267_v13 = vpop.f32.mrf.mxu2  ;;  %3831 = vperm.xlu2 %10318, %v11195_v4  }
 0x157   : > { %13903 = vst [vmem:[#allocation22_spill] sm:$0xff] %v11182_v42  ;;  %v1353_v37 = vadd.f32 %v1267_v13, %v10841_v63  ;;  %v1785_v53 = vpop.f32.mrf.mxu3  ;;  %v11205_v63 = vld [vmem:[%s13753_s1 + $0xa8] sm:$0xff] }
 0x158   : > { %v2024_v19 = vpop.f32.mrf.mxu0  ;;  %3916 = vperm.xlu0 %10316, %v11205_v63  }
 0x159   : > { %v1871_v56 = vadd.f32 %v1785_v53, %v1353_v37  ;;  %v13905_v53 = vshrl.u32 %v10556_v24, 16 }
 0x15b   : > { %v2521_v62 = vpop.f32.mrf.mxu1  ;;  %1309 = vmatmul.bf16.gmra.mxu2 %v1151_v21  ;;  %2063 = vmatmul.bf16.gmra.mxu0 %v10246_v18  ;;  %v2107_v33 = vadd.f32 %v2021_v26, %v1871_v56  ;;  %v1152_v18 = vrot.slane %v13905_v53, 3  ;;  %v13906_v26 = vshll.u32 %v10556_v24, 16  ;;  %v2382_v53 = vor.u32 %v2380_v10, %v2378_v41  ;;  %v11265_v41 = vld [vmem:[%s13753_s1 + $0x40] sm:$0xff] }
 0x15c   : > { %1827 = vmatmul.bf16.gmra.mxu3 %v1639_v47  ;;  %v1646_v47 = vrot.slane %v1644_v40, 4 }
 0x15d   : > { %v11215_v16 = vadd.f32 %v2518_v17, %v2107_v33  ;;  %v1153_v21 = vrot.slane %v13906_v26, 4  ;;  %v1643_v17 = vrot.slane %v1641_v57, 3  ;;  %v2384_v33 = vshll.u32 %v11218_v61, 16 }
 0x15e   : > { %2560 = vmatmul.bf16.gmra.mxu1 %v2379_v58  ;;  %v1270_v8 = vpop.f32.mrf.mxu2  ;;  %v11228_v58 = vld [vmem:[%s13753_s1 + $0x28] sm:$0xff] }
 0x15f   : > { %13904 = vst [vmem:[#allocation23_spill] sm:$0xff] %v11215_v16  ;;  %v1354_v13 = vadd.f32 %v1270_v8, %v10855_v5  ;;  %v1788_v25 = vpop.f32.mrf.mxu3  ;;  %v11233_v5 = vld [vmem:[%s13753_s1 + $0x98] sm:$0xff]  ;;  %3836 = vperm.xlu2 %10318, %v11228_v58   ;;  %v11244_v40 = vor.u32 %v1153_v21, %v1152_v18  ;;  %v2386_v26 = vrot.slane %v2384_v33, 1 }
 0x160   : > { %v2026_v37 = vpop.f32.mrf.mxu0  ;;  %3906 = vperm.xlu1 %10317, %v11233_v5   ;;  %3931 = vperm.xlu0 %10316, %v11238_v6  }
 0x161   : > { %v1872_v56 = vadd.f32 %v1788_v25, %v1354_v13  ;;  %v11249_v13 = vor.u32 %v1646_v47, %v1643_v17  ;;  %v9506_v25 = vld [vmem:[%s13755_s3 + $0x30] sm:$0xff]  ;;  %v11275_v17 = vld [vmem:[%s13753_s1 + $0xd8] sm:$0xff] }
 0x162   : > { %4552 = vmatpush.bf16.msra.mxu1 %v9506_v25  ;;  %v11285_v25 = vld [vmem:[%s10423_s16 + $0x74] sm:$0xff] }
 0x163   : > { %v2523_v24 = vpop.f32.mrf.mxu1  ;;  %v2108_v57 = vadd.f32 %v2024_v19, %v1872_v56  ;;  %v10248_v19 = vld [vmem:[%s10423_s16 + $0x64] sm:$0xff]   ;;  %v1648_v56 = vsel %vm1099_vm2, %v11184_v48, %v11249_v13  ;;  %v9993_v48 = vld [vmem:[%s10423_s16 + $0x70] sm:$0xff]  }
 0x164   : > { %v1650_v10 = vshrl.u32 %v9993_v48, 16  ;;  %v1653_v33 = vshll.u32 %v9993_v48, 16  ;;  %v2388_v48 = vshrl.u32 %v11218_v61, 16 }
 0x165   : > { %v11247_v8 = vadd.f32 %v2521_v62, %v2108_v57  ;;  %v1155_v62 = vsel %vm1099_vm2, %v11180_v32, %v11244_v40 }
 0x166   : > { %v1272_v60 = vpop.f32.mrf.mxu2 }
 0x167   : > { %13907 = vst [vmem:[#allocation24_spill] sm:$0xff] %v11247_v8  ;;  %v1355_v16 = vadd.f32 %v1272_v60, %v10866_v39  ;;  %v1790_v42 = vpop.f32.mrf.mxu3  ;;  %v11270_v39 = vld [vmem:[%s13753_s1 + $0xb0] sm:$0xff]  ;;  %3851 = vperm.xlu2 %10318, %v11265_v41  }
 0x168   : > { %v2029_v18 = vpop.f32.mrf.mxu0  ;;  %3921 = vperm.xlu1 %10317, %v11270_v39   ;;  %3946 = vperm.xlu0 %10316, %v11275_v17  }
 0x169   : > { %v1873_v21 = vadd.f32 %v1790_v42, %v1355_v16  ;;  %v2387_v42 = vsel %vm2287_vm3, %v2382_v53, %v2386_v26 }
 0x16b   : > { %v2526_v32 = vpop.f32.mrf.mxu1  ;;  %1314 = vmatmul.bf16.gmra.mxu2 %v1155_v62  ;;  %2068 = vmatmul.bf16.gmra.mxu0 %v10248_v19  ;;  %v2109_v16 = vadd.f32 %v2026_v37, %v1873_v21  ;;  %v1156_v62 = vrot.slane %v13909_v52, 3  ;;  %v13910_v37 = vshll.u32 %v10586_v49, 16  ;;  %v11305_v52 = vld [vmem:[%s13753_s1 + $0xf0] sm:$0xff] }
 0x16c   : > { %1832 = vmatmul.bf16.gmra.mxu3 %v1648_v56  ;;  %v1652_v56 = vrot.slane %v1650_v10, 3  ;;  %v9460_v10 = vld [vmem:[%s13754_s2 + $0x188] sm:$0xff] }
 0x16d   : > { %v11282_v47 = vadd.f32 %v2523_v24, %v2109_v16  ;;  %v1157_v19 = vrot.slane %v13910_v37, 4  ;;  %v1655_v24 = vrot.slane %v1653_v33, 4  ;;  %v2392_v16 = vshll.u32 %v11285_v25, 16  ;;  %3004 = vmatpush.bf16.msra.mxu2 %v9460_v10 }
 0x16e   : > { %2565 = vmatmul.bf16.gmra.mxu1 %v2387_v42  ;;  %v1275_v57 = vpop.f32.mrf.mxu2  ;;  %v11295_v42 = vld [vmem:[%s13753_s1 + $0x58] sm:$0xff] }
 0x16f   : > { %13908 = vst [vmem:[#allocation25_spill] sm:$0xff] %v11282_v47  ;;  %v1356_v60 = vadd.f32 %v1275_v57, %v10877_v38  ;;  %v1793_v53 = vpop.f32.mrf.mxu3  ;;  %v11300_v38 = vld [vmem:[%s13753_s1 + $0xc8] sm:$0xff]  ;;  %3866 = vperm.xlu2 %10318, %v11295_v42   ;;  %v11314_v57 = vor.u32 %v1157_v19, %v1156_v62  ;;  %v11319_v61 = vor.u32 %v1655_v24, %v1652_v56  ;;  %v2394_v44 = vrot.slane %v2392_v16, 1 }
 0x170   : > { %v2031_v8 = vpop.f32.mrf.mxu0  ;;  %3936 = vperm.xlu1 %10317, %v11300_v38   ;;  %3961 = vperm.xlu0 %10316, %v11305_v52   ;;  %v2390_v47 = vor.u32 %v2388_v48, %v2386_v26  ;;  %v10250_v62 = vld [vmem:[%s10423_s16 + $0x6c] sm:$0xff]  }
 0x171   : > { %v1874_v21 = vadd.f32 %v1793_v53, %v1356_v60  ;;  %v9468_v53 = vld [vmem:[%s13754_s2 + $0x1c8] sm:$0xff]  ;;  %v1657_v56 = vsel %vm1099_vm2, %v11249_v13, %v11319_v61  ;;  %v11335_v26 = vld [vmem:[%s13753_s1 + $0x70] sm:$0xff]  ;;  %v9994_v13 = vld [vmem:[%s10423_s16 + $0x78] sm:$0xff]  }
 0x172   : > { %3264 = vmatpush.bf16.msra.mxu3 %v9468_v53  ;;  %13912 = vst [vmem:[#allocation27_spill] sm:$0xff] %v11335_v26  ;;  %v11345_v24 = vld [vmem:[%s13753_s1 + $0x108] sm:$0xff]  ;;  %v1659_v10 = vshrl.u32 %v9994_v13, 16 }
 0x173   : > { %v2528_v49 = vpop.f32.mrf.mxu1  ;;  %v2110_v33 = vadd.f32 %v2029_v18, %v1874_v21  ;;  %13914 = vst [vmem:[#allocation29_spill] sm:$0xff] %v11345_v24 }
 0x175   : > { %v11317_v60 = vadd.f32 %v2526_v32, %v2110_v33  ;;  %v1159_v32 = vsel %vm1099_vm2, %v11244_v40, %v11314_v57  ;;  %v2395_v40 = vsel %vm2287_vm3, %v2390_v47, %v2394_v44  ;;  %v1662_v33 = vshll.u32 %v9994_v13, 16  ;;  %v9476_v47 = vld [vmem:[%s13754_s2 + $0x208] sm:$0xff] }
 0x176   : > { %v1277_v37 = vpop.f32.mrf.mxu2  ;;  %3572 = vmatpush.bf16.msra.mxu0 %v9476_v47  ;;  %v1661_v13 = vrot.slane %v1659_v10, 3 }
 0x177   : > { %13911 = vst [vmem:[#allocation26_spill] sm:$0xff] %v11317_v60  ;;  %v1357_v31 = vadd.f32 %v1277_v37, %v10891_v15  ;;  %v1795_v18 = vpop.f32.mrf.mxu3  ;;  %v11340_v15 = vld [vmem:[%s13753_s1 + $0xe0] sm:$0xff]  ;;  %3881 = vperm.xlu2 %10318, %v11335_v26  }
 0x178   : > { %v2034_v19 = vpop.f32.mrf.mxu0  ;;  %13913 = vst [vmem:[#allocation28_spill] sm:$0xff] %v11340_v15  ;;  %3951 = vperm.xlu1 %10317, %v11340_v15   ;;  %3976 = vperm.xlu0 %10316, %v11345_v24   ;;  %v11358_v37 = vld [vmem:[%s10423_s16 + $0x7c] sm:$0xff]  ;;  %v10252_v15 = vld [vmem:[%s10423_s16 + $0x74] sm:$0xff]  }
 0x179   : > { %v1875_v21 = vadd.f32 %v1795_v18, %v1357_v31 }
 0x17b   : > { %v2531_v31 = vpop.f32.mrf.mxu1  ;;  %1319 = vmatmul.bf16.gmra.mxu2 %v1159_v32  ;;  %2073 = vmatmul.bf16.gmra.mxu0 %v10250_v62  ;;  %v2111_v48 = vadd.f32 %v2031_v8, %v1875_v21  ;;  %v13916_v62 = vshrl.u32 %v10619_v14, 16 }
 0x17c   : > { %1837 = vmatmul.bf16.gmra.mxu3 %v1657_v56 }
 0x17d   : > { %v11352_v16 = vadd.f32 %v2528_v49, %v2111_v48  ;;  %v1160_v21 = vrot.slane %v13916_v62, 3  ;;  %v13917_v49 = vshll.u32 %v10619_v14, 16  ;;  %v1664_v48 = vrot.slane %v1662_v33, 4 }
 0x17e   : > { %2570 = vmatmul.bf16.gmra.mxu1 %v2395_v40  ;;  %v1280_v53 = vpop.f32.mrf.mxu2  ;;  %v2400_v14 = vshll.u32 %v11358_v37, 16 }
 0x17f   : > { %13915 = vst [vmem:[#allocation30_spill] sm:$0xff] %v11352_v16  ;;  %v1358_v18 = vadd.f32 %v1280_v53, %v10905_v36  ;;  %v1798_v32 = vpop.f32.mrf.mxu3  ;;  %v1161_v56 = vrot.slane %v13917_v49, 4  ;;  %v11368_v16 = vld [vmem:[%s13753_s1 + $0x88] sm:$0xff]  ;;  %v11373_v36 = vld [vmem:[%s13753_s1 + $0xf8] sm:$0xff]  ;;  %v2396_v53 = vshrl.u32 %v11285_v25, 16 }
 0x180   : > { %v2036_v8 = vpop.f32.mrf.mxu0  ;;  %13918 = vst [vmem:[#allocation31_spill] sm:$0xff] %v11368_v16  ;;  %3896 = vperm.xlu2 %10318, %v11368_v16   ;;  %3966 = vperm.xlu1 %10317, %v11373_v36   ;;  %v2402_v60 = vrot.slane %v2400_v14, 1 }
 0x181   : > { %v1876_v40 = vadd.f32 %v1798_v32, %v1358_v18  ;;  %13919 = vst [vmem:[#allocation32_spill] sm:$0xff] %v11373_v36  ;;  %v1162_v33 = vor.u32 %v1161_v56, %v1160_v21  ;;  %7761 = vperm.xlu0 %10316, %v11013_v43   ;;  %v1665_v32 = vor.u32 %v1664_v48, %v1661_v13  ;;  %v11391_v43 = vld [vmem:[%s13753_s1 + $0xa0] sm:$0xff] }
 0x182   : > { %v2398_v49 = vor.u32 %v2396_v53, %v2394_v44  ;;  %v11396_v44 = vld [vmem:[%s13753_s1 + $0x110] sm:$0xff]  ;;  %v9995_v21 = vld [vmem:[%s10423_s16 + $0x80] sm:$0xff]  }
 0x183   : > { %v2533_v47 = vpop.f32.mrf.mxu1  ;;  %v2112_v10 = vadd.f32 %v2034_v19, %v1876_v40  ;;  %v1163_v16 = vsel %vm1099_vm2, %v11314_v57, %v1162_v33  ;;  %v1666_v19 = vsel %vm1099_vm2, %v11319_v61, %v1665_v32  ;;  %v9505_v57 = vld [vmem:[%s13755_s3 + $0x28] sm:$0xff]  ;;  %v1668_v56 = vshrl.u32 %v9995_v21, 16 }
 0x184   : > { %v1671_v40 = vshll.u32 %v9995_v21, 16  ;;  %v11409_v48 = vld [vmem:[%s10423_s16 + $0x84] sm:$0xff]  ;;  %4553 = vmatpush.bf16.msra.mxu1 %v9505_v57 }
 0x185   : > { %v11380_v18 = vadd.f32 %v2531_v31, %v2112_v10  ;;  %v2403_v31 = vsel %vm2287_vm3, %v2398_v49, %v2402_v60  ;;  %v11419_v49 = vld [vmem:[%s13753_s1 + $0xb8] sm:$0xff] }
 0x186   : > { %v1282_v62 = vpop.f32.mrf.mxu2 }
 0x187   : > { %v1359_v24 = vadd.f32 %v1282_v62, %v10919_v0  ;;  %v1800_v25 = vpop.f32.mrf.mxu3  ;;  %v1673_v62 = vrot.slane %v1671_v40, 4 }
 0x188   : > { %v2039_v26 = vpop.f32.mrf.mxu0  ;;  %3911 = vperm.xlu2 %10318, %v11391_v43   ;;  %3981 = vperm.xlu1 %10317, %v11396_v44  }
 0x189   : > { %v1877_v36 = vadd.f32 %v1800_v25, %v1359_v24  ;;  %7776 = vperm.xlu0 %10316, %v11094_v29  }
 0x18b   : > { %v2536_v0 = vpop.f32.mrf.mxu1  ;;  %1324 = vmatmul.bf16.gmra.mxu2 %v1163_v16  ;;  %2078 = vmatmul.bf16.gmra.mxu0 %v10252_v15  ;;  %v2113_v61 = vadd.f32 %v2036_v8, %v1877_v36  ;;  %v13920_v16 = vshrl.u32 %v10652_v59, 16  ;;  %v13921_v8 = vshll.u32 %v10652_v59, 16 }
 0x18c   : > { %1842 = vmatmul.bf16.gmra.mxu3 %v1666_v19  ;;  %v2408_v19 = vshll.u32 %v11409_v48, 16 }
 0x18d   : > { %v11406_v24 = vadd.f32 %v2533_v47, %v2113_v61  ;;  %v1164_v15 = vrot.slane %v13920_v16, 3  ;;  %v1165_v36 = vrot.slane %v13921_v8, 4  ;;  %v1670_v47 = vrot.slane %v1668_v56, 3 }
 0x18e   : > { %2575 = vmatmul.bf16.gmra.mxu1 %v2403_v31  ;;  %v1285_v13 = vpop.f32.mrf.mxu2  ;;  %v2410_v40 = vrot.slane %v2408_v19, 1 }
 0x18f   : > { %v1360_v53 = vadd.f32 %v1285_v13, %v10930_v34  ;;  %v1803_v14 = vpop.f32.mrf.mxu3  ;;  %v2404_v34 = vshrl.u32 %v11358_v37, 16  ;;  %v11425_v31 = vor.u32 %v1165_v36, %v1164_v15  ;;  %v11430_v57 = vor.u32 %v1673_v62, %v1670_v47  ;;  %v9996_v15 = vld [vmem:[%s10423_s16 + $0x88] sm:$0xff]  }
 0x190   : > { %v2041_v10 = vpop.f32.mrf.mxu0  ;;  %3926 = vperm.xlu2 %10318, %v11419_v49   ;;  %7766 = vperm.xlu1 %10317, %v11043_v12   ;;  %v1677_v36 = vshrl.u32 %v9996_v15, 16  ;;  %v11457_v62 = vld [vmem:[%s10423_s16 + $0x8c] sm:$0xff] }
 0x191   : > { %v1878_v29 = vadd.f32 %v1803_v14, %v1360_v53  ;;  %7791 = vperm.xlu0 %10316, %v11073_v20   ;;  %v2406_v56 = vor.u32 %v2404_v34, %v2402_v60  ;;  %v10254_v53 = vld [vmem:[%s10423_s16 + $0x7c] sm:$0xff]   ;;  %v1167_v12 = vsel %vm1099_vm2, %v1162_v33, %v11425_v31  ;;  %v1675_v20 = vsel %vm1099_vm2, %v1665_v32, %v11430_v57  ;;  %v11444_v60 = vld [vmem:[%s13753_s1 + $0xd0] sm:$0xff] }
 0x192   : > { %v9467_v33 = vld [vmem:[%s13754_s2 + $0x1c0] sm:$0xff] }
 0x193   : > { %v2538_v25 = vpop.f32.mrf.mxu1  ;;  %v2114_v59 = vadd.f32 %v2039_v26, %v1878_v29  ;;  %v2411_v16 = vsel %vm2287_vm3, %v2406_v56, %v2410_v40  ;;  %v1680_v29 = vshll.u32 %v9996_v15, 16  ;;  %3265 = vmatpush.bf16.msra.mxu3 %v9467_v33 }
 0x195   : > { %v11428_v21 = vadd.f32 %v2536_v0, %v2114_v59  ;;  %v9459_v0 = vld [vmem:[%s13754_s2 + $0x180] sm:$0xff]  ;;  %v13922_v59 = vshrl.u32 %v10685_v50, 16 }
 0x196   : > { %v1287_v61 = vpop.f32.mrf.mxu2  ;;  %3005 = vmatpush.bf16.msra.mxu2 %v9459_v0 }
 0x197   : > { %v1361_v37 = vadd.f32 %v1287_v61, %v10941_v54  ;;  %v1805_v13 = vpop.f32.mrf.mxu3  ;;  %v13923_v61 = vshll.u32 %v10685_v50, 16  ;;  %v2416_v50 = vshll.u32 %v11457_v62, 16 }
 0x198   : > { %v2044_v14 = vpop.f32.mrf.mxu0  ;;  %3941 = vperm.xlu2 %10318, %v11444_v60   ;;  %7781 = vperm.xlu1 %10317, %v11195_v4  }
 0x199   : > { %v1879_v26 = vadd.f32 %v1805_v13, %v1361_v37  ;;  %7806 = vperm.xlu0 %10316, %v11099_v51   ;;  %v1679_v37 = vrot.slane %v1677_v36, 3  ;;  %v1682_v13 = vrot.slane %v1680_v29, 4  ;;  %v11467_v51 = vld [vmem:[%s13753_s1 + $0xe8] sm:$0xff] }
 0x19a   : > { %v10256_v29 = vld [vmem:[%s10423_s16 + $0x84] sm:$0xff]  }
 0x19b   : > { %v2541_v54 = vpop.f32.mrf.mxu1  ;;  %1329 = vmatmul.bf16.gmra.mxu2 %v1167_v12  ;;  %2083 = vmatmul.bf16.gmra.mxu0 %v10254_v53  ;;  %v2115_v32 = vadd.f32 %v2041_v10, %v1879_v26  ;;  %v1168_v10 = vrot.slane %v13922_v59, 3  ;;  %v2412_v12 = vshrl.u32 %v11409_v48, 16  ;;  %v2418_v48 = vrot.slane %v2416_v50, 1  ;;  %v9504_v59 = vld [vmem:[%s13755_s3 + $0x20] sm:$0xff] }
 0x19c   : > { %1847 = vmatmul.bf16.gmra.mxu3 %v1675_v20  ;;  %4554 = vmatpush.bf16.msra.mxu1 %v9504_v59 }
 0x19d   : > { %v11453_v8 = vadd.f32 %v2538_v25, %v2115_v32  ;;  %v1169_v25 = vrot.slane %v13923_v61, 4  ;;  %v2414_v33 = vor.u32 %v2412_v12, %v2410_v40 }
 0x19e   : > { %2580 = vmatmul.bf16.gmra.mxu1 %v2411_v16  ;;  %v1290_v47 = vpop.f32.mrf.mxu2  ;;  %v11482_v16 = vor.u32 %v1682_v13, %v1679_v37  ;;  %v13925_v13 = vshll.u32 %v10715_v7, 16 }
 0x19f   : > { %v1362_v4 = vadd.f32 %v1290_v47, %v10958_v9  ;;  %v1808_v34 = vpop.f32.mrf.mxu3  ;;  %v9475_v9 = vld [vmem:[%s13754_s2 + $0x200] sm:$0xff]  ;;  %v11478_v20 = vor.u32 %v1169_v25, %v1168_v10 }
 0x1a0   : > { %v2046_v19 = vpop.f32.mrf.mxu0  ;;  %3956 = vperm.xlu2 %10318, %v11467_v51   ;;  %7796 = vperm.xlu1 %10317, %v11116_v30  }
 0x1a1   : > { %v1880_v56 = vadd.f32 %v1808_v34, %v1362_v4  ;;  %3573 = vmatpush.bf16.msra.mxu0 %v9475_v9  ;;  %7821 = vperm.xlu0 %10316, %v11121_v45   ;;  %v1171_v30 = vsel %vm1099_vm2, %v11425_v31, %v11478_v20  ;;  %v11496_v45 = vld [vmem:[%s13753_s1 + $0x100] sm:$0xff]  ;;  %v11500_v4 = vld [vmem:[%s10423_s16 + $0x90] sm:$0xff]   ;;  %v1173_v9 = vrot.slane %v13925_v13, 4 }
 0x1a2   : > { %v1689_v34 = vshll.u32 %v11500_v4, 16 }
 0x1a3   : > { %v11472_v53 = vpop.f32.mrf.mxu1  ;;  %v2116_v26 = vadd.f32 %v2044_v14, %v1880_v56  ;;  %v13924_v56 = vshrl.u32 %v10715_v7, 16 }
 0x1a4   : > { %v1691_v50 = vrot.slane %v1689_v34, 4 }
 0x1a5   : > { %v11480_v0 = vadd.f32 %v2541_v54, %v2116_v26  ;;  %v1684_v54 = vsel %vm1099_vm2, %v11430_v57, %v11482_v16  ;;  %v1686_v57 = vshrl.u32 %v11500_v4, 16  ;;  %v1172_v37 = vrot.slane %v13924_v56, 3  ;;  %v1078_v26 = vld [vmem:[%s10423_s16 + $0x90] sm:$0xf] }
 0x1a6   : > { %v1292_v15 = vpop.f32.mrf.mxu2 }
 0x1a7   : > { %v1363_v32 = vadd.f32 %v1292_v15, %v10975_v11  ;;  %v1810_v36 = vpop.f32.mrf.mxu3  ;;  %v2419_v11 = vsel %vm2287_vm3, %v2414_v33, %v2418_v48  ;;  %v1688_v12 = vrot.slane %v1686_v57, 3  ;;  %v11524_v15 = vld [vmem:[%s13753_s1 + $0x118] sm:$0xff] }
 0x1a8   : > { %v2049_v47 = vpop.f32.mrf.mxu0  ;;  %3971 = vperm.xlu2 %10318, %v11496_v45   ;;  %7811 = vperm.xlu1 %10317, %v11139_v22   ;;  %v11513_v22 = vld [vmem:[%s10423_s16 + $0x94] sm:$0xff] }
 0x1a9   : > { %v1881_v14 = vadd.f32 %v1810_v36, %v1363_v32  ;;  %7836 = vperm.xlu0 %10316, %v11144_v28   ;;  %v2424_v32 = vshll.u32 %v11513_v22, 16  ;;  %v1422_v36 = vld [vmem:[%s10423_s16 + $0x98] sm:$0xf] }
 0x1ab   : > { %v2546_v40 = vpop.f32.mrf.mxu1  ;;  %1334 = vmatmul.bf16.gmra.mxu2 %v1171_v30  ;;  %2088 = vmatmul.bf16.gmra.mxu0 %v10256_v29  ;;  %v11504_v31 = vadd.f32 %v2046_v19, %v1881_v14  ;;  %v11533_v29 = vor.u32 %v1173_v9, %v1172_v37  ;;  %v1097_v30 = vunpack.c.l.b16 %v1078_v26  ;;  %v2426_v34 = vrot.slane %v2424_v32, 1 }
 0x1ac   : > { %1852 = vmatmul.bf16.gmra.mxu3 %v1684_v54  ;;  %v11537_v54 = vor.u32 %v1691_v50, %v1688_v12 }
 0x1ae   : > { %2585 = vmatmul.bf16.gmra.mxu1 %v2419_v11  ;;  %v1295_v10 = vpop.f32.mrf.mxu2  ;;  %v1513_v11 = vunpack.c.l.b16 %v1422_v36  ;;  %v1693_v37 = vsel %vm1099_vm2, %v11482_v16, %v11537_v54 }
 0x1af   : > { %v1364_v19 = vadd.f32 %v1295_v10, %v10989_v55  ;;  %v1813_v61 = vpop.f32.mrf.mxu3  ;;  %v2420_v55 = vshrl.u32 %v11457_v62, 16 }
 0x1b0   : > { %v2051_v25 = vpop.f32.mrf.mxu0  ;;  %3986 = vperm.xlu2 %10318, %v11524_v15   ;;  %7826 = vperm.xlu1 %10317, %v11166_v35  }
 0x1b1   : > { %v1882_v28 = vadd.f32 %v1813_v61, %v1364_v19  ;;  %7851 = vperm.xlu0 %10316, %v11171_v1   ;;  %v2422_v57 = vor.u32 %v2420_v55, %v2418_v48  ;;  %v10257_v19 = vld [vmem:[%s10423_s16 + $0x8c] sm:$0xff]   ;;  %v2176_v61 = vld [vmem:[%s10423_s16 + $0x9c] sm:$0x1]  ;;  %v1532_v1 = vpack.c.b16 %v1513_v11, %v1513_v11 }
 0x1b2   : > { %v7725_v48 = vld [vmem:[%s13753_s1 + $0x10] sm:$0xff]  ;;  %v2267_v9 = vunpack.c.l.b16 %v2176_v61 }
 0x1b3   : > { %v11526_v33 = vpop.f32.mrf.mxu1  ;;  %v2118_v7 = vadd.f32 %v2049_v47, %v1882_v28  ;;  %v1175_v47 = vsel %vm1099_vm2, %v11478_v20, %v11533_v29  ;;  %v2427_v13 = vsel %vm2287_vm3, %v2422_v57, %v2426_v34  ;;  %v1695_v12 = vshrl.u32 %v1532_v1, 16 }
 0x1b4   : > { %v1698_v50 = vshll.u32 %v1532_v1, 16  ;;  %v2286_v55 = vpack.c.b16 %v2267_v9, %v2267_v9 }
 0x1b5   : > { %v11535_v14 = vadd.f32 %v2546_v40, %v2118_v7  ;;  %v1098_v40 = vpack.c.b16 %v1097_v30, %v1097_v30 }
 0x1b6   : > { %v1297_v62 = vpop.f32.mrf.mxu2 }
 0x1b7   : > { %v1365_v59 = vadd.f32 %v1297_v62, %v11019_v3  ;;  %v1815_v10 = vpop.f32.mrf.mxu3  ;;  %v1177_v16 = vshrl.u32 %v1098_v40, 16  ;;  %v1180_v28 = vshll.u32 %v1098_v40, 16  ;;  %v10340_v62 = vld [vmem:[%s10423_s16 + $0x14] sm:$0xf0]  ;;  %v2432_v40 = vshll.u32 %v2286_v55, 16 }
 0x1b8   : > { %v2054_v35 = vpop.f32.mrf.mxu0  ;;  %7771 = vperm.xlu2 %10318, %v7725_v48   ;;  %7841 = vperm.xlu1 %10317, %v11200_v23  }
 0x1b9   : > { %v1883_v56 = vadd.f32 %v1815_v10, %v1365_v59  ;;  %7866 = vperm.xlu0 %10316, %v11205_v63   ;;  %v1179_v7 = vrot.slane %v1177_v16, 3  ;;  %v1182_v30 = vrot.slane %v1180_v28, 4  ;;  %v1697_v59 = vrot.slane %v1695_v12, 3 }
 0x1ba   : > { %v1700_v10 = vrot.slane %v1698_v50, 4  ;;  %v9674_v63 = vunpack.c.h.b16 %v11500_v4  ;;  %v2434_v9 = vrot.slane %v2432_v40, 1 }
 0x1bb   : > { %v2551_v3 = vpop.f32.mrf.mxu1  ;;  %1339 = vmatmul.bf16.gmra.mxu2 %v1175_v47  ;;  %2093 = vmatmul.bf16.gmra.mxu0 %v10257_v19  ;;  %v11554_v20 = vadd.f32 %v2051_v25, %v1883_v56  ;;  %v2637_v25 = vld [vmem:[%s10423_s16 + $0x14] sm:$0xff]   ;;  %v2428_v47 = vshrl.u32 %v11513_v22, 16  ;;  %v1183_v56 = vor.u32 %v1182_v30, %v1179_v7 }
 0x1bc   : > { %1857 = vmatmul.bf16.gmra.mxu3 %v1693_v37  ;;  %v10341_v19 = vld [vmem:[%s10423_s16 + $0x14] sm:$0xe]  ;;  %v1701_v1 = vor.u32 %v1700_v10, %v1697_v59  ;;  %v1938_v28 = vpack.c.b16 %v1513_v11, %v9674_v63  ;;  %v2787_v11 = vshll.u32 %v2637_v25, 16  ;;  %v9503_v10 = vld [vmem:[%s13755_s3 + $0x18] sm:$0xff] }
 0x1bd   : > { %v10342_v4 = vor.u32 %v10341_v19, %v10340_v62  ;;  %4555 = vmatpush.bf16.msra.mxu1 %v9503_v10 }
 0x1be   : > { %2590 = vmatmul.bf16.gmra.mxu1 %v2427_v13  ;;  %v1300_v26 = vpop.f32.mrf.mxu2  ;;  %v2430_v13 = vor.u32 %v2428_v47, %v2426_v34 }
 0x1bf   : > { %v1366_v32 = vadd.f32 %v1300_v26, %v11048_v27  ;;  %v1818_v23 = vpop.f32.mrf.mxu3  ;;  %v3416_v26 = vshrl.u32 %v10342_v4, 16  ;;  %v3419_v55 = vshll.u32 %v10342_v4, 16  ;;  %v3155_v63 = vrot.slane %v10342_v4, 1  ;;  %v13928_v4 = vld [vmem:[#allocation28_spill] sm:$0xff] }
 0x1c0   : > { %v2056_v36 = vpop.f32.mrf.mxu0  ;;  %7786 = vperm.xlu2 %10318, %v11228_v58   ;;  %7856 = vperm.xlu1 %10317, %v11233_v5   ;;  %v1184_v5 = vsel %vm1099_vm2, %v11533_v29, %v1183_v56 }
 0x1c1   : > { %v1884_v57 = vadd.f32 %v1818_v23, %v1366_v32  ;;  %7881 = vperm.xlu0 %10316, %v11238_v6   ;;  %v2435_v6 = vsel %vm2287_vm3, %v2430_v13, %v2434_v9  ;;  %v2789_v23 = vrot.slane %v2787_v11, 1  ;;  %v3421_v30 = vrot.slane %v3419_v55, 2  ;;  %v13930_v11 = vld [vmem:[#allocation4_spill] sm:$0xff] }
 0x1c3   : > { %v11561_v61 = vpop.f32.mrf.mxu1  ;;  %v2120_v27 = vadd.f32 %v2054_v35, %v1884_v57  ;;  %v11574_v35 = vld [vmem:[%s10423_s16 + $0x1c] sm:$0xff] }
 0x1c4   : > { %v2792_v29 = vshll.u32 %v11574_v35, 16  ;;  %v2796_v34 = vshrl.u32 %v11574_v35, 16  ;;  %v3156_v56 = vrot.slane %v11574_v35, 1  ;;  %v13927_v35 = vld [vmem:[#allocation27_spill] sm:$0xff] }
 0x1c5   : > { %v11567_v37 = vadd.f32 %v2551_v3, %v2120_v27  ;;  %v1702_v3 = vsel %vm1099_vm2, %v11537_v54, %v1701_v1 }
 0x1c6   : > { %v1302_v48 = vpop.f32.mrf.mxu2  ;;  %v3423_v62 = vrot.slane %v2796_v34, 1  ;;  %v3424_v57 = vrot.slane %v2792_v29, 2 }
 0x1c7   : > { %v1367_v22 = vadd.f32 %v1302_v48, %v11078_v2  ;;  %v1820_v16 = vpop.f32.mrf.mxu3 }
 0x1c8   : > { %v2059_v58 = vpop.f32.mrf.mxu0  ;;  %7801 = vperm.xlu2 %10318, %v11265_v41   ;;  %7871 = vperm.xlu1 %10317, %v11270_v39   ;;  %v2785_v39 = vshrl.u32 %v2637_v25, 16  ;;  %v2794_v25 = vrot.slane %v2792_v29, 1  ;;  %v3425_v40 = vor.u32 %v3424_v57, %v3423_v62 }
 0x1c9   : > { %v1885_v12 = vadd.f32 %v1820_v16, %v1367_v22  ;;  %7896 = vperm.xlu0 %10316, %v11275_v17   ;;  %v11602_v16 = vld [vmem:[%s10423_s16 + $0x24] sm:$0xff] }
 0x1ca   : > { %v2790_v17 = vor.u32 %v2789_v23, %v2785_v39  ;;  %v13931_v23 = vld [vmem:[#allocation31_spill] sm:$0xff]  ;;  %v3158_v10 = vrot.slane %v11602_v16, 1 }
 0x1cb   : > { %v2556_v50 = vpop.f32.mrf.mxu1  ;;  %1344 = vmatmul.bf16.gmra.mxu2 %v1184_v5  ;;  %2098 = vmatmul.bf16.gmra.mxu0 %v1938_v28  ;;  %v11581_v2 = vadd.f32 %v2056_v36, %v1885_v12  ;;  %v3418_v36 = vrot.slane %v3416_v26, 1  ;;  %v2800_v12 = vshll.u32 %v11602_v16, 16 }
 0x1cc   : > { %1862 = vmatmul.bf16.gmra.mxu3 %v1702_v3  ;;  %v2795_v9 = vsel %vm2287_vm3, %v2790_v17, %v2794_v25  ;;  %v2804_v3 = vshrl.u32 %v11602_v16, 16  ;;  %v13933_v17 = vld [vmem:[#allocation5_spill] sm:$0xff] }
 0x1cd   : > { %v3422_v47 = vor.u32 %v3421_v30, %v3418_v36  ;;  %v2798_v30 = vor.u32 %v2796_v34, %v2794_v25  ;;  %v2802_v62 = vrot.slane %v2800_v12, 1  ;;  %v3159_v34 = vsel %vm3154_vm5, %v3156_v56, %v3158_v10 }
 0x1ce   : > { %2595 = vmatmul.bf16.gmra.mxu1 %v2435_v6  ;;  %v1305_v54 = vpop.f32.mrf.mxu2 }
 0x1cf   : > { %v1368_v41 = vadd.f32 %v1305_v54, %v10809_v46  ;;  %v1823_v32 = vpop.f32.mrf.mxu3  ;;  %v3426_v22 = vsel %vm3414_vm4, %v3422_v47, %v3425_v40  ;;  %v3427_v54 = vrot.slane %v2804_v3, 1 }
 0x1d0   : > { %v2061_v7 = vpop.f32.mrf.mxu0  ;;  %7816 = vperm.xlu2 %10318, %v11295_v42   ;;  %7886 = vperm.xlu1 %10317, %v11300_v38   ;;  %v13926_v42 = vld [vmem:[#allocation3_spill] sm:$0xff] }
 0x1d1   : > { %v1886_v59 = vadd.f32 %v1823_v32, %v1368_v41  ;;  %7911 = vperm.xlu0 %10316, %v11305_v52   ;;  %v3428_v41 = vrot.slane %v2800_v12, 2 }
 0x1d3   : > { %v11590_v19 = vpop.f32.mrf.mxu1  ;;  %v2122_v46 = vadd.f32 %v2059_v58, %v1886_v59  ;;  %v3157_v58 = vsel %vm3154_vm5, %v3155_v63, %v3156_v56  ;;  %v3429_v57 = vor.u32 %v3428_v41, %v3427_v54  ;;  %v13935_v41 = vld [vmem:[#allocation7_spill] sm:$0xff] }
 0x1d5   : > { %v11594_v27 = vadd.f32 %v2556_v50, %v2122_v46  ;;  %v13929_v50 = vld [vmem:[#allocation29_spill] sm:$0xff] }
 0x1d6   : > { %v1307_v1 = vpop.f32.mrf.mxu2 }
 0x1d7   : > { %v1369_v48 = vadd.f32 %v1307_v1, %v13926_v42  ;;  %v1825_v38 = vpop.f32.mrf.mxu3  ;;  %v2803_v42 = vsel %vm2287_vm3, %v2798_v30, %v2802_v62 }
 0x1d8   : > { %v2064_v13 = vpop.f32.mrf.mxu0  ;;  %7831 = vperm.xlu2 %10318, %v13927_v35   ;;  %7901 = vperm.xlu1 %10317, %v13928_v4  }
 0x1d9   : > { %v1887_v28 = vadd.f32 %v1825_v38, %v1369_v48  ;;  %7926 = vperm.xlu0 %10316, %v13929_v50   ;;  %v3430_v48 = vsel %vm3414_vm4, %v3425_v40, %v3429_v57  ;;  %v11624_v38 = vld [vmem:[%s10423_s16 + $0x2c] sm:$0xff]  ;;  %v2806_v50 = vor.u32 %v2804_v3, %v2802_v62 }
 0x1da   : > { %v2812_v16 = vshrl.u32 %v11624_v38, 16 }
 0x1db   : > { %v2561_v5 = vpop.f32.mrf.mxu1  ;;  %3006 = vmatmul.bf16.vlgmr.msra.gmra.mxu2 %v2795_v9  ;;  %3574 = vmatmul.bf16.vlgmr.msra.gmra.mxu0 %v3426_v22  ;;  %v11607_v52 = vadd.f32 %v2061_v7, %v1887_v28  ;;  %v13932_v7 = vld [vmem:[#allocation32_spill] sm:$0xff]  ;;  %v2808_v22 = vshll.u32 %v11624_v38, 16  ;;  %v13934_v28 = vld [vmem:[#allocation6_spill] sm:$0xff] }
 0x1dc   : > { %3266 = vmatmul.bf16.vlgmr.msra.gmra.mxu3 %v3157_v58  ;;  %v3431_v56 = vrot.slane %v2812_v16, 1 }
 0x1dd   : > { %v3432_v4 = vrot.slane %v2808_v22, 2 }
 0x1de   : > { %v1310_v6 = vpop.f32.mrf.mxu2 }
 0x1df   : > { %v1370_v29 = vadd.f32 %v1310_v6, %v13930_v11  ;;  %v1828_v26 = vpop.f32.mrf.mxu3  ;;  %v2810_v6 = vrot.slane %v2808_v22, 1  ;;  %v3433_v11 = vor.u32 %v3432_v4, %v3431_v56  ;;  %v13938_v56 = vld [vmem:[#allocation9_spill] sm:$0xff] }
 0x1e0   : > { %v2066_v55 = vpop.f32.mrf.mxu0  ;;  %7846 = vperm.xlu2 %10318, %v13931_v23   ;;  %7916 = vperm.xlu1 %10317, %v13932_v7  }
 0x1e1   : > { %v1888_v32 = vadd.f32 %v1828_v26, %v1370_v29  ;;  %v3160_v26 = vrot.slane %v11624_v38, 1  ;;  %v3434_v3 = vsel %vm3414_vm4, %v3429_v57, %v3433_v11  ;;  %v2814_v22 = vor.u32 %v2812_v16, %v2810_v6 }
 0x1e3   : > { %v11613_v39 = vpop.f32.mrf.mxu1  ;;  %v2124_v36 = vadd.f32 %v2064_v13, %v1888_v32  ;;  %v3161_v62 = vsel %vm3154_vm5, %v3158_v10, %v3160_v26 }
 0x1e5   : > { %v11617_v59 = vadd.f32 %v2561_v5, %v2124_v36  ;;  %v11647_v36 = vld [vmem:[%s10423_s16 + $0x34] sm:$0xff] }
 0x1e6   : > { %v1312_v46 = vpop.f32.mrf.mxu2 }
 0x1e7   : > { %v1371_v47 = vadd.f32 %v1312_v46, %v13933_v17  ;;  %v1830_v63 = vpop.f32.mrf.mxu3 }
 0x1e8   : > { %v2069_v1 = vpop.f32.mrf.mxu0  ;;  %7861 = vperm.xlu2 %10318, %v11391_v43   ;;  %7931 = vperm.xlu1 %10317, %v11396_v44  }
 0x1e9   : > { %v1889_v9 = vadd.f32 %v1830_v63, %v1371_v47  ;;  %v2816_v47 = vshll.u32 %v11647_v36, 16  ;;  %v2820_v63 = vshrl.u32 %v11647_v36, 16 }
 0x1eb   : > { %v2566_v25 = vpop.f32.mrf.mxu1  ;;  %3011 = vmatmul.bf16.gmra.mxu2 %v2803_v42  ;;  %3579 = vmatmul.bf16.gmra.mxu0 %v3430_v48  ;;  %v11629_v13 = vadd.f32 %v2066_v55, %v1889_v9  ;;  %v9502_v55 = vld [vmem:[%s13755_s3 + $0x10] sm:$0xff]  ;;  %v3435_v9 = vrot.slane %v2820_v63, 1 }
 0x1ec   : > { %3271 = vmatmul.bf16.gmra.mxu3 %v3159_v34  ;;  %4556 = vmatpush.bf16.msra.mxu1 %v9502_v55  ;;  %v13936_v42 = vld [vmem:[#allocation8_spill] sm:$0xff]  ;;  %v3436_v34 = vrot.slane %v2816_v47, 2 }
 0x1ee   : > { %v1315_v40 = vpop.f32.mrf.mxu2 }
 0x1ef   : > { %v1372_v58 = vadd.f32 %v1315_v40, %v13934_v28  ;;  %v1833_v5 = vpop.f32.mrf.mxu3  ;;  %v2818_v40 = vrot.slane %v2816_v47, 1  ;;  %v3437_v28 = vor.u32 %v3436_v34, %v3435_v9  ;;  %v13943_v9 = vld [vmem:[#allocation11_spill] sm:$0xff] }
 0x1f0   : > { %v2071_v35 = vpop.f32.mrf.mxu0  ;;  %7876 = vperm.xlu2 %10318, %v11419_v49   ;;  %v2811_v49 = vsel %vm2287_vm3, %v2806_v50, %v2810_v6 }
 0x1f1   : > { %v1890_v12 = vadd.f32 %v1833_v5, %v1372_v58  ;;  %v3162_v5 = vrot.slane %v11647_v36, 1  ;;  %v2819_v50 = vsel %vm2287_vm3, %v2814_v22, %v2818_v40  ;;  %v3438_v55 = vsel %vm3414_vm4, %v3433_v11, %v3437_v28 }
 0x1f2   : > { %v2822_v47 = vor.u32 %v2820_v63, %v2818_v40  ;;  %v9501_v40 = vld [vmem:[%s13755_s3 + $0x8] sm:$0xff] }
 0x1f3   : > { %v11634_v43 = vpop.f32.mrf.mxu1  ;;  %v2126_v44 = vadd.f32 %v2069_v1, %v1890_v12  ;;  %v3163_v16 = vsel %vm3154_vm5, %v3160_v26, %v3162_v5  ;;  %4557 = vmatpush.bf16.msra.mxu1 %v9501_v40  ;;  %v13950_v40 = vld [vmem:[#allocation14_spill] sm:$0xff] }
 0x1f5   : > { %v11637_v29 = vadd.f32 %v2566_v25, %v2126_v44 }
 0x1f6   : > { %v1317_v54 = vpop.f32.mrf.mxu2 }
 0x1f7   : > { %v1373_v32 = vadd.f32 %v1317_v54, %v13935_v41  ;;  %v1835_v23 = vpop.f32.mrf.mxu3  ;;  %v11666_v54 = vld [vmem:[%s10423_s16 + $0x3c] sm:$0xff] }
 0x1f8   : > { %v2074_v7 = vpop.f32.mrf.mxu0  ;;  %7891 = vperm.xlu2 %10318, %v11444_v60  }
 0x1f9   : > { %v1891_v30 = vadd.f32 %v1835_v23, %v1373_v32  ;;  %v2824_v32 = vshll.u32 %v11666_v54, 16  ;;  %v2828_v23 = vshrl.u32 %v11666_v54, 16 }
 0x1fb   : > { %v2571_v46 = vpop.f32.mrf.mxu1  ;;  %3016 = vmatmul.bf16.gmra.mxu2 %v2811_v49  ;;  %3584 = vmatmul.bf16.gmra.mxu0 %v3434_v3  ;;  %v11651_v17 = vadd.f32 %v2071_v35, %v1891_v30  ;;  %v13940_v49 = vld [vmem:[#allocation10_spill] sm:$0xff]  ;;  %v3439_v30 = vrot.slane %v2828_v23, 1 }
 0x1fc   : > { %3276 = vmatmul.bf16.gmra.mxu3 %v3161_v62  ;;  %v3440_v62 = vrot.slane %v2824_v32, 2 }
 0x1fe   : > { %v1320_v1 = vpop.f32.mrf.mxu2 }
 0x1ff   : > { %v1374_v57 = vadd.f32 %v1320_v1, %v13936_v42  ;;  %v1838_v48 = vpop.f32.mrf.mxu3  ;;  %v2826_v1 = vrot.slane %v2824_v32, 1  ;;  %v3441_v42 = vor.u32 %v3440_v62, %v3439_v30 }
 0x200   : > { %v2076_v38 = vpop.f32.mrf.mxu0  ;;  %7906 = vperm.xlu2 %10318, %v11467_v51  }
 0x201   : > { %v1892_v10 = vadd.f32 %v1838_v48, %v1374_v57  ;;  %v3164_v48 = vrot.slane %v11666_v54, 1  ;;  %v2827_v22 = vsel %vm2287_vm3, %v2822_v47, %v2826_v1 }
 0x203   : > { %v11656_v25 = vpop.f32.mrf.mxu1  ;;  %v2128_v60 = vadd.f32 %v2074_v7, %v1892_v10  ;;  %v3165_v63 = vsel %vm3154_vm5, %v3162_v5, %v3164_v48 }
 0x204   : > { %13937 = vst [vmem:[#allocation3_spill] sm:$0xff] %v11656_v25 }
 0x205   : > { %v11659_v58 = vadd.f32 %v2571_v46, %v2128_v60 }
 0x206   : > { %v1322_v35 = vpop.f32.mrf.mxu2 }
 0x207   : > { %v1375_v4 = vadd.f32 %v1322_v35, %v13938_v56  ;;  %v1840_v12 = vpop.f32.mrf.mxu3  ;;  %v3442_v35 = vsel %vm3414_vm4, %v3437_v28, %v3441_v42  ;;  %v11685_v56 = vld [vmem:[%s10423_s16 + $0x44] sm:$0xff] }
 0x208   : > { %v2079_v44 = vpop.f32.mrf.mxu0  ;;  %7921 = vperm.xlu2 %10318, %v11496_v45   ;;  %v3166_v62 = vrot.slane %v11685_v56, 1 }
 0x209   : > { %v1893_v51 = vadd.f32 %v1840_v12, %v1375_v4 }
 0x20b   : > { %v2576_v6 = vpop.f32.mrf.mxu1  ;;  %3021 = vmatmul.bf16.gmra.mxu2 %v2819_v50  ;;  %3589 = vmatmul.bf16.gmra.mxu0 %v3438_v55  ;;  %v11670_v41 = vadd.f32 %v2076_v38, %v1893_v51  ;;  %v2836_v50 = vshrl.u32 %v11685_v56, 16  ;;  %v13945_v55 = vld [vmem:[#allocation12_spill] sm:$0xff] }
 0x20c   : > { %3281 = vmatmul.bf16.gmra.mxu3 %v3163_v16 }
 0x20d   : > { %13939 = vst [vmem:[#allocation27_spill] sm:$0xff] %v11670_v41  ;;  %v3443_v16 = vrot.slane %v2836_v50, 1 }
 0x20e   : > { %v1325_v7 = vpop.f32.mrf.mxu2 }
 0x20f   : > { %v1376_v11 = vadd.f32 %v1325_v7, %v13940_v49  ;;  %v1843_v3 = vpop.f32.mrf.mxu3 }
 0x210   : > { %v2081_v36 = vpop.f32.mrf.mxu0  ;;  %7936 = vperm.xlu2 %10318, %v11524_v15  }
 0x211   : > { %v1894_v26 = vadd.f32 %v1843_v3, %v1376_v11  ;;  %v2830_v11 = vor.u32 %v2828_v23, %v2826_v1  ;;  %v3167_v23 = vsel %vm3154_vm5, %v3164_v48, %v3166_v62 }
 0x213   : > { %v11675_v46 = vpop.f32.mrf.mxu1  ;;  %v2130_v45 = vadd.f32 %v2079_v44, %v1894_v26  ;;  %v2832_v44 = vshll.u32 %v11685_v56, 16 }
 0x214   : > { %13941 = vst [vmem:[#allocation28_spill] sm:$0xff] %v11675_v46 }
 0x215   : > { %v11678_v57 = vadd.f32 %v2576_v6, %v2130_v45  ;;  %v3444_v6 = vrot.slane %v2832_v44, 2  ;;  %v2834_v3 = vrot.slane %v2832_v44, 1  ;;  %v13948_v45 = vld [vmem:[#allocation13_spill] sm:$0xff] }
 0x216   : > { %v1327_v38 = vpop.f32.mrf.mxu2 }
 0x217   : > { %13942 = vst [vmem:[#allocation29_spill] sm:$0xff] %v11678_v57  ;;  %v1377_v34 = vadd.f32 %v1327_v38, %v13943_v9  ;;  %v1845_v10 = vpop.f32.mrf.mxu3 }
 0x218   : > { %v2084_v60 = vpop.f32.mrf.mxu0 }
 0x219   : > { %v1895_v15 = vadd.f32 %v1845_v10, %v1377_v34  ;;  %v2835_v34 = vsel %vm2287_vm3, %v2830_v11, %v2834_v3 }
 0x21b   : > { %v2581_v4 = vpop.f32.mrf.mxu1  ;;  %3026 = vmatmul.bf16.gmra.mxu2 %v2827_v22  ;;  %3594 = vmatmul.bf16.gmra.mxu0 %v3442_v35  ;;  %v11691_v12 = vadd.f32 %v2081_v36, %v1895_v15  ;;  %v3445_v36 = vor.u32 %v3444_v6, %v3443_v16  ;;  %v11705_v22 = vld [vmem:[%s10423_s16 + $0x4c] sm:$0xff] }
 0x21c   : > { %3286 = vmatmul.bf16.gmra.mxu3 %v3165_v63  ;;  %v2840_v56 = vshll.u32 %v11705_v22, 16  ;;  %v2844_v15 = vshrl.u32 %v11705_v22, 16 }
 0x21d   : > { %13944 = vst [vmem:[#allocation4_spill] sm:$0xff] %v11691_v12  ;;  %v3446_v10 = vsel %vm3414_vm4, %v3441_v42, %v3445_v36 }
 0x21e   : > { %v1330_v28 = vpop.f32.mrf.mxu2  ;;  %v2842_v16 = vrot.slane %v2840_v56, 1 }
 0x21f   : > { %v1378_v54 = vadd.f32 %v1330_v28, %v13945_v55  ;;  %v1848_v51 = vpop.f32.mrf.mxu3  ;;  %v3447_v28 = vrot.slane %v2844_v15, 1  ;;  %v3448_v55 = vrot.slane %v2840_v56, 2 }
 0x220   : > { %v2086_v5 = vpop.f32.mrf.mxu0 }
 0x221   : > { %v1896_v32 = vadd.f32 %v1848_v51, %v1378_v54  ;;  %v2838_v51 = vor.u32 %v2836_v50, %v2834_v3  ;;  %v3449_v6 = vor.u32 %v3448_v55, %v3447_v28 }
 0x223   : > { %v11696_v7 = vpop.f32.mrf.mxu1  ;;  %v2132_v49 = vadd.f32 %v2084_v60, %v1896_v32 }
 0x224   : > { %13946 = vst [vmem:[#allocation31_spill] sm:$0xff] %v11696_v7 }
 0x225   : > { %v11698_v30 = vadd.f32 %v2581_v4, %v2132_v49  ;;  %v3168_v49 = vrot.slane %v11705_v22, 1 }
 0x226   : > { %v1332_v26 = vpop.f32.mrf.mxu2 }
 0x227   : > { %13947 = vst [vmem:[#allocation32_spill] sm:$0xff] %v11698_v30  ;;  %v1379_v47 = vadd.f32 %v1332_v26, %v13948_v45  ;;  %v1850_v38 = vpop.f32.mrf.mxu3  ;;  %v13953_v26 = vld [vmem:[#allocation15_spill] sm:$0xff]  ;;  %v3169_v3 = vsel %vm3154_vm5, %v3166_v62, %v3168_v49 }
 0x228   : > { %v2089_v9 = vpop.f32.mrf.mxu0 }
 0x229   : > { %v1897_v35 = vadd.f32 %v1850_v38, %v1379_v47 }
 0x22b   : > { %v2586_v1 = vpop.f32.mrf.mxu1  ;;  %3031 = vmatmul.bf16.gmra.mxu2 %v2835_v34  ;;  %3599 = vmatmul.bf16.gmra.mxu0 %v3446_v10  ;;  %v11708_v60 = vadd.f32 %v2086_v5, %v1897_v35  ;;  %v2843_v34 = vsel %vm2287_vm3, %v2838_v51, %v2842_v16  ;;  %v3450_v10 = vsel %vm3414_vm4, %v3445_v36, %v3449_v6  ;;  %v11722_v35 = vld [vmem:[%s10423_s16 + $0x54] sm:$0xff] }
 0x22c   : > { %3291 = vmatmul.bf16.gmra.mxu3 %v3167_v23  ;;  %v2848_v22 = vshll.u32 %v11722_v35, 16  ;;  %v2852_v23 = vshrl.u32 %v11722_v35, 16 }
 0x22d   : > { %13949 = vst [vmem:[#allocation5_spill] sm:$0xff] %v11708_v60 }
 0x22e   : > { %v1335_v63 = vpop.f32.mrf.mxu2 }
 0x22f   : > { %v1380_v4 = vadd.f32 %v1335_v63, %v13950_v40  ;;  %v1853_v44 = vpop.f32.mrf.mxu3  ;;  %v13955_v63 = vld [vmem:[#allocation16_spill] sm:$0xff] }
 0x230   : > { %v2091_v42 = vpop.f32.mrf.mxu0 }
 0x231   : > { %v1898_v54 = vadd.f32 %v1853_v44, %v1380_v4  ;;  %v3451_v44 = vrot.slane %v2852_v23, 1 }
 0x233   : > { %v2134_v48 = vadd.f32 %v2089_v9, %v1898_v54  ;;  %v11713_v5 = vpop.f32.mrf.mxu1  ;;  %v2846_v54 = vor.u32 %v2844_v15, %v2842_v16 }
 0x234   : > { %13951 = vst [vmem:[#allocation6_spill] sm:$0xff] %v11713_v5 }
 0x235   : > { %v11715_v32 = vadd.f32 %v2586_v1, %v2134_v48  ;;  %v9500_v1 = vld [vmem:[%s13755_s3] sm:$0xff]  ;;  %v2850_v48 = vrot.slane %v2848_v22, 1 }
 0x236   : > { %v1337_v11 = vpop.f32.mrf.mxu2  ;;  %4558 = vmatpush.bf16.msra.mxu1 %v9500_v1 }
 0x237   : > { %13952 = vst [vmem:[#allocation7_spill] sm:$0xff] %v11715_v32  ;;  %v1381_v45 = vadd.f32 %v1337_v11, %v13953_v26  ;;  %v1855_v47 = vpop.f32.mrf.mxu3  ;;  %v3170_v26 = vrot.slane %v11722_v35, 1 }
 0x238   : > { %v2094_v38 = vpop.f32.mrf.mxu0 }
 0x239   : > { %v1899_v50 = vadd.f32 %v1855_v47, %v1381_v45  ;;  %v13957_v47 = vld [vmem:[#allocation17_spill] sm:$0xff]  ;;  %v3171_v16 = vsel %vm3154_vm5, %v3168_v49, %v3170_v26 }
 0x23b   : > { %3036 = vmatmul.bf16.gmra.mxu2 %v2843_v34  ;;  %3604 = vmatmul.bf16.gmra.mxu0 %v3450_v10  ;;  %v11725_v9 = vadd.f32 %v2091_v42, %v1899_v50  ;;  %v2591_v36 = vpop.f32.mrf.mxu1  ;;  %v3452_v42 = vrot.slane %v2848_v22, 2 }
 0x23c   : > { %3296 = vmatmul.bf16.gmra.mxu3 %v3169_v3  ;;  %v2851_v3 = vsel %vm2287_vm3, %v2846_v54, %v2850_v48 }
 0x23d   : > { %13954 = vst [vmem:[#allocation8_spill] sm:$0xff] %v11725_v9  ;;  %v3453_v51 = vor.u32 %v3452_v42, %v3451_v44 }
 0x23e   : > { %v1340_v56 = vpop.f32.mrf.mxu2 }
 0x23f   : > { %v1382_v40 = vadd.f32 %v1340_v56, %v13955_v63  ;;  %v1858_v4 = vpop.f32.mrf.mxu3  ;;  %v3454_v1 = vsel %vm3414_vm4, %v3449_v6, %v3453_v51  ;;  %v11742_v63 = vld [vmem:[%s10423_s16 + $0x5c] sm:$0xff] }
 0x240   : > { %v2096_v62 = vpop.f32.mrf.mxu0  ;;  %v2856_v6 = vshll.u32 %v11742_v63, 16 }
 0x241   : > { %v1900_v28 = vadd.f32 %v1858_v4, %v1382_v40  ;;  %v13960_v4 = vld [vmem:[#allocation18_spill] sm:$0xff] }
 0x242   : > { %v3456_v49 = vrot.slane %v2856_v6, 2 }
 0x243   : > { %v2136_v55 = vadd.f32 %v2094_v38, %v1900_v28  ;;  %v11739_v56 = vpop.f32.mrf.mxu1  ;;  %v283_v38 = vld [vmem:[#allocation2] sm:$0xc] }
 0x244   : > { %13958 = vst [vmem:[#allocation10_spill] sm:$0xff] %v11739_v56  ;;  %v284_v35 = vsel %vm282_vm8, 0, %v283_v38 }
 0x245   : > { %v11733_v11 = vadd.f32 %v2591_v36, %v2136_v55  ;;  %285 = vst [vmem:[#allocation2] sm:$0xc] %v284_v35  ;;  %v2860_v36 = vshrl.u32 %v11742_v63, 16 }
 0x246   : > { %v1342_v45 = vpop.f32.mrf.mxu2 }
 0x247   : > { %13956 = vst [vmem:[#allocation9_spill] sm:$0xff] %v11733_v11  ;;  %v1383_v34 = vadd.f32 %v1342_v45, %v13957_v47  ;;  %v1860_v10 = vpop.f32.mrf.mxu3  ;;  %v3455_v55 = vrot.slane %v2860_v36, 1 }
 0x248   : > { %v2099_v50 = vpop.f32.mrf.mxu0 }
 0x249   : > { %v1901_v15 = vadd.f32 %v1860_v10, %v1383_v34  ;;  %v2854_v34 = vor.u32 %v2852_v23, %v2850_v48  ;;  %v3457_v10 = vor.u32 %v3456_v49, %v3455_v55 }
 0x24b   : > { %3041 = vmatmul.bf16.gmra.mxu2 %v2851_v3  ;;  %3609 = vmatmul.bf16.gmra.mxu0 %v3454_v1  ;;  %v11745_v22 = vadd.f32 %v2096_v62, %v1901_v15  ;;  %v2596_v45 = vpop.f32.mrf.mxu1  ;;  %v2858_v62 = vrot.slane %v2856_v6, 1  ;;  %v3172_v1 = vrot.slane %v11742_v63, 1  ;;  %v3458_v56 = vsel %vm3414_vm4, %v3453_v51, %v3457_v10  ;;  %v9515_v6 = vld [vmem:[%s13755_s3 + $0x78] sm:$0xff] }
 0x24c   : > { %3301 = vmatmul.bf16.gmra.mxu3 %v3171_v16  ;;  %v13962_v16 = vld [vmem:[#allocation19_spill] sm:$0xff]  ;;  %v13964_v51 = vld [vmem:[#allocation20_spill] sm:$0xff]  ;;  %4810 = vmatpush.bf16.msrb.mxu2 %v9515_v6 }
 0x24d   : > { %13959 = vst [vmem:[#allocation11_spill] sm:$0xff] %v11745_v22  ;;  %v11757_v22 = vld [vmem:[%s10423_s16 + $0x64] sm:$0xff]  ;;  %v3173_v23 = vsel %vm3154_vm5, %v3170_v26, %v3172_v1 }
 0x24e   : > { %v1345_v40 = vpop.f32.mrf.mxu2  ;;  %v2868_v63 = vshrl.u32 %v11757_v22, 16 }
 0x24f   : > { %v1384_v44 = vadd.f32 %v1345_v40, %v13960_v4  ;;  %v1863_v42 = vpop.f32.mrf.mxu3  ;;  %v2859_v4 = vsel %vm2287_vm3, %v2854_v34, %v2858_v62  ;;  %v2862_v34 = vor.u32 %v2860_v36, %v2858_v62 }
 0x250   : > { %v2101_v28 = vpop.f32.mrf.mxu0  ;;  %v3459_v26 = vrot.slane %v2868_v63, 1 }
 0x251   : > { %v1902_v54 = vadd.f32 %v1863_v42, %v1384_v44 }
 0x253   : > { %v2138_v47 = vadd.f32 %v2099_v50, %v1902_v54  ;;  %v2864_v50 = vshll.u32 %v11757_v22, 16 }
 0x255   : > { %v11750_v3 = vadd.f32 %v2596_v45, %v2138_v47  ;;  %v9523_v45 = vld [vmem:[%s13755_s3 + $0xb8] sm:$0xff] }
 0x256   : > { %v1347_v15 = vpop.f32.mrf.mxu2  ;;  %5117 = vmatpush.bf16.msrb.mxu3 %v9523_v45 }
 0x257   : > { %13961 = vst [vmem:[#allocation12_spill] sm:$0xff] %v11750_v3  ;;  %v1385_v38 = vadd.f32 %v1347_v15, %v13962_v16  ;;  %v1865_v35 = vpop.f32.mrf.mxu3  ;;  %v2866_v15 = vrot.slane %v2864_v50, 1 }
 0x258   : > { %v3575_v40 = vpop.f32.mrf.mxu0 }
 0x259   : > { %v1903_v44 = vadd.f32 %v1865_v35, %v1385_v38  ;;  %v4169_v38 = vld [vmem:[#allocation2] sm:$0xc]  ;;  %v4170_v35 = vld [vmem:[#allocation2 + $0x4] sm:$0xf]  ;;  %v2867_v62 = vsel %vm2287_vm3, %v2862_v34, %v2866_v15 }
 0x25a   : > { %v4259_v3 = vunpack.c.l.b16 %v4169_v38 }
 0x25b   : > { %3046 = vmatmul.bf16.gmra.mxu2 %v2859_v4  ;;  %3614 = vmatmul.bf16.gmra.mxu0 %v3458_v56  ;;  %v11760_v48 = vadd.f32 %v2101_v28, %v1903_v44  ;;  %v3460_v56 = vrot.slane %v2864_v50, 2  ;;  %v13783_v44 = vrot.slane %v11757_v22, 1 }
 0x25c   : > { %3306 = vmatmul.bf16.gmra.mxu3 %v3173_v23  ;;  %v4686_v23 = vld [vmem:[#allocation2] sm:$0x8] }
 0x25d   : > { %13963 = vst [vmem:[#allocation13_spill] sm:$0xff] %v11760_v48  ;;  %v11771_v16 = vor.u32 %v3460_v56, %v3459_v26  ;;  %v4705_v26 = vunpack.c.l.b16 %v4686_v23  ;;  %v3175_v11 = vsel %vm3154_vm5, %v3172_v1, %v13783_v44  ;;  %v9539_v1 = vld [vmem:[%s13755_s3 + $0x138] sm:$0xff] }
 0x25e   : > { %v3007_v42 = vpop.f32.mrf.mxu2  ;;  %5871 = vmatpush.bf16.msrb.mxu1 %v9539_v1 }
 0x25f   : > { %v3097_v55 = vadd.f32 %v3007_v42, %v13964_v51  ;;  %v3267_v49 = vpop.f32.mrf.mxu3  ;;  %v11775_v42 = vld [vmem:[%s10423_s16 + $0x6c] sm:$0xff]  ;;  %v3462_v50 = vsel %vm3414_vm4, %v3457_v10, %v11771_v16  ;;  %v9531_v10 = vld [vmem:[%s13755_s3 + $0xf8] sm:$0xff] }
 0x260   : > { %v3577_v54 = vpop.f32.mrf.mxu0  ;;  %v2872_v38 = vshll.u32 %v11775_v42, 16  ;;  %5635 = vmatpush.bf16.msrb.mxu0 %v9531_v10  ;;  %v13968_v7 = vrot.slane %v11775_v42, 1 }
 0x261   : > { %v3357_v28 = vadd.f32 %v3267_v49, %v3097_v55  ;;  %v13965_v55 = vld [vmem:[#allocation21_spill] sm:$0xff] }
 0x263   : > { %v3665_v47 = vadd.f32 %v3575_v40, %v3357_v28  ;;  %v4260_v40 = vunpack.c.l.b16 %v4170_v35  ;;  %v3812_v28 = vpop.permute.xlu0 %3811 }
 0x265   : > { %v3701_v4 = vmul.f32 0.01, %v3665_v47  ;;  %v4296_v35 = vpack.c.b16 %v4260_v40, %v4259_v3  ;;  %v4706_v34 = vpack.c.b16 %v4260_v40, %v4705_v26  ;;  %v3464_v3 = vrot.slane %v2872_v38, 2 }
 0x266   : > { %v3009_v6 = vpop.f32.mrf.mxu2  ;;  %v2870_v26 = vor.u32 %v2868_v63, %v2866_v15 }
 0x267   : > { %v3737_v51 = vmax.f32 %v3665_v47, %v3701_v4  ;;  %v3098_v49 = vadd.f32 %v3009_v6, %v13965_v55  ;;  %v3269_v48 = vpop.f32.mrf.mxu3  ;;  %v13784_v47 = vshrl.u32 %v11775_v42, 16  ;;  %v4319_v40 = vshll.u32 %v4296_v35, 16 }
 0x268   : > { %v3580_v36 = vpop.f32.mrf.mxu0  ;;  %v4707_v9 = vrot.slane %v4706_v34, 3 }
 0x269   : > { %v3989_v56 = vmul.f32 %v3812_v28, %v3737_v51  ;;  %v3358_v45 = vadd.f32 %v3269_v48, %v3098_v49  ;;  %v3463_v23 = vrot.slane %v13784_v47, 1  ;;  %v13966_v51 = vld [vmem:[#allocation22_spill] sm:$0xff]  ;;  %v4967_v28 = vshrl.u32 %v4706_v34, 16 }
 0x26a   : > { %v4321_v47 = vrot.slane %v4319_v40, 3 }
 0x26b   : > { %v4025_v4 = vpack.c.bf16 %v3989_v56, %v3989_v56  ;;  %3051 = vmatmul.bf16.gmra.mxu2 %v2867_v62  ;;  %3619 = vmatmul.bf16.gmra.mxu0 %v3462_v50  ;;  %v3666_v6 = vadd.f32 %v3577_v54, %v3358_v45  ;;  %v2874_v56 = vrot.slane %v2872_v38, 1  ;;  %v4970_v45 = vshll.u32 %v4706_v34, 16 }
 0x26c   : > { %3311 = vmatmul.bf16.gmra.mxu3 %v3175_v11  ;;  %v4316_v11 = vshrl.u32 %v4296_v35, 16  ;;  %v11795_v44 = vor.u32 %v3464_v3, %v3463_v23  ;;  %v4969_v32 = vrot.slane %v4967_v28, 3  ;;  %v3817_v23 = vpop.permute.xlu0 %3816  ;;  %v13967_v3 = vld [vmem:[#allocation23_spill] sm:$0xff]  ;;  %v3822_v28 = vpop.permute.xlu1 %3821 }
 0x26d   : > { %4061 = vst [vmem:[#allocation2 + $0xc] sm:$0xf] %v4025_v4  ;;  %v3702_v62 = vmul.f32 0.01, %v3666_v6  ;;  %v2875_v1 = vsel %vm2287_vm3, %v2870_v26, %v2874_v56  ;;  %v4972_v38 = vrot.slane %v4970_v45, 4 }
 0x26e   : > { %v3012_v48 = vpop.f32.mrf.mxu2  ;;  %v4318_v5 = vrot.slane %v4316_v11, 2  ;;  %v3466_v34 = vsel %vm3414_vm4, %v11771_v16, %v11795_v44  ;;  %v13969_v16 = vrot.slane %v11757_v22, 1 }
 0x26f   : > { %v3099_v55 = vadd.f32 %v3012_v48, %v13966_v51  ;;  %v3272_v49 = vpop.f32.mrf.mxu3  ;;  %v3738_v35 = vmax.f32 %v3666_v6, %v3702_v62  ;;  %v11809_v48 = vld [vmem:[%s10423_s16 + $0x74] sm:$0xff]  ;;  %v4973_v60 = vor.u32 %v4972_v38, %v4969_v32 }
 0x270   : > { %v3582_v54 = vpop.f32.mrf.mxu0  ;;  %v4322_v6 = vor.u32 %v4321_v47, %v4318_v5  ;;  %v3177_v5 = vsel %vm3154_vm5, %v13969_v16, %v13968_v7 }
 0x271   : > { %v3359_v50 = vadd.f32 %v3272_v49, %v3099_v55 }
 0x273   : > { %v3667_v4 = vadd.f32 %v3580_v36, %v3359_v50 }
 0x274   : > { %v11798_v51 = vld [vmem:[#allocation2 + $0x8] sm:$0xff] }
 0x275   : > { %v3703_v10 = vmul.f32 0.01, %v3667_v4  ;;  %v4324_v63 = vshrl.u32 %v11798_v51, 16  ;;  %v4327_v15 = vshll.u32 %v11798_v51, 16  ;;  %v4708_v36 = vrot.slane %v11798_v51, 3 }
 0x276   : > { %v3014_v55 = vpop.f32.mrf.mxu2 }
 0x277   : > { %v3739_v49 = vmax.f32 %v3667_v4, %v3703_v10  ;;  %v3100_v11 = vadd.f32 %v3014_v55, %v13967_v3  ;;  %v3274_v40 = vpop.f32.mrf.mxu3  ;;  %v4326_v50 = vrot.slane %v4324_v63, 2  ;;  %v4329_v26 = vrot.slane %v4327_v15, 3 }
 0x278   : > { %v3585_v62 = vpop.f32.mrf.mxu0  ;;  %v11814_v45 = vsel %vm839_vm1, %v4707_v9, %v4708_v36  ;;  %v4974_v4 = vrot.slane %v4324_v63, 3  ;;  %v3990_v10 = vmul.f32 %v3817_v23, %v3738_v35  ;;  %v4975_v30 = vrot.slane %v4327_v15, 4 }
 0x279   : > { %v3991_v55 = vmul.f32 %v3822_v28, %v3739_v49  ;;  %v3360_v3 = vadd.f32 %v3274_v40, %v3100_v11  ;;  %v11821_v47 = vor.u32 %v4329_v26, %v4326_v50  ;;  %v2880_v35 = vshll.u32 %v11809_v48, 16 }
 0x27a   : > { %v2884_v63 = vshrl.u32 %v11809_v48, 16  ;;  %v11827_v23 = vor.u32 %v4975_v30, %v4974_v4  ;;  %v9522_v30 = vld [vmem:[%s13755_s3 + $0xb0] sm:$0xff]  ;;  %v13785_v26 = vrot.slane %v11809_v48, 1 }
 0x27b   : > { %v9678_v46 = vpack.c.bf16 %v3991_v55, %v3990_v10  ;;  %3056 = vmatmul.bf16.gmra.mxu2 %v2875_v1  ;;  %3624 = vmatmul.bf16.gmra.mxu0 %v3466_v34  ;;  %v4331_v9 = vsel %vm446_vm0, %v4322_v6, %v11821_v47  ;;  %v3668_v22 = vadd.f32 %v3582_v54, %v3360_v3  ;;  %v13970_v1 = vld [vmem:[#allocation24_spill] sm:$0xff]  ;;  %v3468_v40 = vrot.slane %v2880_v35, 2 }
 0x27c   : > { %3316 = vmatmul.bf16.gmra.mxu3 %v3177_v5  ;;  %4559 = vmatmul.bf16.vlgmr.msra.gmra.mxu1 %v4331_v9  ;;  %v11831_v32 = vsel %vm1099_vm2, %v4973_v60, %v11827_v23  ;;  %v3467_v11 = vrot.slane %v2884_v63, 1  ;;  %v13971_v54 = vshrl.u32 %v11775_v42, 16  ;;  %v2882_v50 = vrot.slane %v2880_v35, 1  ;;  %v3827_v9 = vpop.permute.xlu1 %3826 }
 0x27d   : > { %10078 = vst [vmem:[#allocation2 + $0x10] sm:$0xff] %v9678_v46   ;;  %v3704_v34 = vmul.f32 0.01, %v3668_v22  ;;  %v9514_v46 = vld [vmem:[%s13755_s3 + $0x70] sm:$0xff]  ;;  %5118 = vmatpush.bf16.msrb.mxu3 %v9522_v30  ;;  %v11862_v30 = vld [vmem:[%s10423_s16 + $0x7c] sm:$0xff] }
 0x27e   : > { %v3017_v7 = vpop.f32.mrf.mxu2  ;;  %v2878_v28 = vor.u32 %v13971_v54, %v2874_v56  ;;  %4811 = vmatpush.bf16.msrb.mxu2 %v9514_v46  ;;  %v11845_v4 = vor.u32 %v3468_v40, %v3467_v11  ;;  %v13972_v56 = vld [vmem:[#allocation25_spill] sm:$0xff] }
 0x27f   : > { %v3101_v15 = vadd.f32 %v3017_v7, %v13970_v1  ;;  %v3277_v38 = vpop.f32.mrf.mxu3  ;;  %v3740_v55 = vmax.f32 %v3668_v22, %v3704_v34  ;;  %v13973_v22 = vrot.slane %v11775_v42, 1 }
 0x280   : > { %v3587_v49 = vpop.f32.mrf.mxu0  ;;  %v3470_v34 = vsel %vm3414_vm4, %v11795_v44, %v11845_v4 }
 0x281   : > { %v3361_v6 = vadd.f32 %v3277_v38, %v3101_v15  ;;  %v2883_v15 = vsel %vm2287_vm3, %v2878_v28, %v2882_v50  ;;  %v3832_v38 = vpop.permute.xlu2 %3831  ;;  %v3179_v40 = vsel %vm3154_vm5, %v13973_v22, %v13785_v26  ;;  %v11869_v22 = vld [vmem:[#allocation2 + $0xc] sm:$0xf] }
 0x283   : > { %v3669_v60 = vadd.f32 %v3585_v62, %v3361_v6 }
 0x284   : > { %v11847_v10 = vld [vmem:[#allocation2 + $0x10] sm:$0xff] }
 0x285   : > { %v3705_v3 = vmul.f32 0.01, %v3669_v60  ;;  %v4333_v5 = vshrl.u32 %v11847_v10, 16  ;;  %v4336_v62 = vshll.u32 %v11847_v10, 16  ;;  %v13788_v28 = vrot.slane %v11847_v10, 3 }
 0x286   : > { %v3019_v16 = vpop.f32.mrf.mxu2 }
 0x287   : > { %v3741_v7 = vmax.f32 %v3669_v60, %v3705_v3  ;;  %v3102_v35 = vadd.f32 %v3019_v16, %v13972_v56  ;;  %v3279_v1 = vpop.f32.mrf.mxu3  ;;  %v4335_v6 = vrot.slane %v4333_v5, 2  ;;  %v4338_v46 = vrot.slane %v4336_v62, 3  ;;  %v11867_v56 = vld [vmem:[#allocation2 + $0x10] sm:$0xff]  }
 0x288   : > { %v3590_v11 = vpop.f32.mrf.mxu0  ;;  %v3992_v60 = vmul.f32 %v3827_v9, %v3740_v55  ;;  %v4978_v26 = vrot.slane %v4333_v5, 3  ;;  %v2888_v55 = vshll.u32 %v11862_v30, 16  ;;  %v13787_v9 = vshrl.u32 %v11862_v30, 16  ;;  %v9538_v5 = vld [vmem:[%s13755_s3 + $0x130] sm:$0xff] }
 0x289   : > { %v3993_v54 = vmul.f32 %v3832_v38, %v3741_v7  ;;  %v3362_v3 = vadd.f32 %v3279_v1, %v3102_v35  ;;  %v11865_v16 = vor.u32 %v4338_v46, %v4335_v6  ;;  %v9530_v35 = vld [vmem:[%s13755_s3 + $0xf0] sm:$0xff]  ;;  %v4979_v1 = vrot.slane %v4336_v62, 4  ;;  %5872 = vmatpush.bf16.msrb.mxu1 %v9538_v5 }
 0x28a   : > { %v13786_v38 = vunpack.c.l.b16 %v11869_v22  ;;  %5636 = vmatpush.bf16.msrb.mxu0 %v9530_v35  ;;  %v3472_v51 = vrot.slane %v2888_v55, 2  ;;  %v2886_v35 = vor.u32 %v2884_v63, %v2882_v50  ;;  %v13789_v5 = vrot.slane %v11862_v30, 1 }
 0x28b   : > { %v9683_v42 = vpack.c.bf16 %v3993_v54, %v3992_v60  ;;  %3061 = vmatmul.bf16.gmra.mxu2 %v2883_v15  ;;  %3629 = vmatmul.bf16.gmra.mxu0 %v3470_v34  ;;  %v4340_v44 = vsel %vm446_vm0, %v11821_v47, %v11865_v16  ;;  %v3670_v7 = vadd.f32 %v3587_v49, %v3362_v3  ;;  %v9830_v15 = vunpack.c.l.b16 %v11867_v56 }
 0x28c   : > { %3321 = vmatmul.bf16.gmra.mxu3 %v3179_v40  ;;  %4564 = vmatmul.bf16.gmra.mxu1 %v4340_v44  ;;  %v11887_v47 = vsel %vm839_vm1, %v4708_v36, %v13788_v28  ;;  %v13974_v40 = vld [vmem:[#allocation26_spill] sm:$0xff]  ;;  %v4980_v46 = vor.u32 %v4979_v1, %v4978_v26  ;;  %v3471_v54 = vrot.slane %v13787_v9, 1  ;;  %v2890_v26 = vrot.slane %v2888_v55, 1  ;;  %v3837_v55 = vpop.permute.xlu2 %3836 }
 0x28d   : > { %10079 = vst [vmem:[#allocation2 + $0x18] sm:$0xff] %v9683_v42   ;;  %v11896_v36 = vpack.c.b16 %v9830_v15, %v13786_v38  ;;  %v3706_v62 = vmul.f32 0.01, %v3670_v7 }
 0x28e   : > { %v3022_v49 = vpop.f32.mrf.mxu2  ;;  %v11900_v42 = vsel %vm1099_vm2, %v11827_v23, %v4980_v46  ;;  %v11905_v1 = vor.u32 %v3472_v51, %v3471_v54  ;;  %v2891_v50 = vsel %vm2287_vm3, %v2886_v35, %v2890_v26 }
 0x28f   : > { %v3103_v34 = vadd.f32 %v3022_v49, %v13974_v40  ;;  %v3282_v6 = vpop.f32.mrf.mxu3  ;;  %13975 = vst [vmem:[#allocation14_spill] sm:$0xff] %v11896_v36  ;;  %v3742_v40 = vmax.f32 %v3670_v7, %v3706_v62  ;;  %v13977_v7 = vrot.slane %v11809_v48, 1 }
 0x290   : > { %v3592_v60 = vpop.f32.mrf.mxu0  ;;  %v3474_v62 = vsel %vm3414_vm4, %v11845_v4, %v11905_v1 }
 0x291   : > { %v3363_v3 = vadd.f32 %v3282_v6, %v3103_v34  ;;  %v3842_v6 = vpop.permute.xlu0 %3841  ;;  %v3181_v51 = vsel %vm3154_vm5, %v13977_v7, %v13789_v5 }
 0x293   : > { %v3671_v44 = vadd.f32 %v3590_v11, %v3363_v3  ;;  %v13976_v3 = vld [vmem:[#allocation30_spill] sm:$0xff] }
 0x294   : > { %v11907_v49 = vld [vmem:[#allocation2 + $0x18] sm:$0xff] }
 0x295   : > { %v3707_v15 = vmul.f32 0.01, %v3671_v44  ;;  %v4342_v34 = vshrl.u32 %v11907_v49, 16  ;;  %v4345_v23 = vshll.u32 %v11907_v49, 16  ;;  %v13791_v35 = vrot.slane %v11907_v49, 3 }
 0x296   : > { %v3024_v38 = vpop.f32.mrf.mxu2 }
 0x297   : > { %v3743_v11 = vmax.f32 %v3671_v44, %v3707_v15  ;;  %v3104_v9 = vadd.f32 %v3024_v38, %v13976_v3  ;;  %v3284_v63 = vpop.f32.mrf.mxu3  ;;  %v4344_v28 = vrot.slane %v4342_v34, 2  ;;  %v4347_v36 = vrot.slane %v4345_v23, 3  ;;  %v11922_v44 = vld [vmem:[%s10423_s16 + $0x84] sm:$0xff] }
 0x298   : > { %v3595_v54 = vpop.f32.mrf.mxu0  ;;  %v3994_v38 = vmul.f32 %v3837_v55, %v3742_v40  ;;  %v4982_v48 = vrot.slane %v4342_v34, 3  ;;  %v2896_v4 = vshll.u32 %v11922_v44, 16  ;;  %v13790_v5 = vshrl.u32 %v11922_v44, 16 }
 0x299   : > { %v3995_v15 = vmul.f32 %v3842_v6, %v3743_v11  ;;  %v3364_v3 = vadd.f32 %v3284_v63, %v3104_v9  ;;  %v4348_v12 = vor.u32 %v4347_v36, %v4344_v28  ;;  %v13978_v9 = vrot.slane %v11847_v10, 3  ;;  %v9513_v10 = vld [vmem:[%s13755_s3 + $0x68] sm:$0xff] }
 0x29a   : > { %v4983_v36 = vrot.slane %v4345_v23, 4  ;;  %v13979_v55 = vshrl.u32 %v11862_v30, 16  ;;  %4812 = vmatpush.bf16.msrb.mxu2 %v9513_v10 }
 0x29b   : > { %v9688_v57 = vpack.c.bf16 %v3995_v15, %v3994_v38  ;;  %3066 = vmatmul.bf16.gmra.mxu2 %v2891_v50  ;;  %3634 = vmatmul.bf16.gmra.mxu0 %v3474_v62  ;;  %v4349_v7 = vsel %vm446_vm0, %v11865_v16, %v4348_v12  ;;  %v3672_v25 = vadd.f32 %v3592_v60, %v3364_v3  ;;  %v3476_v60 = vrot.slane %v2896_v4, 2 }
 0x29c   : > { %3326 = vmatmul.bf16.gmra.mxu3 %v3181_v51  ;;  %4569 = vmatmul.bf16.gmra.mxu1 %v4349_v7  ;;  %v11934_v28 = vsel %vm839_vm1, %v13978_v9, %v13791_v35  ;;  %v11937_v16 = vor.u32 %v4983_v36, %v4982_v48  ;;  %v2894_v51 = vor.u32 %v13979_v55, %v2890_v26  ;;  %v2898_v62 = vrot.slane %v2896_v4, 1 }
 0x29d   : > { %10080 = vst [vmem:[#allocation2 + $0x20] sm:$0xff] %v9688_v57   ;;  %v3475_v57 = vrot.slane %v13790_v5, 1  ;;  %v3708_v63 = vmul.f32 0.01, %v3672_v25  ;;  %v13792_v38 = vrot.slane %v11922_v44, 1 }
 0x29e   : > { %v3027_v40 = vpop.f32.mrf.mxu2  ;;  %v11946_v23 = vsel %vm1099_vm2, %v4980_v46, %v11937_v16 }
 0x29f   : > { %v3105_v34 = vadd.f32 %v3027_v40, %v11380_v18  ;;  %v3287_v6 = vpop.f32.mrf.mxu3  ;;  %v11951_v15 = vor.u32 %v3476_v60, %v3475_v57  ;;  %v3744_v48 = vmax.f32 %v3672_v25, %v3708_v63  ;;  %v11958_v40 = vld [vmem:[%s10423_s16 + $0x8c] sm:$0xff]  ;;  %v3852_v57 = vpop.permute.xlu2 %3851  ;;  %v13980_v25 = vrot.slane %v11862_v30, 1 }
 0x2a0   : > { %v3597_v11 = vpop.f32.mrf.mxu0  ;;  %v2904_v5 = vshll.u32 %v11958_v40, 16  ;;  %v13795_v35 = vshrl.u32 %v11958_v40, 16 }
 0x2a1   : > { %v3365_v50 = vadd.f32 %v3287_v6, %v3105_v34  ;;  %v2899_v6 = vsel %vm2287_vm3, %v2894_v51, %v2898_v62  ;;  %v3183_v63 = vsel %vm3154_vm5, %v13980_v25, %v13792_v38  ;;  %v11977_v38 = vld [vmem:[#allocation2 + $0x14] sm:$0xff]  }
 0x2a2   : > { %13981 = vst [vmem:[#allocation15_spill] sm:$0xff] %v11977_v38 }
 0x2a3   : > { %v3673_v18 = vadd.f32 %v3595_v54, %v3365_v50  ;;  %v3847_v54 = vpop.permute.xlu1 %3846  ;;  %v3478_v50 = vsel %vm3414_vm4, %v11905_v1, %v11951_v15 }
 0x2a4   : > { %v11953_v3 = vld [vmem:[#allocation2 + $0x20] sm:$0xff] }
 0x2a5   : > { %v3709_v7 = vmul.f32 0.01, %v3673_v18  ;;  %v4351_v36 = vshrl.u32 %v11953_v3, 16  ;;  %v4354_v46 = vshll.u32 %v11953_v3, 16 }
 0x2a6   : > { %v3029_v9 = vpop.f32.mrf.mxu2 }
 0x2a7   : > { %v3745_v34 = vmax.f32 %v3673_v18, %v3709_v7  ;;  %v3106_v26 = vadd.f32 %v3029_v9, %v11406_v24  ;;  %v3289_v4 = vpop.f32.mrf.mxu3  ;;  %v4353_v10 = vrot.slane %v4351_v36, 2  ;;  %v4356_v55 = vrot.slane %v4354_v46, 3 }
 0x2a8   : > { %v3600_v60 = vpop.f32.mrf.mxu0  ;;  %v3996_v18 = vmul.f32 %v3847_v54, %v3744_v48  ;;  %v13796_v9 = vrot.slane %v11953_v3, 3  ;;  %v4986_v25 = vrot.slane %v4351_v36, 3  ;;  %v9521_v54 = vld [vmem:[%s13755_s3 + $0xa8] sm:$0xff]  ;;  %v4987_v36 = vrot.slane %v4354_v46, 4 }
 0x2a9   : > { %v3997_v7 = vmul.f32 %v3852_v57, %v3745_v34  ;;  %v3366_v24 = vadd.f32 %v3289_v4, %v3106_v26  ;;  %v11971_v51 = vor.u32 %v4356_v55, %v4353_v10  ;;  %v13982_v34 = vrot.slane %v11907_v49, 3  ;;  %v6998_v4 = vld [vmem:[#allocation2 + $0x14] sm:$0xe]  ;;  %5119 = vmatpush.bf16.msrb.mxu3 %v9521_v54 }
 0x2aa   : > { %v3480_v57 = vrot.slane %v2904_v5, 2  ;;  %v13793_v10 = vunpack.c.h.b16 %v11977_v38  ;;  %v13984_v49 = vshrl.u32 %v11922_v44, 16 }
 0x2ab   : > { %v9693_v30 = vpack.c.bf16 %v3997_v7, %v3996_v18  ;;  %3071 = vmatmul.bf16.gmra.mxu2 %v2899_v6  ;;  %3639 = vmatmul.bf16.gmra.mxu0 %v3478_v50  ;;  %v4358_v1 = vsel %vm446_vm0, %v4348_v12, %v11971_v51  ;;  %v3674_v48 = vadd.f32 %v3597_v11, %v3366_v24  ;;  %v3479_v12 = vrot.slane %v13795_v35, 1 }
 0x2ac   : > { %3331 = vmatmul.bf16.gmra.mxu3 %v3183_v63  ;;  %4574 = vmatmul.bf16.gmra.mxu1 %v4358_v1  ;;  %v11987_v26 = vsel %vm839_vm1, %v13982_v34, %v13796_v9  ;;  %v11992_v50 = vor.u32 %v4987_v36, %v4986_v25  ;;  %v2902_v18 = vor.u32 %v13984_v49, %v2898_v62  ;;  %v7017_v7 = vunpack.c.l.b16 %v6998_v4  ;;  %v9529_v1 = vld [vmem:[%s13755_s3 + $0xe8] sm:$0xff]  ;;  %v12019_v4 = vld [vmem:[#allocation2 + $0x1c] sm:$0xff] }
 0x2ad   : > { %10081 = vst [vmem:[#allocation2 + $0x28] sm:$0xff] %v9693_v30   ;;  %v3710_v46 = vmul.f32 0.01, %v3674_v48  ;;  %v11997_v30 = vrot.slane %v2904_v5, 1  ;;  %v13794_v62 = vrot.slane %v11958_v40, 1  ;;  %v12011_v54 = vor.u32 %v3480_v57, %v3479_v12  ;;  %5637 = vmatpush.bf16.msrb.mxu0 %v9529_v1  ;;  %v12035_v1 = vld [vmem:[%s10423_s16 + $0x94] sm:$0xff] }
 0x2ae   : > { %13983 = vst [vmem:[#allocation16_spill] sm:$0xff] %v11987_v26  ;;  %v3032_v6 = vpop.f32.mrf.mxu2  ;;  %v12008_v25 = vsel %vm1099_vm2, %v11937_v16, %v11992_v50  ;;  %v12015_v5 = vpack.c.b16 %v13793_v10, %v7017_v7  ;;  %v13799_v9 = vshrl.u32 %v12019_v4, 16  ;;  %v13801_v26 = vshrl.u32 %v12035_v1, 16 }
 0x2af   : > { %v3107_v11 = vadd.f32 %v3032_v6, %v11428_v21  ;;  %v3292_v63 = vpop.f32.mrf.mxu3  ;;  %v9537_v21 = vld [vmem:[%s13755_s3 + $0x128] sm:$0xff]  ;;  %13985 = vst [vmem:[#allocation17_spill] sm:$0xff] %v12008_v25  ;;  %v3746_v6 = vmax.f32 %v3674_v48, %v3710_v46  ;;  %v2907_v16 = vsel %vm2287_vm3, %v2902_v18, %v11997_v30  ;;  %v3482_v57 = vsel %vm3414_vm4, %v11951_v15, %v12011_v54  ;;  %v3857_v48 = vpop.permute.xlu0 %3856 }
 0x2b0   : > { %v3602_v55 = vpop.f32.mrf.mxu0  ;;  %5873 = vmatpush.bf16.msrb.mxu1 %v9537_v21  ;;  %13986 = vst [vmem:[#allocation18_spill] sm:$0xff] %v12015_v5  ;;  %v7279_v21 = vshrl.u32 %v12015_v5, 16 }
 0x2b1   : > { %v3367_v24 = vadd.f32 %v3292_v63, %v3107_v11  ;;  %13987 = vst [vmem:[#allocation19_spill] sm:$0xff] %v12019_v4  ;;  %v3998_v38 = vmul.f32 %v3857_v48, %v3746_v6  ;;  %v7286_v6 = vrot.slane %v13799_v9, 1 }
 0x2b2   : > { %v7281_v48 = vrot.slane %v7279_v21, 1 }
 0x2b3   : > { %v3675_v34 = vadd.f32 %v3600_v60, %v3367_v24  ;;  %v13988_v60 = vrot.slane %v11922_v44, 1  ;;  %v7282_v44 = vshll.u32 %v12015_v5, 16  ;;  %v2912_v5 = vshll.u32 %v12035_v1, 16 }
 0x2b4   : > { %v12017_v36 = vld [vmem:[#allocation2 + $0x28] sm:$0xff] }
 0x2b5   : > { %v3711_v11 = vmul.f32 0.01, %v3675_v34  ;;  %v3185_v12 = vsel %vm3154_vm5, %v13988_v60, %v13794_v62  ;;  %v4360_v49 = vshrl.u32 %v12017_v36, 16  ;;  %v4363_v7 = vshll.u32 %v12017_v36, 16  ;;  %v3862_v60 = vpop.permute.xlu1 %3861 }
 0x2b6   : > { %v3034_v63 = vpop.f32.mrf.mxu2 }
 0x2b7   : > { %v3747_v46 = vmax.f32 %v3675_v34, %v3711_v11  ;;  %v3108_v24 = vadd.f32 %v3034_v63, %v11453_v8  ;;  %v3294_v18 = vpop.f32.mrf.mxu3  ;;  %v4362_v62 = vrot.slane %v4360_v49, 2  ;;  %v4365_v35 = vrot.slane %v4363_v7, 3 }
 0x2b8   : > { %v3605_v10 = vpop.f32.mrf.mxu0  ;;  %v13802_v8 = vrot.slane %v12017_v36, 3  ;;  %v4990_v41 = vrot.slane %v4360_v49, 3 }
 0x2b9   : > { %v3999_v25 = vmul.f32 %v3862_v60, %v3747_v46  ;;  %v3368_v34 = vadd.f32 %v3294_v18, %v3108_v24  ;;  %v12042_v11 = vor.u32 %v4365_v35, %v4362_v62  ;;  %v13989_v35 = vshll.u32 %v12019_v4, 16 }
 0x2ba   : > { %v3483_v24 = vrot.slane %v13801_v26, 1  ;;  %v3484_v18 = vrot.slane %v2912_v5, 2 }
 0x2bb   : > { %v9698_v63 = vpack.c.bf16 %v3999_v25, %v3998_v38  ;;  %3076 = vmatmul.bf16.gmra.mxu2 %v2907_v16  ;;  %3644 = vmatmul.bf16.gmra.mxu0 %v3482_v57  ;;  %v4367_v15 = vsel %vm446_vm0, %v11971_v51, %v12042_v11  ;;  %v7287_v62 = vrot.slane %v13989_v35, 2  ;;  %v3676_v38 = vadd.f32 %v3602_v55, %v3368_v34 }
 0x2bc   : > { %3336 = vmatmul.bf16.gmra.mxu3 %v3185_v12  ;;  %4579 = vmatmul.bf16.gmra.mxu1 %v4367_v15  ;;  %v13990_v25 = vrot.slane %v11953_v3, 3  ;;  %v4991_v12 = vrot.slane %v4363_v7, 4  ;;  %v7284_v57 = vrot.slane %v7282_v44, 2  ;;  %v13800_v35 = vrot.slane %v12035_v1, 1 }
 0x2bd   : > { %10082 = vst [vmem:[#allocation2 + $0x30] sm:$0xff] %v9698_v63   ;;  %v12065_v60 = vor.u32 %v7287_v62, %v7286_v6  ;;  %v3712_v15 = vmul.f32 0.01, %v3676_v38  ;;  %v12075_v63 = vrot.slane %v2912_v5, 1  ;;  %v12078_v6 = vor.u32 %v3484_v18, %v3483_v24 }
 0x2be   : > { %v12058_v16 = vsel %vm839_vm1, %v13990_v25, %v13802_v8  ;;  %v3037_v51 = vpop.f32.mrf.mxu2  ;;  %v12063_v21 = vor.u32 %v4991_v12, %v4990_v41  ;;  %v7285_v44 = vor.u32 %v7284_v57, %v7281_v48  ;;  %v2614_v48 = vadd.f32 %v11472_v53, %v11504_v31 }
 0x2bf   : > { %13991 = vst [vmem:[#allocation20_spill] sm:$0xff] %v12058_v16  ;;  %v3109_v49 = vadd.f32 %v3037_v51, %v11480_v0  ;;  %v3297_v46 = vpop.f32.mrf.mxu3  ;;  %v13993_v0 = vshrl.u32 %v11958_v40, 16  ;;  %v3748_v12 = vmax.f32 %v3676_v38, %v3712_v15  ;;  %v13996_v53 = vrot.slane %v11958_v40, 1  ;;  %v9512_v15 = vld [vmem:[%s13755_s3 + $0x60] sm:$0xff] }
 0x2c0   : > { %v3607_v55 = vpop.f32.mrf.mxu0  ;;  %v12070_v7 = vsel %vm1099_vm2, %v11992_v50, %v12063_v21  ;;  %v12082_v62 = vsel %vm3414_vm4, %v7285_v44, %v12065_v60  ;;  %v12086_v50 = vld [vmem:[#allocation2 + $0x24] sm:$0xff]  ;;  %v3486_v38 = vsel %vm3414_vm4, %v12011_v54, %v12078_v6  ;;  %4813 = vmatpush.bf16.msrb.mxu2 %v9512_v15 }
 0x2c1   : > { %v3369_v3 = vadd.f32 %v3297_v46, %v3109_v49  ;;  %13992 = vst [vmem:[#allocation21_spill] sm:$0xff] %v12070_v7  ;;  %v2910_v34 = vor.u32 %v13993_v0, %v11997_v30  ;;  %v12095_v49 = vld [vmem:[%s10423_s16 + $0x9c] sm:$0xff]  ;;  %v3872_v46 = vpop.permute.xlu0 %3871  ;;  %v3187_v31 = vsel %vm3154_vm5, %v13996_v53, %v13800_v35  ;;  %v13805_v54 = vshrl.u32 %v12086_v50, 16 }
 0x2c2   : > { %13994 = vst [vmem:[#allocation22_spill] sm:$0xff] %v12082_v62  ;;  %v9520_v44 = vld [vmem:[%s13755_s3 + $0xa0] sm:$0xff]  ;;  %v2920_v26 = vshll.u32 %v12095_v49, 16  ;;  %v13809_v8 = vshrl.u32 %v12095_v49, 16 }
 0x2c3   : > { %v3677_v41 = vadd.f32 %v3605_v10, %v3369_v3  ;;  %13995 = vst [vmem:[#allocation23_spill] sm:$0xff] %v12086_v50  ;;  %v2915_v10 = vsel %vm2287_vm3, %v2910_v34, %v12075_v63  ;;  %v9528_v0 = vld [vmem:[%s13755_s3 + $0xe0] sm:$0xff]  ;;  %v3867_v34 = vpop.permute.xlu2 %3866  ;;  %5120 = vmatpush.bf16.msrb.mxu3 %v9520_v44  ;;  %v13998_v44 = vrot.slane %v12017_v36, 3  ;;  %v9510_v36 = vld [vmem:[%s13755_s3 + $0x50] sm:$0xff] }
 0x2c4   : > { %v12084_v25 = vld [vmem:[#allocation2 + $0x30] sm:$0xff]  ;;  %5638 = vmatpush.bf16.msrb.mxu0 %v9528_v0 }
 0x2c5   : > { %v3713_v30 = vmul.f32 0.01, %v3677_v41  ;;  %v4369_v57 = vshrl.u32 %v12084_v25, 16  ;;  %v4372_v51 = vshll.u32 %v12084_v25, 16  ;;  %v12120_v62 = vld [vmem:[#allocation2 + $0x2c] sm:$0xff] }
 0x2c6   : > { %v3039_v5 = vpop.f32.mrf.mxu2  ;;  %13997 = vst [vmem:[#allocation24_spill] sm:$0xff] %v12120_v62 }
 0x2c7   : > { %v3749_v24 = vmax.f32 %v3677_v41, %v3713_v30  ;;  %v3110_v18 = vadd.f32 %v3039_v5, %v2614_v48  ;;  %v3299_v3 = vpop.f32.mrf.mxu3  ;;  %v4371_v41 = vrot.slane %v4369_v57, 2  ;;  %v4374_v48 = vrot.slane %v4372_v51, 3 }
 0x2c8   : > { %v3610_v40 = vpop.f32.mrf.mxu0  ;;  %v13806_v30 = vshll.u32 %v12086_v50, 16  ;;  %v4000_v5 = vmul.f32 %v3867_v34, %v3748_v12  ;;  %v9511_v12 = vld [vmem:[%s13755_s3 + $0x58] sm:$0xff]  ;;  %v4994_v0 = vrot.slane %v4369_v57, 3  ;;  %v9526_v57 = vld [vmem:[%s13755_s3 + $0xd0] sm:$0xff] }
 0x2c9   : > { %v4001_v53 = vmul.f32 %v3872_v46, %v3749_v24  ;;  %v3370_v9 = vadd.f32 %v3299_v3, %v3110_v18  ;;  %v12116_v35 = vor.u32 %v4374_v48, %v4371_v41  ;;  %v9519_v46 = vld [vmem:[%s13755_s3 + $0x98] sm:$0xff]  ;;  %v13810_v18 = vrot.slane %v12084_v25, 3  ;;  %4814 = vmatpush.bf16.msrb.mxu2 %v9511_v12 }
 0x2ca   : > { %v9527_v24 = vld [vmem:[%s13755_s3 + $0xd8] sm:$0xff]  ;;  %v7290_v3 = vrot.slane %v13805_v54, 1  ;;  %v3487_v41 = vrot.slane %v13809_v8, 1  ;;  %v3488_v48 = vrot.slane %v2920_v26, 2  ;;  %5121 = vmatpush.bf16.msrb.mxu3 %v9519_v46  ;;  %v14000_v12 = vshrl.u32 %v12035_v1, 16 }
 0x2cb   : > { %v9703_v4 = vpack.c.bf16 %v4001_v53, %v4000_v5  ;;  %3081 = vmatmul.bf16.gmra.mxu2 %v2915_v10  ;;  %3649 = vmatmul.bf16.gmra.mxu0 %v3486_v38  ;;  %v4376_v10 = vsel %vm446_vm0, %v12042_v11, %v12116_v35  ;;  %v7291_v38 = vrot.slane %v13806_v30, 2  ;;  %v12139_v15 = vadd.f32 %v3607_v55, %v3370_v9  ;;  %v9518_v55 = vld [vmem:[%s13755_s3 + $0x90] sm:$0xff] }
 0x2cc   : > { %3341 = vmatmul.bf16.gmra.mxu3 %v3187_v31  ;;  %4584 = vmatmul.bf16.gmra.mxu1 %v4376_v10  ;;  %v12146_v31 = vsel %vm839_vm1, %v13998_v44, %v13810_v18  ;;  %v4995_v11 = vrot.slane %v4372_v51, 4  ;;  %v13808_v5 = vshll.u32 %v12120_v62, 16  ;;  %v2918_v46 = vor.u32 %v14000_v12, %v12075_v63  ;;  %v3393_v44 = vld [vmem:[%s10423_s16 + $0xa4] sm:$0x3] }
 0x2cd   : > { %10083 = vst [vmem:[#allocation2 + $0x38] sm:$0xff] %v9703_v4   ;;  %5639 = vmatpush.bf16.msrb.mxu0 %v9527_v24  ;;  %v12169_v24 = vrot.slane %v2920_v26, 1  ;;  %v13811_v10 = vrot.slane %v12095_v49, 1  ;;  %4815 = vmatpush.bf16.msrb.mxu2 %v9510_v36  ;;  %v12182_v30 = vor.u32 %v7291_v38, %v7290_v3  ;;  %v12184_v26 = vor.u32 %v3488_v48, %v3487_v41  ;;  %v2673_v63 = vld [vmem:[%s10423_s16 + $0xa4] sm:$0x1]  ;;  %v9509_v36 = vld [vmem:[%s13755_s3 + $0x48] sm:$0xff] }
 0x2ce   : > { %13999 = vst [vmem:[#allocation25_spill] sm:$0xff] %v12146_v31  ;;  %v3042_v34 = vpop.f32.mrf.mxu2  ;;  %v12160_v51 = vor.u32 %v4995_v11, %v4994_v0  ;;  %v9536_v0 = vld [vmem:[%s13755_s3 + $0x120] sm:$0xff]  ;;  %5122 = vmatpush.bf16.msrb.mxu3 %v9518_v55  ;;  %v3412_v12 = vunpack.c.l.b16 %v3393_v44  ;;  %v9525_v3 = vld [vmem:[%s13755_s3 + $0xc8] sm:$0xff]  ;;  %v14003_v44 = vrot.slane %v12035_v1, 1 }
 0x2cf   : > { %v3111_v9 = vadd.f32 %v3042_v34, %v11535_v14  ;;  %v3302_v4 = vpop.f32.mrf.mxu3  ;;  %v13807_v14 = vshrl.u32 %v12120_v62, 16  ;;  %v3714_v34 = vmul.f32 0.01, %v12139_v15  ;;  %5874 = vmatpush.bf16.msrb.mxu1 %v9536_v0  ;;  %v12201_v38 = vsel %vm3414_vm4, %v12065_v60, %v12182_v30 }
 0x2d0   : > { %v12164_v53 = vpop.f32.mrf.mxu0  ;;  %v12180_v11 = vsel %vm1099_vm2, %v12063_v21, %v12160_v51  ;;  %v9517_v21 = vld [vmem:[%s13755_s3 + $0x88] sm:$0xff]  ;;  %14002 = vst [vmem:[#allocation30_spill] sm:$0xff] %v12201_v38  ;;  %v2923_v41 = vsel %vm2287_vm3, %v2918_v46, %v12169_v24  ;;  %v3189_v60 = vsel %vm3154_vm5, %v14003_v44, %v13811_v10  ;;  %v2764_v46 = vunpack.c.l.b16 %v2673_v63  ;;  %v9516_v63 = vld [vmem:[%s13755_s3 + $0x80] sm:$0xff] }
 0x2d1   : > { %v3371_v54 = vadd.f32 %v3302_v4, %v3111_v9  ;;  %14001 = vst [vmem:[#allocation26_spill] sm:$0xff] %v12180_v11  ;;  %5640 = vmatpush.bf16.msrb.mxu0 %v9526_v57  ;;  %v7294_v9 = vrot.slane %v13807_v14, 1  ;;  %v3750_v55 = vmax.f32 %v12139_v15, %v3714_v34  ;;  %4816 = vmatpush.bf16.msrb.mxu2 %v9509_v36 }
 0x2d2   : > { %5123 = vmatpush.bf16.msrb.mxu3 %v9517_v21  ;;  %v3413_v36 = vpack.c.b16 %v3412_v12, %v3412_v12  ;;  %v9524_v21 = vld [vmem:[%s13755_s3 + $0xc0] sm:$0xff]  ;;  %v2783_v11 = vpack.c.b16 %v2764_v46, %v2764_v46 }
 0x2d3   : > { %v3679_v4 = vadd.f32 %v3610_v40, %v3371_v54  ;;  %v7295_v40 = vrot.slane %v13808_v5, 2  ;;  %v2616_v54 = vadd.f32 %v11526_v33, %v11554_v20  ;;  %v3877_v5 = vpop.permute.xlu1 %3876 }
 0x2d4   : > { %v12209_v48 = vld [vmem:[#allocation2 + $0x38] sm:$0xff]  ;;  %v4002_v44 = vmul.f32 %v3877_v5, %v3750_v55  ;;  %v3495_v16 = vshll.u32 %v3413_v36, 16 }
 0x2d5   : > { %v3715_v57 = vmul.f32 0.01, %v3679_v4  ;;  %v12217_v0 = vor.u32 %v7295_v40, %v7294_v9  ;;  %v4378_v33 = vshrl.u32 %v12209_v48, 16  ;;  %v4381_v20 = vshll.u32 %v12209_v48, 16  ;;  %5641 = vmatpush.bf16.msrb.mxu0 %v9525_v3  ;;  %v12222_v34 = vld [vmem:[#allocation2 + $0x34] sm:$0xff]  ;;  %v9508_v40 = vld [vmem:[%s13755_s3 + $0x40] sm:$0xff] }
 0x2d6   : > { %v3044_v14 = vpop.f32.mrf.mxu2  ;;  %v4720_v15 = vrot.slane %v12209_v48, 3  ;;  %14004 = vst [vmem:[#allocation33_spill] sm:$0xff] %v12222_v34  ;;  %v3490_v9 = vsel %vm3414_vm4, %v12078_v6, %v12184_v26  ;;  %v14005_v6 = vrot.slane %v12084_v25, 3  ;;  %4817 = vmatpush.bf16.msrb.mxu2 %v9508_v40  ;;  %5124 = vmatpush.bf16.msrb.mxu3 %v9516_v63  ;;  %v13825_v31 = vshll.u32 %v12222_v34, 16 }
 0x2d7   : > { %v3751_v8 = vmax.f32 %v3679_v4, %v3715_v57  ;;  %v3112_v1 = vadd.f32 %v3044_v14, %v2616_v54  ;;  %v3304_v18 = vpop.f32.mrf.mxu3  ;;  %v3882_v4 = vpop.permute.xlu2 %3881  ;;  %v4380_v3 = vrot.slane %v4378_v33, 2  ;;  %v4383_v54 = vrot.slane %v4381_v20, 3 }
 0x2d8   : > { %v3615_v14 = vpop.f32.mrf.mxu0  ;;  %v12241_v12 = vsel %vm839_vm1, %v14005_v6, %v4720_v15  ;;  %v4998_v57 = vrot.slane %v4378_v33, 3  ;;  %v4999_v62 = vrot.slane %v4381_v20, 4  ;;  %v3492_v25 = vshrl.u32 %v3413_v36, 16  ;;  %v5252_v36 = vld [vmem:[#allocation2 + $0x8] sm:$0x8] }
 0x2d9   : > { %v4003_v10 = vmul.f32 %v3882_v4, %v3751_v8  ;;  %v3372_v38 = vadd.f32 %v3304_v18, %v3112_v1  ;;  %v12243_v50 = vor.u32 %v4383_v54, %v4380_v3  ;;  %5642 = vmatpush.bf16.msrb.mxu0 %v9524_v21  ;;  %v13823_v5 = vshrl.u32 %v12222_v34, 16 }
 0x2da   : > { %v12250_v18 = vor.u32 %v4999_v62, %v4998_v57  ;;  %v2928_v33 = vshll.u32 %v2783_v11, 16  ;;  %v14007_v1 = vshrl.u32 %v12095_v49, 16  ;;  %v3190_v21 = vrot.slane %v2783_v11, 1 }
 0x2db   : > { %v9708_v7 = vpack.c.bf16 %v4003_v10, %v4002_v44  ;;  %3086 = vmatmul.bf16.gmra.mxu2 %v2923_v41  ;;  %3654 = vmatmul.bf16.gmra.mxu0 %v3490_v9  ;;  %v3680_v6 = vadd.f32 %v12164_v53, %v3372_v38  ;;  %v4385_v8 = vsel %vm446_vm0, %v12116_v35, %v12243_v50  ;;  %v7299_v35 = vrot.slane %v13825_v31, 2 }
 0x2dc   : > { %3346 = vmatmul.bf16.gmra.mxu3 %v3189_v60  ;;  %4589 = vmatmul.bf16.gmra.mxu1 %v4385_v8  ;;  %v12256_v10 = vsel %vm1099_vm2, %v12160_v51, %v12250_v18  ;;  %v12261_v53 = vsel %vm3414_vm4, %v12182_v30, %v12217_v0  ;;  %v3494_v38 = vrot.slane %v3492_v25, 1  ;;  %v3497_v41 = vrot.slane %v3495_v16, 2 }
 0x2dd   : > { %10084 = vst [vmem:[#allocation2 + $0x40] sm:$0xff] %v9708_v7   ;;  %v3716_v60 = vmul.f32 0.01, %v3680_v6  ;;  %v7298_v46 = vrot.slane %v13823_v5, 1  ;;  %v2926_v9 = vor.u32 %v14007_v1, %v12169_v24  ;;  %v2930_v30 = vrot.slane %v2928_v33, 1 }
 0x2de   : > { %v3047_v55 = vpop.f32.mrf.mxu2  ;;  %14006 = vst [vmem:[#allocation34_spill] sm:$0xff] %v12261_v53  ;;  %v2618_v54 = vadd.f32 %v11561_v61, %v11581_v2  ;;  %v5343_v24 = vunpack.c.l.b16 %v5252_v36 }
 0x2df   : > { %v3113_v7 = vadd.f32 %v3047_v55, %v11567_v37  ;;  %v3307_v62 = vpop.f32.mrf.mxu3  ;;  %v12271_v40 = vor.u32 %v7299_v35, %v7298_v46  ;;  %v3498_v37 = vor.u32 %v3497_v41, %v3494_v38  ;;  %v3752_v4 = vmax.f32 %v3680_v6, %v3716_v60  ;;  %v3887_v55 = vpop.permute.xlu0 %3886 }
 0x2e0   : > { %v3617_v20 = vpop.f32.mrf.mxu0  ;;  %v2931_v25 = vsel %vm2287_vm3, %v2926_v9, %v2930_v30 }
 0x2e1   : > { %v3373_v51 = vadd.f32 %v3307_v62, %v3113_v7  ;;  %v12278_v16 = vsel %vm3414_vm4, %v12217_v0, %v12271_v40  ;;  %v14010_v7 = vrot.slane %v12095_v49, 1  ;;  %v3499_v2 = vsel %vm3414_vm4, %v12184_v26, %v3498_v37  ;;  %v3892_v62 = vpop.permute.xlu1 %3891 }
 0x2e2   : > { %14008 = vst [vmem:[#allocation35_spill] sm:$0xff] %v12278_v16  ;;  %v4004_v38 = vmul.f32 %v3887_v55, %v3752_v4 }
 0x2e3   : > { %v3681_v63 = vadd.f32 %v3615_v14, %v3373_v51  ;;  %v3191_v61 = vsel %vm3154_vm5, %v14010_v7, %v3190_v21  ;;  %v14011_v21 = vunpack.c.l.b16 %v11869_v22  ;;  %v5408_v22 = vshrl.u32 %v11867_v56, 16 }
 0x2e4   : > { %v12273_v3 = vld [vmem:[#allocation2 + $0x40] sm:$0xff] }
 0x2e5   : > { %v3717_v57 = vmul.f32 0.01, %v3681_v63  ;;  %v4387_v14 = vshrl.u32 %v12273_v3, 16  ;;  %v4390_v11 = vshll.u32 %v12273_v3, 16  ;;  %v4722_v6 = vrot.slane %v12273_v3, 3  ;;  %v12286_v8 = vld [vmem:[#allocation2 + $0x3c] sm:$0xff] }
 0x2e6   : > { %v3049_v44 = vpop.f32.mrf.mxu2  ;;  %14009 = vst [vmem:[#allocation36_spill] sm:$0xff] %v12286_v8  ;;  %v13824_v26 = vshll.u32 %v12286_v8, 16  ;;  %v5380_v37 = vpack.c.b16 %v14011_v21, %v5343_v24  ;;  %v5411_v24 = vshll.u32 %v11867_v56, 16  ;;  %v5410_v7 = vrot.slane %v5408_v22, 3  ;;  %v10113_v3 = vld [vmem:[#allocation2 + $0x18] sm:$0xff]  }
 0x2e7   : > { %v3753_v33 = vmax.f32 %v3681_v63, %v3717_v57  ;;  %v3114_v0 = vadd.f32 %v3049_v44, %v2618_v54  ;;  %v3309_v35 = vpop.f32.mrf.mxu3  ;;  %v4389_v60 = vrot.slane %v4387_v14, 2  ;;  %v4392_v46 = vrot.slane %v4390_v11, 3 }
 0x2e8   : > { %v3620_v41 = vpop.f32.mrf.mxu0  ;;  %v12298_v51 = vsel %vm839_vm1, %v4720_v15, %v4722_v6  ;;  %v5002_v49 = vrot.slane %v4387_v14, 3  ;;  %v5003_v30 = vrot.slane %v4390_v11, 4  ;;  %v13819_v57 = vshrl.u32 %v12286_v8, 16 }
 0x2e9   : > { %v4005_v1 = vmul.f32 %v3892_v62, %v3753_v33  ;;  %v3374_v9 = vadd.f32 %v3309_v35, %v3114_v0  ;;  %v12300_v36 = vor.u32 %v4392_v46, %v4389_v60  ;;  %v5400_v14 = vshrl.u32 %v5380_v37, 16  ;;  %v12323_v35 = vpop.f32.mrf.mxu1 }
 0x2ea   : > { %v12305_v4 = vor.u32 %v5003_v30, %v5002_v49  ;;  %v5403_v11 = vshll.u32 %v5380_v37, 16 }
 0x2eb   : > { %v9713_v63 = vpack.c.bf16 %v4005_v1, %v4004_v38  ;;  %3091 = vmatmul.bf16.gmra.mxu2 %v2931_v25  ;;  %3659 = vmatmul.bf16.gmra.mxu0 %v3499_v2  ;;  %v3682_v48 = vadd.f32 %v3617_v20, %v3374_v9  ;;  %v4394_v15 = vsel %vm446_vm0, %v12243_v50, %v12300_v36  ;;  %v7303_v20 = vrot.slane %v13824_v26, 2 }
 0x2ec   : > { %3351 = vmatmul.bf16.gmra.mxu3 %v3191_v61  ;;  %4594 = vmatmul.bf16.gmra.mxu1 %v4394_v15  ;;  %v12313_v54 = vsel %vm1099_vm2, %v12250_v18, %v12305_v4  ;;  %v7302_v18 = vrot.slane %v13819_v57, 1  ;;  %v5413_v61 = vrot.slane %v5411_v24, 4  ;;  %v5402_v62 = vrot.slane %v5400_v14, 3  ;;  %v3902_v24 = vpop.permute.xlu0 %3901 }
 0x2ed   : > { %10085 = vst [vmem:[#allocation2 + $0x48] sm:$0xff] %v9713_v63   ;;  %v3718_v55 = vmul.f32 0.01, %v3682_v48  ;;  %v5405_v38 = vrot.slane %v5403_v11, 4  ;;  %v2620_v1 = vadd.f32 %v11590_v19, %v11607_v52 }
 0x2ee   : > { %v3052_v44 = vpop.f32.mrf.mxu2  ;;  %v12325_v2 = vor.u32 %v7303_v20, %v7302_v18  ;;  %v12336_v30 = vor.u32 %v5413_v61, %v5410_v7 }
 0x2ef   : > { %v3115_v25 = vadd.f32 %v3052_v44, %v11594_v27  ;;  %v3312_v50 = vpop.f32.mrf.mxu3  ;;  %v3754_v60 = vmax.f32 %v3682_v48, %v3718_v55  ;;  %v3897_v48 = vpop.permute.xlu2 %3896  ;;  %v5406_v22 = vor.u32 %v5405_v38, %v5402_v62 }
 0x2f0   : > { %v3622_v33 = vpop.f32.mrf.mxu0  ;;  %v12332_v46 = vsel %vm3414_vm4, %v12271_v40, %v12325_v2 }
 0x2f1   : > { %v3375_v0 = vadd.f32 %v3312_v50, %v3115_v25  ;;  %14012 = vst [vmem:[#allocation37_spill] sm:$0xff] %v12332_v46  ;;  %v4006_v20 = vmul.f32 %v3897_v48, %v3754_v60  ;;  %v5415_v7 = vsel %vm1099_vm2, %v5406_v22, %v12336_v30 }
 0x2f3   : > { %v3683_v56 = vadd.f32 %v3620_v41, %v3375_v0 }
 0x2f4   : > { %v12327_v27 = vld [vmem:[#allocation2 + $0x48] sm:$0xff] }
 0x2f5   : > { %v3719_v9 = vmul.f32 0.01, %v3683_v56  ;;  %v4396_v63 = vshrl.u32 %v12327_v27, 16  ;;  %v4399_v41 = vshll.u32 %v12327_v27, 16  ;;  %v4724_v21 = vrot.slane %v12327_v27, 3  ;;  %v12341_v37 = vld [vmem:[#allocation2 + $0x44] sm:$0xff] }
 0x2f6   : > { %v3054_v49 = vpop.f32.mrf.mxu2  ;;  %14013 = vst [vmem:[#allocation38_spill] sm:$0xff] %v12341_v37 }
 0x2f7   : > { %v3755_v15 = vmax.f32 %v3683_v56, %v3719_v9  ;;  %v3116_v44 = vadd.f32 %v3054_v49, %v2620_v1  ;;  %v3314_v40 = vpop.f32.mrf.mxu3  ;;  %v4398_v52 = vrot.slane %v4396_v63, 2  ;;  %v4401_v25 = vrot.slane %v4399_v41, 3  ;;  %v9535_v1 = vld [vmem:[%s13755_s3 + $0x118] sm:$0xff] }
 0x2f8   : > { %v3625_v19 = vpop.f32.mrf.mxu0  ;;  %v12348_v50 = vsel %vm839_vm1, %v4722_v6, %v4724_v21  ;;  %v5006_v55 = vrot.slane %v4396_v63, 3  ;;  %v5007_v18 = vrot.slane %v4399_v41, 4  ;;  %v13822_v56 = vshll.u32 %v12341_v37, 16  ;;  %5875 = vmatpush.bf16.msrb.mxu1 %v9535_v1 }
 0x2f9   : > { %v4007_v14 = vmul.f32 %v3902_v24, %v3755_v15  ;;  %v3376_v11 = vadd.f32 %v3314_v40, %v3116_v44  ;;  %v12350_v0 = vpop.f32.mrf.mxu1  ;;  %v12354_v61 = vor.u32 %v4401_v25, %v4398_v52  ;;  %v13817_v9 = vshrl.u32 %v12341_v37, 16 }
 0x2fa   : > { %v12362_v60 = vor.u32 %v5007_v18, %v5006_v55  ;;  %v5417_v49 = vshrl.u32 %v10113_v3, 16  ;;  %v5420_v63 = vshll.u32 %v10113_v3, 16 }
 0x2fb   : > { %v9718_v62 = vpack.c.bf16 %v4007_v14, %v4006_v20  ;;  %4818 = vmatmul.bf16.vlgmr.msrb.gmra.mxu2 %v11814_v45  ;;  %5643 = vmatmul.bf16.vlgmr.msrb.gmra.mxu0 %v5415_v7  ;;  %v3684_v6 = vadd.f32 %v3622_v33, %v3376_v11  ;;  %v4403_v38 = vsel %vm446_vm0, %v12300_v36, %v12354_v61  ;;  %v7307_v36 = vrot.slane %v13822_v56, 2 }
 0x2fc   : > { %5125 = vmatmul.bf16.vlgmr.msrb.gmra.mxu3 %v11831_v32  ;;  %4599 = vmatmul.bf16.gmra.mxu1 %v4403_v38  ;;  %v12371_v32 = vsel %vm1099_vm2, %v12305_v4, %v12362_v60  ;;  %v7306_v44 = vrot.slane %v13817_v9, 1  ;;  %v5419_v24 = vrot.slane %v5417_v49, 3  ;;  %v5422_v20 = vrot.slane %v5420_v63, 4  ;;  %v3912_v49 = vpop.permute.xlu2 %3911 }
 0x2fd   : > { %10086 = vst [vmem:[#allocation2 + $0x50] sm:$0xff] %v9718_v62   ;;  %v3720_v48 = vmul.f32 0.01, %v3684_v6  ;;  %v2622_v11 = vadd.f32 %v11613_v39, %v11629_v13  ;;  %v10114_v39 = vld [vmem:[#allocation2 + $0x20] sm:$0xff]  }
 0x2fe   : > { %v3057_v45 = vpop.f32.mrf.mxu2  ;;  %v12380_v52 = vor.u32 %v7307_v36, %v7306_v44  ;;  %v12391_v7 = vor.u32 %v5422_v20, %v5419_v24  ;;  %v5426_v27 = vshrl.u32 %v10114_v39, 16 }
 0x2ff   : > { %v3117_v33 = vadd.f32 %v3057_v45, %v11617_v59  ;;  %v3317_v41 = vpop.f32.mrf.mxu3  ;;  %v3756_v25 = vmax.f32 %v3684_v6, %v3720_v48  ;;  %v3907_v6 = vpop.permute.xlu1 %3906 }
 0x300   : > { %v3627_v15 = vpop.f32.mrf.mxu0  ;;  %v12387_v59 = vsel %vm3414_vm4, %v12325_v2, %v12380_v52 }
 0x301   : > { %v3377_v40 = vadd.f32 %v3317_v41, %v3117_v33  ;;  %v12378_v22 = vpop.f32.mrf.mxu1  ;;  %14014 = vst [vmem:[#allocation39_spill] sm:$0xff] %v12387_v59  ;;  %v4008_v2 = vmul.f32 %v3907_v6, %v3756_v25 }
 0x303   : > { %v3685_v4 = vadd.f32 %v3625_v19, %v3377_v40 }
 0x304   : > { %v12382_v14 = vld [vmem:[#allocation2 + $0x50] sm:$0xff] }
 0x305   : > { %v3721_v55 = vmul.f32 0.01, %v3685_v4  ;;  %v4405_v62 = vshrl.u32 %v12382_v14, 16  ;;  %v4408_v3 = vshll.u32 %v12382_v14, 16  ;;  %v4726_v19 = vrot.slane %v12382_v14, 3  ;;  %v12403_v24 = vld [vmem:[#allocation2 + $0x4c] sm:$0xff] }
 0x306   : > { %v3059_v18 = vpop.f32.mrf.mxu2  ;;  %14015 = vst [vmem:[#allocation40_spill] sm:$0xff] %v12403_v24 }
 0x307   : > { %v3757_v38 = vmax.f32 %v3685_v4, %v3721_v55  ;;  %v3118_v1 = vadd.f32 %v3059_v18, %v2622_v11  ;;  %v3319_v45 = vpop.f32.mrf.mxu3  ;;  %v4407_v36 = vrot.slane %v4405_v62, 2  ;;  %v4410_v33 = vrot.slane %v4408_v3, 3 }
 0x308   : > { %v3630_v63 = vpop.f32.mrf.mxu0  ;;  %v12401_v13 = vsel %vm839_vm1, %v4724_v21, %v4726_v19  ;;  %v5010_v44 = vrot.slane %v4405_v62, 3  ;;  %v5011_v40 = vrot.slane %v4408_v3, 4  ;;  %v5424_v4 = vsel %vm1099_vm2, %v12336_v30, %v12391_v7 }
 0x309   : > { %v4009_v41 = vmul.f32 %v3912_v49, %v3757_v38  ;;  %v3378_v48 = vadd.f32 %v3319_v45, %v3118_v1  ;;  %v12405_v20 = vpop.f32.mrf.mxu1  ;;  %v12410_v25 = vor.u32 %v4410_v33, %v4407_v36  ;;  %v5429_v21 = vshll.u32 %v10114_v39, 16 }
 0x30a   : > { %v12419_v18 = vor.u32 %v5011_v40, %v5010_v44  ;;  %v13818_v62 = vshll.u32 %v12403_v24, 16 }
 0x30b   : > { %v12412_v11 = vpack.c.bf16 %v4009_v41, %v4008_v2  ;;  %4823 = vmatmul.bf16.gmra.mxu2 %v11887_v47  ;;  %5648 = vmatmul.bf16.gmra.mxu0 %v5424_v4  ;;  %v4412_v55 = vsel %vm446_vm0, %v12354_v61, %v12410_v25  ;;  %v3686_v30 = vadd.f32 %v3627_v15, %v3378_v48  ;;  %v5428_v61 = vrot.slane %v5426_v27, 3 }
 0x30c   : > { %5130 = vmatmul.bf16.gmra.mxu3 %v11900_v42  ;;  %4604 = vmatmul.bf16.gmra.mxu1 %v4412_v55  ;;  %v12426_v47 = vsel %vm1099_vm2, %v12362_v60, %v12419_v18  ;;  %v13816_v42 = vshrl.u32 %v12403_v24, 16  ;;  %v5431_v1 = vrot.slane %v5429_v21, 4  ;;  %v7311_v36 = vrot.slane %v13818_v62, 2 }
 0x30d   : > { %10087 = vst [vmem:[#allocation2 + $0x58] sm:$0xff] %v12412_v11   ;;  %v3722_v49 = vmul.f32 0.01, %v3686_v30  ;;  %v2624_v48 = vadd.f32 %v11634_v43, %v11651_v17  ;;  %v5489_v9 = vshrl.u32 %v12412_v11, 16  ;;  %v5492_v62 = vshll.u32 %v12412_v11, 16 }
 0x30e   : > { %v3062_v3 = vpop.f32.mrf.mxu2  ;;  %v7310_v15 = vrot.slane %v13816_v42, 1  ;;  %v12436_v39 = vor.u32 %v5431_v1, %v5428_v61 }
 0x30f   : > { %v3119_v6 = vadd.f32 %v3062_v3, %v11637_v29  ;;  %v3322_v38 = vpop.f32.mrf.mxu3  ;;  %v3758_v44 = vmax.f32 %v3686_v30, %v3722_v49  ;;  %v3922_v30 = vpop.permute.xlu1 %3921 }
 0x310   : > { %v3632_v45 = vpop.f32.mrf.mxu0  ;;  %v12438_v41 = vor.u32 %v7311_v36, %v7310_v15  ;;  %v5433_v17 = vsel %vm1099_vm2, %v12391_v7, %v12436_v39 }
 0x311   : > { %v3379_v2 = vadd.f32 %v3322_v38, %v3119_v6  ;;  %v12434_v33 = vpop.f32.mrf.mxu1  ;;  %v3917_v6 = vpop.permute.xlu0 %3916 }
 0x312   : > { %v12447_v4 = vsel %vm3414_vm4, %v12380_v52, %v12438_v41  ;;  %v4010_v36 = vmul.f32 %v3917_v6, %v3758_v44 }
 0x313   : > { %v3687_v60 = vadd.f32 %v3630_v63, %v3379_v2  ;;  %14016 = vst [vmem:[#allocation41_spill] sm:$0xff] %v12447_v4 }
 0x314   : > { %v12440_v29 = vld [vmem:[#allocation2 + $0x58] sm:$0xff] }
 0x315   : > { %v3723_v40 = vmul.f32 0.01, %v3687_v60  ;;  %v4414_v21 = vshrl.u32 %v12440_v29, 16  ;;  %v4417_v63 = vshll.u32 %v12440_v29, 16  ;;  %v4728_v55 = vrot.slane %v12440_v29, 3  ;;  %v12452_v3 = vld [vmem:[#allocation2 + $0x54] sm:$0xff] }
 0x316   : > { %v3064_v27 = vpop.f32.mrf.mxu2  ;;  %14017 = vst [vmem:[#allocation42_spill] sm:$0xff] %v12452_v3  ;;  %v13820_v57 = vshrl.u32 %v12452_v3, 16  ;;  %v14022_v29 = vld [vmem:[#allocation16_spill] sm:$0xff] }
 0x317   : > { %v3759_v38 = vmax.f32 %v3687_v60, %v3723_v40  ;;  %v3120_v61 = vadd.f32 %v3064_v27, %v2624_v48  ;;  %v3324_v43 = vpop.f32.mrf.mxu3  ;;  %v4416_v1 = vrot.slane %v4414_v21, 2  ;;  %v4419_v49 = vrot.slane %v4417_v63, 3  ;;  %v10115_v40 = vld [vmem:[#allocation2 + $0x28] sm:$0xff]  }
 0x318   : > { %v3635_v52 = vpop.f32.mrf.mxu0  ;;  %v12462_v2 = vsel %vm839_vm1, %v4726_v19, %v4728_v55  ;;  %v5014_v15 = vrot.slane %v4414_v21, 3  ;;  %v5015_v27 = vrot.slane %v4417_v63, 4  ;;  %v5435_v44 = vshrl.u32 %v10115_v40, 16 }
 0x319   : > { %v4011_v60 = vmul.f32 %v3922_v30, %v3759_v38  ;;  %v3380_v48 = vadd.f32 %v3324_v43, %v3120_v61  ;;  %v12464_v42 = vpop.f32.mrf.mxu1  ;;  %v12466_v7 = vor.u32 %v4419_v49, %v4416_v1  ;;  %v13821_v63 = vshll.u32 %v12452_v3, 16 }
 0x31a   : > { %v12476_v21 = vor.u32 %v5015_v27, %v5014_v15  ;;  %v5438_v11 = vshll.u32 %v10115_v40, 16  ;;  %v5491_v43 = vrot.slane %v5489_v9, 3  ;;  %v7314_v30 = vrot.slane %v13820_v57, 1 }
 0x31b   : > { %v9728_v14 = vpack.c.bf16 %v4011_v60, %v4010_v36  ;;  %4828 = vmatmul.bf16.gmra.mxu2 %v11934_v28  ;;  %5653 = vmatmul.bf16.gmra.mxu0 %v5433_v17  ;;  %v4421_v19 = vsel %vm446_vm0, %v12410_v25, %v12466_v7  ;;  %v3688_v6 = vadd.f32 %v3632_v45, %v3380_v48  ;;  %v9534_v28 = vld [vmem:[%s13755_s3 + $0x110] sm:$0xff]  ;;  %v5494_v17 = vrot.slane %v5492_v62, 4 }
 0x31c   : > { %5135 = vmatmul.bf16.gmra.mxu3 %v11946_v23  ;;  %4609 = vmatmul.bf16.gmra.mxu1 %v4421_v19  ;;  %v12485_v25 = vsel %vm1099_vm2, %v12419_v18, %v12476_v21  ;;  %v7315_v60 = vrot.slane %v13821_v63, 2  ;;  %v5437_v48 = vrot.slane %v5435_v44, 3  ;;  %v5440_v18 = vrot.slane %v5438_v11, 4  ;;  %v14019_v11 = vld [vmem:[#allocation27_spill] sm:$0xff]  ;;  %v3927_v63 = vpop.permute.xlu2 %3926 }
 0x31d   : > { %10088 = vst [vmem:[#allocation2 + $0x60] sm:$0xff] %v9728_v14   ;;  %v5498_v38 = vshrl.u32 %v9728_v14, 16  ;;  %v5501_v61 = vshll.u32 %v9728_v14, 16  ;;  %5876 = vmatpush.bf16.msrb.mxu1 %v9534_v28  ;;  %v3724_v9 = vmul.f32 0.01, %v3688_v6  ;;  %v12494_v27 = vor.u32 %v5494_v17, %v5491_v43 }
 0x31e   : > { %v3067_v23 = vpop.f32.mrf.mxu2  ;;  %v12498_v19 = vor.u32 %v7315_v60, %v7314_v30  ;;  %v3932_v60 = vpop.permute.xlu0 %3931 }
 0x31f   : > { %v3121_v45 = vadd.f32 %v3067_v23, %v11659_v58  ;;  %v3327_v1 = vpop.f32.mrf.mxu3  ;;  %v5500_v49 = vrot.slane %v5498_v38, 3  ;;  %v5503_v36 = vrot.slane %v5501_v61, 4  ;;  %v14020_v61 = vld [vmem:[#allocation3_spill] sm:$0xff]  ;;  %v3760_v43 = vmax.f32 %v3688_v6, %v3724_v9 }
 0x320   : > { %v3637_v15 = vpop.f32.mrf.mxu0  ;;  %v12510_v44 = vsel %vm3414_vm4, %v12438_v41, %v12498_v19  ;;  %v2626_v23 = vadd.f32 %v14020_v61, %v14019_v11 }
 0x321   : > { %v3381_v62 = vadd.f32 %v3327_v1, %v3121_v45  ;;  %v12492_v40 = vpop.f32.mrf.mxu1  ;;  %v12496_v14 = vor.u32 %v5503_v36, %v5500_v49  ;;  %14018 = vst [vmem:[#allocation43_spill] sm:$0xff] %v12510_v44  ;;  %v12514_v45 = vor.u32 %v5440_v18, %v5437_v48  ;;  %v4012_v18 = vmul.f32 %v3927_v63, %v3760_v43 }
 0x323   : > { %v3689_v58 = vadd.f32 %v3635_v52, %v3381_v62  ;;  %v12505_v38 = vsel %vm1099_vm2, %v12494_v27, %v12496_v14 }
 0x324   : > { %v12500_v28 = vld [vmem:[#allocation2 + $0x60] sm:$0xff] }
 0x325   : > { %v3725_v17 = vmul.f32 0.01, %v3689_v58  ;;  %v4423_v52 = vshrl.u32 %v12500_v28, 16  ;;  %v4426_v1 = vshll.u32 %v12500_v28, 16  ;;  %v13826_v49 = vrot.slane %v12500_v28, 3  ;;  %v12519_v36 = vld [vmem:[#allocation2 + $0x5c] sm:$0xff] }
 0x326   : > { %v3069_v30 = vpop.f32.mrf.mxu2  ;;  %14021 = vst [vmem:[#allocation27_spill] sm:$0xff] %v12519_v36  ;;  %v13828_v43 = vshll.u32 %v12519_v36, 16 }
 0x327   : > { %v3761_v62 = vmax.f32 %v3689_v58, %v3725_v17  ;;  %v3122_v41 = vadd.f32 %v3069_v30, %v2626_v23  ;;  %v3329_v57 = vpop.f32.mrf.mxu3  ;;  %v4425_v11 = vrot.slane %v4423_v52, 2  ;;  %v4428_v6 = vrot.slane %v4426_v1, 3 }
 0x328   : > { %v3640_v56 = vpop.f32.mrf.mxu0  ;;  %v12526_v9 = vsel %vm839_vm1, %v4728_v55, %v13826_v49  ;;  %v5018_v48 = vrot.slane %v4423_v52, 3  ;;  %v5019_v26 = vrot.slane %v4426_v1, 4  ;;  %v5442_v58 = vsel %vm1099_vm2, %v12436_v39, %v12514_v45  ;;  %v10116_v55 = vld [vmem:[#allocation2 + $0x30] sm:$0xff]   ;;  %v14023_v52 = vld [vmem:[#allocation17_spill] sm:$0xff] }
 0x329   : > { %v4013_v61 = vmul.f32 %v3932_v60, %v3761_v62  ;;  %v3382_v5 = vadd.f32 %v3329_v57, %v3122_v41  ;;  %v12528_v31 = vpop.f32.mrf.mxu1  ;;  %v12533_v23 = vor.u32 %v4428_v6, %v4425_v11  ;;  %v13827_v17 = vshrl.u32 %v12519_v36, 16 }
 0x32a   : > { %v12541_v63 = vor.u32 %v5019_v26, %v5018_v48  ;;  %v5444_v41 = vshrl.u32 %v10116_v55, 16  ;;  %v5447_v11 = vshll.u32 %v10116_v55, 16  ;;  %v14024_v26 = vld [vmem:[#allocation29_spill] sm:$0xff] }
 0x32b   : > { %v9733_v30 = vpack.c.bf16 %v4013_v61, %v4012_v18  ;;  %4833 = vmatmul.bf16.gmra.mxu2 %v14022_v29  ;;  %5658 = vmatmul.bf16.gmra.mxu0 %v5442_v58  ;;  %v4430_v57 = vsel %vm446_vm0, %v12466_v7, %v12533_v23  ;;  %v3690_v39 = vadd.f32 %v3637_v15, %v3382_v5  ;;  %v7318_v7 = vrot.slane %v13827_v17, 1 }
 0x32c   : > { %5140 = vmatmul.bf16.gmra.mxu3 %v14023_v52  ;;  %4614 = vmatmul.bf16.gmra.mxu1 %v4430_v57  ;;  %v12547_v6 = vsel %vm1099_vm2, %v12476_v21, %v12541_v63  ;;  %v7319_v15 = vrot.slane %v13828_v43, 2  ;;  %v5446_v52 = vrot.slane %v5444_v41, 3  ;;  %v5449_v57 = vrot.slane %v5447_v11, 4  ;;  %v14027_v41 = vld [vmem:[#allocation28_spill] sm:$0xff] }
 0x32d   : > { %10089 = vst [vmem:[#allocation2 + $0x68] sm:$0xff] %v9733_v30   ;;  %v5507_v1 = vshrl.u32 %v9733_v30, 16  ;;  %v5510_v60 = vshll.u32 %v9733_v30, 16  ;;  %v3726_v30 = vmul.f32 0.01, %v3690_v39 }
 0x32e   : > { %v3072_v62 = vpop.f32.mrf.mxu2  ;;  %v12558_v49 = vor.u32 %v7319_v15, %v7318_v7  ;;  %v3937_v15 = vpop.permute.xlu1 %3936 }
 0x32f   : > { %v3123_v48 = vadd.f32 %v3072_v62, %v14024_v26  ;;  %v3332_v18 = vpop.f32.mrf.mxu3  ;;  %v5509_v61 = vrot.slane %v5507_v1, 3  ;;  %v5512_v5 = vrot.slane %v5510_v60, 4  ;;  %v14026_v62 = vld [vmem:[#allocation4_spill] sm:$0xff]  ;;  %v3762_v26 = vmax.f32 %v3690_v39, %v3726_v30 }
 0x330   : > { %v3642_v58 = vpop.f32.mrf.mxu0  ;;  %v12570_v60 = vsel %vm3414_vm4, %v12498_v19, %v12558_v49  ;;  %v2628_v11 = vadd.f32 %v14027_v41, %v14026_v62  ;;  %v14029_v30 = vrot.slane %v12500_v28, 3  ;;  %v14030_v28 = vld [vmem:[#allocation20_spill] sm:$0xff] }
 0x331   : > { %v3383_v29 = vadd.f32 %v3332_v18, %v3123_v48  ;;  %v12554_v55 = vpop.f32.mrf.mxu1  ;;  %v12556_v21 = vor.u32 %v5512_v5, %v5509_v61  ;;  %14025 = vst [vmem:[#allocation3_spill] sm:$0xff] %v12570_v60  ;;  %v12574_v18 = vor.u32 %v5449_v57, %v5446_v52  ;;  %v3942_v60 = vpop.permute.xlu2 %3941  ;;  %v4014_v41 = vmul.f32 %v3937_v15, %v3762_v26 }
 0x333   : > { %v3691_v17 = vadd.f32 %v3640_v56, %v3383_v29  ;;  %v12565_v1 = vsel %vm1099_vm2, %v12496_v14, %v12556_v21 }
 0x334   : > { %v12560_v44 = vld [vmem:[#allocation2 + $0x68] sm:$0xff] }
 0x335   : > { %v3727_v48 = vmul.f32 0.01, %v3691_v17  ;;  %v4432_v56 = vshrl.u32 %v12560_v44, 16  ;;  %v4435_v61 = vshll.u32 %v12560_v44, 16  ;;  %v13831_v14 = vrot.slane %v12560_v44, 3  ;;  %v12579_v5 = vld [vmem:[#allocation2 + $0x64] sm:$0xff] }
 0x336   : > { %v3074_v7 = vpop.f32.mrf.mxu2  ;;  %14028 = vst [vmem:[#allocation16_spill] sm:$0xff] %v12579_v5  ;;  %v13830_v26 = vshll.u32 %v12579_v5, 16 }
 0x337   : > { %v3763_v29 = vmax.f32 %v3691_v17, %v3727_v48  ;;  %v3124_v19 = vadd.f32 %v3074_v7, %v2628_v11  ;;  %v3334_v43 = vpop.f32.mrf.mxu3  ;;  %v4434_v62 = vrot.slane %v4432_v56, 2  ;;  %v4437_v39 = vrot.slane %v4435_v61, 3 }
 0x338   : > { %v3645_v4 = vpop.f32.mrf.mxu0  ;;  %v12586_v52 = vsel %vm839_vm1, %v14029_v30, %v13831_v14  ;;  %v5022_v57 = vrot.slane %v4432_v56, 3  ;;  %v5023_v16 = vrot.slane %v4435_v61, 4  ;;  %v5451_v17 = vsel %vm1099_vm2, %v12514_v45, %v12574_v18  ;;  %v10117_v30 = vld [vmem:[#allocation2 + $0x38] sm:$0xff]  }
 0x339   : > { %v4015_v59 = vmul.f32 %v3942_v60, %v3763_v29  ;;  %v3384_v46 = vadd.f32 %v3334_v43, %v3124_v19  ;;  %v12588_v53 = vpop.f32.mrf.mxu1  ;;  %v12593_v11 = vor.u32 %v4437_v39, %v4434_v62  ;;  %v13829_v48 = vshrl.u32 %v12579_v5, 16  ;;  %v14031_v56 = vld [vmem:[#allocation21_spill] sm:$0xff]  ;;  %v3952_v5 = vpop.permute.xlu1 %3951 }
 0x33a   : > { %v12601_v60 = vor.u32 %v5023_v16, %v5022_v57  ;;  %v5453_v29 = vshrl.u32 %v10117_v30, 16  ;;  %v5456_v19 = vshll.u32 %v10117_v30, 16  ;;  %v14032_v16 = vld [vmem:[#allocation32_spill] sm:$0xff]  ;;  %v9533_v30 = vld [vmem:[%s13755_s3 + $0x108] sm:$0xff] }
 0x33b   : > { %v9738_v7 = vpack.c.bf16 %v4015_v59, %v4014_v41  ;;  %4838 = vmatmul.bf16.gmra.mxu2 %v14030_v28  ;;  %5663 = vmatmul.bf16.gmra.mxu0 %v5451_v17  ;;  %v4439_v43 = vsel %vm446_vm0, %v12533_v23, %v12593_v11  ;;  %v3692_v45 = vadd.f32 %v3642_v58, %v3384_v46  ;;  %v7322_v23 = vrot.slane %v13829_v48, 1 }
 0x33c   : > { %5145 = vmatmul.bf16.gmra.mxu3 %v14031_v56  ;;  %4619 = vmatmul.bf16.gmra.mxu1 %v4439_v43  ;;  %v12607_v62 = vsel %vm1099_vm2, %v12541_v63, %v12601_v60  ;;  %v7323_v58 = vrot.slane %v13830_v26, 2  ;;  %v5455_v56 = vrot.slane %v5453_v29, 3  ;;  %v5458_v43 = vrot.slane %v5456_v19, 4  ;;  %v14034_v29 = vld [vmem:[#allocation5_spill] sm:$0xff]  ;;  %v14035_v19 = vld [vmem:[#allocation31_spill] sm:$0xff]  ;;  %v3947_v26 = vpop.permute.xlu0 %3946 }
 0x33d   : > { %10090 = vst [vmem:[#allocation2 + $0x70] sm:$0xff] %v9738_v7   ;;  %v5516_v61 = vshrl.u32 %v9738_v7, 16  ;;  %v5519_v15 = vshll.u32 %v9738_v7, 16  ;;  %v3728_v7 = vmul.f32 0.01, %v3692_v45  ;;  %5877 = vmatpush.bf16.msrb.mxu1 %v9533_v30 }
 0x33e   : > { %v3077_v59 = vpop.f32.mrf.mxu2 }
 0x33f   : > { %v3125_v39 = vadd.f32 %v3077_v59, %v14032_v16  ;;  %v3337_v57 = vpop.f32.mrf.mxu3  ;;  %v5518_v41 = vrot.slane %v5516_v61, 3  ;;  %v5521_v46 = vrot.slane %v5519_v15, 4  ;;  %v12621_v59 = vor.u32 %v7323_v58, %v7322_v23 }
 0x340   : > { %v3647_v17 = vpop.f32.mrf.mxu0 }
 0x341   : > { %v3385_v28 = vadd.f32 %v3337_v57, %v3125_v39  ;;  %v12617_v63 = vpop.f32.mrf.mxu1  ;;  %v12619_v48 = vor.u32 %v5521_v46, %v5518_v41  ;;  %v12633_v39 = vsel %vm3414_vm4, %v12558_v49, %v12621_v59  ;;  %v2630_v57 = vadd.f32 %v14035_v19, %v14034_v29 }
 0x342   : > { %14033 = vst [vmem:[#allocation17_spill] sm:$0xff] %v12633_v39  ;;  %v3764_v41 = vmax.f32 %v3692_v45, %v3728_v7  ;;  %v14037_v7 = vrot.slane %v12560_v44, 3  ;;  %v14039_v44 = vld [vmem:[#allocation25_spill] sm:$0xff] }
 0x343   : > { %v3693_v61 = vadd.f32 %v3645_v4, %v3385_v28  ;;  %v12628_v16 = vsel %vm1099_vm2, %v12556_v21, %v12619_v48  ;;  %v12637_v4 = vor.u32 %v5458_v43, %v5455_v56 }
 0x344   : > { %v12623_v15 = vld [vmem:[#allocation2 + $0x70] sm:$0xff]  ;;  %v4016_v19 = vmul.f32 %v3947_v26, %v3764_v41 }
 0x345   : > { %v3729_v23 = vmul.f32 0.01, %v3693_v61  ;;  %v4441_v58 = vshrl.u32 %v12623_v15, 16  ;;  %v4444_v28 = vshll.u32 %v12623_v15, 16  ;;  %v13844_v21 = vrot.slane %v12623_v15, 3  ;;  %v12642_v30 = vld [vmem:[#allocation2 + $0x6c] sm:$0xff] }
 0x346   : > { %v3079_v46 = vpop.f32.mrf.mxu2  ;;  %14036 = vst [vmem:[#allocation29_spill] sm:$0xff] %v12642_v30  ;;  %v13848_v26 = vshll.u32 %v12642_v30, 16 }
 0x347   : > { %v3765_v14 = vmax.f32 %v3693_v61, %v3729_v23  ;;  %v3126_v49 = vadd.f32 %v3079_v46, %v2630_v57  ;;  %v3339_v39 = vpop.f32.mrf.mxu3  ;;  %v4443_v29 = vrot.slane %v4441_v58, 2  ;;  %v4446_v45 = vrot.slane %v4444_v28, 3 }
 0x348   : > { %v3650_v36 = vpop.f32.mrf.mxu0  ;;  %v12649_v56 = vsel %vm839_vm1, %v14037_v7, %v13844_v21  ;;  %v5026_v43 = vrot.slane %v4441_v58, 3  ;;  %v5027_v37 = vrot.slane %v4444_v28, 4  ;;  %v5460_v61 = vsel %vm1099_vm2, %v12574_v18, %v12637_v4  ;;  %v10118_v7 = vld [vmem:[#allocation2 + $0x40] sm:$0xff]  }
 0x349   : > { %v4017_v3 = vmul.f32 %v3952_v5, %v3765_v14  ;;  %v3386_v24 = vadd.f32 %v3339_v39, %v3126_v49  ;;  %v12651_v8 = vpop.f32.mrf.mxu1  ;;  %v12656_v57 = vor.u32 %v4446_v45, %v4443_v29  ;;  %v13845_v23 = vshrl.u32 %v12642_v30, 16  ;;  %v14040_v58 = vld [vmem:[#allocation26_spill] sm:$0xff] }
 0x34a   : > { %14038 = vst [vmem:[#allocation4_spill] sm:$0xff] %v12651_v8  ;;  %v12664_v5 = vor.u32 %v5027_v37, %v5026_v43  ;;  %v5462_v28 = vshrl.u32 %v10118_v7, 16  ;;  %v5465_v49 = vshll.u32 %v10118_v7, 16  ;;  %v14042_v37 = vld [vmem:[#allocation7_spill] sm:$0xff] }
 0x34b   : > { %v9743_v46 = vpack.c.bf16 %v4017_v3, %v4016_v19  ;;  %4843 = vmatmul.bf16.gmra.mxu2 %v14039_v44  ;;  %5668 = vmatmul.bf16.gmra.mxu0 %v5460_v61  ;;  %v4448_v14 = vsel %vm446_vm0, %v12593_v11, %v12656_v57  ;;  %v3694_v18 = vadd.f32 %v3647_v17, %v3386_v24  ;;  %v7326_v11 = vrot.slane %v13845_v23, 1 }
 0x34c   : > { %5150 = vmatmul.bf16.gmra.mxu3 %v14040_v58  ;;  %4624 = vmatmul.bf16.gmra.mxu1 %v4448_v14  ;;  %v12670_v29 = vsel %vm1099_vm2, %v12601_v60, %v12664_v5  ;;  %v7327_v17 = vrot.slane %v13848_v26, 2  ;;  %v5464_v58 = vrot.slane %v5462_v28, 3  ;;  %v5467_v14 = vrot.slane %v5465_v49, 4  ;;  %v14046_v28 = vld [vmem:[#allocation6_spill] sm:$0xff] }
 0x34d   : > { %10091 = vst [vmem:[#allocation2 + $0x78] sm:$0xff] %v9743_v46   ;;  %v5525_v39 = vshrl.u32 %v9743_v46, 16  ;;  %v5528_v41 = vshll.u32 %v9743_v46, 16  ;;  %v3730_v46 = vmul.f32 0.01, %v3694_v18 }
 0x34e   : > { %v3082_v3 = vpop.f32.mrf.mxu2  ;;  %14041 = vst [vmem:[#allocation28_spill] sm:$0xff] %v12670_v29  ;;  %v12681_v21 = vor.u32 %v7327_v17, %v7326_v11 }
 0x34f   : > { %v3127_v45 = vadd.f32 %v3082_v3, %v14042_v37  ;;  %v3342_v43 = vpop.f32.mrf.mxu3  ;;  %v5527_v19 = vrot.slane %v5525_v39, 3  ;;  %v5530_v24 = vrot.slane %v5528_v41, 4  ;;  %v14045_v3 = vld [vmem:[#allocation8_spill] sm:$0xff]  ;;  %v3766_v37 = vmax.f32 %v3694_v18, %v3730_v46 }
 0x350   : > { %v3652_v61 = vpop.f32.mrf.mxu0  ;;  %v12693_v41 = vsel %vm3414_vm4, %v12621_v59, %v12681_v21  ;;  %v2632_v49 = vadd.f32 %v14046_v28, %v14045_v3  ;;  %v3957_v59 = vpop.permute.xlu2 %3956  ;;  %v14047_v18 = vrot.slane %v12623_v15, 3  ;;  %v10119_v15 = vld [vmem:[#allocation2 + $0x48] sm:$0xff]  }
 0x351   : > { %v3387_v44 = vadd.f32 %v3342_v43, %v3127_v45  ;;  %v12677_v7 = vpop.f32.mrf.mxu1  ;;  %v12679_v60 = vor.u32 %v5530_v24, %v5527_v19  ;;  %14044 = vst [vmem:[#allocation21_spill] sm:$0xff] %v12693_v41  ;;  %v12697_v43 = vor.u32 %v5467_v14, %v5464_v58  ;;  %v3962_v24 = vpop.permute.xlu0 %3961  ;;  %v4018_v3 = vmul.f32 %v3957_v59, %v3766_v37 }
 0x352   : > { %14043 = vst [vmem:[#allocation20_spill] sm:$0xff] %v12677_v7 }
 0x353   : > { %v3695_v23 = vadd.f32 %v3650_v36, %v3387_v44  ;;  %v12688_v39 = vsel %vm1099_vm2, %v12619_v48, %v12679_v60 }
 0x354   : > { %v12683_v34 = vld [vmem:[#allocation2 + $0x78] sm:$0xff] }
 0x355   : > { %v3731_v45 = vmul.f32 0.01, %v3695_v23  ;;  %v4450_v36 = vshrl.u32 %v12683_v34, 16  ;;  %v4453_v19 = vshll.u32 %v12683_v34, 16  ;;  %v13853_v48 = vrot.slane %v12683_v34, 3  ;;  %v12709_v14 = vld [vmem:[#allocation2 + $0x74] sm:$0xff] }
 0x356   : > { %v3084_v11 = vpop.f32.mrf.mxu2  ;;  %14048 = vst [vmem:[#allocation32_spill] sm:$0xff] %v12709_v14 }
 0x357   : > { %v3767_v17 = vmax.f32 %v3695_v23, %v3731_v45  ;;  %v3128_v44 = vadd.f32 %v3084_v11, %v2632_v49  ;;  %v3344_v26 = vpop.f32.mrf.mxu3  ;;  %v4452_v30 = vrot.slane %v4450_v36, 2  ;;  %v4455_v7 = vrot.slane %v4453_v19, 3 }
 0x358   : > { %v3655_v41 = vpop.f32.mrf.mxu0  ;;  %v12707_v46 = vsel %vm839_vm1, %v14047_v18, %v13853_v48  ;;  %v5030_v58 = vrot.slane %v4450_v36, 3  ;;  %v5031_v23 = vrot.slane %v4453_v19, 4  ;;  %v5469_v45 = vsel %vm1099_vm2, %v12637_v4, %v12697_v43 }
 0x359   : > { %v4019_v28 = vmul.f32 %v3962_v24, %v3767_v17  ;;  %v3388_v8 = vadd.f32 %v3344_v26, %v3128_v44  ;;  %v12711_v49 = vpop.f32.mrf.mxu1  ;;  %v12716_v11 = vor.u32 %v4455_v7, %v4452_v30  ;;  %v13852_v36 = vshll.u32 %v12709_v14, 16 }
 0x35a   : > { %14049 = vst [vmem:[#allocation5_spill] sm:$0xff] %v12711_v49  ;;  %v12723_v37 = vor.u32 %v5031_v23, %v5030_v58  ;;  %v13851_v19 = vshrl.u32 %v12709_v14, 16  ;;  %v5471_v24 = vshrl.u32 %v10119_v15, 16  ;;  %v5474_v17 = vshll.u32 %v10119_v15, 16 }
 0x35b   : > { %v9748_v29 = vpack.c.bf16 %v4019_v28, %v4018_v3  ;;  %4848 = vmatmul.bf16.gmra.mxu2 %v12241_v12  ;;  %5673 = vmatmul.bf16.gmra.mxu0 %v5469_v45  ;;  %v4457_v26 = vsel %vm446_vm0, %v12656_v57, %v12716_v11  ;;  %v3696_v4 = vadd.f32 %v3652_v61, %v3388_v8  ;;  %v14051_v57 = vld [vmem:[#allocation9_spill] sm:$0xff] }
 0x35c   : > { %5155 = vmatmul.bf16.gmra.mxu3 %v12256_v10  ;;  %4629 = vmatmul.bf16.gmra.mxu1 %v4457_v26  ;;  %v12730_v10 = vsel %vm1099_vm2, %v12664_v5, %v12723_v37  ;;  %v7330_v8 = vrot.slane %v13851_v19, 1  ;;  %v5473_v45 = vrot.slane %v5471_v24, 3  ;;  %v5476_v15 = vrot.slane %v5474_v17, 4  ;;  %v14055_v24 = vld [vmem:[#allocation10_spill] sm:$0xff] }
 0x35d   : > { %10092 = vst [vmem:[#allocation2 + $0x80] sm:$0xff] %v9748_v29   ;;  %v5534_v30 = vshrl.u32 %v9748_v29, 16  ;;  %v5537_v7 = vshll.u32 %v9748_v29, 16  ;;  %v7331_v29 = vrot.slane %v13852_v36, 2  ;;  %v3732_v61 = vmul.f32 0.01, %v3696_v4 }
 0x35e   : > { %v3087_v12 = vpop.f32.mrf.mxu2  ;;  %14050 = vst [vmem:[#allocation31_spill] sm:$0xff] %v12730_v10 }
 0x35f   : > { %v3129_v44 = vadd.f32 %v3087_v12, %v14051_v57  ;;  %v3347_v59 = vpop.f32.mrf.mxu3  ;;  %v5536_v18 = vrot.slane %v5534_v30, 3  ;;  %v5539_v3 = vrot.slane %v5537_v7, 4  ;;  %v12741_v26 = vor.u32 %v7331_v29, %v7330_v8 }
 0x360   : > { %v3657_v58 = vpop.f32.mrf.mxu0  ;;  %v12760_v8 = vor.u32 %v5476_v15, %v5473_v45  ;;  %v14056_v45 = vrot.slane %v12683_v34, 3  ;;  %v10120_v34 = vld [vmem:[#allocation2 + $0x50] sm:$0xff]  }
 0x361   : > { %v3389_v28 = vadd.f32 %v3347_v59, %v3129_v44  ;;  %v12737_v23 = vpop.f32.mrf.mxu1  ;;  %v12739_v5 = vor.u32 %v5539_v3, %v5536_v18  ;;  %v12753_v57 = vsel %vm3414_vm4, %v12681_v21, %v12741_v26  ;;  %v14054_v44 = vld [vmem:[#allocation11_spill] sm:$0xff]  ;;  %v3768_v59 = vmax.f32 %v3696_v4, %v3732_v61  ;;  %v3967_v21 = vpop.permute.xlu1 %3966 }
 0x362   : > { %14052 = vst [vmem:[#allocation25_spill] sm:$0xff] %v12737_v23  ;;  %v2634_v17 = vadd.f32 %v14055_v24, %v14054_v44  ;;  %v3972_v4 = vpop.permute.xlu2 %3971 }
 0x363   : > { %v3697_v12 = vadd.f32 %v3655_v41, %v3389_v28  ;;  %v12748_v7 = vsel %vm1099_vm2, %v12679_v60, %v12739_v5  ;;  %14053 = vst [vmem:[#allocation26_spill] sm:$0xff] %v12753_v57  ;;  %v9532_v41 = vld [vmem:[%s13755_s3 + $0x100] sm:$0xff]  ;;  %v4020_v23 = vmul.f32 %v3967_v21, %v3768_v59 }
 0x364   : > { %v12743_v30 = vld [vmem:[#allocation2 + $0x80] sm:$0xff]  ;;  %5878 = vmatpush.bf16.msrb.mxu1 %v9532_v41  ;;  %v5478_v41 = vsel %vm1099_vm2, %v12697_v43, %v12760_v8 }
 0x365   : > { %v3733_v18 = vmul.f32 0.01, %v3697_v12  ;;  %v4459_v60 = vshrl.u32 %v12743_v30, 16  ;;  %v4462_v29 = vshll.u32 %v12743_v30, 16  ;;  %v13858_v28 = vrot.slane %v12743_v30, 3  ;;  %v12772_v14 = vld [vmem:[#allocation2 + $0x7c] sm:$0xff] }
 0x366   : > { %v3089_v3 = vpop.f32.mrf.mxu2  ;;  %14057 = vst [vmem:[#allocation7_spill] sm:$0xff] %v12772_v14  ;;  %v13856_v59 = vshrl.u32 %v12772_v14, 16 }
 0x367   : > { %v3769_v19 = vmax.f32 %v3697_v12, %v3733_v18  ;;  %v3130_v36 = vadd.f32 %v3089_v3, %v2634_v17  ;;  %v3349_v48 = vpop.f32.mrf.mxu3  ;;  %v4461_v44 = vrot.slane %v4459_v60, 2  ;;  %v4464_v24 = vrot.slane %v4462_v29, 3 }
 0x368   : > { %v3660_v61 = vpop.f32.mrf.mxu0  ;;  %v12770_v15 = vsel %vm839_vm1, %v14056_v45, %v13858_v28  ;;  %v5034_v57 = vrot.slane %v4459_v60, 3  ;;  %v5035_v17 = vrot.slane %v4462_v29, 4  ;;  %v5480_v60 = vshrl.u32 %v10120_v34, 16 }
 0x369   : > { %v4021_v49 = vmul.f32 %v3972_v4, %v3769_v19  ;;  %v3390_v12 = vadd.f32 %v3349_v48, %v3130_v36  ;;  %v12774_v18 = vpop.f32.mrf.mxu1  ;;  %v12779_v3 = vor.u32 %v4464_v24, %v4461_v44  ;;  %v13857_v19 = vshll.u32 %v12772_v14, 16  ;;  %v3982_v14 = vpop.permute.xlu1 %3981 }
 0x36a   : > { %14058 = vst [vmem:[#allocation8_spill] sm:$0xff] %v12774_v18  ;;  %v12786_v36 = vor.u32 %v5035_v17, %v5034_v57  ;;  %v5483_v29 = vshll.u32 %v10120_v34, 16 }
 0x36b   : > { %v9753_v10 = vpack.c.bf16 %v4021_v49, %v4020_v23  ;;  %4853 = vmatmul.bf16.gmra.mxu2 %v12298_v51  ;;  %5678 = vmatmul.bf16.gmra.mxu0 %v5478_v41  ;;  %v4466_v48 = vsel %vm446_vm0, %v12716_v11, %v12779_v3  ;;  %v3698_v43 = vadd.f32 %v3657_v58, %v3390_v12  ;;  %v14059_v11 = vld [vmem:[#allocation12_spill] sm:$0xff]  ;;  %v7334_v58 = vrot.slane %v13856_v59, 1  ;;  %v3977_v59 = vpop.permute.xlu0 %3976 }
 0x36c   : > { %5160 = vmatmul.bf16.gmra.mxu3 %v12313_v54  ;;  %4634 = vmatmul.bf16.gmra.mxu1 %v4466_v48  ;;  %v12793_v54 = vsel %vm1099_vm2, %v12723_v37, %v12786_v36  ;;  %v5482_v37 = vrot.slane %v5480_v60, 3  ;;  %v5485_v34 = vrot.slane %v5483_v29, 4  ;;  %v14062_v29 = vld [vmem:[#allocation13_spill] sm:$0xff] }
 0x36d   : > { %10093 = vst [vmem:[#allocation2 + $0x88] sm:$0xff] %v9753_v10   ;;  %v5543_v49 = vshrl.u32 %v9753_v10, 16  ;;  %v5546_v23 = vshll.u32 %v9753_v10, 16  ;;  %v7335_v10 = vrot.slane %v13857_v19, 2  ;;  %v3734_v45 = vmul.f32 0.01, %v3698_v43 }
 0x36e   : > { %v3092_v51 = vpop.f32.mrf.mxu2 }
 0x36f   : > { %v3131_v57 = vadd.f32 %v3092_v51, %v14059_v11  ;;  %v3352_v21 = vpop.f32.mrf.mxu3  ;;  %v5545_v4 = vrot.slane %v5543_v49, 3  ;;  %v5548_v44 = vrot.slane %v5546_v23, 4  ;;  %v12804_v48 = vor.u32 %v7335_v10, %v7334_v58  ;;  %v9565_v49 = vld [vmem:[%s13755_s3 + $0x178] sm:$0xff]  ;;  %v4097_v11 = vld [vmem:[%s10423_s16 + $0xc] sm:$0xf] }
 0x370   : > { %v3662_v24 = vpop.f32.mrf.mxu0  ;;  %6367 = vmatpush.bf16.msra.mxu2 %v9565_v49  ;;  %v12824_v58 = vor.u32 %v5485_v34, %v5482_v37  ;;  %v4133_v19 = vunpack.c.l.bf16 %v4097_v11 }
 0x371   : > { %v3391_v12 = vadd.f32 %v3352_v21, %v3131_v57  ;;  %v12800_v17 = vor.u32 %v5548_v44, %v5545_v4  ;;  %v12802_v41 = vpop.f32.mrf.mxu1  ;;  %v12820_v60 = vsel %vm3414_vm4, %v12741_v26, %v12804_v48  ;;  %v3770_v21 = vmax.f32 %v3698_v43, %v3734_v45 }
 0x372   : > { %14060 = vst [vmem:[#allocation6_spill] sm:$0xff] %v12802_v41  ;;  %v14063_v45 = vrot.slane %v12743_v30, 3  ;;  %v5487_v30 = vsel %vm1099_vm2, %v12760_v8, %v12824_v58 }
 0x373   : > { %v3699_v51 = vadd.f32 %v3660_v61, %v3391_v12  ;;  %v12812_v23 = vsel %vm1099_vm2, %v12739_v5, %v12800_v17  ;;  %14061 = vst [vmem:[#allocation9_spill] sm:$0xff] %v12820_v60  ;;  %v2636_v61 = vadd.f32 %v12323_v35, %v14062_v29  ;;  %v4022_v29 = vmul.f32 %v3977_v59, %v3770_v21 }
 0x374   : > { %v12815_v57 = vld [vmem:[#allocation2 + $0x88] sm:$0xff] }
 0x375   : > { %v3735_v4 = vmul.f32 0.01, %v3699_v51  ;;  %v4468_v5 = vshrl.u32 %v12815_v57, 16  ;;  %v4471_v10 = vshll.u32 %v12815_v57, 16  ;;  %v4740_v12 = vrot.slane %v12815_v57, 3  ;;  %v12836_v49 = vld [vmem:[#allocation2 + $0x84] sm:$0xff] }
 0x376   : > { %v3094_v44 = vpop.f32.mrf.mxu2  ;;  %14064 = vst [vmem:[#allocation11_spill] sm:$0xff] %v12836_v49  ;;  %v13868_v59 = vshll.u32 %v12836_v49, 16  ;;  %v13861_v8 = vshrl.u32 %v12836_v49, 16 }
 0x377   : > { %v3771_v28 = vmax.f32 %v3699_v51, %v3735_v4  ;;  %v3132_v26 = vadd.f32 %v3094_v44, %v2636_v61  ;;  %v3354_v60 = vpop.f32.mrf.mxu3  ;;  %v4470_v35 = vrot.slane %v4468_v5, 2  ;;  %v4473_v43 = vrot.slane %v4471_v10, 3  ;;  %v9590_v51 = vld [vmem:[%s13755_s3 + $0x1b8] sm:$0xff] }
 0x378   : > { %v5644_v41 = vpop.f32.mrf.mxu0  ;;  %v12834_v37 = vsel %vm839_vm1, %v14063_v45, %v4740_v12  ;;  %v5038_v34 = vrot.slane %v4468_v5, 3  ;;  %v5039_v61 = vrot.slane %v4471_v10, 4  ;;  %6863 = vmatpush.bf16.msra.mxu3 %v9590_v51 }
 0x379   : > { %v4023_v18 = vmul.f32 %v3982_v14, %v3771_v28  ;;  %v3392_v11 = vadd.f32 %v3354_v60, %v3132_v26  ;;  %v12841_v4 = vpop.f32.mrf.mxu1  ;;  %v12846_v44 = vor.u32 %v4473_v43, %v4470_v35  ;;  %v10095_v60 = vld [vmem:[%s10423_s16 + $0x10] sm:$0xff]   ;;  %v3987_v43 = vpop.permute.xlu2 %3986 }
 0x37a   : > { %v12855_v28 = vor.u32 %v5039_v61, %v5038_v34  ;;  %v9762_v51 = vunpack.c.l.bf16 %v10095_v60 }
 0x37b   : > { %v12848_v45 = vpack.c.bf16 %v4023_v18, %v4022_v29  ;;  %v3700_v5 = vadd.f32 %v3662_v24, %v3392_v11  ;;  %4858 = vmatmul.bf16.gmra.mxu2 %v12348_v50  ;;  %5683 = vmatmul.bf16.gmra.mxu0 %v5487_v30  ;;  %v4475_v14 = vsel %vm446_vm0, %v12779_v3, %v12846_v44  ;;  %v7338_v29 = vrot.slane %v13861_v8, 1 }
 0x37c   : > { %5165 = vmatmul.bf16.gmra.mxu3 %v12371_v32  ;;  %v4650_v18 = vadd.f32 %v12350_v0, %v4133_v19  ;;  %4639 = vmatmul.bf16.gmra.mxu1 %v4475_v14  ;;  %v12867_v3 = vsel %vm1099_vm2, %v12786_v36, %v12855_v28  ;;  %v7339_v11 = vrot.slane %v13868_v59, 2  ;;  %v9598_v36 = vld [vmem:[%s13755_s3 + $0x1f8] sm:$0xff] }
 0x37d   : > { %10094 = vst [vmem:[#allocation2 + $0x90] sm:$0xff] %v12848_v45   ;;  %v3736_v24 = vmul.f32 0.01, %v3700_v5  ;;  %v5552_v50 = vshrl.u32 %v12848_v45, 16  ;;  %v5555_v32 = vshll.u32 %v12848_v45, 16  ;;  %7122 = vmatpush.bf16.msra.mxu0 %v9598_v36  ;;  %v9763_v36 = vunpack.c.h.bf16 %v10095_v60 }
 0x37e   : > { %v4819_v21 = vpop.f32.mrf.mxu2 }
 0x37f   : > { %v3772_v10 = vmax.f32 %v3700_v5, %v3736_v24  ;;  %v4909_v26 = vadd.f32 %v4819_v21, %v4650_v18  ;;  %v5126_v35 = vpop.f32.mrf.mxu3  ;;  %v5554_v0 = vrot.slane %v5552_v50, 3  ;;  %v5557_v19 = vrot.slane %v5555_v32, 4  ;;  %v9606_v5 = vld [vmem:[%s13755_s3 + $0x238] sm:$0xff] }
 0x380   : > { %v5646_v34 = vpop.f32.mrf.mxu0  ;;  %v12883_v24 = vor.u32 %v7339_v11, %v7338_v29  ;;  %7429 = vmatpush.bf16.msra.mxu1 %v9606_v5 }
 0x381   : > { %v4024_v61 = vmul.f32 %v3987_v43, %v3772_v10  ;;  %v5216_v30 = vadd.f32 %v5126_v35, %v4909_v26  ;;  %v12879_v14 = vor.u32 %v5557_v19, %v5554_v0  ;;  %v12881_v18 = vpop.f32.mrf.mxu1  ;;  %v4651_v35 = vadd.f32 %v9762_v51, %v12378_v22 }
 0x382   : > { %v12895_v26 = vsel %vm3414_vm4, %v12804_v48, %v12883_v24  ;;  %v5496_v48 = vsel %vm1099_vm2, %v12824_v58, %v12494_v27  ;;  %v10096_v58 = vld [vmem:[%s10423_s16 + $0x18] sm:$0xff]  }
 0x383   : > { %v4060_v50 = vpack.c.bf16 %v4024_v61, %v4024_v61  ;;  %v12888_v32 = vsel %vm1099_vm2, %v12800_v17, %v12879_v14  ;;  %v12890_v10 = vadd.f32 %v5644_v41, %v5216_v30  ;;  %14065 = vst [vmem:[#allocation10_spill] sm:$0xff] %v12895_v26 }
 0x384   : > { %v4205_v21 = vld [vmem:[#allocation2 + $0x90] sm:$0x7] }
 0x385   : > { %4096 = vst [vmem:[#allocation2 + $0x98] sm:$0xf] %v4060_v50  ;;  %v4295_v0 = vunpack.c.l.b16 %v4205_v21 }
 0x386   : > { %v4821_v19 = vpop.f32.mrf.mxu2 }
 0x387   : > { %v4910_v43 = vadd.f32 %v4821_v19, %v4651_v35  ;;  %v5128_v29 = vpop.f32.mrf.mxu3  ;;  %v4314_v11 = vpack.c.b16 %v4295_v0, %v4295_v0  ;;  %v4652_v35 = vadd.f32 %v9763_v36, %v12405_v20  ;;  %v12922_v20 = vld [vmem:[#allocation2 + $0x8c] sm:$0xff] }
 0x388   : > { %v5649_v61 = vpop.f32.mrf.mxu0  ;;  %14066 = vst [vmem:[#allocation12_spill] sm:$0xff] %v12922_v20 }
 0x389   : > { %v5217_v17 = vadd.f32 %v5128_v29, %v4910_v43  ;;  %v4477_v5 = vshrl.u32 %v4314_v11, 16  ;;  %v4480_v8 = vshll.u32 %v4314_v11, 16  ;;  %v12898_v41 = vpop.f32.mrf.mxu1  ;;  %v4742_v30 = vrot.slane %v4314_v11, 3 }
 0x38a   : > { %v9766_v43 = vunpack.c.l.bf16 %v10096_v58 }
 0x38b   : > { %4863 = vmatmul.bf16.gmra.mxu2 %v12401_v13  ;;  %5688 = vmatmul.bf16.gmra.mxu0 %v5496_v48  ;;  %v4479_v22 = vrot.slane %v4477_v5, 2  ;;  %v4482_v51 = vrot.slane %v4480_v8, 3  ;;  %v12904_v50 = vadd.f32 %v5646_v34, %v5217_v17  ;;  %v12910_v60 = vsel %vm839_vm1, %v4740_v12, %v4742_v30  ;;  %v12930_v17 = vld [vmem:[#allocation2 + $0x9c] sm:$0xff] }
 0x38c   : > { %5170 = vmatmul.bf16.gmra.mxu3 %v12426_v47  ;;  %v5288_v21 = vld [vmem:[#allocation2 + $0x98] sm:$0xf]  ;;  %v9895_v13 = vunpack.c.h.b16 %v12848_v45  ;;  %14068 = vst [vmem:[#allocation44_spill] sm:$0xff] %v12930_v17  ;;  %v4653_v5 = vadd.f32 %v9766_v43, %v12434_v33  ;;  %v13864_v30 = vshll.u32 %v12922_v20, 16  ;;  %v9564_v33 = vld [vmem:[%s13755_s3 + $0x170] sm:$0xff] }
 0x38d   : > { %v4483_v0 = vor.u32 %v4482_v51, %v4479_v22  ;;  %v12913_v27 = vunpack.c.l.b16 %v5288_v21  ;;  %v12926_v36 = vld [vmem:[#allocation2 + $0x94] sm:$0xff]  ;;  %6368 = vmatpush.bf16.msra.mxu2 %v9564_v33 }
 0x38e   : > { %v4824_v19 = vpop.f32.mrf.mxu2  ;;  %14067 = vst [vmem:[#allocation13_spill] sm:$0xff] %v12926_v36  ;;  %v13865_v22 = vshll.u32 %v12926_v36, 16  ;;  %v13863_v51 = vshrl.u32 %v12926_v36, 16 }
 0x38f   : > { %v4911_v8 = vadd.f32 %v4824_v19, %v4652_v35  ;;  %v5131_v34 = vpop.f32.mrf.mxu3  ;;  %v4484_v47 = vsel %vm446_vm0, %v12846_v44, %v4483_v0  ;;  %v12920_v57 = vpack.c.b16 %v12913_v27, %v9895_v13  ;;  %v13862_v44 = vshrl.u32 %v12922_v20, 16 }
 0x390   : > { %4644 = vmatmul.bf16.gmra.mxu1 %v4484_v47  ;;  %v5651_v12 = vpop.f32.mrf.mxu0  ;;  %v13867_v0 = vshll.u32 %v12930_v17, 16  ;;  %v9767_v19 = vunpack.c.h.bf16 %v10096_v58  ;;  %v7346_v58 = vrot.slane %v13863_v51, 1 }
 0x391   : > { %v5218_v29 = vadd.f32 %v5131_v34, %v4911_v8  ;;  %v12924_v11 = vpop.f32.mrf.mxu1  ;;  %v9589_v34 = vld [vmem:[%s13755_s3 + $0x1b0] sm:$0xff]  ;;  %v7342_v47 = vrot.slane %v13862_v44, 1 }
 0x392   : > { %6864 = vmatpush.bf16.msra.mxu3 %v9589_v34 }
 0x393   : > { %v12928_v45 = vadd.f32 %v5649_v61, %v5218_v29  ;;  %v13866_v61 = vshrl.u32 %v12930_v17, 16  ;;  %v7343_v29 = vrot.slane %v13864_v30, 2  ;;  %v4654_v30 = vadd.f32 %v9767_v19, %v12464_v42  ;;  %v14073_v42 = vld [vmem:[#allocation14_spill] sm:$0xff] }
 0x395   : > { %v7344_v44 = vor.u32 %v7343_v29, %v7342_v47  ;;  %v9597_v47 = vld [vmem:[%s13755_s3 + $0x1f0] sm:$0xff] }
 0x396   : > { %v4826_v48 = vpop.f32.mrf.mxu2  ;;  %7123 = vmatpush.bf16.msra.mxu0 %v9597_v47 }
 0x397   : > { %v4912_v21 = vadd.f32 %v4826_v48, %v4653_v5  ;;  %v5133_v35 = vpop.f32.mrf.mxu3  ;;  %v7347_v5 = vrot.slane %v13865_v22, 2 }
 0x398   : > { %v5654_v13 = vpop.f32.mrf.mxu0 }
 0x399   : > { %v5219_v8 = vadd.f32 %v5133_v35, %v4912_v21  ;;  %v12947_v43 = vpop.f32.mrf.mxu1  ;;  %v7350_v21 = vrot.slane %v13866_v61, 1  ;;  %v7351_v35 = vrot.slane %v13867_v0, 2  ;;  %v7348_v51 = vor.u32 %v7347_v5, %v7346_v58 }
 0x39b   : > { %4868 = vmatmul.bf16.gmra.mxu2 %v12462_v2  ;;  %5693 = vmatmul.bf16.gmra.mxu0 %v12505_v38  ;;  %v12957_v48 = vadd.f32 %v5651_v12, %v5219_v8  ;;  %v12965_v22 = vor.u32 %v7351_v35, %v7350_v21  ;;  %v10097_v2 = vld [vmem:[%s10423_s16 + $0x20] sm:$0xff]   ;;  %v12970_v12 = vsel %vm3414_vm4, %v12883_v24, %v7344_v44 }
 0x39c   : > { %5175 = vmatmul.bf16.gmra.mxu3 %v12485_v25  ;;  %14070 = vst [vmem:[#allocation46_spill] sm:$0xff] %v12970_v12  ;;  %v12973_v8 = vsel %vm3414_vm4, %v7344_v44, %v7348_v51  ;;  %v9770_v19 = vunpack.c.l.bf16 %v10097_v2  ;;  %v9605_v44 = vld [vmem:[%s13755_s3 + $0x230] sm:$0xff]  ;;  %v9771_v5 = vunpack.c.h.bf16 %v10097_v2 }
 0x39d   : > { %14069 = vst [vmem:[#allocation45_spill] sm:$0xff] %v12965_v22  ;;  %v12977_v25 = vsel %vm3414_vm4, %v7348_v51, %v12965_v22  ;;  %7430 = vmatpush.bf16.msra.mxu1 %v9605_v44 }
 0x39e   : > { %v4829_v38 = vpop.f32.mrf.mxu2  ;;  %14071 = vst [vmem:[#allocation47_spill] sm:$0xff] %v12973_v8  ;;  %v4655_v51 = vadd.f32 %v9770_v19, %v12492_v40  ;;  %v10098_v40 = vld [vmem:[%s10423_s16 + $0x28] sm:$0xff]   ;;  %v10260_v19 = vld [vmem:[#allocation2 + $0x14] sm:$0xff]  }
 0x39f   : > { %v4913_v61 = vadd.f32 %v4829_v38, %v4654_v30  ;;  %v5136_v0 = vpop.f32.mrf.mxu3  ;;  %14072 = vst [vmem:[#allocation48_spill] sm:$0xff] %v12977_v25  ;;  %v9774_v2 = vunpack.c.l.bf16 %v10098_v40 }
 0x3a0   : > { %v5656_v33 = vpop.f32.mrf.mxu0  ;;  %5879 = vmatmul.bf16.vlgmr.msrb.gmra.mxu1 %v14073_v42 }
 0x3a1   : > { %v5220_v34 = vadd.f32 %v5136_v0, %v4913_v61  ;;  %v12983_v24 = vpop.f32.mrf.mxu1 }
 0x3a3   : > { %v12988_v30 = vadd.f32 %v5654_v13, %v5220_v34  ;;  %v4656_v13 = vadd.f32 %v9771_v5, %v12528_v31 }
 0x3a6   : > { %v4831_v29 = vpop.f32.mrf.mxu2 }
 0x3a7   : > { %v4914_v58 = vadd.f32 %v4831_v29, %v4655_v51  ;;  %v5138_v0 = vpop.f32.mrf.mxu3 }
 0x3a8   : > { %v5659_v61 = vpop.f32.mrf.mxu0 }
 0x3a9   : > { %v5221_v21 = vadd.f32 %v5138_v0, %v4914_v58  ;;  %v12991_v35 = vpop.f32.mrf.mxu1  ;;  %v9775_v0 = vunpack.c.h.bf16 %v10098_v40  ;;  %v10262_v40 = vld [vmem:[#allocation2 + $0x1c] sm:$0xff]  }
 0x3ab   : > { %4873 = vmatmul.bf16.gmra.mxu2 %v12526_v9  ;;  %5698 = vmatmul.bf16.gmra.mxu0 %v12565_v1  ;;  %v12995_v38 = vadd.f32 %v5656_v33, %v5221_v21  ;;  %v4657_v1 = vadd.f32 %v9774_v2, %v12554_v55  ;;  %v9563_v55 = vld [vmem:[%s13755_s3 + $0x168] sm:$0xff] }
 0x3ac   : > { %5180 = vmatmul.bf16.gmra.mxu3 %v12547_v6  ;;  %6369 = vmatpush.bf16.msra.mxu2 %v9563_v55  ;;  %v9596_v55 = vld [vmem:[%s13755_s3 + $0x1e8] sm:$0xff] }
 0x3ad   : > { %7124 = vmatpush.bf16.msra.mxu0 %v9596_v55 }
 0x3ae   : > { %v4834_v42 = vpop.f32.mrf.mxu2 }
 0x3af   : > { %v4915_v34 = vadd.f32 %v4834_v42, %v4656_v13  ;;  %v5141_v47 = vpop.f32.mrf.mxu3  ;;  %v10099_v42 = vld [vmem:[%s10423_s16 + $0x30] sm:$0xff]  }
 0x3b0   : > { %v5661_v44 = vpop.f32.mrf.mxu0  ;;  %5884 = vmatmul.bf16.gmra.mxu1 %v10260_v19 }
 0x3b1   : > { %v5222_v51 = vadd.f32 %v5141_v47, %v4915_v34  ;;  %v13000_v29 = vpop.f32.mrf.mxu1 }
 0x3b3   : > { %v13002_v9 = vadd.f32 %v5659_v61, %v5222_v51  ;;  %v4658_v61 = vadd.f32 %v9775_v0, %v12588_v53  ;;  %v9779_v0 = vunpack.c.h.bf16 %v10099_v42 }
 0x3b6   : > { %v4836_v33 = vpop.f32.mrf.mxu2 }
 0x3b7   : > { %v4916_v6 = vadd.f32 %v4836_v33, %v4657_v1  ;;  %v5143_v58 = vpop.f32.mrf.mxu3 }
 0x3b8   : > { %v5664_v31 = vpop.f32.mrf.mxu0 }
 0x3b9   : > { %v5223_v5 = vadd.f32 %v5143_v58, %v4916_v6  ;;  %v13005_v21 = vpop.f32.mrf.mxu1 }
 0x3bb   : > { %4878 = vmatmul.bf16.gmra.mxu2 %v12586_v52  ;;  %5703 = vmatmul.bf16.gmra.mxu0 %v12628_v16  ;;  %v13009_v13 = vadd.f32 %v5661_v44, %v5223_v5  ;;  %v9778_v52 = vunpack.c.l.bf16 %v10099_v42  ;;  %v14075_v42 = vld [vmem:[#allocation4_spill] sm:$0xff] }
 0x3bc   : > { %5185 = vmatmul.bf16.gmra.mxu3 %v12607_v62  ;;  %v9588_v62 = vld [vmem:[%s13755_s3 + $0x1a8] sm:$0xff] }
 0x3bd   : > { %6865 = vmatpush.bf16.msra.mxu3 %v9588_v62  ;;  %v4659_v53 = vadd.f32 %v9778_v52, %v12617_v63  ;;  %v10264_v52 = vld [vmem:[#allocation2 + $0x24] sm:$0xff]  }
 0x3be   : > { %v4839_v19 = vpop.f32.mrf.mxu2 }
 0x3bf   : > { %v4917_v34 = vadd.f32 %v4839_v19, %v4658_v61  ;;  %v5146_v47 = vpop.f32.mrf.mxu3  ;;  %v9604_v61 = vld [vmem:[%s13755_s3 + $0x228] sm:$0xff] }
 0x3c0   : > { %v5666_v2 = vpop.f32.mrf.mxu0  ;;  %5889 = vmatmul.bf16.gmra.mxu1 %v10262_v40  ;;  %v4660_v40 = vadd.f32 %v9779_v0, %v14075_v42 }
 0x3c1   : > { %v5224_v16 = vadd.f32 %v5146_v47, %v4917_v34  ;;  %v13020_v44 = vpop.f32.mrf.mxu1  ;;  %7431 = vmatpush.bf16.msra.mxu1 %v9604_v61  ;;  %v10100_v34 = vld [vmem:[%s10423_s16 + $0x38] sm:$0xff]  }
 0x3c3   : > { %v13022_v51 = vadd.f32 %v5664_v31, %v5224_v16  ;;  %v14074_v31 = vld [vmem:[#allocation28_spill] sm:$0xff] }
 0x3c6   : > { %v4841_v1 = vpop.f32.mrf.mxu2 }
 0x3c7   : > { %v4918_v33 = vadd.f32 %v4841_v1, %v4659_v53  ;;  %v5148_v6 = vpop.f32.mrf.mxu3  ;;  %v9782_v1 = vunpack.c.l.bf16 %v10100_v34 }
 0x3c8   : > { %v5669_v58 = vpop.f32.mrf.mxu0 }
 0x3c9   : > { %v5225_v5 = vadd.f32 %v5148_v6, %v4918_v33  ;;  %v13031_v19 = vpop.f32.mrf.mxu1 }
 0x3cb   : > { %4883 = vmatmul.bf16.gmra.mxu2 %v12649_v56  ;;  %5708 = vmatmul.bf16.gmra.mxu0 %v12688_v39  ;;  %v13035_v63 = vadd.f32 %v5666_v2, %v5225_v5  ;;  %v14076_v2 = vld [vmem:[#allocation20_spill] sm:$0xff] }
 0x3cc   : > { %5190 = vmatmul.bf16.gmra.mxu3 %v14074_v31  ;;  %v4661_v6 = vadd.f32 %v9782_v1, %v14076_v2  ;;  %v9783_v31 = vunpack.c.h.bf16 %v10100_v34  ;;  %v10266_v1 = vld [vmem:[#allocation2 + $0x2c] sm:$0xff]  }
 0x3ce   : > { %v4844_v47 = vpop.f32.mrf.mxu2 }
 0x3cf   : > { %v4919_v16 = vadd.f32 %v4844_v47, %v4660_v40  ;;  %v5151_v62 = vpop.f32.mrf.mxu3  ;;  %v14077_v47 = vld [vmem:[#allocation31_spill] sm:$0xff] }
 0x3d0   : > { %v5671_v53 = vpop.f32.mrf.mxu0  ;;  %5894 = vmatmul.bf16.gmra.mxu1 %v10264_v52 }
 0x3d1   : > { %v5226_v33 = vadd.f32 %v5151_v62, %v4919_v16  ;;  %v13040_v56 = vpop.f32.mrf.mxu1  ;;  %v10101_v16 = vld [vmem:[%s10423_s16 + $0x40] sm:$0xff]  }
 0x3d2   : > { %v9786_v34 = vunpack.c.l.bf16 %v10101_v16 }
 0x3d3   : > { %v13042_v39 = vadd.f32 %v5669_v58, %v5226_v33  ;;  %v14078_v58 = vld [vmem:[#allocation5_spill] sm:$0xff] }
 0x3d4   : > { %v4662_v52 = vadd.f32 %v9783_v31, %v14078_v58 }
 0x3d6   : > { %v4846_v5 = vpop.f32.mrf.mxu2 }
 0x3d7   : > { %v4920_v55 = vadd.f32 %v4846_v5, %v4661_v6  ;;  %v5153_v0 = vpop.f32.mrf.mxu3 }
 0x3d8   : > { %v5674_v61 = vpop.f32.mrf.mxu0 }
 0x3d9   : > { %v5227_v42 = vadd.f32 %v5153_v0, %v4920_v55  ;;  %v13045_v59 = vpop.f32.mrf.mxu1  ;;  %v14079_v0 = vld [vmem:[#allocation25_spill] sm:$0xff] }
 0x3da   : > { %v4663_v31 = vadd.f32 %v9786_v34, %v14079_v0  ;;  %v9586_v34 = vld [vmem:[%s13755_s3 + $0x198] sm:$0xff] }
 0x3db   : > { %4888 = vmatmul.bf16.gmra.mxu2 %v12707_v46  ;;  %5713 = vmatmul.bf16.gmra.mxu0 %v12748_v7  ;;  %v13049_v40 = vadd.f32 %v5671_v53, %v5227_v42  ;;  %v9562_v46 = vld [vmem:[%s13755_s3 + $0x160] sm:$0xff] }
 0x3dc   : > { %5195 = vmatmul.bf16.gmra.mxu3 %v14077_v47  ;;  %v9587_v7 = vld [vmem:[%s13755_s3 + $0x1a0] sm:$0xff]  ;;  %6370 = vmatpush.bf16.msra.mxu2 %v9562_v46 }
 0x3dd   : > { %6866 = vmatpush.bf16.msra.mxu3 %v9587_v7  ;;  %v10268_v7 = vld [vmem:[#allocation2 + $0x34] sm:$0xff]  }
 0x3de   : > { %v4849_v62 = vpop.f32.mrf.mxu2 }
 0x3df   : > { %v4921_v33 = vadd.f32 %v4849_v62, %v4662_v52  ;;  %v5156_v2 = vpop.f32.mrf.mxu3  ;;  %v9787_v62 = vunpack.c.h.bf16 %v10101_v16  ;;  %v9561_v16 = vld [vmem:[%s13755_s3 + $0x158] sm:$0xff] }
 0x3e0   : > { %v5676_v6 = vpop.f32.mrf.mxu0  ;;  %5899 = vmatmul.bf16.gmra.mxu1 %v10266_v1  ;;  %6371 = vmatpush.bf16.msra.mxu2 %v9561_v16 }
 0x3e1   : > { %v5228_v5 = vadd.f32 %v5156_v2, %v4921_v33  ;;  %v13060_v53 = vpop.f32.mrf.mxu1  ;;  %v9595_v33 = vld [vmem:[%s13755_s3 + $0x1e0] sm:$0xff]  ;;  %6867 = vmatpush.bf16.msra.mxu3 %v9586_v34  ;;  %v9559_v34 = vld [vmem:[%s13755_s3 + $0x148] sm:$0xff] }
 0x3e2   : > { %7125 = vmatpush.bf16.msra.mxu0 %v9595_v33  ;;  %v9593_v33 = vld [vmem:[%s13755_s3 + $0x1d0] sm:$0xff] }
 0x3e3   : > { %v13062_v55 = vadd.f32 %v5674_v61, %v5228_v5  ;;  %v9594_v5 = vld [vmem:[%s13755_s3 + $0x1d8] sm:$0xff] }
 0x3e6   : > { %v4851_v42 = vpop.f32.mrf.mxu2  ;;  %7126 = vmatpush.bf16.msra.mxu0 %v9594_v5  ;;  %v9584_v5 = vld [vmem:[%s13755_s3 + $0x188] sm:$0xff] }
 0x3e7   : > { %v4922_v47 = vadd.f32 %v4851_v42, %v4663_v31  ;;  %v5158_v58 = vpop.f32.mrf.mxu3 }
 0x3e8   : > { %v5679_v52 = vpop.f32.mrf.mxu0 }
 0x3e9   : > { %v5229_v1 = vadd.f32 %v5158_v58, %v4922_v47  ;;  %v13068_v2 = vpop.f32.mrf.mxu1 }
 0x3ea   : > { %7127 = vmatpush.bf16.msra.mxu0 %v9593_v33  ;;  %v9583_v33 = vld [vmem:[%s13755_s3 + $0x180] sm:$0xff] }
 0x3eb   : > { %4893 = vmatmul.bf16.gmra.mxu2 %v12770_v15  ;;  %5718 = vmatmul.bf16.gmra.mxu0 %v12812_v23  ;;  %v13072_v61 = vadd.f32 %v5676_v6, %v5229_v1  ;;  %v14080_v15 = vld [vmem:[#allocation8_spill] sm:$0xff]  ;;  %v9603_v23 = vld [vmem:[%s13755_s3 + $0x220] sm:$0xff] }
 0x3ec   : > { %5200 = vmatmul.bf16.gmra.mxu3 %v12793_v54  ;;  %v4664_v46 = vadd.f32 %v9787_v62, %v14080_v15  ;;  %v10102_v54 = vld [vmem:[%s10423_s16 + $0x48] sm:$0xff]   ;;  %7432 = vmatpush.bf16.msra.mxu1 %v9603_v23  ;;  %v9560_v62 = vld [vmem:[%s13755_s3 + $0x150] sm:$0xff] }
 0x3ed   : > { %v9790_v47 = vunpack.c.l.bf16 %v10102_v54  ;;  %v9585_v1 = vld [vmem:[%s13755_s3 + $0x190] sm:$0xff]  ;;  %6372 = vmatpush.bf16.msra.mxu2 %v9560_v62  ;;  %v9592_v23 = vld [vmem:[%s13755_s3 + $0x1c8] sm:$0xff]  ;;  %v9791_v25 = vunpack.c.h.bf16 %v10102_v54 }
 0x3ee   : > { %v4854_v6 = vpop.f32.mrf.mxu2  ;;  %6868 = vmatpush.bf16.msra.mxu3 %v9585_v1  ;;  %7128 = vmatpush.bf16.msra.mxu0 %v9592_v23 }
 0x3ef   : > { %v4923_v0 = vadd.f32 %v4854_v6, %v4664_v46  ;;  %v5161_v31 = vpop.f32.mrf.mxu3  ;;  %v4945_v46 = vld [vmem:[#allocation2 + $0x90] sm:$0xf]  ;;  %v14081_v6 = vld [vmem:[#allocation6_spill] sm:$0xff]  ;;  %v4666_v23 = vadd.f32 %v9791_v25, %v12841_v4 }
 0x3f0   : > { %v5681_v42 = vpop.f32.mrf.mxu0  ;;  %5904 = vmatmul.bf16.gmra.mxu1 %v10268_v7  ;;  %v4665_v7 = vadd.f32 %v9790_v47, %v14081_v6  ;;  %v4964_v1 = vunpack.c.l.b16 %v4945_v46  ;;  %v9591_v47 = vld [vmem:[%s13755_s3 + $0x1c0] sm:$0xff]  ;;  %v10103_v6 = vld [vmem:[%s10423_s16 + $0x50] sm:$0xff]  }
 0x3f1   : > { %v5230_v58 = vadd.f32 %v5161_v31, %v4923_v0  ;;  %v13098_v16 = vpop.f32.mrf.mxu1  ;;  %6373 = vmatpush.bf16.msra.mxu2 %v9559_v34  ;;  %v5398_v34 = vpack.c.b16 %v12913_v27, %v12913_v27 }
 0x3f2   : > { %6869 = vmatpush.bf16.msra.mxu3 %v9584_v5  ;;  %v4965_v54 = vpack.c.b16 %v4964_v1, %v4964_v1  ;;  %7129 = vmatpush.bf16.msra.mxu0 %v9591_v47 }
 0x3f3   : > { %v13106_v15 = vadd.f32 %v5679_v52, %v5230_v58  ;;  %v9558_v58 = vld [vmem:[%s13755_s3 + $0x140] sm:$0xff]  ;;  %v5561_v27 = vshrl.u32 %v5398_v34, 16 }
 0x3f4   : > { %v5046_v12 = vshll.u32 %v4965_v54, 16 }
 0x3f5   : > { %6374 = vmatpush.bf16.msra.mxu2 %v9558_v58 }
 0x3f6   : > { %v4856_v0 = vpop.f32.mrf.mxu2  ;;  %6870 = vmatpush.bf16.msra.mxu3 %v9583_v33  ;;  %v5048_v26 = vrot.slane %v5046_v12, 4 }
 0x3f7   : > { %v4924_v31 = vadd.f32 %v4856_v0, %v4665_v7  ;;  %v5163_v62 = vpop.f32.mrf.mxu3  ;;  %v10270_v0 = vld [vmem:[#allocation2 + $0x3c] sm:$0xff]  }
 0x3f8   : > { %v5684_v22 = vpop.f32.mrf.mxu0 }
 0x3f9   : > { %v5231_v52 = vadd.f32 %v5163_v62, %v4924_v31  ;;  %v13123_v5 = vpop.f32.mrf.mxu1  ;;  %v5564_v31 = vshll.u32 %v5398_v34, 16 }
 0x3fb   : > { %4898 = vmatmul.bf16.gmra.mxu2 %v12834_v37  ;;  %5723 = vmatmul.bf16.gmra.mxu0 %v12888_v32  ;;  %v13127_v46 = vadd.f32 %v5681_v42, %v5231_v52  ;;  %v5043_v37 = vshrl.u32 %v4965_v54, 16  ;;  %v9794_v42 = vunpack.c.l.bf16 %v10103_v6  ;;  %v5563_v52 = vrot.slane %v5561_v27, 3 }
 0x3fc   : > { %5205 = vmatmul.bf16.gmra.mxu3 %v12867_v3  ;;  %v5566_v3 = vrot.slane %v5564_v31, 4  ;;  %v9540_v31 = vld [vmem:[#allocation2 + $0xc] sm:$0xff] }
 0x3fd   : > { %v5045_v58 = vrot.slane %v5043_v37, 3  ;;  %v4667_v25 = vadd.f32 %v9794_v42, %v12881_v18 }
 0x3fe   : > { %v4859_v7 = vpop.f32.mrf.mxu2  ;;  %v5567_v34 = vor.u32 %v5566_v3, %v5563_v52  ;;  %v13150_v3 = vld [vmem:[#allocation2 + $0x14] sm:$0xff] }
 0x3ff   : > { %v4925_v62 = vadd.f32 %v4859_v7, %v4666_v23  ;;  %v5166_v8 = vpop.f32.mrf.mxu3  ;;  %v5049_v17 = vor.u32 %v5048_v26, %v5045_v58 }
 0x400   : > { %v5686_v32 = vpop.f32.mrf.mxu0  ;;  %5909 = vmatmul.bf16.gmra.mxu1 %v10270_v0  ;;  %v9795_v0 = vunpack.c.h.bf16 %v10103_v6  ;;  %v5568_v12 = vsel %vm1099_vm2, %v12879_v14, %v5567_v34  ;;  %v14082_v6 = vld [vmem:[#allocation15_spill] sm:$0xff]  ;;  %v10272_v14 = vld [vmem:[#allocation2 + $0x44] sm:$0xff]  }
 0x401   : > { %v5232_v1 = vadd.f32 %v5166_v8, %v4925_v62  ;;  %v13135_v33 = vpop.f32.mrf.mxu1  ;;  %v10322_v8 = vld [vmem:[#allocation2 + $0x14] sm:$0xff]   ;;  %v5050_v18 = vsel %vm1099_vm2, %v12855_v28, %v5049_v17  ;;  %v14083_v37 = vunpack.c.h.b16 %v14082_v6 }
 0x402   : > { %v6593_v27 = vunpack.c.l.b16 %v10322_v8  ;;  %v4668_v26 = vadd.f32 %v9795_v0, %v12898_v41  ;;  %v9602_v41 = vld [vmem:[%s13755_s3 + $0x218] sm:$0xff] }
 0x403   : > { %v13132_v4 = vadd.f32 %v5684_v22, %v5232_v1  ;;  %v10104_v1 = vld [vmem:[%s10423_s16 + $0x58] sm:$0xff]   ;;  %7433 = vmatpush.bf16.msra.mxu1 %v9602_v41 }
 0x404   : > { %v6630_v42 = vpack.c.b16 %v14083_v37, %v6593_v27  ;;  %v9798_v17 = vunpack.c.l.bf16 %v10104_v1 }
 0x406   : > { %v4861_v47 = vpop.f32.mrf.mxu2 }
 0x407   : > { %v4926_v23 = vadd.f32 %v4861_v47, %v4667_v25  ;;  %v5168_v7 = vpop.f32.mrf.mxu3  ;;  %v6652_v25 = vshll.u32 %v6630_v42, 16  ;;  %v6161_v47 = vshll.u32 %v13150_v3, 16 }
 0x408   : > { %v5689_v54 = vpop.f32.mrf.mxu0 }
 0x409   : > { %v5233_v36 = vadd.f32 %v5168_v7, %v4926_v23  ;;  %v4669_v7 = vadd.f32 %v9798_v17, %v12924_v11  ;;  %v6654_v8 = vrot.slane %v6652_v25, 1  ;;  %v9799_v11 = vunpack.c.h.bf16 %v10104_v1 }
 0x40b   : > { %4903 = vmatmul.bf16.gmra.mxu2 %v12910_v60  ;;  %5728 = vmatmul.bf16.gmra.mxu0 %v5568_v12  ;;  %v13142_v22 = vadd.f32 %v5686_v32, %v5233_v36  ;;  %v6156_v36 = vshll.u32 %v9540_v31, 16  ;;  %v6154_v12 = vshrl.u32 %v9540_v31, 16 }
 0x40c   : > { %5210 = vmatmul.bf16.gmra.mxu3 %v5050_v18  ;;  %v6163_v18 = vrot.slane %v6161_v47, 1 }
 0x40d   : > { %v13145_v62 = vpop.f32.mrf.mxu1  ;;  %v6158_v23 = vrot.slane %v6156_v36, 1  ;;  %v14086_v36 = vld [vmem:[#allocation18_spill] sm:$0xff] }
 0x40e   : > { %v4864_v52 = vpop.f32.mrf.mxu2  ;;  %v7019_v41 = vrot.slane %v14086_v36, 1 }
 0x40f   : > { %v4927_v60 = vadd.f32 %v4864_v52, %v4668_v26  ;;  %v5171_v58 = vpop.f32.mrf.mxu3  ;;  %v10323_v26 = vld [vmem:[#allocation2 + $0x1c] sm:$0xff] }
 0x410   : > { %v5691_v28 = vpop.f32.mrf.mxu0  ;;  %5914 = vmatmul.bf16.gmra.mxu1 %v10272_v14  ;;  %v7020_v6 = vrot.slane %v10323_v26, 1  ;;  %v6650_v14 = vshrl.u32 %v6630_v42, 16  ;;  %v9542_v26 = vld [vmem:[#allocation2 + $0x1c] sm:$0xff] }
 0x411   : > { %v5234_v32 = vadd.f32 %v5171_v58, %v4927_v60  ;;  %v14084_v60 = vld [vmem:[#allocation19_spill] sm:$0xff] }
 0x412   : > { %v14085_v58 = vshll.u32 %v14084_v60, 16  ;;  %v6655_v49 = vor.u32 %v6654_v8, %v6650_v14  ;;  %v7021_v31 = vsel %vm3154_vm5, %v7019_v41, %v7020_v6  ;;  %v10274_v8 = vld [vmem:[#allocation2 + $0x4c] sm:$0xff]  }
 0x413   : > { %v13156_v34 = vadd.f32 %v5689_v54, %v5234_v32  ;;  %v6159_v32 = vor.u32 %v6158_v23, %v6154_v12  ;;  %v10105_v23 = vld [vmem:[%s10423_s16 + $0x60] sm:$0xff]  }
 0x414   : > { %v6659_v20 = vrot.slane %v14085_v58, 1  ;;  %v9802_v58 = vunpack.c.l.bf16 %v10105_v23 }
 0x415   : > { %v13159_v0 = vpop.f32.mrf.mxu1  ;;  %v6164_v25 = vsel %vm2287_vm3, %v6159_v32, %v6163_v18  ;;  %v6169_v32 = vshll.u32 %v9542_v26, 16 }
 0x416   : > { %v4866_v27 = vpop.f32.mrf.mxu2  ;;  %v6660_v47 = vsel %vm2287_vm3, %v6655_v49, %v6659_v20  ;;  %v4671_v36 = vadd.f32 %v9802_v58, %v12983_v24  ;;  %v14089_v58 = vshrl.u32 %v14084_v60, 16  ;;  %v13193_v60 = vld [vmem:[#allocation2 + $0x24] sm:$0xff] }
 0x417   : > { %v4928_v37 = vadd.f32 %v4866_v27, %v4669_v7  ;;  %v5173_v52 = vpop.f32.mrf.mxu3  ;;  %v4670_v7 = vadd.f32 %v9799_v11, %v12947_v43  ;;  %v6165_v11 = vshrl.u32 %v13150_v3, 16 }
 0x418   : > { %v5694_v54 = vpop.f32.mrf.mxu0 }
 0x419   : > { %v5235_v17 = vadd.f32 %v5173_v52, %v4928_v37 }
 0x41b   : > { %6375 = vmatmul.bf16.vlgmr.msra.gmra.mxu2 %v6164_v25  ;;  %7130 = vmatmul.bf16.vlgmr.msra.gmra.mxu0 %v7021_v31  ;;  %v13167_v42 = vadd.f32 %v5691_v28, %v5235_v17  ;;  %v6171_v17 = vrot.slane %v6169_v32, 1  ;;  %v10324_v25 = vld [vmem:[#allocation2 + $0x24] sm:$0xff] }
 0x41c   : > { %6871 = vmatmul.bf16.vlgmr.msra.gmra.mxu3 %v6660_v47  ;;  %v7022_v31 = vrot.slane %v10324_v25, 1 }
 0x41d   : > { %v5880_v27 = vpop.f32.mrf.mxu1 }
 0x41e   : > { %v13172_v12 = vadd.f32 %v5880_v27, %v12890_v10  ;;  %v4869_v1 = vpop.f32.mrf.mxu2  ;;  %v14087_v27 = vld [vmem:[#allocation23_spill] sm:$0xff]  ;;  %v7023_v3 = vsel %vm3154_vm5, %v7020_v6, %v7022_v31 }
 0x41f   : > { %v4929_v37 = vadd.f32 %v4869_v1, %v4670_v7  ;;  %v5176_v52 = vpop.f32.mrf.mxu3  ;;  %v14088_v1 = vshll.u32 %v14087_v27, 16 }
 0x420   : > { %v5696_v14 = vpop.f32.mrf.mxu0  ;;  %5919 = vmatmul.bf16.gmra.mxu1 %v10274_v8 }
 0x421   : > { %v5236_v49 = vadd.f32 %v5176_v52, %v4929_v37  ;;  %v6667_v8 = vrot.slane %v14088_v1, 1  ;;  %v6167_v37 = vor.u32 %v6165_v11, %v6163_v18  ;;  %v9803_v52 = vunpack.c.h.bf16 %v10105_v23  ;;  %v10276_v11 = vld [vmem:[#allocation2 + $0x54] sm:$0xff]  }
 0x423   : > { %v13174_v28 = vadd.f32 %v5694_v54, %v5236_v49  ;;  %v6172_v49 = vsel %vm2287_vm3, %v6167_v37, %v6171_v17  ;;  %v6177_v37 = vshll.u32 %v13193_v60, 16 }
 0x425   : > { %v5882_v43 = vpop.f32.mrf.mxu1 }
 0x426   : > { %v13178_v41 = vadd.f32 %v5882_v43, %v12904_v50  ;;  %v4871_v10 = vpop.f32.mrf.mxu2  ;;  %v6663_v50 = vor.u32 %v14089_v58, %v6659_v20  ;;  %v6173_v58 = vshrl.u32 %v9542_v26, 16  ;;  %v14092_v26 = vshrl.u32 %v14087_v27, 16  ;;  %v9544_v27 = vld [vmem:[#allocation2 + $0x2c] sm:$0xff] }
 0x427   : > { %v4930_v47 = vadd.f32 %v4871_v10, %v4671_v36  ;;  %v5178_v7 = vpop.f32.mrf.mxu3  ;;  %v4672_v36 = vadd.f32 %v9803_v52, %v12991_v35  ;;  %v10106_v10 = vld [vmem:[%s10423_s16 + $0x68] sm:$0xff]   ;;  %v9601_v35 = vld [vmem:[%s13755_s3 + $0x210] sm:$0xff] }
 0x428   : > { %v5699_v54 = vpop.f32.mrf.mxu0  ;;  %v6668_v32 = vsel %vm2287_vm3, %v6663_v50, %v6667_v8  ;;  %7434 = vmatpush.bf16.msra.mxu1 %v9601_v35  ;;  %v6179_v50 = vrot.slane %v6177_v37, 1  ;;  %v6175_v35 = vor.u32 %v6173_v58, %v6171_v17  ;;  %v10278_v58 = vld [vmem:[#allocation2 + $0x5c] sm:$0xff]  }
 0x429   : > { %v5237_v24 = vadd.f32 %v5178_v7, %v4930_v47  ;;  %v9806_v7 = vunpack.c.l.bf16 %v10106_v10 }
 0x42b   : > { %6380 = vmatmul.bf16.gmra.mxu2 %v6172_v49  ;;  %7135 = vmatmul.bf16.gmra.mxu0 %v7023_v3  ;;  %v13195_v20 = vadd.f32 %v5696_v14, %v5237_v24  ;;  %v10325_v49 = vld [vmem:[#allocation2 + $0x2c] sm:$0xff] }
 0x42c   : > { %6876 = vmatmul.bf16.gmra.mxu3 %v6668_v32  ;;  %v7024_v3 = vrot.slane %v10325_v49, 1 }
 0x42d   : > { %v5885_v43 = vpop.f32.mrf.mxu1 }
 0x42e   : > { %v13191_v18 = vadd.f32 %v5885_v43, %v12928_v45  ;;  %v4874_v23 = vpop.f32.mrf.mxu2  ;;  %v4673_v45 = vadd.f32 %v9806_v7, %v13000_v29  ;;  %v9807_v29 = vunpack.c.h.bf16 %v10106_v10  ;;  %v7025_v37 = vsel %vm3154_vm5, %v7022_v31, %v7024_v3 }
 0x42f   : > { %v4931_v25 = vadd.f32 %v4874_v23, %v4672_v36  ;;  %v5181_v6 = vpop.f32.mrf.mxu3  ;;  %v14090_v23 = vld [vmem:[#allocation24_spill] sm:$0xff] }
 0x430   : > { %v5701_v47 = vpop.f32.mrf.mxu0  ;;  %5924 = vmatmul.bf16.gmra.mxu1 %v10276_v11  ;;  %v14091_v11 = vshll.u32 %v14090_v23, 16 }
 0x431   : > { %v5238_v1 = vadd.f32 %v5181_v6, %v4931_v25 }
 0x432   : > { %v6675_v25 = vrot.slane %v14091_v11, 1 }
 0x433   : > { %v13205_v32 = vadd.f32 %v5699_v54, %v5238_v1  ;;  %v4674_v1 = vadd.f32 %v9807_v29, %v13005_v21  ;;  %v6181_v29 = vshrl.u32 %v13193_v60, 16  ;;  %v14095_v60 = vshrl.u32 %v14090_v23, 16  ;;  %v13240_v23 = vld [vmem:[#allocation2 + $0x34] sm:$0xff] }
 0x435   : > { %v5887_v52 = vpop.f32.mrf.mxu1 }
 0x436   : > { %v13203_v14 = vadd.f32 %v5887_v52, %v12957_v48  ;;  %v4876_v24 = vpop.f32.mrf.mxu2  ;;  %v6671_v48 = vor.u32 %v14092_v26, %v6667_v8  ;;  %v6180_v52 = vsel %vm2287_vm3, %v6175_v35, %v6179_v50  ;;  %v6185_v35 = vshll.u32 %v9544_v27, 16 }
 0x437   : > { %v4932_v36 = vadd.f32 %v4876_v24, %v4673_v45  ;;  %v5183_v43 = vpop.f32.mrf.mxu3  ;;  %v10107_v24 = vld [vmem:[%s10423_s16 + $0x70] sm:$0xff]  }
 0x438   : > { %v5704_v6 = vpop.f32.mrf.mxu0  ;;  %v6676_v54 = vsel %vm2287_vm3, %v6671_v48, %v6675_v25 }
 0x439   : > { %v5239_v7 = vadd.f32 %v5183_v43, %v4932_v36  ;;  %v9810_v43 = vunpack.c.l.bf16 %v10107_v24 }
 0x43b   : > { %6385 = vmatmul.bf16.gmra.mxu2 %v6180_v52  ;;  %7140 = vmatmul.bf16.gmra.mxu0 %v7025_v37  ;;  %v13219_v8 = vadd.f32 %v5701_v47, %v5239_v7  ;;  %v4675_v26 = vadd.f32 %v9810_v43, %v13020_v44  ;;  %v6187_v52 = vrot.slane %v6185_v35, 1  ;;  %v10326_v37 = vld [vmem:[#allocation2 + $0x34] sm:$0xff]  ;;  %v6183_v44 = vor.u32 %v6181_v29, %v6179_v50  ;;  %v10280_v29 = vld [vmem:[#allocation2 + $0x64] sm:$0xff]  }
 0x43c   : > { %6881 = vmatmul.bf16.gmra.mxu3 %v6676_v54  ;;  %v7026_v47 = vrot.slane %v10326_v37, 1 }
 0x43d   : > { %v5890_v45 = vpop.f32.mrf.mxu1 }
 0x43e   : > { %v13217_v17 = vadd.f32 %v5890_v45, %v12988_v30  ;;  %v4879_v10 = vpop.f32.mrf.mxu2  ;;  %v14093_v45 = vld [vmem:[#allocation33_spill] sm:$0xff]  ;;  %v7027_v35 = vsel %vm3154_vm5, %v7024_v3, %v7026_v47 }
 0x43f   : > { %v4933_v49 = vadd.f32 %v4879_v10, %v4674_v1  ;;  %v5186_v36 = vpop.f32.mrf.mxu3  ;;  %v14094_v10 = vshll.u32 %v14093_v45, 16 }
 0x440   : > { %v5706_v31 = vpop.f32.mrf.mxu0  ;;  %5929 = vmatmul.bf16.gmra.mxu1 %v10278_v58 }
 0x441   : > { %v5240_v11 = vadd.f32 %v5186_v36, %v4933_v49  ;;  %v6683_v58 = vrot.slane %v14094_v10, 1  ;;  %v9811_v36 = vunpack.c.h.bf16 %v10107_v24 }
 0x443   : > { %v13226_v7 = vadd.f32 %v5704_v6, %v5240_v11  ;;  %v4676_v11 = vadd.f32 %v9811_v36, %v13031_v19 }
 0x445   : > { %v5892_v21 = vpop.f32.mrf.mxu1 }
 0x446   : > { %v13224_v30 = vadd.f32 %v5892_v21, %v12995_v38  ;;  %v4881_v48 = vpop.f32.mrf.mxu2  ;;  %v6679_v38 = vor.u32 %v14095_v60, %v6675_v25  ;;  %v6188_v21 = vsel %vm2287_vm3, %v6183_v44, %v6187_v52  ;;  %v6193_v44 = vshll.u32 %v13240_v23, 16 }
 0x447   : > { %v4934_v54 = vadd.f32 %v4881_v48, %v4675_v26  ;;  %v5188_v1 = vpop.f32.mrf.mxu3  ;;  %v10108_v48 = vld [vmem:[%s10423_s16 + $0x78] sm:$0xff]   ;;  %v6189_v60 = vshrl.u32 %v9544_v27, 16  ;;  %v14098_v27 = vshrl.u32 %v14093_v45, 16 }
 0x448   : > { %v5709_v49 = vpop.f32.mrf.mxu0  ;;  %v6684_v6 = vsel %vm2287_vm3, %v6679_v38, %v6683_v58 }
 0x449   : > { %v5241_v43 = vadd.f32 %v5188_v1, %v4934_v54  ;;  %v9814_v1 = vunpack.c.l.bf16 %v10108_v48 }
 0x44b   : > { %6390 = vmatmul.bf16.gmra.mxu2 %v6188_v21  ;;  %7145 = vmatmul.bf16.gmra.mxu0 %v7027_v35  ;;  %v13242_v25 = vadd.f32 %v5706_v31, %v5241_v43  ;;  %v4677_v19 = vadd.f32 %v9814_v1, %v13040_v56  ;;  %v6195_v21 = vrot.slane %v6193_v44, 1  ;;  %v10327_v35 = vld [vmem:[#allocation2 + $0x3c] sm:$0xff]  ;;  %v9815_v56 = vunpack.c.h.bf16 %v10108_v48  ;;  %v9600_v44 = vld [vmem:[%s13755_s3 + $0x208] sm:$0xff] }
 0x44c   : > { %6886 = vmatmul.bf16.gmra.mxu3 %v6684_v6  ;;  %v7028_v31 = vrot.slane %v10327_v35, 1  ;;  %7435 = vmatpush.bf16.msra.mxu1 %v9600_v44 }
 0x44d   : > { %v5895_v26 = vpop.f32.mrf.mxu1 }
 0x44e   : > { %v13238_v50 = vadd.f32 %v5895_v26, %v13002_v9  ;;  %v4884_v24 = vpop.f32.mrf.mxu2  ;;  %v14096_v26 = vld [vmem:[#allocation36_spill] sm:$0xff] }
 0x44f   : > { %v4935_v37 = vadd.f32 %v4884_v24, %v4676_v11  ;;  %v5191_v3 = vpop.f32.mrf.mxu3  ;;  %v14097_v24 = vshll.u32 %v14096_v26, 16 }
 0x450   : > { %v5711_v54 = vpop.f32.mrf.mxu0  ;;  %5934 = vmatmul.bf16.gmra.mxu1 %v10280_v29 }
 0x451   : > { %v5242_v10 = vadd.f32 %v5191_v3, %v4935_v37  ;;  %v6691_v29 = vrot.slane %v14097_v24, 1  ;;  %v6191_v3 = vor.u32 %v6189_v60, %v6187_v52  ;;  %v4678_v52 = vadd.f32 %v9815_v56, %v13045_v59  ;;  %v10282_v60 = vld [vmem:[#allocation2 + $0x6c] sm:$0xff]  }
 0x452   : > { %v6197_v56 = vshrl.u32 %v13240_v23, 16  ;;  %v14101_v23 = vshrl.u32 %v14096_v26, 16  ;;  %v13287_v26 = vld [vmem:[#allocation2 + $0x44] sm:$0xff] }
 0x453   : > { %v13249_v43 = vadd.f32 %v5709_v49, %v5242_v10  ;;  %v6196_v49 = vsel %vm2287_vm3, %v6191_v3, %v6195_v21  ;;  %v7029_v10 = vsel %vm3154_vm5, %v7026_v47, %v7028_v31 }
 0x455   : > { %v5897_v36 = vpop.f32.mrf.mxu1 }
 0x456   : > { %v13247_v9 = vadd.f32 %v5897_v36, %v13009_v13  ;;  %v4886_v38 = vpop.f32.mrf.mxu2  ;;  %v6687_v13 = vor.u32 %v14098_v27, %v6683_v58  ;;  %v10109_v36 = vld [vmem:[%s10423_s16 + $0x80] sm:$0xff]  }
 0x457   : > { %v4936_v6 = vadd.f32 %v4886_v38, %v4677_v19  ;;  %v5193_v11 = vpop.f32.mrf.mxu3  ;;  %v9546_v38 = vld [vmem:[#allocation2 + $0x3c] sm:$0xff]  ;;  %v9818_v24 = vunpack.c.l.bf16 %v10109_v36 }
 0x458   : > { %v5714_v37 = vpop.f32.mrf.mxu0  ;;  %v6692_v19 = vsel %vm2287_vm3, %v6687_v13, %v6691_v29  ;;  %v6201_v27 = vshll.u32 %v9546_v38, 16 }
 0x459   : > { %v5243_v1 = vadd.f32 %v5193_v11, %v4936_v6  ;;  %v4679_v13 = vadd.f32 %v9818_v24, %v13060_v53  ;;  %v6199_v53 = vor.u32 %v6197_v56, %v6195_v21  ;;  %v10284_v56 = vld [vmem:[#allocation2 + $0x74] sm:$0xff]  }
 0x45b   : > { %6395 = vmatmul.bf16.gmra.mxu2 %v6196_v49  ;;  %7150 = vmatmul.bf16.gmra.mxu0 %v7029_v10  ;;  %v13266_v35 = vadd.f32 %v5711_v54, %v5243_v1  ;;  %v6203_v49 = vrot.slane %v6201_v27, 1  ;;  %v10328_v10 = vld [vmem:[#allocation2 + $0x44] sm:$0xff] }
 0x45c   : > { %6891 = vmatmul.bf16.gmra.mxu3 %v6692_v19  ;;  %v7030_v54 = vrot.slane %v10328_v10, 1 }
 0x45d   : > { %v5900_v48 = vpop.f32.mrf.mxu1 }
 0x45e   : > { %v13264_v45 = vadd.f32 %v5900_v48, %v13022_v51  ;;  %v4889_v58 = vpop.f32.mrf.mxu2  ;;  %v14099_v48 = vld [vmem:[#allocation38_spill] sm:$0xff]  ;;  %v7031_v27 = vsel %vm3154_vm5, %v7028_v31, %v7030_v54 }
 0x45f   : > { %v4937_v6 = vadd.f32 %v4889_v58, %v4678_v52  ;;  %v5196_v47 = vpop.f32.mrf.mxu3  ;;  %v14100_v58 = vshll.u32 %v14099_v48, 16 }
 0x460   : > { %v5716_v11 = vpop.f32.mrf.mxu0  ;;  %5939 = vmatmul.bf16.gmra.mxu1 %v10282_v60 }
 0x461   : > { %v5244_v3 = vadd.f32 %v5196_v47, %v4937_v6  ;;  %v6699_v60 = vrot.slane %v14100_v58, 1  ;;  %v9819_v47 = vunpack.c.h.bf16 %v10109_v36 }
 0x463   : > { %v13273_v1 = vadd.f32 %v5714_v37, %v5244_v3  ;;  %v4680_v3 = vadd.f32 %v9819_v47, %v13068_v2 }
 0x465   : > { %v5902_v59 = vpop.f32.mrf.mxu1 }
 0x466   : > { %v13271_v51 = vadd.f32 %v5902_v59, %v13035_v63  ;;  %v4891_v44 = vpop.f32.mrf.mxu2  ;;  %v6695_v63 = vor.u32 %v14101_v23, %v6691_v29  ;;  %v6204_v59 = vsel %vm2287_vm3, %v6199_v53, %v6203_v49  ;;  %v6209_v53 = vshll.u32 %v13287_v26, 16 }
 0x467   : > { %v4938_v19 = vadd.f32 %v4891_v44, %v4679_v13  ;;  %v5198_v52 = vpop.f32.mrf.mxu3  ;;  %v10110_v44 = vld [vmem:[%s10423_s16 + $0x88] sm:$0xff]   ;;  %v6205_v23 = vshrl.u32 %v9546_v38, 16  ;;  %v14104_v38 = vshrl.u32 %v14099_v48, 16 }
 0x468   : > { %v5719_v6 = vpop.f32.mrf.mxu0  ;;  %v6700_v37 = vsel %vm2287_vm3, %v6695_v63, %v6699_v60 }
 0x469   : > { %v5245_v24 = vadd.f32 %v5198_v52, %v4938_v19  ;;  %v9822_v52 = vunpack.c.l.bf16 %v10110_v44 }
 0x46b   : > { %6400 = vmatmul.bf16.gmra.mxu2 %v6204_v59  ;;  %7155 = vmatmul.bf16.gmra.mxu0 %v7031_v27  ;;  %v13289_v29 = vadd.f32 %v5716_v11, %v5245_v24  ;;  %v4681_v2 = vadd.f32 %v9822_v52, %v13098_v16  ;;  %v6211_v59 = vrot.slane %v6209_v53, 1  ;;  %v10329_v27 = vld [vmem:[#allocation2 + $0x4c] sm:$0xff]  ;;  %v9823_v16 = vunpack.c.h.bf16 %v10110_v44 }
 0x46c   : > { %6896 = vmatmul.bf16.gmra.mxu3 %v6700_v37  ;;  %v7032_v11 = vrot.slane %v10329_v27, 1 }
 0x46d   : > { %v5905_v13 = vpop.f32.mrf.mxu1 }
 0x46e   : > { %v13285_v21 = vadd.f32 %v5905_v13, %v13042_v39  ;;  %v4894_v36 = vpop.f32.mrf.mxu2  ;;  %v14102_v13 = vld [vmem:[#allocation40_spill] sm:$0xff]  ;;  %v7033_v53 = vsel %vm3154_vm5, %v7030_v54, %v7032_v11 }
 0x46f   : > { %v4939_v10 = vadd.f32 %v4894_v36, %v4680_v3  ;;  %v5201_v31 = vpop.f32.mrf.mxu3  ;;  %v14103_v36 = vshll.u32 %v14102_v13, 16 }
 0x470   : > { %v5721_v19 = vpop.f32.mrf.mxu0  ;;  %5944 = vmatmul.bf16.gmra.mxu1 %v10284_v56 }
 0x471   : > { %v5246_v58 = vadd.f32 %v5201_v31, %v4939_v10  ;;  %v6707_v56 = vrot.slane %v14103_v36, 1  ;;  %v6207_v31 = vor.u32 %v6205_v23, %v6203_v49  ;;  %v4682_v49 = vadd.f32 %v9823_v16, %v13123_v5  ;;  %v10286_v23 = vld [vmem:[#allocation2 + $0x7c] sm:$0xff]  }
 0x473   : > { %v13296_v24 = vadd.f32 %v5719_v6, %v5246_v58  ;;  %v9599_v58 = vld [vmem:[%s13755_s3 + $0x200] sm:$0xff] }
 0x474   : > { %7436 = vmatpush.bf16.msra.mxu1 %v9599_v58 }
 0x475   : > { %v5907_v47 = vpop.f32.mrf.mxu1 }
 0x476   : > { %v13294_v39 = vadd.f32 %v5907_v47, %v13049_v40  ;;  %v4896_v63 = vpop.f32.mrf.mxu2  ;;  %v6703_v40 = vor.u32 %v14104_v38, %v6699_v60  ;;  %v6212_v47 = vsel %vm2287_vm3, %v6207_v31, %v6211_v59 }
 0x477   : > { %v4940_v37 = vadd.f32 %v4896_v63, %v4681_v2  ;;  %v5203_v3 = vpop.f32.mrf.mxu3  ;;  %v10111_v2 = vld [vmem:[%s10423_s16 + $0x90] sm:$0xff]  }
 0x478   : > { %v5724_v10 = vpop.f32.mrf.mxu0  ;;  %v6708_v6 = vsel %vm2287_vm3, %v6703_v40, %v6707_v56  ;;  %v9548_v63 = vld [vmem:[#allocation2 + $0x4c] sm:$0xff]  ;;  %v9826_v36 = vunpack.c.l.bf16 %v10111_v2  ;;  %v6213_v40 = vshrl.u32 %v13287_v26, 16  ;;  %v14107_v26 = vshrl.u32 %v14102_v13, 16  ;;  %v9549_v13 = vld [vmem:[#allocation2 + $0x54] sm:$0xff] }
 0x479   : > { %v5247_v52 = vadd.f32 %v5203_v3, %v4940_v37  ;;  %v6217_v38 = vshll.u32 %v9548_v63, 16 }
 0x47a   : > { %v4683_v5 = vadd.f32 %v9826_v36, %v13135_v33  ;;  %v6215_v33 = vor.u32 %v6213_v40, %v6211_v59  ;;  %v10288_v40 = vld [vmem:[#allocation2 + $0x84] sm:$0xff]  }
 0x47b   : > { %6405 = vmatmul.bf16.gmra.mxu2 %v6212_v47  ;;  %7160 = vmatmul.bf16.gmra.mxu0 %v7033_v53  ;;  %v13313_v54 = vadd.f32 %v5721_v19, %v5247_v52  ;;  %v6219_v53 = vrot.slane %v6217_v38, 1 }
 0x47c   : > { %6901 = vmatmul.bf16.gmra.mxu3 %v6708_v6  ;;  %v10330_v6 = vld [vmem:[#allocation2 + $0x54] sm:$0xff] }
 0x47d   : > { %v5910_v44 = vpop.f32.mrf.mxu1  ;;  %v7034_v19 = vrot.slane %v10330_v6, 1 }
 0x47e   : > { %v13311_v48 = vadd.f32 %v5910_v44, %v13062_v55  ;;  %v4899_v60 = vpop.f32.mrf.mxu2  ;;  %v14105_v44 = vld [vmem:[#allocation42_spill] sm:$0xff] }
 0x47f   : > { %v4941_v27 = vadd.f32 %v4899_v60, %v4682_v49  ;;  %v5206_v37 = vpop.f32.mrf.mxu3  ;;  %v14106_v60 = vshll.u32 %v14105_v44, 16  ;;  %v7035_v38 = vsel %vm3154_vm5, %v7032_v11, %v7034_v19 }
 0x480   : > { %v5726_v3 = vpop.f32.mrf.mxu0  ;;  %5949 = vmatmul.bf16.gmra.mxu1 %v10286_v23 }
 0x481   : > { %v5248_v31 = vadd.f32 %v5206_v37, %v4941_v27  ;;  %v6715_v23 = vrot.slane %v14106_v60, 1  ;;  %v9827_v37 = vunpack.c.h.bf16 %v10111_v2 }
 0x483   : > { %v13320_v52 = vadd.f32 %v5724_v10, %v5248_v31  ;;  %v4684_v31 = vadd.f32 %v9827_v37, %v13145_v62  ;;  %v6221_v37 = vshrl.u32 %v9548_v63, 16 }
 0x485   : > { %v5912_v16 = vpop.f32.mrf.mxu1 }
 0x486   : > { %v13318_v55 = vadd.f32 %v5912_v16, %v13072_v61  ;;  %v4901_v47 = vpop.f32.mrf.mxu2  ;;  %v6711_v61 = vor.u32 %v14107_v26, %v6707_v56  ;;  %v6220_v16 = vsel %vm2287_vm3, %v6215_v33, %v6219_v53  ;;  %v6225_v33 = vshll.u32 %v9549_v13, 16 }
 0x487   : > { %v4942_v58 = vadd.f32 %v4901_v47, %v4683_v5  ;;  %v5208_v49 = vpop.f32.mrf.mxu3  ;;  %v4132_v47 = vld [vmem:[%s10423_s16 + $0x98] sm:$0xf] }
 0x488   : > { %v5729_v27 = vpop.f32.mrf.mxu0  ;;  %v6716_v10 = vsel %vm2287_vm3, %v6711_v61, %v6715_v23 }
 0x489   : > { %v5249_v36 = vadd.f32 %v5208_v49, %v4942_v58  ;;  %v4168_v49 = vunpack.c.l.bf16 %v4132_v47 }
 0x48b   : > { %6410 = vmatmul.bf16.gmra.mxu2 %v6220_v16  ;;  %7165 = vmatmul.bf16.gmra.mxu0 %v7035_v38  ;;  %v13334_v56 = vadd.f32 %v5726_v3, %v5249_v36  ;;  %v4685_v26 = vadd.f32 %v13159_v0, %v4168_v49  ;;  %v6227_v16 = vrot.slane %v6225_v33, 1  ;;  %v10331_v38 = vld [vmem:[#allocation2 + $0x5c] sm:$0xff]  ;;  %v14110_v0 = vshrl.u32 %v14105_v44, 16 }
 0x48c   : > { %6906 = vmatmul.bf16.gmra.mxu3 %v6716_v10  ;;  %v7036_v10 = vrot.slane %v10331_v38, 1 }
 0x48d   : > { %v5915_v5 = vpop.f32.mrf.mxu1  ;;  %v6719_v63 = vor.u32 %v14110_v0, %v6715_v23  ;;  %v10332_v0 = vld [vmem:[#allocation2 + $0x64] sm:$0xff] }
 0x48e   : > { %v13332_v59 = vadd.f32 %v5915_v5, %v13106_v15  ;;  %v4904_v2 = vpop.f32.mrf.mxu2  ;;  %v14108_v5 = vld [vmem:[#allocation27_spill] sm:$0xff]  ;;  %v7037_v49 = vsel %vm3154_vm5, %v7034_v19, %v7036_v10 }
 0x48f   : > { %v4943_v6 = vadd.f32 %v4904_v2, %v4684_v31  ;;  %v5211_v58 = vpop.f32.mrf.mxu3  ;;  %v14109_v2 = vshll.u32 %v14108_v5, 16 }
 0x490   : > { %v5731_v11 = vpop.f32.mrf.mxu0  ;;  %5954 = vmatmul.bf16.gmra.mxu1 %v10288_v40 }
 0x491   : > { %v5250_v60 = vadd.f32 %v5211_v58, %v4943_v6  ;;  %v6723_v47 = vrot.slane %v14109_v2, 1  ;;  %v6223_v6 = vor.u32 %v6221_v37, %v6219_v53  ;;  %v9550_v53 = vld [vmem:[#allocation2 + $0x5c] sm:$0xff] }
 0x492   : > { %v6233_v38 = vshll.u32 %v9550_v53, 16 }
 0x493   : > { %v13340_v3 = vadd.f32 %v5729_v27, %v5250_v60  ;;  %v6724_v33 = vsel %vm2287_vm3, %v6719_v63, %v6723_v47  ;;  %v7038_v63 = vrot.slane %v10332_v0, 1 }
 0x495   : > { %v5917_v62 = vpop.f32.mrf.mxu1 }
 0x496   : > { %v13338_v61 = vadd.f32 %v5917_v62, %v13127_v46  ;;  %v4906_v15 = vpop.f32.mrf.mxu2  ;;  %v6228_v46 = vsel %vm2287_vm3, %v6223_v6, %v6227_v16  ;;  %v10289_v62 = vld [vmem:[#allocation2 + $0x8c] sm:$0xff]  }
 0x497   : > { %v4944_v36 = vadd.f32 %v4906_v15, %v4685_v26  ;;  %v5213_v31 = vpop.f32.mrf.mxu3 }
 0x498   : > { %v7131_v40 = vpop.f32.mrf.mxu0 }
 0x499   : > { %v5251_v58 = vadd.f32 %v5213_v31, %v4944_v36  ;;  %v6229_v31 = vshrl.u32 %v9549_v13, 16  ;;  %v14113_v13 = vshrl.u32 %v14108_v5, 16 }
 0x49b   : > { %6415 = vmatmul.bf16.gmra.mxu2 %v6228_v46  ;;  %7170 = vmatmul.bf16.gmra.mxu0 %v7037_v49  ;;  %v13352_v37 = vadd.f32 %v5731_v11, %v5251_v58 }
 0x49c   : > { %6911 = vmatmul.bf16.gmra.mxu3 %v6724_v33 }
 0x49d   : > { %v5920_v27 = vpop.f32.mrf.mxu1 }
 0x49e   : > { %v13350_v60 = vadd.f32 %v5920_v27, %v13132_v4  ;;  %v6376_v26 = vpop.f32.mrf.mxu2  ;;  %v6235_v4 = vrot.slane %v6233_v38, 1 }
 0x49f   : > { %v6466_v44 = vadd.f32 %v6376_v26, %v13172_v12  ;;  %v6872_v23 = vpop.f32.mrf.mxu3  ;;  %v14111_v12 = vld [vmem:[#allocation16_spill] sm:$0xff]  ;;  %v6231_v26 = vor.u32 %v6229_v31, %v6227_v16 }
 0x4a0   : > { %5959 = vmatmul.bf16.gmra.mxu1 %v10289_v62  ;;  %v7133_v15 = vpop.f32.mrf.mxu0  ;;  %v14112_v49 = vshll.u32 %v14111_v12, 16 }
 0x4a1   : > { %v6962_v19 = vadd.f32 %v6872_v23, %v6466_v44  ;;  %v6727_v44 = vor.u32 %v14113_v13, %v6723_v47  ;;  %v7039_v23 = vsel %vm3154_vm5, %v7036_v10, %v7038_v63 }
 0x4a2   : > { %v6731_v33 = vrot.slane %v14112_v49, 1 }
 0x4a3   : > { %v13358_v46 = vadd.f32 %v7131_v40, %v6962_v19 }
 0x4a4   : > { %v6732_v40 = vsel %vm2287_vm3, %v6727_v44, %v6731_v33 }
 0x4a5   : > { %v5922_v36 = vpop.f32.mrf.mxu1 }
 0x4a6   : > { %v13356_v2 = vadd.f32 %v5922_v36, %v13142_v22  ;;  %v6378_v6 = vpop.f32.mrf.mxu2  ;;  %v6236_v22 = vsel %vm2287_vm3, %v6231_v26, %v6235_v4  ;;  %v9551_v36 = vld [vmem:[#allocation2 + $0x64] sm:$0xff]  ;;  %v10333_v26 = vld [vmem:[#allocation2 + $0x6c] sm:$0xff] }
 0x4a7   : > { %v6467_v11 = vadd.f32 %v6378_v6, %v13178_v41  ;;  %v6874_v58 = vpop.f32.mrf.mxu3  ;;  %v6241_v6 = vshll.u32 %v9551_v36, 16  ;;  %v7040_v13 = vrot.slane %v10333_v26, 1 }
 0x4a8   : > { %v7136_v27 = vpop.f32.mrf.mxu0 }
 0x4a9   : > { %v6963_v62 = vadd.f32 %v6874_v58, %v6467_v11  ;;  %v6237_v11 = vshrl.u32 %v9550_v53, 16  ;;  %v14116_v53 = vshrl.u32 %v14111_v12, 16 }
 0x4ab   : > { %6420 = vmatmul.bf16.gmra.mxu2 %v6236_v22  ;;  %7175 = vmatmul.bf16.gmra.mxu0 %v7039_v23  ;;  %v13371_v16 = vadd.f32 %v7133_v15, %v6963_v62  ;;  %v14114_v62 = vld [vmem:[#allocation29_spill] sm:$0xff] }
 0x4ac   : > { %6916 = vmatmul.bf16.gmra.mxu3 %v6732_v40  ;;  %v14115_v22 = vshll.u32 %v14114_v62, 16  ;;  %v6239_v40 = vor.u32 %v6237_v11, %v6235_v4 }
 0x4ad   : > { %v5925_v41 = vpop.f32.mrf.mxu1 }
 0x4ae   : > { %v13369_v19 = vadd.f32 %v5925_v41, %v13156_v34  ;;  %v6381_v38 = vpop.f32.mrf.mxu2  ;;  %v6243_v34 = vrot.slane %v6241_v6, 1  ;;  %v9552_v6 = vld [vmem:[#allocation2 + $0x6c] sm:$0xff] }
 0x4af   : > { %v6468_v5 = vadd.f32 %v6381_v38, %v13191_v18  ;;  %v6877_v47 = vpop.f32.mrf.mxu3  ;;  %v6735_v38 = vor.u32 %v14116_v53, %v6731_v33 }
 0x4b0   : > { %5964 = vmatmul.bf16.gmra.mxu1 %v12920_v57  ;;  %v7138_v31 = vpop.f32.mrf.mxu0  ;;  %v6739_v57 = vrot.slane %v14115_v22, 1 }
 0x4b1   : > { %v6964_v10 = vadd.f32 %v6877_v47, %v6468_v5  ;;  %v7041_v5 = vsel %vm3154_vm5, %v7038_v63, %v7040_v13 }
 0x4b3   : > { %v13378_v44 = vadd.f32 %v7136_v27, %v6964_v10  ;;  %v6740_v27 = vsel %vm2287_vm3, %v6735_v38, %v6739_v57 }
 0x4b5   : > { %v5927_v0 = vpop.f32.mrf.mxu1 }
 0x4b6   : > { %v13376_v58 = vadd.f32 %v5927_v0, %v13167_v42  ;;  %v6383_v49 = vpop.f32.mrf.mxu2  ;;  %v6244_v42 = vsel %vm2287_vm3, %v6239_v40, %v6243_v34  ;;  %v14117_v0 = vld [vmem:[#allocation22_spill] sm:$0xff]  ;;  %v10334_v40 = vld [vmem:[#allocation2 + $0x74] sm:$0xff] }
 0x4b7   : > { %v6469_v15 = vadd.f32 %v6383_v49, %v13203_v14  ;;  %v6879_v18 = vpop.f32.mrf.mxu3  ;;  %v6249_v49 = vshll.u32 %v9552_v6, 16  ;;  %v7042_v53 = vrot.slane %v10334_v40, 1 }
 0x4b8   : > { %v7141_v23 = vpop.f32.mrf.mxu0 }
 0x4b9   : > { %v6965_v41 = vadd.f32 %v6879_v18, %v6469_v15  ;;  %v6245_v15 = vshrl.u32 %v9551_v36, 16 }
 0x4bb   : > { %6425 = vmatmul.bf16.gmra.mxu2 %v6244_v42  ;;  %7180 = vmatmul.bf16.gmra.mxu0 %v7041_v5  ;;  %v13391_v4 = vadd.f32 %v7138_v31, %v6965_v41  ;;  %v14118_v41 = vld [vmem:[#allocation32_spill] sm:$0xff] }
 0x4bc   : > { %6921 = vmatmul.bf16.gmra.mxu3 %v6740_v27  ;;  %v14119_v42 = vshll.u32 %v14118_v41, 16  ;;  %v6247_v27 = vor.u32 %v6245_v15, %v6243_v34  ;;  %v9553_v34 = vld [vmem:[#allocation2 + $0x74] sm:$0xff] }
 0x4bd   : > { %v5930_v14 = vpop.f32.mrf.mxu1  ;;  %v6257_v15 = vshll.u32 %v9553_v34, 16 }
 0x4be   : > { %v13389_v47 = vadd.f32 %v5930_v14, %v13174_v28  ;;  %v6386_v10 = vpop.f32.mrf.mxu2  ;;  %v6251_v28 = vrot.slane %v6249_v49, 1  ;;  %v6747_v5 = vrot.slane %v14119_v42, 1 }
 0x4bf   : > { %v6470_v12 = vadd.f32 %v6386_v10, %v13217_v17  ;;  %v6882_v33 = vpop.f32.mrf.mxu3  ;;  %v14120_v10 = vshrl.u32 %v14114_v62, 16 }
 0x4c0   : > { %7437 = vmatmul.bf16.vlgmr.msra.gmra.mxu1 %v14117_v0  ;;  %v7143_v63 = vpop.f32.mrf.mxu0 }
 0x4c1   : > { %v6966_v11 = vadd.f32 %v6882_v33, %v6470_v12  ;;  %v6743_v36 = vor.u32 %v14120_v10, %v6739_v57  ;;  %v7043_v12 = vsel %vm3154_vm5, %v7040_v13, %v7042_v53 }
 0x4c3   : > { %v13398_v38 = vadd.f32 %v7141_v23, %v6966_v11  ;;  %v6748_v23 = vsel %vm2287_vm3, %v6743_v36, %v6747_v5 }
 0x4c5   : > { %v5932_v26 = vpop.f32.mrf.mxu1 }
 0x4c6   : > { %v13396_v18 = vadd.f32 %v5932_v26, %v13195_v20  ;;  %v6388_v22 = vpop.f32.mrf.mxu2  ;;  %v6252_v20 = vsel %vm2287_vm3, %v6247_v27, %v6251_v28  ;;  %v14121_v26 = vld [vmem:[#allocation30_spill] sm:$0xff]  ;;  %v10335_v27 = vld [vmem:[#allocation2 + $0x7c] sm:$0xff] }
 0x4c7   : > { %v6471_v31 = vadd.f32 %v6388_v22, %v13224_v30  ;;  %v6884_v17 = vpop.f32.mrf.mxu3  ;;  %v7044_v10 = vrot.slane %v10335_v27, 1  ;;  %v6261_v27 = vshrl.u32 %v9553_v34, 16 }
 0x4c8   : > { %v7146_v33 = vpop.f32.mrf.mxu0 }
 0x4c9   : > { %v6967_v14 = vadd.f32 %v6884_v17, %v6471_v31  ;;  %v6253_v31 = vshrl.u32 %v9552_v6, 16 }
 0x4cb   : > { %6430 = vmatmul.bf16.gmra.mxu2 %v6252_v20  ;;  %7185 = vmatmul.bf16.gmra.mxu0 %v7043_v12  ;;  %v13411_v49 = vadd.f32 %v7143_v63, %v6967_v14  ;;  %v14122_v14 = vld [vmem:[#allocation7_spill] sm:$0xff] }
 0x4cc   : > { %6926 = vmatmul.bf16.gmra.mxu3 %v6748_v23  ;;  %v14123_v20 = vshll.u32 %v14122_v14, 16  ;;  %v6255_v23 = vor.u32 %v6253_v31, %v6251_v28  ;;  %v14128_v34 = vshrl.u32 %v14122_v14, 16 }
 0x4cd   : > { %v5935_v30 = vpop.f32.mrf.mxu1 }
 0x4ce   : > { %v13409_v0 = vadd.f32 %v5935_v30, %v13205_v32  ;;  %v6391_v11 = vpop.f32.mrf.mxu2  ;;  %v6259_v32 = vrot.slane %v6257_v15, 1  ;;  %v6755_v12 = vrot.slane %v14123_v20, 1  ;;  %v10336_v20 = vld [vmem:[#allocation2 + $0x84] sm:$0xff] }
 0x4cf   : > { %v6472_v62 = vadd.f32 %v6391_v11, %v13238_v50  ;;  %v6887_v57 = vpop.f32.mrf.mxu3  ;;  %v14124_v11 = vshrl.u32 %v14118_v41, 16 }
 0x4d0   : > { %7442 = vmatmul.bf16.gmra.mxu1 %v14121_v26  ;;  %v7148_v22 = vpop.f32.mrf.mxu0 }
 0x4d1   : > { %v6968_v13 = vadd.f32 %v6887_v57, %v6472_v62  ;;  %v6751_v6 = vor.u32 %v14124_v11, %v6747_v5  ;;  %v7045_v62 = vsel %vm3154_vm5, %v7042_v53, %v7044_v10 }
 0x4d3   : > { %v13418_v36 = vadd.f32 %v7146_v33, %v6968_v13  ;;  %v6756_v57 = vsel %vm2287_vm3, %v6751_v6, %v6755_v12  ;;  %v9554_v13 = vld [vmem:[#allocation2 + $0x7c] sm:$0xff] }
 0x4d4   : > { %v6265_v31 = vshll.u32 %v9554_v13, 16 }
 0x4d5   : > { %v5937_v40 = vpop.f32.mrf.mxu1 }
 0x4d6   : > { %v13416_v17 = vadd.f32 %v5937_v40, %v13219_v8  ;;  %v6393_v42 = vpop.f32.mrf.mxu2  ;;  %v6260_v8 = vsel %vm2287_vm3, %v6255_v23, %v6259_v32  ;;  %v14125_v40 = vld [vmem:[#allocation34_spill] sm:$0xff]  ;;  %v7046_v23 = vrot.slane %v10336_v20, 1  ;;  %v6269_v20 = vshrl.u32 %v9554_v13, 16 }
 0x4d7   : > { %v6473_v63 = vadd.f32 %v6393_v42, %v13247_v9  ;;  %v6889_v50 = vpop.f32.mrf.mxu3 }
 0x4d8   : > { %v7151_v15 = vpop.f32.mrf.mxu0 }
 0x4d9   : > { %v6969_v30 = vadd.f32 %v6889_v50, %v6473_v63 }
 0x4db   : > { %6435 = vmatmul.bf16.gmra.mxu2 %v6260_v8  ;;  %7190 = vmatmul.bf16.gmra.mxu0 %v7045_v62  ;;  %v13431_v28 = vadd.f32 %v7148_v22, %v6969_v30  ;;  %v6263_v62 = vor.u32 %v6261_v27, %v6259_v32  ;;  %v9555_v32 = vld [vmem:[#allocation2 + $0x84] sm:$0xff] }
 0x4dc   : > { %6931 = vmatmul.bf16.gmra.mxu3 %v6756_v57 }
 0x4dd   : > { %v5940_v33 = vpop.f32.mrf.mxu1 }
 0x4de   : > { %v13429_v9 = vadd.f32 %v5940_v33, %v13226_v7  ;;  %v6396_v26 = vpop.f32.mrf.mxu2  ;;  %v6267_v7 = vrot.slane %v6265_v31, 1  ;;  %v14129_v31 = vld [vmem:[#allocation35_spill] sm:$0xff] }
 0x4df   : > { %v6474_v41 = vadd.f32 %v6396_v26, %v13264_v45  ;;  %v6892_v5 = vpop.f32.mrf.mxu3  ;;  %v14126_v45 = vld [vmem:[#allocation11_spill] sm:$0xff]  ;;  %v6759_v26 = vor.u32 %v14128_v34, %v6755_v12 }
 0x4e0   : > { %7447 = vmatmul.bf16.gmra.mxu1 %v14125_v40  ;;  %v14127_v6 = vshll.u32 %v14126_v45, 16  ;;  %v7153_v57 = vpop.f32.mrf.mxu0 }
 0x4e1   : > { %v6970_v53 = vadd.f32 %v6892_v5, %v6474_v41  ;;  %v7047_v41 = vsel %vm3154_vm5, %v7044_v10, %v7046_v23  ;;  %v6273_v10 = vshll.u32 %v9555_v32, 16 }
 0x4e2   : > { %v6763_v8 = vrot.slane %v14127_v6, 1  ;;  %v10337_v6 = vld [vmem:[#allocation2 + $0x8c] sm:$0xff] }
 0x4e3   : > { %v13438_v11 = vadd.f32 %v7151_v15, %v6970_v53 }
 0x4e4   : > { %v6764_v15 = vsel %vm2287_vm3, %v6759_v26, %v6763_v8 }
 0x4e5   : > { %v5942_v42 = vpop.f32.mrf.mxu1 }
 0x4e6   : > { %v13436_v63 = vadd.f32 %v5942_v42, %v13242_v25  ;;  %v6398_v50 = vpop.f32.mrf.mxu2  ;;  %v6268_v25 = vsel %vm2287_vm3, %v6263_v62, %v6267_v7  ;;  %v7048_v62 = vrot.slane %v10337_v6, 1  ;;  %v14134_v6 = vld [vmem:[#allocation13_spill] sm:$0xff] }
 0x4e7   : > { %v6475_v22 = vadd.f32 %v6398_v50, %v13271_v51  ;;  %v6894_v30 = vpop.f32.mrf.mxu3 }
 0x4e8   : > { %v7156_v27 = vpop.f32.mrf.mxu0 }
 0x4e9   : > { %v6971_v33 = vadd.f32 %v6894_v30, %v6475_v22 }
 0x4eb   : > { %6440 = vmatmul.bf16.gmra.mxu2 %v6268_v25  ;;  %7195 = vmatmul.bf16.gmra.mxu0 %v7047_v41  ;;  %v13451_v53 = vadd.f32 %v7153_v57, %v6971_v33  ;;  %v6271_v41 = vor.u32 %v6269_v20, %v6267_v7  ;;  %v10338_v20 = vld [vmem:[#allocation2 + $0x94] sm:$0xff] }
 0x4ec   : > { %6936 = vmatmul.bf16.gmra.mxu3 %v6764_v15 }
 0x4ed   : > { %v5945_v51 = vpop.f32.mrf.mxu1 }
 0x4ee   : > { %v13449_v5 = vadd.f32 %v5945_v51, %v13249_v43  ;;  %v6401_v40 = vpop.f32.mrf.mxu2  ;;  %v6275_v43 = vrot.slane %v6273_v10, 1  ;;  %v14132_v51 = vshrl.u32 %v14126_v45, 16  ;;  %v14133_v10 = vld [vmem:[#allocation37_spill] sm:$0xff] }
 0x4ef   : > { %v6476_v14 = vadd.f32 %v6401_v40, %v13285_v21  ;;  %v6897_v12 = vpop.f32.mrf.mxu3  ;;  %v14130_v21 = vld [vmem:[#allocation12_spill] sm:$0xff]  ;;  %v7049_v40 = vsel %vm3154_vm5, %v7046_v23, %v7048_v62  ;;  %v6277_v23 = vshrl.u32 %v9555_v32, 16 }
 0x4f0   : > { %7452 = vmatmul.bf16.gmra.mxu1 %v14129_v31  ;;  %v14131_v33 = vshll.u32 %v14130_v21, 16  ;;  %v6767_v13 = vor.u32 %v14132_v51, %v6763_v8 }
 0x4f1   : > { %v6972_v42 = vadd.f32 %v6897_v12, %v6476_v14  ;;  %v7158_v12 = vpop.f32.mrf.mxu0 }
 0x4f2   : > { %v6771_v26 = vrot.slane %v14131_v33, 1 }
 0x4f3   : > { %v13458_v34 = vadd.f32 %v7156_v27, %v6972_v42  ;;  %v9556_v42 = vld [vmem:[#allocation2 + $0x8c] sm:$0xff] }
 0x4f4   : > { %v6772_v14 = vsel %vm2287_vm3, %v6767_v13, %v6771_v26  ;;  %v6281_v45 = vshll.u32 %v9556_v42, 16 }
 0x4f5   : > { %v5947_v50 = vpop.f32.mrf.mxu1 }
 0x4f6   : > { %v13456_v22 = vadd.f32 %v5947_v50, %v13266_v35  ;;  %v6403_v30 = vpop.f32.mrf.mxu2  ;;  %v6276_v35 = vsel %vm2287_vm3, %v6271_v41, %v6275_v43  ;;  %v6283_v50 = vrot.slane %v6281_v45, 1 }
 0x4f7   : > { %v6477_v57 = vadd.f32 %v6403_v30, %v13294_v39  ;;  %v6899_v25 = vpop.f32.mrf.mxu3  ;;  %v7050_v30 = vrot.slane %v10338_v20, 1 }
 0x4f9   : > { %v6973_v15 = vadd.f32 %v6899_v25, %v6477_v57  ;;  %v14135_v57 = vshll.u32 %v14134_v6, 16  ;;  %v6279_v25 = vor.u32 %v6277_v23, %v6275_v43  ;;  %v7051_v51 = vsel %vm3154_vm5, %v7048_v62, %v7050_v30  ;;  %v293_v43 = vld [vmem:[#allocation2 + $0xa4] sm:$0x3]  ;;  %v14139_v23 = vld [vmem:[#allocation44_spill] sm:$0xff] }
 0x4fa   : > { %v14140_v20 = vshll.u32 %v14139_v23, 16 }
 0x4fb   : > { %6445 = vmatmul.bf16.gmra.mxu2 %v6276_v35  ;;  %7200 = vmatmul.bf16.gmra.mxu0 %v7049_v40  ;;  %v13471_v7 = vadd.f32 %v7158_v12, %v6973_v15  ;;  %v6779_v33 = vrot.slane %v14135_v57, 1  ;;  %v6284_v15 = vsel %vm2287_vm3, %v6279_v25, %v6283_v50  ;;  %v9557_v35 = vld [vmem:[#allocation2 + $0x94] sm:$0xff]  ;;  %v6285_v12 = vshrl.u32 %v9556_v42, 16  ;;  %v6042_v25 = vld [vmem:[#allocation2 + $0x9c] sm:$0x1] }
 0x4fc   : > { %6941 = vmatmul.bf16.gmra.mxu3 %v6772_v14  ;;  %v6289_v40 = vshll.u32 %v9557_v35, 16  ;;  %v6787_v57 = vrot.slane %v14140_v20, 1 }
 0x4fd   : > { %v5950_v39 = vpop.f32.mrf.mxu1 }
 0x4fe   : > { %v13469_v31 = vadd.f32 %v5950_v39, %v13273_v1  ;;  %v14136_v1 = vshrl.u32 %v14130_v21, 16  ;;  %v14137_v21 = vld [vmem:[#allocation39_spill] sm:$0xff]  ;;  %v6291_v39 = vrot.slane %v6289_v40, 1  ;;  %v6293_v40 = vshrl.u32 %v9557_v35, 16 }
 0x500   : > { %7457 = vmatmul.bf16.gmra.mxu1 %v14133_v10  ;;  %v6775_v41 = vor.u32 %v14136_v1, %v6771_v26  ;;  %v294_v26 = vsel %vm292_vm11, 0, %v293_v43  ;;  %v10339_v10 = vld [vmem:[#allocation2 + $0x9c] sm:$0xff]  ;;  %v6287_v1 = vor.u32 %v6285_v12, %v6283_v50  ;;  %v6295_v20 = vor.u32 %v6293_v40, %v6291_v39 }
 0x501   : > { %295 = vst [vmem:[#allocation2 + $0xa4] sm:$0x3] %v294_v26  ;;  %v7052_v45 = vrot.slane %v10339_v10, 1 }
 0x502   : > { %v6780_v13 = vsel %vm2287_vm3, %v6775_v41, %v6779_v33 }
 0x505   : > { %v5952_v8 = vpop.f32.mrf.mxu1 }
 0x506   : > { %v13475_v27 = vadd.f32 %v5952_v8, %v13289_v29 }
 0x508   : > { %v6538_v41 = vld [vmem:[#allocation2 + $0xa4] sm:$0x1] }
 0x50b   : > { %6450 = vmatmul.bf16.gmra.mxu2 %v6284_v15  ;;  %7205 = vmatmul.bf16.gmra.mxu0 %v7051_v51  ;;  %v6629_v15 = vunpack.c.l.b16 %v6538_v41  ;;  %v6292_v51 = vsel %vm2287_vm3, %v6287_v1, %v6291_v39  ;;  %v13520_v39 = vld [vmem:[%s13757_s5] ss:$0 sm:$0xff] }
 0x50c   : > { %6946 = vmatmul.bf16.gmra.mxu3 %v6780_v13  ;;  %v7053_v13 = vsel %vm3154_vm5, %v7050_v30, %v7052_v45  ;;  %v14142_v30 = vshrl.u32 %v14139_v23, 16  ;;  %v14143_v23 = vld [vmem:[#allocation43_spill] sm:$0xff] }
 0x50d   : > { %v5955_v29 = vpop.f32.mrf.mxu1 }
 0x50e   : > { %v13485_v32 = vadd.f32 %v5955_v29, %v13296_v24  ;;  %v14138_v24 = vshrl.u32 %v14134_v6, 16  ;;  %v6648_v6 = vpack.c.b16 %v6629_v15, %v6629_v15  ;;  %v6791_v10 = vor.u32 %v14142_v30, %v6787_v57 }
 0x510   : > { %7462 = vmatmul.bf16.gmra.mxu1 %v14137_v21  ;;  %v6783_v8 = vor.u32 %v14138_v24, %v6779_v33  ;;  %v14141_v21 = vld [vmem:[#allocation41_spill] sm:$0xff]  ;;  %v6793_v50 = vshll.u32 %v6648_v6, 16 }
 0x512   : > { %v6788_v42 = vsel %vm2287_vm3, %v6783_v8, %v6787_v57  ;;  %v6795_v24 = vrot.slane %v6793_v50, 1 }
 0x514   : > { %v6796_v1 = vsel %vm2287_vm3, %v6791_v10, %v6795_v24  ;;  %v14145_v24 = vld [vmem:[#allocation17_spill] sm:$0xff] }
 0x515   : > { %v5957_v62 = vpop.f32.mrf.mxu1 }
 0x516   : > { %v13489_v14 = vadd.f32 %v5957_v62, %v13313_v54  ;;  %v6133_v54 = vunpack.c.l.b16 %v6042_v25  ;;  %v7054_v62 = vrot.slane %v6648_v6, 1 }
 0x518   : > { %v6152_v43 = vpack.c.b16 %v6133_v54, %v6133_v54  ;;  %v14144_v54 = vld [vmem:[#allocation3_spill] sm:$0xff] }
 0x51a   : > { %v6297_v26 = vshll.u32 %v6152_v43, 16 }
 0x51b   : > { %6455 = vmatmul.bf16.gmra.mxu2 %v6292_v51  ;;  %7210 = vmatmul.bf16.gmra.mxu0 %v7053_v13 }
 0x51c   : > { %6951 = vmatmul.bf16.gmra.mxu3 %v6788_v42  ;;  %v6299_v25 = vrot.slane %v6297_v26, 1 }
 0x51d   : > { %v5960_v29 = vpop.f32.mrf.mxu1 }
 0x51e   : > { %v13499_v33 = vadd.f32 %v5960_v29, %v13320_v52  ;;  %v7055_v52 = vsel %vm3154_vm5, %v7052_v45, %v7054_v62  ;;  %v6300_v41 = vsel %vm2287_vm3, %v6295_v20, %v6299_v25 }
 0x520   : > { %7467 = vmatmul.bf16.gmra.mxu1 %v14141_v21  ;;  %v7762_v21 = vpop.permute.xlu0 %7761 }
 0x525   : > { %v5962_v12 = vpop.f32.mrf.mxu1 }
 0x526   : > { %v13505_v8 = vadd.f32 %v5962_v12, %v13334_v56 }
 0x52b   : > { %6460 = vmatmul.bf16.gmra.mxu2 %v6300_v41  ;;  %7215 = vmatmul.bf16.gmra.mxu0 %v7055_v52 }
 0x52c   : > { %6956 = vmatmul.bf16.gmra.mxu3 %v6796_v1 }
 0x52d   : > { %v5965_v35 = vpop.f32.mrf.mxu1 }
 0x52e   : > { %v13511_v15 = vadd.f32 %v5965_v35, %v13340_v3  ;;  %v13526_v3 = vld [vmem:[%s13758_s6] ss:$0 sm:$0xff]  ;;  %v7767_v35 = vpop.permute.xlu1 %7766 }
 0x530   : > { %7472 = vmatmul.bf16.gmra.mxu1 %v14143_v23  ;;  %v7772_v23 = vpop.permute.xlu2 %7771 }
 0x535   : > { %v5967_v57 = vpop.f32.mrf.mxu1 }
 0x536   : > { %v13515_v56 = vadd.f32 %v5967_v57, %v13352_v37 }
 0x53d   : > { %v7438_v45 = vpop.f32.mrf.mxu1 }
 0x53e   : > { %v7528_v51 = vadd.f32 %v7438_v45, %v13358_v46 }
 0x540   : > { %v7568_v13 = vmul.f32 %v13520_v39, %v7528_v51  ;;  %7477 = vmatmul.bf16.gmra.mxu1 %v14144_v54 }
 0x542   : > { %v7608_v37 = vadd.f32 %v13526_v3, %v7568_v13 }
 0x544   : > { %v7644_v42 = vmul.f32 0.01, %v7608_v37 }
 0x545   : > { %v7440_v29 = vpop.f32.mrf.mxu1 }
 0x546   : > { %v7680_v6 = vmax.f32 %v7608_v37, %v7644_v42  ;;  %v7529_v43 = vadd.f32 %v7440_v29, %v13371_v16 }
 0x548   : > { %v7939_v50 = vmul.f32 %v7762_v21, %v7680_v6  ;;  %v7569_v46 = vmul.f32 %v13520_v39, %v7529_v43  ;;  %v14146_v6 = vld [vmem:[#allocation21_spill] sm:$0xff]  ;;  %v13547_v43 = vpop.f32.mrf.mxu2 }
 0x54a   : > { %v7975_v26 = vpack.c.bf16 %v7939_v50, %v7939_v50  ;;  %v7609_v40 = vadd.f32 %v13526_v3, %v7569_v46 }
 0x54c   : > { %8011 = vst [vmem:[%s11004_s17 + $0xc] sm:$0xf] %v7975_v26  ;;  %v7645_v30 = vmul.f32 0.01, %v7609_v40 }
 0x54d   : > { %v7443_v62 = vpop.f32.mrf.mxu1 }
 0x54e   : > { %v7530_v12 = vadd.f32 %v7443_v62, %v13378_v44  ;;  %v7681_v16 = vmax.f32 %v7609_v40, %v7645_v30  ;;  %v7777_v62 = vpop.permute.xlu0 %7776 }
 0x550   : > { %v7570_v10 = vmul.f32 %v13520_v39, %v7530_v12  ;;  %7482 = vmatmul.bf16.gmra.mxu1 %v14145_v24  ;;  %v7940_v57 = vmul.f32 %v7767_v35, %v7681_v16  ;;  %v7782_v12 = vpop.permute.xlu1 %7781  ;;  %v13551_v24 = vpop.f32.mrf.mxu3 }
 0x551   : > { %v13553_v16 = vpop.f32.mrf.mxu0 }
 0x552   : > { %v7610_v20 = vadd.f32 %v13526_v3, %v7570_v10 }
 0x554   : > { %v7646_v25 = vmul.f32 0.01, %v7610_v20 }
 0x555   : > { %v7445_v52 = vpop.f32.mrf.mxu1 }
 0x556   : > { %v7682_v1 = vmax.f32 %v7610_v20, %v7646_v25  ;;  %v7531_v41 = vadd.f32 %v7445_v52, %v13391_v4  ;;  %v13557_v52 = vpop.f32.mrf.mxu2 }
 0x558   : > { %v7941_v45 = vmul.f32 %v7772_v23, %v7682_v1  ;;  %v7571_v44 = vmul.f32 %v13520_v39, %v7531_v41  ;;  %v14147_v23 = vld [vmem:[#allocation26_spill] sm:$0xff] }
 0x55a   : > { %v9899_v51 = vpack.c.bf16 %v7941_v45, %v7940_v57  ;;  %v7611_v13 = vadd.f32 %v13526_v3, %v7571_v44  ;;  %v13563_v45 = vpop.f32.mrf.mxu3 }
 0x55c   : > { %10209 = vst [vmem:[%s11004_s17 + $0x10] sm:$0xff] %v9899_v51   ;;  %v7647_v42 = vmul.f32 0.01, %v7611_v13 }
 0x55d   : > { %v7448_v54 = vpop.f32.mrf.mxu1 }
 0x55e   : > { %v7532_v37 = vadd.f32 %v7448_v54, %v13398_v38  ;;  %v7683_v21 = vmax.f32 %v7611_v13, %v7647_v42  ;;  %v7792_v54 = vpop.permute.xlu0 %7791 }
 0x560   : > { %v7572_v29 = vmul.f32 %v13520_v39, %v7532_v37  ;;  %7487 = vmatmul.bf16.gmra.mxu1 %v14146_v6  ;;  %v7942_v30 = vmul.f32 %v7777_v62, %v7683_v21  ;;  %v13565_v37 = vpop.f32.mrf.mxu0  ;;  %v13568_v6 = vpop.f32.mrf.mxu2 }
 0x562   : > { %v7612_v4 = vadd.f32 %v13526_v3, %v7572_v29 }
 0x564   : > { %v7648_v50 = vmul.f32 0.01, %v7612_v4 }
 0x565   : > { %v7450_v46 = vpop.f32.mrf.mxu1 }
 0x566   : > { %v7684_v26 = vmax.f32 %v7612_v4, %v7648_v50  ;;  %v7533_v40 = vadd.f32 %v7450_v46, %v13411_v49 }
 0x568   : > { %v7943_v38 = vmul.f32 %v7782_v12, %v7684_v26  ;;  %v7573_v10 = vmul.f32 %v13520_v39, %v7533_v40  ;;  %v13573_v40 = vpop.f32.mrf.mxu3 }
 0x56a   : > { %v9904_v20 = vpack.c.bf16 %v7943_v38, %v7942_v30  ;;  %v7613_v25 = vadd.f32 %v13526_v3, %v7573_v10  ;;  %v13576_v30 = vpop.f32.mrf.mxu0  ;;  %v14148_v10 = vld [vmem:[#allocation9_spill] sm:$0xff] }
 0x56c   : > { %10210 = vst [vmem:[%s11004_s17 + $0x18] sm:$0xff] %v9904_v20   ;;  %v7649_v49 = vmul.f32 0.01, %v7613_v25  ;;  %v13580_v20 = vpop.f32.mrf.mxu2 }
 0x56d   : > { %v7453_v1 = vpop.f32.mrf.mxu1 }
 0x56e   : > { %v7534_v41 = vadd.f32 %v7453_v1, %v13418_v36  ;;  %v7685_v44 = vmax.f32 %v7613_v25, %v7649_v49  ;;  %v7787_v36 = vpop.permute.xlu2 %7786 }
 0x570   : > { %v7574_v35 = vmul.f32 %v13520_v39, %v7534_v41  ;;  %7492 = vmatmul.bf16.gmra.mxu1 %v14147_v23  ;;  %v7944_v4 = vmul.f32 %v7787_v36, %v7685_v44  ;;  %v13584_v44 = vpop.f32.mrf.mxu3 }
 0x572   : > { %v7614_v57 = vadd.f32 %v13526_v3, %v7574_v35  ;;  %v7797_v35 = vpop.permute.xlu1 %7796 }
 0x574   : > { %v7650_v51 = vmul.f32 0.01, %v7614_v57  ;;  %v13589_v36 = vpop.f32.mrf.mxu2 }
 0x575   : > { %v7455_v13 = vpop.f32.mrf.mxu1 }
 0x576   : > { %v7686_v42 = vmax.f32 %v7614_v57, %v7650_v51  ;;  %v7535_v29 = vadd.f32 %v7455_v13, %v13431_v28 }
 0x578   : > { %v7945_v21 = vmul.f32 %v7792_v54, %v7686_v42  ;;  %v7575_v50 = vmul.f32 %v13520_v39, %v7535_v29  ;;  %v13587_v42 = vpop.f32.mrf.mxu0 }
 0x57a   : > { %v9909_v46 = vpack.c.bf16 %v7945_v21, %v7944_v4  ;;  %v7615_v26 = vadd.f32 %v13526_v3, %v7575_v50 }
 0x57c   : > { %10211 = vst [vmem:[%s11004_s17 + $0x20] sm:$0xff] %v9909_v46   ;;  %v7651_v38 = vmul.f32 0.01, %v7615_v26 }
 0x57d   : > { %v7458_v62 = vpop.f32.mrf.mxu1 }
 0x57e   : > { %v7536_v12 = vadd.f32 %v7458_v62, %v13438_v11  ;;  %v7687_v1 = vmax.f32 %v7615_v26, %v7651_v38  ;;  %v7802_v11 = vpop.permute.xlu2 %7801  ;;  %v14149_v26 = vld [vmem:[#allocation10_spill] sm:$0xff]  ;;  %v13596_v62 = vpop.f32.mrf.mxu3  ;;  %v6478_v38 = vadd.f32 %v13547_v43, %v13311_v48 }
 0x580   : > { %v7576_v28 = vmul.f32 %v13520_v39, %v7536_v12  ;;  %7497 = vmatmul.bf16.gmra.mxu1 %v14148_v10  ;;  %v7946_v51 = vmul.f32 %v7797_v35, %v7687_v1  ;;  %v13603_v1 = vpop.f32.mrf.mxu2  ;;  %v7807_v35 = vpop.permute.xlu0 %7806 }
 0x582   : > { %v7616_v25 = vadd.f32 %v13526_v3, %v7576_v28  ;;  %v13601_v28 = vpop.f32.mrf.mxu0 }
 0x584   : > { %v7652_v41 = vmul.f32 0.01, %v7616_v25 }
 0x585   : > { %v7460_v49 = vpop.f32.mrf.mxu1 }
 0x586   : > { %v7688_v23 = vmax.f32 %v7616_v25, %v7652_v41  ;;  %v7537_v57 = vadd.f32 %v7460_v49, %v13451_v53  ;;  %v13608_v43 = vpop.f32.mrf.mxu3 }
 0x588   : > { %v7947_v13 = vmul.f32 %v7802_v11, %v7688_v23  ;;  %v7577_v54 = vmul.f32 %v13520_v39, %v7537_v57  ;;  %v7812_v23 = vpop.permute.xlu1 %7811  ;;  %v6974_v57 = vadd.f32 %v13551_v24, %v6478_v38  ;;  %v13617_v24 = vpop.f32.mrf.mxu2 }
 0x58a   : > { %v9914_v29 = vpack.c.bf16 %v7947_v13, %v7946_v51  ;;  %v7617_v4 = vadd.f32 %v13526_v3, %v7577_v54  ;;  %v6479_v54 = vadd.f32 %v13557_v52, %v13318_v55  ;;  %v6480_v52 = vadd.f32 %v13568_v6, %v13332_v59 }
 0x58c   : > { %10212 = vst [vmem:[%s11004_s17 + $0x28] sm:$0xff] %v9914_v29   ;;  %v7653_v46 = vmul.f32 0.01, %v7617_v4 }
 0x58d   : > { %v7463_v21 = vpop.f32.mrf.mxu1 }
 0x58e   : > { %v7538_v50 = vadd.f32 %v7463_v21, %v13458_v34  ;;  %v7689_v10 = vmax.f32 %v7617_v4, %v7653_v46  ;;  %v7233_v4 = vadd.f32 %v13553_v16, %v6974_v57  ;;  %v13615_v21 = vpop.f32.mrf.mxu0  ;;  %v6975_v46 = vadd.f32 %v13563_v45, %v6479_v54 }
 0x590   : > { %v7578_v53 = vmul.f32 %v13520_v39, %v7538_v50  ;;  %7502 = vmatmul.bf16.gmra.mxu1 %v14149_v26  ;;  %v7948_v11 = vmul.f32 %v7807_v35, %v7689_v10  ;;  %v7234_v10 = vadd.f32 %v13565_v37, %v6975_v46  ;;  %v7817_v35 = vpop.permute.xlu2 %7816  ;;  %v13632_v6 = vpop.f32.mrf.mxu2  ;;  %v6481_v37 = vadd.f32 %v13580_v20, %v13338_v61 }
 0x592   : > { %v7618_v12 = vadd.f32 %v13526_v3, %v7578_v53 }
 0x594   : > { %v7654_v25 = vmul.f32 0.01, %v7618_v12 }
 0x595   : > { %v7465_v34 = vpop.f32.mrf.mxu1 }
 0x596   : > { %v7690_v41 = vmax.f32 %v7618_v12, %v7654_v25  ;;  %v7539_v49 = vadd.f32 %v7465_v34, %v13471_v7  ;;  %v14150_v12 = vld [vmem:[#allocation46_spill] sm:$0xff]  ;;  %v13626_v25 = vpop.f32.mrf.mxu3  ;;  %v13629_v57 = vpop.f32.mrf.mxu0 }
 0x598   : > { %v7949_v51 = vmul.f32 %v7812_v23, %v7690_v41  ;;  %v7579_v13 = vmul.f32 %v13520_v39, %v7539_v49  ;;  %v7822_v49 = vpop.permute.xlu0 %7821  ;;  %v6976_v23 = vadd.f32 %v13573_v40, %v6480_v52  ;;  %v13647_v20 = vpop.f32.mrf.mxu2 }
 0x59a   : > { %v9919_v48 = vpack.c.bf16 %v7949_v51, %v7948_v11  ;;  %v7619_v29 = vadd.f32 %v13526_v3, %v7579_v13  ;;  %v7235_v54 = vadd.f32 %v13576_v30, %v6976_v23  ;;  %v6482_v30 = vadd.f32 %v13589_v36, %v13350_v60 }
 0x59b   : > { %v6483_v60 = vadd.f32 %v13603_v1, %v13356_v2  ;;  %v14152_v2 = vld [vmem:[#allocation48_spill] sm:$0xff] }
 0x59c   : > { %10213 = vst [vmem:[%s11004_s17 + $0x30] sm:$0xff] %v9919_v48   ;;  %v7655_v53 = vmul.f32 0.01, %v7619_v29 }
 0x59d   : > { %v7468_v7 = vpop.f32.mrf.mxu1 }
 0x59e   : > { %v7540_v50 = vadd.f32 %v7468_v7, %v7233_v4  ;;  %v7691_v38 = vmax.f32 %v7619_v29, %v7655_v53  ;;  %v13639_v40 = vpop.f32.mrf.mxu3  ;;  %v6977_v7 = vadd.f32 %v13584_v44, %v6481_v37  ;;  %v14151_v53 = vld [vmem:[#allocation47_spill] sm:$0xff] }
 0x5a0   : > { %v7580_v26 = vmul.f32 %v13520_v39, %v7540_v50  ;;  %7507 = vmatmul.bf16.gmra.mxu1 %v14150_v12  ;;  %v7950_v11 = vmul.f32 %v7817_v35, %v7691_v38  ;;  %v7236_v52 = vadd.f32 %v13587_v42, %v6977_v7 }
 0x5a2   : > { %v7620_v55 = vadd.f32 %v13526_v3, %v7580_v26  ;;  %v13644_v26 = vpop.f32.mrf.mxu0 }
 0x5a4   : > { %v7656_v16 = vmul.f32 0.01, %v7620_v55 }
 0x5a5   : > { %v7470_v34 = vpop.f32.mrf.mxu1 }
 0x5a6   : > { %v7692_v41 = vmax.f32 %v7620_v55, %v7656_v16  ;;  %v7541_v45 = vadd.f32 %v7470_v34, %v7234_v10  ;;  %v7827_v10 = vpop.permute.xlu1 %7826  ;;  %v7832_v34 = vpop.permute.xlu2 %7831 }
 0x5a7   : > { %v13654_v23 = vpop.f32.mrf.mxu3 }
 0x5a8   : > { %v7951_v51 = vmul.f32 %v7822_v49, %v7692_v41  ;;  %v7581_v59 = vmul.f32 %v13520_v39, %v7541_v45  ;;  %v6978_v41 = vadd.f32 %v13596_v62, %v6482_v30 }
 0x5aa   : > { %v9924_v13 = vpack.c.bf16 %v7951_v51, %v7950_v11  ;;  %v7621_v48 = vadd.f32 %v13526_v3, %v7581_v59  ;;  %v13658_v36 = vpop.f32.mrf.mxu0  ;;  %v7237_v51 = vadd.f32 %v13601_v28, %v6978_v41  ;;  %v7257_v59 = vld [vmem:[#allocation2 + $0xa4] sm:$0x3]  ;;  %v6484_v28 = vadd.f32 %v13617_v24, %v13369_v19 }
 0x5ab   : > { %v7276_v37 = vunpack.c.l.b16 %v7257_v59 }
 0x5ac   : > { %10214 = vst [vmem:[%s11004_s17 + $0x38] sm:$0xff] %v9924_v13   ;;  %v7657_v50 = vmul.f32 0.01, %v7621_v48  ;;  %v13663_v13 = vpop.f32.mrf.mxu2 }
 0x5ad   : > { %v7473_v29 = vpop.f32.mrf.mxu1 }
 0x5ae   : > { %v7542_v4 = vadd.f32 %v7473_v29, %v7235_v54  ;;  %v7693_v12 = vmax.f32 %v7621_v48, %v7657_v50  ;;  %v7277_v54 = vpack.c.b16 %v7276_v37, %v7276_v37  ;;  %v6979_v29 = vadd.f32 %v13608_v43, %v6483_v60 }
 0x5b0   : > { %v7582_v46 = vmul.f32 %v13520_v39, %v7542_v4  ;;  %7512 = vmatmul.bf16.gmra.mxu1 %v14151_v53  ;;  %v7952_v45 = vmul.f32 %v7827_v10, %v7693_v12  ;;  %v7355_v1 = vshrl.u32 %v7277_v54, 16  ;;  %v7358_v50 = vshll.u32 %v7277_v54, 16  ;;  %v6924_v53 = vpop.f32.mrf.mxu3 }
 0x5b1   : > { %v7238_v12 = vadd.f32 %v13615_v21, %v6979_v29  ;;  %v6485_v21 = vadd.f32 %v13632_v6, %v13376_v58  ;;  %v6486_v6 = vadd.f32 %v13647_v20, %v13389_v47  ;;  %v6487_v20 = vadd.f32 %v13663_v13, %v13396_v18 }
 0x5b2   : > { %v7622_v61 = vadd.f32 %v13526_v3, %v7582_v46  ;;  %v7357_v43 = vrot.slane %v7355_v1, 1 }
 0x5b4   : > { %v7658_v55 = vmul.f32 0.01, %v7622_v61  ;;  %v6431_v41 = vpop.f32.mrf.mxu2 }
 0x5b5   : > { %v7475_v44 = vpop.f32.mrf.mxu1 }
 0x5b6   : > { %v7694_v38 = vmax.f32 %v7622_v61, %v7658_v55  ;;  %v7543_v16 = vadd.f32 %v7475_v44, %v7236_v52  ;;  %v7360_v52 = vrot.slane %v7358_v50, 2  ;;  %v7837_v44 = vpop.permute.xlu0 %7836 }
 0x5b8   : > { %v7953_v49 = vmul.f32 %v7832_v34, %v7694_v38  ;;  %v7583_v35 = vmul.f32 %v13520_v39, %v7543_v16  ;;  %v7183_v38 = vpop.f32.mrf.mxu0  ;;  %v7842_v34 = vpop.permute.xlu1 %7841  ;;  %v7361_v24 = vor.u32 %v7360_v52, %v7357_v43 }
 0x5ba   : > { %v9929_v11 = vpack.c.bf16 %v7953_v49, %v7952_v45  ;;  %v7623_v42 = vadd.f32 %v13526_v3, %v7583_v35  ;;  %v6980_v45 = vadd.f32 %v13626_v25, %v6484_v28 }
 0x5bc   : > { %10215 = vst [vmem:[%s11004_s17 + $0x40] sm:$0xff] %v9929_v11   ;;  %v7659_v4 = vmul.f32 0.01, %v7623_v42 }
 0x5bd   : > { %v7478_v62 = vpop.f32.mrf.mxu1 }
 0x5be   : > { %v7544_v48 = vadd.f32 %v7478_v62, %v7237_v51  ;;  %v7695_v61 = vmax.f32 %v7623_v42, %v7659_v4  ;;  %v7239_v42 = vadd.f32 %v13629_v57, %v6980_v45  ;;  %v6927_v51 = vpop.f32.mrf.mxu3  ;;  %v14153_v62 = vld [vmem:[#allocation45_spill] sm:$0xff] }
 0x5bf   : > { %v7362_v37 = vsel %vm3414_vm4, %v14153_v62, %v7361_v24 }
 0x5c0   : > { %v7584_v7 = vmul.f32 %v13520_v39, %v7544_v48  ;;  %7517 = vmatmul.bf16.gmra.mxu1 %v14152_v2  ;;  %v7954_v49 = vmul.f32 %v7837_v44, %v7695_v61  ;;  %v6981_v48 = vadd.f32 %v13639_v40, %v6485_v21  ;;  %v7186_v54 = vpop.f32.mrf.mxu0  ;;  %v7847_v61 = vpop.permute.xlu2 %7846 }
 0x5c2   : > { %v7624_v46 = vadd.f32 %v13526_v3, %v7584_v7  ;;  %v6433_v7 = vpop.f32.mrf.mxu2  ;;  %v7240_v1 = vadd.f32 %v13644_v26, %v6981_v48 }
 0x5c4   : > { %v7660_v30 = vmul.f32 0.01, %v7624_v46 }
 0x5c5   : > { %v7480_v55 = vpop.f32.mrf.mxu1 }
 0x5c6   : > { %v7696_v16 = vmax.f32 %v7624_v46, %v7660_v30  ;;  %v7545_v10 = vadd.f32 %v7480_v55, %v7238_v12  ;;  %v7852_v46 = vpop.permute.xlu0 %7851  ;;  %v6929_v30 = vpop.f32.mrf.mxu3  ;;  %v6982_v12 = vadd.f32 %v13654_v23, %v6486_v6 }
 0x5c8   : > { %v7955_v35 = vmul.f32 %v7842_v34, %v7696_v16  ;;  %v7585_v19 = vmul.f32 %v13520_v39, %v7545_v10  ;;  %v7188_v44 = vpop.f32.mrf.mxu0  ;;  %v7241_v10 = vadd.f32 %v13658_v36, %v6982_v12 }
 0x5ca   : > { %v9934_v11 = vpack.c.bf16 %v7955_v35, %v7954_v49  ;;  %v7625_v60 = vadd.f32 %v13526_v3, %v7585_v19  ;;  %v6436_v47 = vpop.f32.mrf.mxu2  ;;  %v6983_v49 = vadd.f32 %v6924_v53, %v6487_v20 }
 0x5cc   : > { %10216 = vst [vmem:[%s11004_s17 + $0x48] sm:$0xff] %v9934_v11   ;;  %v7661_v29 = vmul.f32 0.01, %v7625_v60  ;;  %v6488_v11 = vadd.f32 %v6431_v41, %v13409_v0  ;;  %v7242_v13 = vadd.f32 %v7183_v38, %v6983_v49  ;;  %v6489_v0 = vadd.f32 %v6433_v7, %v13416_v17 }
 0x5cd   : > { %v7483_v59 = vpop.f32.mrf.mxu1 }
 0x5ce   : > { %v7546_v25 = vadd.f32 %v7483_v59, %v7239_v42  ;;  %v7697_v57 = vmax.f32 %v7625_v60, %v7661_v29  ;;  %v6932_v19 = vpop.f32.mrf.mxu3  ;;  %v6984_v53 = vadd.f32 %v6927_v51, %v6488_v11 }
 0x5d0   : > { %v7586_v4 = vmul.f32 %v13520_v39, %v7546_v25  ;;  %7522 = vmatmul.bf16.gmra.mxu1 %v7362_v37  ;;  %v7956_v55 = vmul.f32 %v7847_v61, %v7697_v57  ;;  %v7191_v21 = vpop.f32.mrf.mxu0  ;;  %v7857_v37 = vpop.permute.xlu1 %7856  ;;  %v7243_v57 = vadd.f32 %v7186_v54, %v6984_v53  ;;  %v6490_v61 = vadd.f32 %v6436_v47, %v13429_v9 }
 0x5d1   : > { %v7862_v25 = vpop.permute.xlu2 %7861 }
 0x5d2   : > { %v7626_v58 = vadd.f32 %v13526_v3, %v7586_v4  ;;  %v6438_v42 = vpop.f32.mrf.mxu2 }
 0x5d3   : > { %v6491_v9 = vadd.f32 %v6438_v42, %v13436_v63 }
 0x5d4   : > { %v7662_v2 = vmul.f32 0.01, %v7626_v58 }
 0x5d5   : > { %v7485_v50 = vpop.f32.mrf.mxu1 }
 0x5d6   : > { %v7698_v28 = vmax.f32 %v7626_v58, %v7662_v2  ;;  %v7547_v40 = vadd.f32 %v7485_v50, %v7240_v1  ;;  %v6934_v6 = vpop.f32.mrf.mxu3 }
 0x5d8   : > { %v7957_v43 = vmul.f32 %v7852_v46, %v7698_v28  ;;  %v7587_v52 = vmul.f32 %v13520_v39, %v7547_v40  ;;  %v7193_v2 = vpop.f32.mrf.mxu0  ;;  %v6985_v46 = vadd.f32 %v6929_v30, %v6489_v0  ;;  %v7872_v20 = vpop.permute.xlu1 %7871 }
 0x5da   : > { %v9939_v16 = vpack.c.bf16 %v7957_v43, %v7956_v55  ;;  %v7627_v26 = vadd.f32 %v13526_v3, %v7587_v52  ;;  %v6441_v50 = vpop.f32.mrf.mxu2  ;;  %v7244_v17 = vadd.f32 %v7188_v44, %v6985_v46 }
 0x5dc   : > { %10217 = vst [vmem:[%s11004_s17 + $0x50] sm:$0xff] %v9939_v16   ;;  %v7663_v35 = vmul.f32 0.01, %v7627_v26  ;;  %v7867_v16 = vpop.permute.xlu0 %7866 }
 0x5dd   : > { %v7488_v34 = vpop.f32.mrf.mxu1 }
 0x5de   : > { %v7548_v45 = vadd.f32 %v7488_v34, %v7241_v10  ;;  %v7699_v60 = vmax.f32 %v7627_v26, %v7663_v35  ;;  %v6937_v7 = vpop.f32.mrf.mxu3  ;;  %v6986_v26 = vadd.f32 %v6932_v19, %v6490_v61 }
 0x5e0   : > { %v7588_v23 = vmul.f32 %v13520_v39, %v7548_v45  ;;  %v7958_v48 = vmul.f32 %v7857_v37, %v7699_v60  ;;  %v7196_v10 = vpop.f32.mrf.mxu0  ;;  %v7245_v44 = vadd.f32 %v7191_v21, %v6986_v26  ;;  %v6987_v60 = vadd.f32 %v6934_v6, %v6491_v9 }
 0x5e2   : > { %v7628_v24 = vadd.f32 %v13526_v3, %v7588_v23  ;;  %v6443_v49 = vpop.f32.mrf.mxu2  ;;  %v7246_v42 = vadd.f32 %v7193_v2, %v6987_v60 }
 0x5e4   : > { %v7664_v18 = vmul.f32 0.01, %v7628_v24 }
 0x5e5   : > { %v7490_v59 = vpop.f32.mrf.mxu1 }
 0x5e6   : > { %v7700_v62 = vmax.f32 %v7628_v24, %v7664_v18  ;;  %v7549_v36 = vadd.f32 %v7490_v59, %v7242_v13  ;;  %v6939_v11 = vpop.f32.mrf.mxu3 }
 0x5e8   : > { %v7959_v29 = vmul.f32 %v7862_v25, %v7700_v62  ;;  %v7589_v4 = vmul.f32 %v13520_v39, %v7549_v36  ;;  %v7198_v13 = vpop.f32.mrf.mxu0  ;;  %v6492_v36 = vadd.f32 %v6441_v50, %v13449_v5 }
 0x5ea   : > { %v9944_v58 = vpack.c.bf16 %v7959_v29, %v7958_v48  ;;  %v7629_v41 = vadd.f32 %v13526_v3, %v7589_v4  ;;  %v6446_v62 = vpop.f32.mrf.mxu2  ;;  %v7882_v48 = vpop.permute.xlu0 %7881  ;;  %v6988_v4 = vadd.f32 %v6937_v7, %v6492_v36 }
 0x5eb   : > { %v7877_v29 = vpop.permute.xlu2 %7876 }
 0x5ec   : > { %10218 = vst [vmem:[%s11004_s17 + $0x58] sm:$0xff] %v9944_v58   ;;  %v7665_v28 = vmul.f32 0.01, %v7629_v41  ;;  %v7247_v50 = vadd.f32 %v7196_v10, %v6988_v4 }
 0x5ed   : > { %v7493_v38 = vpop.f32.mrf.mxu1 }
 0x5ee   : > { %v7550_v1 = vadd.f32 %v7493_v38, %v7243_v57  ;;  %v7701_v12 = vmax.f32 %v7629_v41, %v7665_v28  ;;  %v6942_v41 = vpop.f32.mrf.mxu3  ;;  %v6493_v38 = vadd.f32 %v6443_v49, %v13456_v22 }
 0x5f0   : > { %v7590_v51 = vmul.f32 %v13520_v39, %v7550_v1  ;;  %v7960_v30 = vmul.f32 %v7867_v16, %v7701_v12  ;;  %v7201_v1 = vpop.f32.mrf.mxu0 }
 0x5f2   : > { %v7630_v40 = vadd.f32 %v13526_v3, %v7590_v51  ;;  %v6448_v2 = vpop.f32.mrf.mxu2  ;;  %v6989_v51 = vadd.f32 %v6939_v11, %v6493_v38 }
 0x5f3   : > { %v7892_v10 = vpop.permute.xlu2 %7891 }
 0x5f4   : > { %v7666_v55 = vmul.f32 0.01, %v7630_v40 }
 0x5f5   : > { %v7495_v43 = vpop.f32.mrf.mxu1 }
 0x5f6   : > { %v7702_v52 = vmax.f32 %v7630_v40, %v7666_v55  ;;  %v7551_v54 = vadd.f32 %v7495_v43, %v7244_v17  ;;  %v6944_v55 = vpop.f32.mrf.mxu3  ;;  %v6494_v17 = vadd.f32 %v6446_v62, %v13469_v31  ;;  %v7248_v43 = vadd.f32 %v7198_v13, %v6989_v51 }
 0x5f8   : > { %v7961_v34 = vmul.f32 %v7872_v20, %v7702_v52  ;;  %v7591_v45 = vmul.f32 %v13520_v39, %v7551_v54  ;;  %v7887_v54 = vpop.permute.xlu1 %7886  ;;  %v7203_v16 = vpop.f32.mrf.mxu0 }
 0x5fa   : > { %v9949_v35 = vpack.c.bf16 %v7961_v34, %v7960_v30  ;;  %v7631_v47 = vadd.f32 %v13526_v3, %v7591_v45  ;;  %v6451_v30 = vpop.f32.mrf.mxu2  ;;  %v6990_v34 = vadd.f32 %v6942_v41, %v6494_v17 }
 0x5fb   : > { %v6496_v36 = vadd.f32 %v6451_v30, %v13485_v32 }
 0x5fc   : > { %10219 = vst [vmem:[%s11004_s17 + $0x60] sm:$0xff] %v9949_v35   ;;  %v7667_v18 = vmul.f32 0.01, %v7631_v47 }
 0x5fd   : > { %v7498_v23 = vpop.f32.mrf.mxu1 }
 0x5fe   : > { %v7552_v24 = vadd.f32 %v7498_v23, %v7245_v44  ;;  %v7703_v37 = vmax.f32 %v7631_v47, %v7667_v18  ;;  %v6495_v47 = vadd.f32 %v6448_v2, %v13475_v27  ;;  %v7249_v44 = vadd.f32 %v7201_v1, %v6990_v34  ;;  %v6947_v23 = vpop.f32.mrf.mxu3 }
 0x5ff   : > { %v6992_v4 = vadd.f32 %v6947_v23, %v6496_v36 }
 0x600   : > { %v7592_v19 = vmul.f32 %v13520_v39, %v7552_v24  ;;  %v7962_v58 = vmul.f32 %v7877_v29, %v7703_v37  ;;  %v6991_v60 = vadd.f32 %v6944_v55, %v6495_v47  ;;  %v7206_v18 = vpop.f32.mrf.mxu0 }
 0x602   : > { %v7632_v59 = vadd.f32 %v13526_v3, %v7592_v19  ;;  %v7250_v27 = vadd.f32 %v7203_v16, %v6991_v60 }
 0x604   : > { %v7668_v63 = vmul.f32 0.01, %v7632_v59 }
 0x605   : > { %v7500_v25 = vpop.f32.mrf.mxu1 }
 0x606   : > { %v7704_v53 = vmax.f32 %v7632_v59, %v7668_v63  ;;  %v7553_v21 = vadd.f32 %v7500_v25, %v7246_v42  ;;  %v6453_v59 = vpop.f32.mrf.mxu2  ;;  %v7897_v25 = vpop.permute.xlu0 %7896 }
 0x607   : > { %v6949_v29 = vpop.f32.mrf.mxu3  ;;  %v6497_v32 = vadd.f32 %v6453_v59, %v13489_v14 }
 0x608   : > { %v7963_v6 = vmul.f32 %v7882_v48, %v7704_v53  ;;  %v7593_v0 = vmul.f32 %v13520_v39, %v7553_v21  ;;  %v7902_v48 = vpop.permute.xlu1 %7901  ;;  %v7208_v41 = vpop.f32.mrf.mxu0 }
 0x60a   : > { %v9954_v57 = vpack.c.bf16 %v7963_v6, %v7962_v58  ;;  %v7633_v5 = vadd.f32 %v13526_v3, %v7593_v0 }
 0x60c   : > { %10220 = vst [vmem:[%s11004_s17 + $0x68] sm:$0xff] %v9954_v57   ;;  %v7669_v40 = vmul.f32 0.01, %v7633_v5 }
 0x60d   : > { %v7503_v46 = vpop.f32.mrf.mxu1 }
 0x60e   : > { %v7554_v28 = vadd.f32 %v7503_v46, %v7247_v50  ;;  %v7705_v7 = vmax.f32 %v7633_v5, %v7669_v40  ;;  %v6456_v38 = vpop.f32.mrf.mxu2  ;;  %v7251_v5 = vadd.f32 %v7206_v18, %v6992_v4  ;;  %v6993_v46 = vadd.f32 %v6949_v29, %v6497_v32  ;;  %v7912_v16 = vpop.permute.xlu0 %7911 }
 0x60f   : > { %v6952_v40 = vpop.f32.mrf.mxu3  ;;  %v6498_v55 = vadd.f32 %v6456_v38, %v13499_v33 }
 0x610   : > { %v7594_v61 = vmul.f32 %v13520_v39, %v7554_v28  ;;  %v7964_v45 = vmul.f32 %v7887_v54, %v7705_v7  ;;  %v7252_v14 = vadd.f32 %v7208_v41, %v6993_v46 }
 0x612   : > { %v7634_v12 = vadd.f32 %v13526_v3, %v7594_v61 }
 0x614   : > { %v7670_v22 = vmul.f32 0.01, %v7634_v12 }
 0x615   : > { %v7505_v52 = vpop.f32.mrf.mxu1 }
 0x616   : > { %v7706_v20 = vmax.f32 %v7634_v12, %v7670_v22  ;;  %v7555_v26 = vadd.f32 %v7505_v52, %v7248_v43  ;;  %v7211_v12 = vpop.f32.mrf.mxu0  ;;  %v6458_v22 = vpop.f32.mrf.mxu2 }
 0x618   : > { %v7965_v49 = vmul.f32 %v7892_v10, %v7706_v20  ;;  %v7595_v35 = vmul.f32 %v13520_v39, %v7555_v26  ;;  %v7907_v20 = vpop.permute.xlu2 %7906  ;;  %v6994_v26 = vadd.f32 %v6952_v40, %v6498_v55 }
 0x61a   : > { %v9959_v9 = vpack.c.bf16 %v7965_v49, %v7964_v45  ;;  %v7635_v31 = vadd.f32 %v13526_v3, %v7595_v35  ;;  %v6954_v49 = vpop.f32.mrf.mxu3  ;;  %v6499_v35 = vadd.f32 %v6458_v22, %v13505_v8 }
 0x61c   : > { %10221 = vst [vmem:[%s11004_s17 + $0x70] sm:$0xff] %v9959_v9   ;;  %v7671_v19 = vmul.f32 0.01, %v7635_v31  ;;  %v7253_v9 = vadd.f32 %v7211_v12, %v6994_v26  ;;  %v7927_v12 = vpop.permute.xlu0 %7926 }
 0x61d   : > { %v7508_v24 = vpop.f32.mrf.mxu1 }
 0x61e   : > { %v7556_v11 = vadd.f32 %v7508_v24, %v7249_v44  ;;  %v7707_v37 = vmax.f32 %v7635_v31, %v7671_v19  ;;  %v7213_v44 = vpop.f32.mrf.mxu0  ;;  %v6461_v23 = vpop.f32.mrf.mxu2  ;;  %v6995_v24 = vadd.f32 %v6954_v49, %v6499_v35 }
 0x620   : > { %v7596_v13 = vmul.f32 %v13520_v39, %v7556_v11  ;;  %v7966_v58 = vmul.f32 %v7897_v25, %v7707_v37  ;;  %v7254_v8 = vadd.f32 %v7213_v44, %v6995_v24  ;;  %v7917_v37 = vpop.permute.xlu1 %7916 }
 0x622   : > { %v7636_v62 = vadd.f32 %v13526_v3, %v7596_v13  ;;  %v6957_v19 = vpop.f32.mrf.mxu3  ;;  %v6500_v13 = vadd.f32 %v6461_v23, %v13511_v15 }
 0x624   : > { %v7672_v63 = vmul.f32 0.01, %v7636_v62 }
 0x625   : > { %v7510_v42 = vpop.f32.mrf.mxu1 }
 0x626   : > { %v7708_v53 = vmax.f32 %v7636_v62, %v7672_v63  ;;  %v7557_v21 = vadd.f32 %v7510_v42, %v7250_v27  ;;  %v7922_v42 = vpop.permute.xlu2 %7921  ;;  %v7216_v25 = vpop.f32.mrf.mxu0 }
 0x627   : > { %v6463_v4 = vpop.f32.mrf.mxu2 }
 0x628   : > { %v7967_v6 = vmul.f32 %v7902_v48, %v7708_v53  ;;  %v7597_v0 = vmul.f32 %v13520_v39, %v7557_v21  ;;  %v6996_v53 = vadd.f32 %v6957_v19, %v6500_v13  ;;  %v6501_v15 = vadd.f32 %v6463_v4, %v13515_v56  ;;  %v7932_v55 = vpop.permute.xlu1 %7931 }
 0x62a   : > { %v9964_v57 = vpack.c.bf16 %v7967_v6, %v7966_v58  ;;  %v7637_v1 = vadd.f32 %v13526_v3, %v7597_v0  ;;  %v7255_v6 = vadd.f32 %v7216_v25, %v6996_v53  ;;  %v6959_v41 = vpop.f32.mrf.mxu3 }
 0x62b   : > { %v6997_v32 = vadd.f32 %v6959_v41, %v6501_v15 }
 0x62c   : > { %10222 = vst [vmem:[%s11004_s17 + $0x78] sm:$0xff] %v9964_v57   ;;  %v7673_v28 = vmul.f32 0.01, %v7637_v1 }
 0x62d   : > { %v7513_v50 = vpop.f32.mrf.mxu1 }
 0x62e   : > { %v7558_v2 = vadd.f32 %v7513_v50, %v7251_v5  ;;  %v7709_v17 = vmax.f32 %v7637_v1, %v7673_v28  ;;  %v7218_v50 = vpop.f32.mrf.mxu0 }
 0x62f   : > { %v7256_v46 = vadd.f32 %v7218_v50, %v6997_v32 }
 0x630   : > { %v7598_v51 = vmul.f32 %v13520_v39, %v7558_v2  ;;  %v7968_v10 = vmul.f32 %v7907_v20, %v7709_v17 }
 0x632   : > { %v7638_v61 = vadd.f32 %v13526_v3, %v7598_v51 }
 0x634   : > { %v7674_v7 = vmul.f32 0.01, %v7638_v61 }
 0x635   : > { %v7515_v43 = vpop.f32.mrf.mxu1 }
 0x636   : > { %v7710_v52 = vmax.f32 %v7638_v61, %v7674_v7  ;;  %v7559_v54 = vadd.f32 %v7515_v43, %v7252_v14 }
 0x638   : > { %v7969_v30 = vmul.f32 %v7912_v16, %v7710_v52  ;;  %v7599_v34 = vmul.f32 %v13520_v39, %v7559_v54  ;;  %v7937_v16 = vpop.permute.xlu2 %7936 }
 0x63a   : > { %v9969_v45 = vpack.c.bf16 %v7969_v30, %v7968_v10  ;;  %v7639_v33 = vadd.f32 %v13526_v3, %v7599_v34 }
 0x63c   : > { %10223 = vst [vmem:[%s11004_s17 + $0x80] sm:$0xff] %v9969_v45   ;;  %v7675_v11 = vmul.f32 0.01, %v7639_v33 }
 0x63d   : > { %v7518_v47 = vpop.f32.mrf.mxu1 }
 0x63e   : > { %v7560_v31 = vadd.f32 %v7518_v47, %v7253_v9  ;;  %v7711_v59 = vmax.f32 %v7639_v33, %v7675_v11 }
 0x640   : > { %v7600_v60 = vmul.f32 %v13520_v39, %v7560_v31  ;;  %v7970_v21 = vmul.f32 %v7917_v37, %v7711_v59 }
 0x642   : > { %v7640_v18 = vadd.f32 %v13526_v3, %v7600_v60 }
 0x644   : > { %v7676_v62 = vmul.f32 0.01, %v7640_v18 }
 0x645   : > { %v7520_v36 = vpop.f32.mrf.mxu1 }
 0x646   : > { %v7712_v63 = vmax.f32 %v7640_v18, %v7676_v62  ;;  %v7561_v27 = vadd.f32 %v7520_v36, %v7254_v8 }
 0x648   : > { %v7971_v48 = vmul.f32 %v7922_v42, %v7712_v63  ;;  %v7601_v29 = vmul.f32 %v13520_v39, %v7561_v27 }
 0x64a   : > { %v9974_v58 = vpack.c.bf16 %v7971_v48, %v7970_v21  ;;  %v7641_v0 = vadd.f32 %v13526_v3, %v7601_v29 }
 0x64c   : > { %10224 = vst [vmem:[%s11004_s17 + $0x88] sm:$0xff] %v9974_v58   ;;  %v7677_v1 = vmul.f32 0.01, %v7641_v0 }
 0x64d   : > { %v7523_v57 = vpop.f32.mrf.mxu1 }
 0x64e   : > { %v7562_v38 = vadd.f32 %v7523_v57, %v7255_v6  ;;  %v7713_v28 = vmax.f32 %v7641_v0, %v7677_v1 }
 0x650   : > { %v7602_v5 = vmul.f32 %v13520_v39, %v7562_v38  ;;  %v7972_v17 = vmul.f32 %v7927_v12, %v7713_v28 }
 0x652   : > { %v7642_v2 = vadd.f32 %v13526_v3, %v7602_v5 }
 0x654   : > { %v7678_v51 = vmul.f32 0.01, %v7642_v2 }
 0x655   : > { %v7525_v40 = vpop.f32.mrf.mxu1 }
 0x656   : > { %v7714_v56 = vmax.f32 %v7642_v2, %v7678_v51  ;;  %v7563_v61 = vadd.f32 %v7525_v40, %v7256_v46 }
 0x658   : > { %v7973_v7 = vmul.f32 %v7932_v55, %v7714_v56  ;;  %v7603_v14 = vmul.f32 %v13520_v39, %v7563_v61 }
 0x65a   : > { %v9979_v22 = vpack.c.bf16 %v7973_v7, %v7972_v17  ;;  %v7643_v43 = vadd.f32 %v13526_v3, %v7603_v14 }
 0x65c   : > { %10225 = vst [vmem:[%s11004_s17 + $0x90] sm:$0xff] %v9979_v22   ;;  %v7679_v52 = vmul.f32 0.01, %v7643_v43 }
 0x65e   : > { %v7715_v54 = vmax.f32 %v7643_v43, %v7679_v52 }
 0x660   : > { %v7974_v20 = vmul.f32 %v7937_v16, %v7715_v54 }
 0x662   : > { %v8010_v26 = vpack.c.bf16 %v7974_v20, %v7974_v20 }
 0x664   : > { %8046 = vst [vmem:[%s11004_s17 + $0x98] sm:$0xf] %v8010_v26 }
 0x665 PF: > { %s17_s24 = sadd.s32 1, %s10349_s24  }
 0x666   : > { %p14_p4 = scmp.ge.s32.totalorder %s17_s24, 4  }
 0x668   :  { %16 = sbr.rel (!%p14_p4) target bundleno = 1 (0x1), region = 94 }

</bundles_post_ra>
